<compile_context>
chip_gen: v7x
topology: tpu7x:2x2x1
jax: 0.10.0
libtpu: 0.0.40
codegen_flags: <defaults>
</compile_context>

<pallas_src>
import functools

import jax
import jax.numpy as jnp
from jax.experimental import pallas as pl
from jax.experimental.pallas import tpu as pltpu


# ----------------------------------------------------------------------------
# Fused forward kernel
# ----------------------------------------------------------------------------
def fused_forward_kernel(*refs, T, B, D, H, L):
    """Whole Model.forward in one kernel.

    Input refs (in order):
      x_ref                      : (T, B, D)   time-major input
      for each encoder layer l   : wih (Din, 8H), whh (2H, 8H), b (1, 8H)
      for each decoder layer l   : wih (Din, 8H), whh (2H, 8H), b (1, 8H)
      w_out (2H, D), b_out (1, D), w1 (2H, 2H), b1 (1, 2H), w2 (2H, 1), b2 (1, 1)
    Output refs:
      enc_last_ref (B, 2H), dec_lin_ref (T, B, D) [already time-flipped],
      outcome_ref (B, 1)
    Scratch:
      gx (T, B, 8H), buf_f (T, B, H), buf_b (T, B, H)

    Gate columns are interleaved per gate: [i_f i_b f_f f_b g_f g_b o_f o_b],
    each block H wide; the recurrent weight is block-diagonal over (fwd, bwd).
    """
    x_ref = refs[0]
    pos = 1
    enc_layers = []
    for _ in range(L):
        enc_layers.append(refs[pos:pos + 3]); pos += 3
    dec_layers = []
    for _ in range(L):
        dec_layers.append(refs[pos:pos + 3]); pos += 3
    w_out_ref, b_out_ref, w1_ref, b1_ref, w2_ref, b2_ref = refs[pos:pos + 6]
    pos += 6
    enc_last_ref, dec_lin_ref, outcome_ref = refs[pos:pos + 3]
    pos += 3
    gx, buf_f, buf_b = refs[pos:pos + 3]

    G = 8 * H
    # Lane mask selecting the forward-direction gate columns (hoisted, computed once).
    col = jax.lax.broadcasted_iota(jnp.int32, (B, G), 1)
    fwd_col = (col % (2 * H)) < H

    zero_row = jnp.zeros((B, D), jnp.float32)
    zero_state = jnp.zeros((B, 2 * H), jnp.float32)

    def run_layer(proj_t, whh_ref, h0, c0):
        whh = whh_ref[...]                       # (2H, 8H) block-diagonal
        # Phase 1: input projection for all T steps (independent of h -> off the
        # serial recurrent chain), written into the aligned (T, B, 8H) scratch.
        for t in range(T):
            gx[t] = proj_t(t)
        # Phase 2: merged fwd+bwd recurrence -- ONE recurrent MXU push and ONE
        # fused gate/cell update per step for both directions.
        h, c = h0, c0
        for t in range(T):
            s = T - 1 - t
            g = jnp.where(fwd_col, gx[t], gx[s]) + jnp.dot(
                h, whh, preferred_element_type=jnp.float32)          # (B, 8H)
            i_g = jax.nn.sigmoid(g[:, 0 * H:2 * H])
            f_g = jax.nn.sigmoid(g[:, 2 * H:4 * H])
            g_g = jnp.tanh(g[:, 4 * H:6 * H])
            o_g = jax.nn.sigmoid(g[:, 6 * H:8 * H])
            c = f_g * c + i_g * g_g
            h = o_g * jnp.tanh(c)
            buf_f[t] = h[:, 0:H]                 # fwd hidden at (original) time t
            buf_b[s] = h[:, H:2 * H]             # bwd hidden at (original) time s
        return h, c                              # = (hn, cn) for this layer, [fwd | bwd]

    def make_proj_from_x(wih_ref, b_ref, reverse_with_zero):
        wih = wih_ref[...]                       # (D, 8H)
        bias = b_ref[...]                        # (1, 8H)
        def proj(t):
            if reverse_with_zero:                # decoder new_input[t] = 0 if t==0 else x[T-t]
                xt = zero_row if t == 0 else x_ref[T - t]
            else:
                xt = x_ref[t]
            return jnp.dot(xt, wih, preferred_element_type=jnp.float32) + bias
        return proj

    def make_proj_from_prev(wih_ref, b_ref):
        wih = wih_ref[...]                       # (2H, 8H): rows 0:H act on fwd, H:2H on bwd
        wih_top = wih[0:H, :]
        wih_bot = wih[H:2 * H, :]
        bias = b_ref[...]
        def proj(t):
            return (jnp.dot(buf_f[t], wih_top, preferred_element_type=jnp.float32)
                    + jnp.dot(buf_b[t], wih_bot, preferred_element_type=jnp.float32)
                    + bias)
        return proj

    # -------------------- Encoder (zero initial states, in-kernel) --------------------
    enc_final = []
    for l in range(L):
        wih_ref, whh_ref, b_ref = enc_layers[l]
        proj = (make_proj_from_x(wih_ref, b_ref, reverse_with_zero=False) if l == 0
                else make_proj_from_prev(wih_ref, b_ref))
        h, c = run_layer(proj, whh_ref, zero_state, zero_state)
        enc_final.append((h, c))

    # encoded_x = flip(enc_out, time)[:, 0, :] == encoder output at t = T-1
    enc_last = jnp.concatenate([buf_f[T - 1], buf_b[T - 1]], axis=-1)   # (B, 2H)
    enc_last_ref[...] = enc_last

    # -------------------- Decoder (seeded with encoder final states) ------------------
    for l in range(L):
        wih_ref, whh_ref, b_ref = dec_layers[l]
        proj = (make_proj_from_x(wih_ref, b_ref, reverse_with_zero=True) if l == 0
                else make_proj_from_prev(wih_ref, b_ref))
        h0, c0 = enc_final[l]
        run_layer(proj, whh_ref, h0, c0)

    # ---------- Decoder output linear (output time-flip folded into the store) --------
    w_out = w_out_ref[...]                       # (2H, D)
    w_out_top = w_out[0:H, :]
    w_out_bot = w_out[H:2 * H, :]
    b_out = b_out_ref[...]                       # (1, D)
    for t in range(T):
        dec_lin_ref[T - 1 - t] = (
            jnp.dot(buf_f[t], w_out_top, preferred_element_type=jnp.float32)
            + jnp.dot(buf_b[t], w_out_bot, preferred_element_type=jnp.float32)
            + b_out)

    # -------------------- Predictor: linear -> softmax -> linear -> sigmoid -----------
    h1 = jnp.dot(enc_last, w1_ref[...], preferred_element_type=jnp.float32) + b1_ref[...]
    m = jnp.max(h1, axis=-1, keepdims=True)
    e = jnp.exp(h1 - m)
    sm = e / jnp.sum(e, axis=-1, keepdims=True)          # exact divide (no approx recip)
    z = jnp.dot(sm, w2_ref[...], preferred_element_type=jnp.float32) + b2_ref[...]
    outcome_ref[...] = jax.nn.sigmoid(z)


# ----------------------------------------------------------------------------
# JAX wrapper
# ----------------------------------------------------------------------------
def model_forward(x, params):
    B, T, D = x.shape
    H = params['hidden_dims']
    L = params['n_layers']

    x_tb = jnp.transpose(x, (1, 0, 2))                   # single layout change (T, B, D)

    inputs = [x_tb]
    for layer in params['enc_lstm']:
        inputs.extend(layer)
    for layer in params['dec_lstm']:
        inputs.extend(layer)
    inputs.extend([params['dec_w_out'], params['dec_b_out'],
                   params['p_w1'], params['p_b1'], params['p_w2'], params['p_b2']])

    kernel = functools.partial(fused_forward_kernel, T=T, B=B, D=D, H=H, L=L)
    enc_last, dec_lin_tb, outcome = pl.pallas_call(
        kernel,
        out_shape=(jax.ShapeDtypeStruct((B, 2 * H), jnp.float32),
                   jax.ShapeDtypeStruct((T, B, D), jnp.float32),
                   jax.ShapeDtypeStruct((B, 1), jnp.float32)),
        scratch_shapes=[pltpu.VMEM((T, B, 8 * H), jnp.float32),   # gate pre-activations
                        pltpu.VMEM((T, B, H), jnp.float32),       # fwd hidden per step
                        pltpu.VMEM((T, B, H), jnp.float32)],      # bwd hidden per step
    )(*inputs)

    decoded_x = jnp.transpose(dec_lin_tb, (1, 0, 2))     # (B, T, D)
    return enc_last, decoded_x, outcome.reshape(-1)


# ----------------------------------------------------------------------------
# Deterministic parameter construction (uniform(-0.1, 0.1) like init_weights)
# ----------------------------------------------------------------------------
def make_bilstm_params(key, input_dim, H, n_layers):
    """Per layer: (wih (Din,8H), whh (2H,8H) block-diag, b (1,8H)), gate columns
    interleaved per gate as [i_f i_b f_f f_b g_f g_b o_f o_b]."""
    layers = []
    zH = jnp.zeros((H, H), jnp.float32)
    for l in range(n_layers):
        in_dim = input_dim if l == 0 else 2 * H
        per_dir = []
        for _ in range(2):                                       # fwd, bwd
            key, k1, k2, k3, k4 = jax.random.split(key, 5)
            wih = jax.random.uniform(k1, (4 * H, in_dim), jnp.float32, -0.1, 0.1)
            whh = jax.random.uniform(k2, (4 * H, H), jnp.float32, -0.1, 0.1)
            bih = jax.random.uniform(k3, (4 * H,), jnp.float32, -0.1, 0.1)
            bhh = jax.random.uniform(k4, (4 * H,), jnp.float32, -0.1, 0.1)
            per_dir.append((wih, whh, bih + bhh))
        (wih_f, whh_f, b_f), (wih_b, whh_b, b_b) = per_dir

        wih_cols, whh_cols, b_cols = [], [], []
        for g in range(4):                                       # PyTorch gate order i,f,g,o
            sl = slice(g * H, (g + 1) * H)
            wih_cols += [wih_f[sl].T, wih_b[sl].T]                               # (in_dim, H)
            whh_cols += [jnp.concatenate([whh_f[sl].T, zH], axis=0),             # fwd rows active
                         jnp.concatenate([zH, whh_b[sl].T], axis=0)]             # bwd rows active
            b_cols += [b_f[sl], b_b[sl]]
        wih_comb = jnp.concatenate(wih_cols, axis=1)             # (in_dim, 8H)
        whh_comb = jnp.concatenate(whh_cols, axis=1)             # (2H, 8H) block-diagonal
        b_comb = jnp.concatenate(b_cols).reshape(1, 8 * H)       # (1, 8H) = b_ih + b_hh
        layers.append((wih_comb, whh_comb, b_comb))
    return key, layers


def make_params(key, input_dim, hidden_dims, n_layers):
    params = {'hidden_dims': hidden_dims, 'n_layers': n_layers}
    key, params['enc_lstm'] = make_bilstm_params(key, input_dim, hidden_dims, n_layers)
    key, params['dec_lstm'] = make_bilstm_params(key, input_dim, hidden_dims, n_layers)
    key, kd, kp1, kp2 = jax.random.split(key, 4)
    # decoder output linear: weight (input_dim, 2H), bias = 0
    w_dec = jax.random.uniform(kd, (input_dim, 2 * hidden_dims), jnp.float32, -0.1, 0.1)
    params['dec_w_out'] = w_dec.T                               # (2H, D)
    params['dec_b_out'] = jnp.zeros((1, input_dim), jnp.float32)
    # predictor
    w1 = jax.random.uniform(kp1, (2 * hidden_dims, 2 * hidden_dims), jnp.float32, -0.1, 0.1)
    w2 = jax.random.uniform(kp2, (1, 2 * hidden_dims), jnp.float32, -0.1, 0.1)
    params['p_w1'] = w1.T
    params['p_b1'] = jnp.zeros((1, 2 * hidden_dims), jnp.float32)
    params['p_w2'] = w2.T
    params['p_b2'] = jnp.zeros((1, 1), jnp.float32)
    return params


# ----------------------------------------------------------------------------
if __name__ == "__main__":
    B, T = 2, 8
    input_dim, hidden_dims, n_layers = 4, 8, 2   # dropout=0.0 (no-op between layers)
    # TODO(synk): nn.LSTM inter-layer dropout (train mode, dropout>0) not implemented.

    key = jax.random.PRNGKey(0)
    key, kx = jax.random.split(key)
    x = jax.random.normal(kx, (B, T, input_dim), jnp.float32)

    params = make_params(key, input_dim, hidden_dims, n_layers)

    fwd = jax.jit(functools.partial(model_forward, params=params))
    encoded_x, decoded_x, output_outcome = fwd(x)
    jax.block_until_ready((encoded_x, decoded_x, output_outcome))

    assert encoded_x.shape == (B, 2 * hidden_dims)
    assert decoded_x.shape == (B, T, input_dim)
    assert output_outcome.shape == (B,)
    print("KERNEL_OK")
</pallas_src>

<mosaic_0001>
module attributes {stable_mosaic.version = 11 : i64} {
  func.func @fused_forward_kernel(%arg0: memref<8x2x4xf32, #tpu.memory_space<vmem>>, %arg1: memref<4x64xf32, #tpu.memory_space<vmem>>, %arg2: memref<16x64xf32, #tpu.memory_space<vmem>>, %arg3: memref<1x64xf32, #tpu.memory_space<vmem>>, %arg4: memref<16x64xf32, #tpu.memory_space<vmem>>, %arg5: memref<16x64xf32, #tpu.memory_space<vmem>>, %arg6: memref<1x64xf32, #tpu.memory_space<vmem>>, %arg7: memref<4x64xf32, #tpu.memory_space<vmem>>, %arg8: memref<16x64xf32, #tpu.memory_space<vmem>>, %arg9: memref<1x64xf32, #tpu.memory_space<vmem>>, %arg10: memref<16x64xf32, #tpu.memory_space<vmem>>, %arg11: memref<16x64xf32, #tpu.memory_space<vmem>>, %arg12: memref<1x64xf32, #tpu.memory_space<vmem>>, %arg13: memref<16x4xf32, #tpu.memory_space<vmem>>, %arg14: memref<1x4xf32, #tpu.memory_space<vmem>>, %arg15: memref<16x16xf32, #tpu.memory_space<vmem>>, %arg16: memref<1x16xf32, #tpu.memory_space<vmem>>, %arg17: memref<16x1xf32, #tpu.memory_space<vmem>>, %arg18: memref<1x1xf32, #tpu.memory_space<vmem>>, %arg19: memref<2x16xf32, #tpu.memory_space<vmem>>, %arg20: memref<8x2x4xf32, #tpu.memory_space<vmem>>, %arg21: memref<2x1xf32, #tpu.memory_space<vmem>>, %arg22: memref<8x2x64xf32, #tpu.memory_space<vmem>>, %arg23: memref<8x2x8xf32, #tpu.memory_space<vmem>>, %arg24: memref<8x2x8xf32, #tpu.memory_space<vmem>>) attributes {dimension_semantics = [], scalar_prefetch = 0 : i64, scratch_operands = 3 : i64, tpu.core_type = #tpu.core_type<tc>} {
    %0 = tpu.iota {dimensions = array<i32: 1>} : vector<2x64xi32>
    %c16_i32 = arith.constant 16 : i32
    %c0_i32 = arith.constant 0 : i32
    %1 = arith.cmpi eq, %c16_i32, %c0_i32 : i32
    %c1_i32 = arith.constant 1 : i32
    %2 = arith.select %1, %c1_i32, %c16_i32 : i32
    %3 = vector.broadcast %2 : i32 to vector<2x64xi32>
    %4 = arith.remsi %0, %3 : vector<2x64xi32>
    %c0_i32_0 = arith.constant 0 : i32
    %5 = vector.broadcast %c0_i32_0 : i32 to vector<2x64xi32>
    %6 = arith.cmpi ne, %4, %5 : vector<2x64xi32>
    %c0_i32_1 = arith.constant 0 : i32
    %7 = vector.broadcast %c0_i32_1 : i32 to vector<2x64xi32>
    %8 = arith.cmpi slt, %4, %7 : vector<2x64xi32>
    %c0_i32_2 = arith.constant 0 : i32
    %9 = arith.cmpi slt, %2, %c0_i32_2 : i32
    %10 = vector.broadcast %9 : i1 to vector<2x64xi1>
    %11 = vector.broadcast %10 : vector<2x64xi1> to vector<2x64xi1>
    %12 = arith.xori %8, %11 : vector<2x64xi1>
    %13 = arith.andi %12, %6 : vector<2x64xi1>
    %14 = vector.broadcast %2 : i32 to vector<2x64xi32>
    %15 = arith.addi %4, %14 : vector<2x64xi32>
    %16 = arith.select %13, %15, %4 : vector<2x64xi1>, vector<2x64xi32>
    %c8_i32 = arith.constant 8 : i32
    %17 = vector.broadcast %c8_i32 : i32 to vector<2x64xi32>
    %18 = arith.cmpi slt, %16, %17 : vector<2x64xi32>
    %cst = arith.constant 0.000000e+00 : f32
    %19 = vector.broadcast %cst : f32 to vector<2x4xf32>
    %cst_3 = arith.constant 0.000000e+00 : f32
    %20 = vector.broadcast %cst_3 : f32 to vector<2x16xf32>
    %c0 = arith.constant 0 : index
    %c0_4 = arith.constant 0 : index
    %21 = vector.load %arg1[%c0, %c0_4] : memref<4x64xf32, #tpu.memory_space<vmem>>, vector<4x64xf32>
    %c0_5 = arith.constant 0 : index
    %c0_6 = arith.constant 0 : index
    %22 = vector.load %arg3[%c0_5, %c0_6] : memref<1x64xf32, #tpu.memory_space<vmem>>, vector<1x64xf32>
    %c0_7 = arith.constant 0 : index
    %c0_8 = arith.constant 0 : index
    %23 = vector.load %arg2[%c0_7, %c0_8] : memref<16x64xf32, #tpu.memory_space<vmem>>, vector<16x64xf32>
    %c0_9 = arith.constant 0 : index
    %c0_10 = arith.constant 0 : index
    %c0_11 = arith.constant 0 : index
    %24 = vector.load %arg0[%c0_9, %c0_10, %c0_11] : memref<8x2x4xf32, #tpu.memory_space<vmem>>, vector<1x2x4xf32>
    %25 = vector.shape_cast %24 : vector<1x2x4xf32> to vector<2x4xf32>
    %cst_12 = arith.constant dense<0.000000e+00> : vector<2x64xf32>
    %26 = tpu.matmul %25, %21, %cst_12 {dimension_numbers = #tpu.dot_dimension_numbers<[1], [0], [0], [1], [0, 0, 1, 1], [], []>} : vector<2x4xf32>, vector<4x64xf32>, vector<2x64xf32> -> vector<2x64xf32>
    %27 = vector.broadcast %22 : vector<1x64xf32> to vector<2x64xf32>
    %28 = arith.addf %26, %27 : vector<2x64xf32>
    %c0_13 = arith.constant 0 : index
    %c0_14 = arith.constant 0 : index
    %c0_15 = arith.constant 0 : index
    %29 = vector.load %arg22[%c0_13, %c0_14, %c0_15] : memref<8x2x64xf32, #tpu.memory_space<vmem>>, vector<1x2x64xf32>
    %30 = vector.shape_cast %29 : vector<1x2x64xf32> to vector<2x64xf32>
    %31 = vector.shape_cast %28 : vector<2x64xf32> to vector<1x2x64xf32>
    tpu.vector_store %arg22[%c0_13, %c0_14, %c0_15], %31 {strides = array<i32>} : memref<8x2x64xf32, #tpu.memory_space<vmem>>, vector<1x2x64xf32>,
    %c1 = arith.constant 1 : index
    %c0_16 = arith.constant 0 : index
    %c0_17 = arith.constant 0 : index
    %32 = vector.load %arg0[%c1, %c0_16, %c0_17] : memref<8x2x4xf32, #tpu.memory_space<vmem>>, vector<1x2x4xf32>
    %33 = vector.shape_cast %32 : vector<1x2x4xf32> to vector<2x4xf32>
    %cst_18 = arith.constant dense<0.000000e+00> : vector<2x64xf32>
    %34 = tpu.matmul %33, %21, %cst_18 {dimension_numbers = #tpu.dot_dimension_numbers<[1], [0], [0], [1], [0, 0, 1, 1], [], []>} : vector<2x4xf32>, vector<4x64xf32>, vector<2x64xf32> -> vector<2x64xf32>
    %35 = vector.broadcast %22 : vector<1x64xf32> to vector<2x64xf32>
    %36 = arith.addf %34, %35 : vector<2x64xf32>
    %c1_19 = arith.constant 1 : index
    %c0_20 = arith.constant 0 : index
    %c0_21 = arith.constant 0 : index
    %37 = vector.load %arg22[%c1_19, %c0_20, %c0_21] : memref<8x2x64xf32, #tpu.memory_space<vmem>>, vector<1x2x64xf32>
    %38 = vector.shape_cast %37 : vector<1x2x64xf32> to vector<2x64xf32>
    %39 = vector.shape_cast %36 : vector<2x64xf32> to vector<1x2x64xf32>
    tpu.vector_store %arg22[%c1_19, %c0_20, %c0_21], %39 {strides = array<i32>} : memref<8x2x64xf32, #tpu.memory_space<vmem>>, vector<1x2x64xf32>,
    %c2 = arith.constant 2 : index
    %c0_22 = arith.constant 0 : index
    %c0_23 = arith.constant 0 : index
    %40 = vector.load %arg0[%c2, %c0_22, %c0_23] : memref<8x2x4xf32, #tpu.memory_space<vmem>>, vector<1x2x4xf32>
    %41 = vector.shape_cast %40 : vector<1x2x4xf32> to vector<2x4xf32>
    %cst_24 = arith.constant dense<0.000000e+00> : vector<2x64xf32>
    %42 = tpu.matmul %41, %21, %cst_24 {dimension_numbers = #tpu.dot_dimension_numbers<[1], [0], [0], [1], [0, 0, 1, 1], [], []>} : vector<2x4xf32>, vector<4x64xf32>, vector<2x64xf32> -> vector<2x64xf32>
    %43 = vector.broadcast %22 : vector<1x64xf32> to vector<2x64xf32>
    %44 = arith.addf %42, %43 : vector<2x64xf32>
    %c2_25 = arith.constant 2 : index
    %c0_26 = arith.constant 0 : index
    %c0_27 = arith.constant 0 : index
    %45 = vector.load %arg22[%c2_25, %c0_26, %c0_27] : memref<8x2x64xf32, #tpu.memory_space<vmem>>, vector<1x2x64xf32>
    %46 = vector.shape_cast %45 : vector<1x2x64xf32> to vector<2x64xf32>
    %47 = vector.shape_cast %44 : vector<2x64xf32> to vector<1x2x64xf32>
    tpu.vector_store %arg22[%c2_25, %c0_26, %c0_27], %47 {strides = array<i32>} : memref<8x2x64xf32, #tpu.memory_space<vmem>>, vector<1x2x64xf32>,
    %c3 = arith.constant 3 : index
    %c0_28 = arith.constant 0 : index
    %c0_29 = arith.constant 0 : index
    %48 = vector.load %arg0[%c3, %c0_28, %c0_29] : memref<8x2x4xf32, #tpu.memory_space<vmem>>, vector<1x2x4xf32>
    %49 = vector.shape_cast %48 : vector<1x2x4xf32> to vector<2x4xf32>
    %cst_30 = arith.constant dense<0.000000e+00> : vector<2x64xf32>
    %50 = tpu.matmul %49, %21, %cst_30 {dimension_numbers = #tpu.dot_dimension_numbers<[1], [0], [0], [1], [0, 0, 1, 1], [], []>} : vector<2x4xf32>, vector<4x64xf32>, vector<2x64xf32> -> vector<2x64xf32>
    %51 = vector.broadcast %22 : vector<1x64xf32> to vector<2x64xf32>
    %52 = arith.addf %50, %51 : vector<2x64xf32>
    %c3_31 = arith.constant 3 : index
    %c0_32 = arith.constant 0 : index
    %c0_33 = arith.constant 0 : index
    %53 = vector.load %arg22[%c3_31, %c0_32, %c0_33] : memref<8x2x64xf32, #tpu.memory_space<vmem>>, vector<1x2x64xf32>
    %54 = vector.shape_cast %53 : vector<1x2x64xf32> to vector<2x64xf32>
    %55 = vector.shape_cast %52 : vector<2x64xf32> to vector<1x2x64xf32>
    tpu.vector_store %arg22[%c3_31, %c0_32, %c0_33], %55 {strides = array<i32>} : memref<8x2x64xf32, #tpu.memory_space<vmem>>, vector<1x2x64xf32>,
    %c4 = arith.constant 4 : index
    %c0_34 = arith.constant 0 : index
    %c0_35 = arith.constant 0 : index
    %56 = vector.load %arg0[%c4, %c0_34, %c0_35] : memref<8x2x4xf32, #tpu.memory_space<vmem>>, vector<1x2x4xf32>
    %57 = vector.shape_cast %56 : vector<1x2x4xf32> to vector<2x4xf32>
    %cst_36 = arith.constant dense<0.000000e+00> : vector<2x64xf32>
    %58 = tpu.matmul %57, %21, %cst_36 {dimension_numbers = #tpu.dot_dimension_numbers<[1], [0], [0], [1], [0, 0, 1, 1], [], []>} : vector<2x4xf32>, vector<4x64xf32>, vector<2x64xf32> -> vector<2x64xf32>
    %59 = vector.broadcast %22 : vector<1x64xf32> to vector<2x64xf32>
    %60 = arith.addf %58, %59 : vector<2x64xf32>
    %c4_37 = arith.constant 4 : index
    %c0_38 = arith.constant 0 : index
    %c0_39 = arith.constant 0 : index
    %61 = vector.load %arg22[%c4_37, %c0_38, %c0_39] : memref<8x2x64xf32, #tpu.memory_space<vmem>>, vector<1x2x64xf32>
    %62 = vector.shape_cast %61 : vector<1x2x64xf32> to vector<2x64xf32>
    %63 = vector.shape_cast %60 : vector<2x64xf32> to vector<1x2x64xf32>
    tpu.vector_store %arg22[%c4_37, %c0_38, %c0_39], %63 {strides = array<i32>} : memref<8x2x64xf32, #tpu.memory_space<vmem>>, vector<1x2x64xf32>,
    %c5 = arith.constant 5 : index
    %c0_40 = arith.constant 0 : index
    %c0_41 = arith.constant 0 : index
    %64 = vector.load %arg0[%c5, %c0_40, %c0_41] : memref<8x2x4xf32, #tpu.memory_space<vmem>>, vector<1x2x4xf32>
    %65 = vector.shape_cast %64 : vector<1x2x4xf32> to vector<2x4xf32>
    %cst_42 = arith.constant dense<0.000000e+00> : vector<2x64xf32>
    %66 = tpu.matmul %65, %21, %cst_42 {dimension_numbers = #tpu.dot_dimension_numbers<[1], [0], [0], [1], [0, 0, 1, 1], [], []>} : vector<2x4xf32>, vector<4x64xf32>, vector<2x64xf32> -> vector<2x64xf32>
    %67 = vector.broadcast %22 : vector<1x64xf32> to vector<2x64xf32>
    %68 = arith.addf %66, %67 : vector<2x64xf32>
    %c5_43 = arith.constant 5 : index
    %c0_44 = arith.constant 0 : index
    %c0_45 = arith.constant 0 : index
    %69 = vector.load %arg22[%c5_43, %c0_44, %c0_45] : memref<8x2x64xf32, #tpu.memory_space<vmem>>, vector<1x2x64xf32>
    %70 = vector.shape_cast %69 : vector<1x2x64xf32> to vector<2x64xf32>
    %71 = vector.shape_cast %68 : vector<2x64xf32> to vector<1x2x64xf32>
    tpu.vector_store %arg22[%c5_43, %c0_44, %c0_45], %71 {strides = array<i32>} : memref<8x2x64xf32, #tpu.memory_space<vmem>>, vector<1x2x64xf32>,
    %c6 = arith.constant 6 : index
    %c0_46 = arith.constant 0 : index
    %c0_47 = arith.constant 0 : index
    %72 = vector.load %arg0[%c6, %c0_46, %c0_47] : memref<8x2x4xf32, #tpu.memory_space<vmem>>, vector<1x2x4xf32>
    %73 = vector.shape_cast %72 : vector<1x2x4xf32> to vector<2x4xf32>
    %cst_48 = arith.constant dense<0.000000e+00> : vector<2x64xf32>
    %74 = tpu.matmul %73, %21, %cst_48 {dimension_numbers = #tpu.dot_dimension_numbers<[1], [0], [0], [1], [0, 0, 1, 1], [], []>} : vector<2x4xf32>, vector<4x64xf32>, vector<2x64xf32> -> vector<2x64xf32>
    %75 = vector.broadcast %22 : vector<1x64xf32> to vector<2x64xf32>
    %76 = arith.addf %74, %75 : vector<2x64xf32>
    %c6_49 = arith.constant 6 : index
    %c0_50 = arith.constant 0 : index
    %c0_51 = arith.constant 0 : index
    %77 = vector.load %arg22[%c6_49, %c0_50, %c0_51] : memref<8x2x64xf32, #tpu.memory_space<vmem>>, vector<1x2x64xf32>
    %78 = vector.shape_cast %77 : vector<1x2x64xf32> to vector<2x64xf32>
    %79 = vector.shape_cast %76 : vector<2x64xf32> to vector<1x2x64xf32>
    tpu.vector_store %arg22[%c6_49, %c0_50, %c0_51], %79 {strides = array<i32>} : memref<8x2x64xf32, #tpu.memory_space<vmem>>, vector<1x2x64xf32>,
    %c7 = arith.constant 7 : index
    %c0_52 = arith.constant 0 : index
    %c0_53 = arith.constant 0 : index
    %80 = vector.load %arg0[%c7, %c0_52, %c0_53] : memref<8x2x4xf32, #tpu.memory_space<vmem>>, vector<1x2x4xf32>
    %81 = vector.shape_cast %80 : vector<1x2x4xf32> to vector<2x4xf32>
    %cst_54 = arith.constant dense<0.000000e+00> : vector<2x64xf32>
    %82 = tpu.matmul %81, %21, %cst_54 {dimension_numbers = #tpu.dot_dimension_numbers<[1], [0], [0], [1], [0, 0, 1, 1], [], []>} : vector<2x4xf32>, vector<4x64xf32>, vector<2x64xf32> -> vector<2x64xf32>
    %83 = vector.broadcast %22 : vector<1x64xf32> to vector<2x64xf32>
    %84 = arith.addf %82, %83 : vector<2x64xf32>
    %c7_55 = arith.constant 7 : index
    %c0_56 = arith.constant 0 : index
    %c0_57 = arith.constant 0 : index
    %85 = vector.load %arg22[%c7_55, %c0_56, %c0_57] : memref<8x2x64xf32, #tpu.memory_space<vmem>>, vector<1x2x64xf32>
    %86 = vector.shape_cast %85 : vector<1x2x64xf32> to vector<2x64xf32>
    %87 = vector.shape_cast %84 : vector<2x64xf32> to vector<1x2x64xf32>
    tpu.vector_store %arg22[%c7_55, %c0_56, %c0_57], %87 {strides = array<i32>} : memref<8x2x64xf32, #tpu.memory_space<vmem>>, vector<1x2x64xf32>,
    %c0_58 = arith.constant 0 : index
    %c0_59 = arith.constant 0 : index
    %c0_60 = arith.constant 0 : index
    %88 = vector.load %arg22[%c0_58, %c0_59, %c0_60] : memref<8x2x64xf32, #tpu.memory_space<vmem>>, vector<1x2x64xf32>
    %89 = vector.shape_cast %88 : vector<1x2x64xf32> to vector<2x64xf32>
    %c7_61 = arith.constant 7 : index
    %c0_62 = arith.constant 0 : index
    %c0_63 = arith.constant 0 : index
    %90 = vector.load %arg22[%c7_61, %c0_62, %c0_63] : memref<8x2x64xf32, #tpu.memory_space<vmem>>, vector<1x2x64xf32>
    %91 = vector.shape_cast %90 : vector<1x2x64xf32> to vector<2x64xf32>
    %92 = arith.select %18, %89, %91 : vector<2x64xi1>, vector<2x64xf32>
    %cst_64 = arith.constant dense<0.000000e+00> : vector<2x64xf32>
    %93 = tpu.matmul %20, %23, %cst_64 {dimension_numbers = #tpu.dot_dimension_numbers<[1], [0], [0], [1], [0, 0, 1, 1], [], []>} : vector<2x16xf32>, vector<16x64xf32>, vector<2x64xf32> -> vector<2x64xf32>
    %94 = arith.addf %92, %93 : vector<2x64xf32>
    %95 = vector.extract_strided_slice %94 {offsets = [0, 0], sizes = [2, 16], strides = [1, 1]} : vector<2x64xf32> to vector<2x16xf32>
    %96 = arith.negf %95 : vector<2x16xf32>
    %97 = math.exp %96 : vector<2x16xf32>
    %cst_65 = arith.constant 1.000000e+00 : f32
    %98 = vector.broadcast %cst_65 : f32 to vector<2x16xf32>
    %99 = arith.addf %98, %97 : vector<2x16xf32>
    %100 = arith.divf %98, %99 : vector<2x16xf32>
    %101 = vector.extract_strided_slice %94 {offsets = [0, 16], sizes = [2, 16], strides = [1, 1]} : vector<2x64xf32> to vector<2x16xf32>
    %102 = arith.negf %101 : vector<2x16xf32>
    %103 = math.exp %102 : vector<2x16xf32>
    %cst_66 = arith.constant 1.000000e+00 : f32
    %104 = vector.broadcast %cst_66 : f32 to vector<2x16xf32>
    %105 = arith.addf %104, %103 : vector<2x16xf32>
    %106 = arith.divf %104, %105 : vector<2x16xf32>
    %107 = vector.extract_strided_slice %94 {offsets = [0, 32], sizes = [2, 16], strides = [1, 1]} : vector<2x64xf32> to vector<2x16xf32>
    %108 = math.tanh %107 : vector<2x16xf32>
    %109 = vector.extract_strided_slice %94 {offsets = [0, 48], sizes = [2, 16], strides = [1, 1]} : vector<2x64xf32> to vector<2x16xf32>
    %110 = arith.negf %109 : vector<2x16xf32>
    %111 = math.exp %110 : vector<2x16xf32>
    %cst_67 = arith.constant 1.000000e+00 : f32
    %112 = vector.broadcast %cst_67 : f32 to vector<2x16xf32>
    %113 = arith.addf %112, %111 : vector<2x16xf32>
    %114 = arith.divf %112, %113 : vector<2x16xf32>
    %115 = arith.mulf %106, %20 : vector<2x16xf32>
    %116 = arith.mulf %100, %108 : vector<2x16xf32>
    %117 = arith.addf %115, %116 : vector<2x16xf32>
    %118 = math.tanh %117 : vector<2x16xf32>
    %119 = arith.mulf %114, %118 : vector<2x16xf32>
    %120 = vector.extract_strided_slice %119 {offsets = [0, 0], sizes = [2, 8], strides = [1, 1]} : vector<2x16xf32> to vector<2x8xf32>
    %c0_68 = arith.constant 0 : index
    %c0_69 = arith.constant 0 : index
    %c0_70 = arith.constant 0 : index
    %121 = vector.load %arg23[%c0_68, %c0_69, %c0_70] : memref<8x2x8xf32, #tpu.memory_space<vmem>>, vector<1x2x8xf32>
    %122 = vector.shape_cast %121 : vector<1x2x8xf32> to vector<2x8xf32>
    %123 = vector.shape_cast %120 : vector<2x8xf32> to vector<1x2x8xf32>
    tpu.vector_store %arg23[%c0_68, %c0_69, %c0_70], %123 {strides = array<i32>} : memref<8x2x8xf32, #tpu.memory_space<vmem>>, vector<1x2x8xf32>,
    %124 = vector.extract_strided_slice %119 {offsets = [0, 8], sizes = [2, 8], strides = [1, 1]} : vector<2x16xf32> to vector<2x8xf32>
    %c7_71 = arith.constant 7 : index
    %c0_72 = arith.constant 0 : index
    %c0_73 = arith.constant 0 : index
    %125 = vector.load %arg24[%c7_71, %c0_72, %c0_73] : memref<8x2x8xf32, #tpu.memory_space<vmem>>, vector<1x2x8xf32>
    %126 = vector.shape_cast %125 : vector<1x2x8xf32> to vector<2x8xf32>
    %127 = vector.shape_cast %124 : vector<2x8xf32> to vector<1x2x8xf32>
    tpu.vector_store %arg24[%c7_71, %c0_72, %c0_73], %127 {strides = array<i32>} : memref<8x2x8xf32, #tpu.memory_space<vmem>>, vector<1x2x8xf32>,
    %c1_74 = arith.constant 1 : index
    %c0_75 = arith.constant 0 : index
    %c0_76 = arith.constant 0 : index
    %128 = vector.load %arg22[%c1_74, %c0_75, %c0_76] : memref<8x2x64xf32, #tpu.memory_space<vmem>>, vector<1x2x64xf32>
    %129 = vector.shape_cast %128 : vector<1x2x64xf32> to vector<2x64xf32>
    %c6_77 = arith.constant 6 : index
    %c0_78 = arith.constant 0 : index
    %c0_79 = arith.constant 0 : index
    %130 = vector.load %arg22[%c6_77, %c0_78, %c0_79] : memref<8x2x64xf32, #tpu.memory_space<vmem>>, vector<1x2x64xf32>
    %131 = vector.shape_cast %130 : vector<1x2x64xf32> to vector<2x64xf32>
    %132 = arith.select %18, %129, %131 : vector<2x64xi1>, vector<2x64xf32>
    %cst_80 = arith.constant dense<0.000000e+00> : vector<2x64xf32>
    %133 = tpu.matmul %119, %23, %cst_80 {dimension_numbers = #tpu.dot_dimension_numbers<[1], [0], [0], [1], [0, 0, 1, 1], [], []>} : vector<2x16xf32>, vector<16x64xf32>, vector<2x64xf32> -> vector<2x64xf32>
    %134 = arith.addf %132, %133 : vector<2x64xf32>
    %135 = vector.extract_strided_slice %134 {offsets = [0, 0], sizes = [2, 16], strides = [1, 1]} : vector<2x64xf32> to vector<2x16xf32>
    %136 = arith.negf %135 : vector<2x16xf32>
    %137 = math.exp %136 : vector<2x16xf32>
    %cst_81 = arith.constant 1.000000e+00 : f32
    %138 = vector.broadcast %cst_81 : f32 to vector<2x16xf32>
    %139 = arith.addf %138, %137 : vector<2x16xf32>
    %140 = arith.divf %138, %139 : vector<2x16xf32>
    %141 = vector.extract_strided_slice %134 {offsets = [0, 16], sizes = [2, 16], strides = [1, 1]} : vector<2x64xf32> to vector<2x16xf32>
    %142 = arith.negf %141 : vector<2x16xf32>
    %143 = math.exp %142 : vector<2x16xf32>
    %cst_82 = arith.constant 1.000000e+00 : f32
    %144 = vector.broadcast %cst_82 : f32 to vector<2x16xf32>
    %145 = arith.addf %144, %143 : vector<2x16xf32>
    %146 = arith.divf %144, %145 : vector<2x16xf32>
    %147 = vector.extract_strided_slice %134 {offsets = [0, 32], sizes = [2, 16], strides = [1, 1]} : vector<2x64xf32> to vector<2x16xf32>
    %148 = math.tanh %147 : vector<2x16xf32>
    %149 = vector.extract_strided_slice %134 {offsets = [0, 48], sizes = [2, 16], strides = [1, 1]} : vector<2x64xf32> to vector<2x16xf32>
    %150 = arith.negf %149 : vector<2x16xf32>
    %151 = math.exp %150 : vector<2x16xf32>
    %cst_83 = arith.constant 1.000000e+00 : f32
    %152 = vector.broadcast %cst_83 : f32 to vector<2x16xf32>
    %153 = arith.addf %152, %151 : vector<2x16xf32>
    %154 = arith.divf %152, %153 : vector<2x16xf32>
    %155 = arith.mulf %146, %117 : vector<2x16xf32>
    %156 = arith.mulf %140, %148 : vector<2x16xf32>
    %157 = arith.addf %155, %156 : vector<2x16xf32>
    %158 = math.tanh %157 : vector<2x16xf32>
    %159 = arith.mulf %154, %158 : vector<2x16xf32>
    %160 = vector.extract_strided_slice %159 {offsets = [0, 0], sizes = [2, 8], strides = [1, 1]} : vector<2x16xf32> to vector<2x8xf32>
    %c1_84 = arith.constant 1 : index
    %c0_85 = arith.constant 0 : index
    %c0_86 = arith.constant 0 : index
    %161 = vector.load %arg23[%c1_84, %c0_85, %c0_86] : memref<8x2x8xf32, #tpu.memory_space<vmem>>, vector<1x2x8xf32>
    %162 = vector.shape_cast %161 : vector<1x2x8xf32> to vector<2x8xf32>
    %163 = vector.shape_cast %160 : vector<2x8xf32> to vector<1x2x8xf32>
    tpu.vector_store %arg23[%c1_84, %c0_85, %c0_86], %163 {strides = array<i32>} : memref<8x2x8xf32, #tpu.memory_space<vmem>>, vector<1x2x8xf32>,
    %164 = vector.extract_strided_slice %159 {offsets = [0, 8], sizes = [2, 8], strides = [1, 1]} : vector<2x16xf32> to vector<2x8xf32>
    %c6_87 = arith.constant 6 : index
    %c0_88 = arith.constant 0 : index
    %c0_89 = arith.constant 0 : index
    %165 = vector.load %arg24[%c6_87, %c0_88, %c0_89] : memref<8x2x8xf32, #tpu.memory_space<vmem>>, vector<1x2x8xf32>
    %166 = vector.shape_cast %165 : vector<1x2x8xf32> to vector<2x8xf32>
    %167 = vector.shape_cast %164 : vector<2x8xf32> to vector<1x2x8xf32>
    tpu.vector_store %arg24[%c6_87, %c0_88, %c0_89], %167 {strides = array<i32>} : memref<8x2x8xf32, #tpu.memory_space<vmem>>, vector<1x2x8xf32>,
    %c2_90 = arith.constant 2 : index
    %c0_91 = arith.constant 0 : index
    %c0_92 = arith.constant 0 : index
    %168 = vector.load %arg22[%c2_90, %c0_91, %c0_92] : memref<8x2x64xf32, #tpu.memory_space<vmem>>, vector<1x2x64xf32>
    %169 = vector.shape_cast %168 : vector<1x2x64xf32> to vector<2x64xf32>
    %c5_93 = arith.constant 5 : index
    %c0_94 = arith.constant 0 : index
    %c0_95 = arith.constant 0 : index
    %170 = vector.load %arg22[%c5_93, %c0_94, %c0_95] : memref<8x2x64xf32, #tpu.memory_space<vmem>>, vector<1x2x64xf32>
    %171 = vector.shape_cast %170 : vector<1x2x64xf32> to vector<2x64xf32>
    %172 = arith.select %18, %169, %171 : vector<2x64xi1>, vector<2x64xf32>
    %cst_96 = arith.constant dense<0.000000e+00> : vector<2x64xf32>
    %173 = tpu.matmul %159, %23, %cst_96 {dimension_numbers = #tpu.dot_dimension_numbers<[1], [0], [0], [1], [0, 0, 1, 1], [], []>} : vector<2x16xf32>, vector<16x64xf32>, vector<2x64xf32> -> vector<2x64xf32>
    %174 = arith.addf %172, %173 : vector<2x64xf32>
    %175 = vector.extract_strided_slice %174 {offsets = [0, 0], sizes = [2, 16], strides = [1, 1]} : vector<2x64xf32> to vector<2x16xf32>
    %176 = arith.negf %175 : vector<2x16xf32>
    %177 = math.exp %176 : vector<2x16xf32>
    %cst_97 = arith.constant 1.000000e+00 : f32
    %178 = vector.broadcast %cst_97 : f32 to vector<2x16xf32>
    %179 = arith.addf %178, %177 : vector<2x16xf32>
    %180 = arith.divf %178, %179 : vector<2x16xf32>
    %181 = vector.extract_strided_slice %174 {offsets = [0, 16], sizes = [2, 16], strides = [1, 1]} : vector<2x64xf32> to vector<2x16xf32>
    %182 = arith.negf %181 : vector<2x16xf32>
    %183 = math.exp %182 : vector<2x16xf32>
    %cst_98 = arith.constant 1.000000e+00 : f32
    %184 = vector.broadcast %cst_98 : f32 to vector<2x16xf32>
    %185 = arith.addf %184, %183 : vector<2x16xf32>
    %186 = arith.divf %184, %185 : vector<2x16xf32>
    %187 = vector.extract_strided_slice %174 {offsets = [0, 32], sizes = [2, 16], strides = [1, 1]} : vector<2x64xf32> to vector<2x16xf32>
    %188 = math.tanh %187 : vector<2x16xf32>
    %189 = vector.extract_strided_slice %174 {offsets = [0, 48], sizes = [2, 16], strides = [1, 1]} : vector<2x64xf32> to vector<2x16xf32>
    %190 = arith.negf %189 : vector<2x16xf32>
    %191 = math.exp %190 : vector<2x16xf32>
    %cst_99 = arith.constant 1.000000e+00 : f32
    %192 = vector.broadcast %cst_99 : f32 to vector<2x16xf32>
    %193 = arith.addf %192, %191 : vector<2x16xf32>
    %194 = arith.divf %192, %193 : vector<2x16xf32>
    %195 = arith.mulf %186, %157 : vector<2x16xf32>
    %196 = arith.mulf %180, %188 : vector<2x16xf32>
    %197 = arith.addf %195, %196 : vector<2x16xf32>
    %198 = math.tanh %197 : vector<2x16xf32>
    %199 = arith.mulf %194, %198 : vector<2x16xf32>
    %200 = vector.extract_strided_slice %199 {offsets = [0, 0], sizes = [2, 8], strides = [1, 1]} : vector<2x16xf32> to vector<2x8xf32>
    %c2_100 = arith.constant 2 : index
    %c0_101 = arith.constant 0 : index
    %c0_102 = arith.constant 0 : index
    %201 = vector.load %arg23[%c2_100, %c0_101, %c0_102] : memref<8x2x8xf32, #tpu.memory_space<vmem>>, vector<1x2x8xf32>
    %202 = vector.shape_cast %201 : vector<1x2x8xf32> to vector<2x8xf32>
    %203 = vector.shape_cast %200 : vector<2x8xf32> to vector<1x2x8xf32>
    tpu.vector_store %arg23[%c2_100, %c0_101, %c0_102], %203 {strides = array<i32>} : memref<8x2x8xf32, #tpu.memory_space<vmem>>, vector<1x2x8xf32>,
    %204 = vector.extract_strided_slice %199 {offsets = [0, 8], sizes = [2, 8], strides = [1, 1]} : vector<2x16xf32> to vector<2x8xf32>
    %c5_103 = arith.constant 5 : index
    %c0_104 = arith.constant 0 : index
    %c0_105 = arith.constant 0 : index
    %205 = vector.load %arg24[%c5_103, %c0_104, %c0_105] : memref<8x2x8xf32, #tpu.memory_space<vmem>>, vector<1x2x8xf32>
    %206 = vector.shape_cast %205 : vector<1x2x8xf32> to vector<2x8xf32>
    %207 = vector.shape_cast %204 : vector<2x8xf32> to vector<1x2x8xf32>
    tpu.vector_store %arg24[%c5_103, %c0_104, %c0_105], %207 {strides = array<i32>} : memref<8x2x8xf32, #tpu.memory_space<vmem>>, vector<1x2x8xf32>,
    %c3_106 = arith.constant 3 : index
    %c0_107 = arith.constant 0 : index
    %c0_108 = arith.constant 0 : index
    %208 = vector.load %arg22[%c3_106, %c0_107, %c0_108] : memref<8x2x64xf32, #tpu.memory_space<vmem>>, vector<1x2x64xf32>
    %209 = vector.shape_cast %208 : vector<1x2x64xf32> to vector<2x64xf32>
    %c4_109 = arith.constant 4 : index
    %c0_110 = arith.constant 0 : index
    %c0_111 = arith.constant 0 : index
    %210 = vector.load %arg22[%c4_109, %c0_110, %c0_111] : memref<8x2x64xf32, #tpu.memory_space<vmem>>, vector<1x2x64xf32>
    %211 = vector.shape_cast %210 : vector<1x2x64xf32> to vector<2x64xf32>
    %212 = arith.select %18, %209, %211 : vector<2x64xi1>, vector<2x64xf32>
    %cst_112 = arith.constant dense<0.000000e+00> : vector<2x64xf32>
    %213 = tpu.matmul %199, %23, %cst_112 {dimension_numbers = #tpu.dot_dimension_numbers<[1], [0], [0], [1], [0, 0, 1, 1], [], []>} : vector<2x16xf32>, vector<16x64xf32>, vector<2x64xf32> -> vector<2x64xf32>
    %214 = arith.addf %212, %213 : vector<2x64xf32>
    %215 = vector.extract_strided_slice %214 {offsets = [0, 0], sizes = [2, 16], strides = [1, 1]} : vector<2x64xf32> to vector<2x16xf32>
    %216 = arith.negf %215 : vector<2x16xf32>
    %217 = math.exp %216 : vector<2x16xf32>
    %cst_113 = arith.constant 1.000000e+00 : f32
    %218 = vector.broadcast %cst_113 : f32 to vector<2x16xf32>
    %219 = arith.addf %218, %217 : vector<2x16xf32>
    %220 = arith.divf %218, %219 : vector<2x16xf32>
    %221 = vector.extract_strided_slice %214 {offsets = [0, 16], sizes = [2, 16], strides = [1, 1]} : vector<2x64xf32> to vector<2x16xf32>
    %222 = arith.negf %221 : vector<2x16xf32>
    %223 = math.exp %222 : vector<2x16xf32>
    %cst_114 = arith.constant 1.000000e+00 : f32
    %224 = vector.broadcast %cst_114 : f32 to vector<2x16xf32>
    %225 = arith.addf %224, %223 : vector<2x16xf32>
    %226 = arith.divf %224, %225 : vector<2x16xf32>
    %227 = vector.extract_strided_slice %214 {offsets = [0, 32], sizes = [2, 16], strides = [1, 1]} : vector<2x64xf32> to vector<2x16xf32>
    %228 = math.tanh %227 : vector<2x16xf32>
    %229 = vector.extract_strided_slice %214 {offsets = [0, 48], sizes = [2, 16], strides = [1, 1]} : vector<2x64xf32> to vector<2x16xf32>
    %230 = arith.negf %229 : vector<2x16xf32>
    %231 = math.exp %230 : vector<2x16xf32>
    %cst_115 = arith.constant 1.000000e+00 : f32
    %232 = vector.broadcast %cst_115 : f32 to vector<2x16xf32>
    %233 = arith.addf %232, %231 : vector<2x16xf32>
    %234 = arith.divf %232, %233 : vector<2x16xf32>
    %235 = arith.mulf %226, %197 : vector<2x16xf32>
    %236 = arith.mulf %220, %228 : vector<2x16xf32>
    %237 = arith.addf %235, %236 : vector<2x16xf32>
    %238 = math.tanh %237 : vector<2x16xf32>
    %239 = arith.mulf %234, %238 : vector<2x16xf32>
    %240 = vector.extract_strided_slice %239 {offsets = [0, 0], sizes = [2, 8], strides = [1, 1]} : vector<2x16xf32> to vector<2x8xf32>
    %c3_116 = arith.constant 3 : index
    %c0_117 = arith.constant 0 : index
    %c0_118 = arith.constant 0 : index
    %241 = vector.load %arg23[%c3_116, %c0_117, %c0_118] : memref<8x2x8xf32, #tpu.memory_space<vmem>>, vector<1x2x8xf32>
    %242 = vector.shape_cast %241 : vector<1x2x8xf32> to vector<2x8xf32>
    %243 = vector.shape_cast %240 : vector<2x8xf32> to vector<1x2x8xf32>
    tpu.vector_store %arg23[%c3_116, %c0_117, %c0_118], %243 {strides = array<i32>} : memref<8x2x8xf32, #tpu.memory_space<vmem>>, vector<1x2x8xf32>,
    %244 = vector.extract_strided_slice %239 {offsets = [0, 8], sizes = [2, 8], strides = [1, 1]} : vector<2x16xf32> to vector<2x8xf32>
    %c4_119 = arith.constant 4 : index
    %c0_120 = arith.constant 0 : index
    %c0_121 = arith.constant 0 : index
    %245 = vector.load %arg24[%c4_119, %c0_120, %c0_121] : memref<8x2x8xf32, #tpu.memory_space<vmem>>, vector<1x2x8xf32>
    %246 = vector.shape_cast %245 : vector<1x2x8xf32> to vector<2x8xf32>
    %247 = vector.shape_cast %244 : vector<2x8xf32> to vector<1x2x8xf32>
    tpu.vector_store %arg24[%c4_119, %c0_120, %c0_121], %247 {strides = array<i32>} : memref<8x2x8xf32, #tpu.memory_space<vmem>>, vector<1x2x8xf32>,
    %c4_122 = arith.constant 4 : index
    %c0_123 = arith.constant 0 : index
    %c0_124 = arith.constant 0 : index
    %248 = vector.load %arg22[%c4_122, %c0_123, %c0_124] : memref<8x2x64xf32, #tpu.memory_space<vmem>>, vector<1x2x64xf32>
    %249 = vector.shape_cast %248 : vector<1x2x64xf32> to vector<2x64xf32>
    %c3_125 = arith.constant 3 : index
    %c0_126 = arith.constant 0 : index
    %c0_127 = arith.constant 0 : index
    %250 = vector.load %arg22[%c3_125, %c0_126, %c0_127] : memref<8x2x64xf32, #tpu.memory_space<vmem>>, vector<1x2x64xf32>
    %251 = vector.shape_cast %250 : vector<1x2x64xf32> to vector<2x64xf32>
    %252 = arith.select %18, %249, %251 : vector<2x64xi1>, vector<2x64xf32>
    %cst_128 = arith.constant dense<0.000000e+00> : vector<2x64xf32>
    %253 = tpu.matmul %239, %23, %cst_128 {dimension_numbers = #tpu.dot_dimension_numbers<[1], [0], [0], [1], [0, 0, 1, 1], [], []>} : vector<2x16xf32>, vector<16x64xf32>, vector<2x64xf32> -> vector<2x64xf32>
    %254 = arith.addf %252, %253 : vector<2x64xf32>
    %255 = vector.extract_strided_slice %254 {offsets = [0, 0], sizes = [2, 16], strides = [1, 1]} : vector<2x64xf32> to vector<2x16xf32>
    %256 = arith.negf %255 : vector<2x16xf32>
    %257 = math.exp %256 : vector<2x16xf32>
    %cst_129 = arith.constant 1.000000e+00 : f32
    %258 = vector.broadcast %cst_129 : f32 to vector<2x16xf32>
    %259 = arith.addf %258, %257 : vector<2x16xf32>
    %260 = arith.divf %258, %259 : vector<2x16xf32>
    %261 = vector.extract_strided_slice %254 {offsets = [0, 16], sizes = [2, 16], strides = [1, 1]} : vector<2x64xf32> to vector<2x16xf32>
    %262 = arith.negf %261 : vector<2x16xf32>
    %263 = math.exp %262 : vector<2x16xf32>
    %cst_130 = arith.constant 1.000000e+00 : f32
    %264 = vector.broadcast %cst_130 : f32 to vector<2x16xf32>
    %265 = arith.addf %264, %263 : vector<2x16xf32>
    %266 = arith.divf %264, %265 : vector<2x16xf32>
    %267 = vector.extract_strided_slice %254 {offsets = [0, 32], sizes = [2, 16], strides = [1, 1]} : vector<2x64xf32> to vector<2x16xf32>
    %268 = math.tanh %267 : vector<2x16xf32>
    %269 = vector.extract_strided_slice %254 {offsets = [0, 48], sizes = [2, 16], strides = [1, 1]} : vector<2x64xf32> to vector<2x16xf32>
    %270 = arith.negf %269 : vector<2x16xf32>
    %271 = math.exp %270 : vector<2x16xf32>
    %cst_131 = arith.constant 1.000000e+00 : f32
    %272 = vector.broadcast %cst_131 : f32 to vector<2x16xf32>
    %273 = arith.addf %272, %271 : vector<2x16xf32>
    %274 = arith.divf %272, %273 : vector<2x16xf32>
    %275 = arith.mulf %266, %237 : vector<2x16xf32>
    %276 = arith.mulf %260, %268 : vector<2x16xf32>
    %277 = arith.addf %275, %276 : vector<2x16xf32>
    %278 = math.tanh %277 : vector<2x16xf32>
    %279 = arith.mulf %274, %278 : vector<2x16xf32>
    %280 = vector.extract_strided_slice %279 {offsets = [0, 0], sizes = [2, 8], strides = [1, 1]} : vector<2x16xf32> to vector<2x8xf32>
    %c4_132 = arith.constant 4 : index
    %c0_133 = arith.constant 0 : index
    %c0_134 = arith.constant 0 : index
    %281 = vector.load %arg23[%c4_132, %c0_133, %c0_134] : memref<8x2x8xf32, #tpu.memory_space<vmem>>, vector<1x2x8xf32>
    %282 = vector.shape_cast %281 : vector<1x2x8xf32> to vector<2x8xf32>
    %283 = vector.shape_cast %280 : vector<2x8xf32> to vector<1x2x8xf32>
    tpu.vector_store %arg23[%c4_132, %c0_133, %c0_134], %283 {strides = array<i32>} : memref<8x2x8xf32, #tpu.memory_space<vmem>>, vector<1x2x8xf32>,
    %284 = vector.extract_strided_slice %279 {offsets = [0, 8], sizes = [2, 8], strides = [1, 1]} : vector<2x16xf32> to vector<2x8xf32>
    %c3_135 = arith.constant 3 : index
    %c0_136 = arith.constant 0 : index
    %c0_137 = arith.constant 0 : index
    %285 = vector.load %arg24[%c3_135, %c0_136, %c0_137] : memref<8x2x8xf32, #tpu.memory_space<vmem>>, vector<1x2x8xf32>
    %286 = vector.shape_cast %285 : vector<1x2x8xf32> to vector<2x8xf32>
    %287 = vector.shape_cast %284 : vector<2x8xf32> to vector<1x2x8xf32>
    tpu.vector_store %arg24[%c3_135, %c0_136, %c0_137], %287 {strides = array<i32>} : memref<8x2x8xf32, #tpu.memory_space<vmem>>, vector<1x2x8xf32>,
    %c5_138 = arith.constant 5 : index
    %c0_139 = arith.constant 0 : index
    %c0_140 = arith.constant 0 : index
    %288 = vector.load %arg22[%c5_138, %c0_139, %c0_140] : memref<8x2x64xf32, #tpu.memory_space<vmem>>, vector<1x2x64xf32>
    %289 = vector.shape_cast %288 : vector<1x2x64xf32> to vector<2x64xf32>
    %c2_141 = arith.constant 2 : index
    %c0_142 = arith.constant 0 : index
    %c0_143 = arith.constant 0 : index
    %290 = vector.load %arg22[%c2_141, %c0_142, %c0_143] : memref<8x2x64xf32, #tpu.memory_space<vmem>>, vector<1x2x64xf32>
    %291 = vector.shape_cast %290 : vector<1x2x64xf32> to vector<2x64xf32>
    %292 = arith.select %18, %289, %291 : vector<2x64xi1>, vector<2x64xf32>
    %cst_144 = arith.constant dense<0.000000e+00> : vector<2x64xf32>
    %293 = tpu.matmul %279, %23, %cst_144 {dimension_numbers = #tpu.dot_dimension_numbers<[1], [0], [0], [1], [0, 0, 1, 1], [], []>} : vector<2x16xf32>, vector<16x64xf32>, vector<2x64xf32> -> vector<2x64xf32>
    %294 = arith.addf %292, %293 : vector<2x64xf32>
    %295 = vector.extract_strided_slice %294 {offsets = [0, 0], sizes = [2, 16], strides = [1, 1]} : vector<2x64xf32> to vector<2x16xf32>
    %296 = arith.negf %295 : vector<2x16xf32>
    %297 = math.exp %296 : vector<2x16xf32>
    %cst_145 = arith.constant 1.000000e+00 : f32
    %298 = vector.broadcast %cst_145 : f32 to vector<2x16xf32>
    %299 = arith.addf %298, %297 : vector<2x16xf32>
    %300 = arith.divf %298, %299 : vector<2x16xf32>
    %301 = vector.extract_strided_slice %294 {offsets = [0, 16], sizes = [2, 16], strides = [1, 1]} : vector<2x64xf32> to vector<2x16xf32>
    %302 = arith.negf %301 : vector<2x16xf32>
    %303 = math.exp %302 : vector<2x16xf32>
    %cst_146 = arith.constant 1.000000e+00 : f32
    %304 = vector.broadcast %cst_146 : f32 to vector<2x16xf32>
    %305 = arith.addf %304, %303 : vector<2x16xf32>
    %306 = arith.divf %304, %305 : vector<2x16xf32>
    %307 = vector.extract_strided_slice %294 {offsets = [0, 32], sizes = [2, 16], strides = [1, 1]} : vector<2x64xf32> to vector<2x16xf32>
    %308 = math.tanh %307 : vector<2x16xf32>
    %309 = vector.extract_strided_slice %294 {offsets = [0, 48], sizes = [2, 16], strides = [1, 1]} : vector<2x64xf32> to vector<2x16xf32>
    %310 = arith.negf %309 : vector<2x16xf32>
    %311 = math.exp %310 : vector<2x16xf32>
    %cst_147 = arith.constant 1.000000e+00 : f32
    %312 = vector.broadcast %cst_147 : f32 to vector<2x16xf32>
    %313 = arith.addf %312, %311 : vector<2x16xf32>
    %314 = arith.divf %312, %313 : vector<2x16xf32>
    %315 = arith.mulf %306, %277 : vector<2x16xf32>
    %316 = arith.mulf %300, %308 : vector<2x16xf32>
    %317 = arith.addf %315, %316 : vector<2x16xf32>
    %318 = math.tanh %317 : vector<2x16xf32>
    %319 = arith.mulf %314, %318 : vector<2x16xf32>
    %320 = vector.extract_strided_slice %319 {offsets = [0, 0], sizes = [2, 8], strides = [1, 1]} : vector<2x16xf32> to vector<2x8xf32>
    %c5_148 = arith.constant 5 : index
    %c0_149 = arith.constant 0 : index
    %c0_150 = arith.constant 0 : index
    %321 = vector.load %arg23[%c5_148, %c0_149, %c0_150] : memref<8x2x8xf32, #tpu.memory_space<vmem>>, vector<1x2x8xf32>
    %322 = vector.shape_cast %321 : vector<1x2x8xf32> to vector<2x8xf32>
    %323 = vector.shape_cast %320 : vector<2x8xf32> to vector<1x2x8xf32>
    tpu.vector_store %arg23[%c5_148, %c0_149, %c0_150], %323 {strides = array<i32>} : memref<8x2x8xf32, #tpu.memory_space<vmem>>, vector<1x2x8xf32>,
    %324 = vector.extract_strided_slice %319 {offsets = [0, 8], sizes = [2, 8], strides = [1, 1]} : vector<2x16xf32> to vector<2x8xf32>
    %c2_151 = arith.constant 2 : index
    %c0_152 = arith.constant 0 : index
    %c0_153 = arith.constant 0 : index
    %325 = vector.load %arg24[%c2_151, %c0_152, %c0_153] : memref<8x2x8xf32, #tpu.memory_space<vmem>>, vector<1x2x8xf32>
    %326 = vector.shape_cast %325 : vector<1x2x8xf32> to vector<2x8xf32>
    %327 = vector.shape_cast %324 : vector<2x8xf32> to vector<1x2x8xf32>
    tpu.vector_store %arg24[%c2_151, %c0_152, %c0_153], %327 {strides = array<i32>} : memref<8x2x8xf32, #tpu.memory_space<vmem>>, vector<1x2x8xf32>,
    %c6_154 = arith.constant 6 : index
    %c0_155 = arith.constant 0 : index
    %c0_156 = arith.constant 0 : index
    %328 = vector.load %arg22[%c6_154, %c0_155, %c0_156] : memref<8x2x64xf32, #tpu.memory_space<vmem>>, vector<1x2x64xf32>
    %329 = vector.shape_cast %328 : vector<1x2x64xf32> to vector<2x64xf32>
    %c1_157 = arith.constant 1 : index
    %c0_158 = arith.constant 0 : index
    %c0_159 = arith.constant 0 : index
    %330 = vector.load %arg22[%c1_157, %c0_158, %c0_159] : memref<8x2x64xf32, #tpu.memory_space<vmem>>, vector<1x2x64xf32>
    %331 = vector.shape_cast %330 : vector<1x2x64xf32> to vector<2x64xf32>
    %332 = arith.select %18, %329, %331 : vector<2x64xi1>, vector<2x64xf32>
    %cst_160 = arith.constant dense<0.000000e+00> : vector<2x64xf32>
    %333 = tpu.matmul %319, %23, %cst_160 {dimension_numbers = #tpu.dot_dimension_numbers<[1], [0], [0], [1], [0, 0, 1, 1], [], []>} : vector<2x16xf32>, vector<16x64xf32>, vector<2x64xf32> -> vector<2x64xf32>
    %334 = arith.addf %332, %333 : vector<2x64xf32>
    %335 = vector.extract_strided_slice %334 {offsets = [0, 0], sizes = [2, 16], strides = [1, 1]} : vector<2x64xf32> to vector<2x16xf32>
    %336 = arith.negf %335 : vector<2x16xf32>
    %337 = math.exp %336 : vector<2x16xf32>
    %cst_161 = arith.constant 1.000000e+00 : f32
    %338 = vector.broadcast %cst_161 : f32 to vector<2x16xf32>
    %339 = arith.addf %338, %337 : vector<2x16xf32>
    %340 = arith.divf %338, %339 : vector<2x16xf32>
    %341 = vector.extract_strided_slice %334 {offsets = [0, 16], sizes = [2, 16], strides = [1, 1]} : vector<2x64xf32> to vector<2x16xf32>
    %342 = arith.negf %341 : vector<2x16xf32>
    %343 = math.exp %342 : vector<2x16xf32>
    %cst_162 = arith.constant 1.000000e+00 : f32
    %344 = vector.broadcast %cst_162 : f32 to vector<2x16xf32>
    %345 = arith.addf %344, %343 : vector<2x16xf32>
    %346 = arith.divf %344, %345 : vector<2x16xf32>
    %347 = vector.extract_strided_slice %334 {offsets = [0, 32], sizes = [2, 16], strides = [1, 1]} : vector<2x64xf32> to vector<2x16xf32>
    %348 = math.tanh %347 : vector<2x16xf32>
    %349 = vector.extract_strided_slice %334 {offsets = [0, 48], sizes = [2, 16], strides = [1, 1]} : vector<2x64xf32> to vector<2x16xf32>
    %350 = arith.negf %349 : vector<2x16xf32>
    %351 = math.exp %350 : vector<2x16xf32>
    %cst_163 = arith.constant 1.000000e+00 : f32
    %352 = vector.broadcast %cst_163 : f32 to vector<2x16xf32>
    %353 = arith.addf %352, %351 : vector<2x16xf32>
    %354 = arith.divf %352, %353 : vector<2x16xf32>
    %355 = arith.mulf %346, %317 : vector<2x16xf32>
    %356 = arith.mulf %340, %348 : vector<2x16xf32>
    %357 = arith.addf %355, %356 : vector<2x16xf32>
    %358 = math.tanh %357 : vector<2x16xf32>
    %359 = arith.mulf %354, %358 : vector<2x16xf32>
    %360 = vector.extract_strided_slice %359 {offsets = [0, 0], sizes = [2, 8], strides = [1, 1]} : vector<2x16xf32> to vector<2x8xf32>
    %c6_164 = arith.constant 6 : index
    %c0_165 = arith.constant 0 : index
    %c0_166 = arith.constant 0 : index
    %361 = vector.load %arg23[%c6_164, %c0_165, %c0_166] : memref<8x2x8xf32, #tpu.memory_space<vmem>>, vector<1x2x8xf32>
    %362 = vector.shape_cast %361 : vector<1x2x8xf32> to vector<2x8xf32>
    %363 = vector.shape_cast %360 : vector<2x8xf32> to vector<1x2x8xf32>
    tpu.vector_store %arg23[%c6_164, %c0_165, %c0_166], %363 {strides = array<i32>} : memref<8x2x8xf32, #tpu.memory_space<vmem>>, vector<1x2x8xf32>,
    %364 = vector.extract_strided_slice %359 {offsets = [0, 8], sizes = [2, 8], strides = [1, 1]} : vector<2x16xf32> to vector<2x8xf32>
    %c1_167 = arith.constant 1 : index
    %c0_168 = arith.constant 0 : index
    %c0_169 = arith.constant 0 : index
    %365 = vector.load %arg24[%c1_167, %c0_168, %c0_169] : memref<8x2x8xf32, #tpu.memory_space<vmem>>, vector<1x2x8xf32>
    %366 = vector.shape_cast %365 : vector<1x2x8xf32> to vector<2x8xf32>
    %367 = vector.shape_cast %364 : vector<2x8xf32> to vector<1x2x8xf32>
    tpu.vector_store %arg24[%c1_167, %c0_168, %c0_169], %367 {strides = array<i32>} : memref<8x2x8xf32, #tpu.memory_space<vmem>>, vector<1x2x8xf32>,
    %c7_170 = arith.constant 7 : index
    %c0_171 = arith.constant 0 : index
    %c0_172 = arith.constant 0 : index
    %368 = vector.load %arg22[%c7_170, %c0_171, %c0_172] : memref<8x2x64xf32, #tpu.memory_space<vmem>>, vector<1x2x64xf32>
    %369 = vector.shape_cast %368 : vector<1x2x64xf32> to vector<2x64xf32>
    %c0_173 = arith.constant 0 : index
    %c0_174 = arith.constant 0 : index
    %c0_175 = arith.constant 0 : index
    %370 = vector.load %arg22[%c0_173, %c0_174, %c0_175] : memref<8x2x64xf32, #tpu.memory_space<vmem>>, vector<1x2x64xf32>
    %371 = vector.shape_cast %370 : vector<1x2x64xf32> to vector<2x64xf32>
    %372 = arith.select %18, %369, %371 : vector<2x64xi1>, vector<2x64xf32>
    %cst_176 = arith.constant dense<0.000000e+00> : vector<2x64xf32>
    %373 = tpu.matmul %359, %23, %cst_176 {dimension_numbers = #tpu.dot_dimension_numbers<[1], [0], [0], [1], [0, 0, 1, 1], [], []>} : vector<2x16xf32>, vector<16x64xf32>, vector<2x64xf32> -> vector<2x64xf32>
    %374 = arith.addf %372, %373 : vector<2x64xf32>
    %375 = vector.extract_strided_slice %374 {offsets = [0, 0], sizes = [2, 16], strides = [1, 1]} : vector<2x64xf32> to vector<2x16xf32>
    %376 = arith.negf %375 : vector<2x16xf32>
    %377 = math.exp %376 : vector<2x16xf32>
    %cst_177 = arith.constant 1.000000e+00 : f32
    %378 = vector.broadcast %cst_177 : f32 to vector<2x16xf32>
    %379 = arith.addf %378, %377 : vector<2x16xf32>
    %380 = arith.divf %378, %379 : vector<2x16xf32>
    %381 = vector.extract_strided_slice %374 {offsets = [0, 16], sizes = [2, 16], strides = [1, 1]} : vector<2x64xf32> to vector<2x16xf32>
    %382 = arith.negf %381 : vector<2x16xf32>
    %383 = math.exp %382 : vector<2x16xf32>
    %cst_178 = arith.constant 1.000000e+00 : f32
    %384 = vector.broadcast %cst_178 : f32 to vector<2x16xf32>
    %385 = arith.addf %384, %383 : vector<2x16xf32>
    %386 = arith.divf %384, %385 : vector<2x16xf32>
    %387 = vector.extract_strided_slice %374 {offsets = [0, 32], sizes = [2, 16], strides = [1, 1]} : vector<2x64xf32> to vector<2x16xf32>
    %388 = math.tanh %387 : vector<2x16xf32>
    %389 = vector.extract_strided_slice %374 {offsets = [0, 48], sizes = [2, 16], strides = [1, 1]} : vector<2x64xf32> to vector<2x16xf32>
    %390 = arith.negf %389 : vector<2x16xf32>
    %391 = math.exp %390 : vector<2x16xf32>
    %cst_179 = arith.constant 1.000000e+00 : f32
    %392 = vector.broadcast %cst_179 : f32 to vector<2x16xf32>
    %393 = arith.addf %392, %391 : vector<2x16xf32>
    %394 = arith.divf %392, %393 : vector<2x16xf32>
    %395 = arith.mulf %386, %357 : vector<2x16xf32>
    %396 = arith.mulf %380, %388 : vector<2x16xf32>
    %397 = arith.addf %395, %396 : vector<2x16xf32>
    %398 = math.tanh %397 : vector<2x16xf32>
    %399 = arith.mulf %394, %398 : vector<2x16xf32>
    %400 = vector.extract_strided_slice %399 {offsets = [0, 0], sizes = [2, 8], strides = [1, 1]} : vector<2x16xf32> to vector<2x8xf32>
    %c7_180 = arith.constant 7 : index
    %c0_181 = arith.constant 0 : index
    %c0_182 = arith.constant 0 : index
    %401 = vector.load %arg23[%c7_180, %c0_181, %c0_182] : memref<8x2x8xf32, #tpu.memory_space<vmem>>, vector<1x2x8xf32>
    %402 = vector.shape_cast %401 : vector<1x2x8xf32> to vector<2x8xf32>
    %403 = vector.shape_cast %400 : vector<2x8xf32> to vector<1x2x8xf32>
    tpu.vector_store %arg23[%c7_180, %c0_181, %c0_182], %403 {strides = array<i32>} : memref<8x2x8xf32, #tpu.memory_space<vmem>>, vector<1x2x8xf32>,
    %404 = vector.extract_strided_slice %399 {offsets = [0, 8], sizes = [2, 8], strides = [1, 1]} : vector<2x16xf32> to vector<2x8xf32>
    %c0_183 = arith.constant 0 : index
    %c0_184 = arith.constant 0 : index
    %c0_185 = arith.constant 0 : index
    %405 = vector.load %arg24[%c0_183, %c0_184, %c0_185] : memref<8x2x8xf32, #tpu.memory_space<vmem>>, vector<1x2x8xf32>
    %406 = vector.shape_cast %405 : vector<1x2x8xf32> to vector<2x8xf32>
    %407 = vector.shape_cast %404 : vector<2x8xf32> to vector<1x2x8xf32>
    tpu.vector_store %arg24[%c0_183, %c0_184, %c0_185], %407 {strides = array<i32>} : memref<8x2x8xf32, #tpu.memory_space<vmem>>, vector<1x2x8xf32>,
    %c0_186 = arith.constant 0 : index
    %c0_187 = arith.constant 0 : index
    %408 = vector.load %arg4[%c0_186, %c0_187] : memref<16x64xf32, #tpu.memory_space<vmem>>, vector<16x64xf32>
    %409 = vector.extract_strided_slice %408 {offsets = [0, 0], sizes = [8, 64], strides = [1, 1]} : vector<16x64xf32> to vector<8x64xf32>
    %410 = vector.extract_strided_slice %408 {offsets = [8, 0], sizes = [8, 64], strides = [1, 1]} : vector<16x64xf32> to vector<8x64xf32>
    %c0_188 = arith.constant 0 : index
    %c0_189 = arith.constant 0 : index
    %411 = vector.load %arg6[%c0_188, %c0_189] : memref<1x64xf32, #tpu.memory_space<vmem>>, vector<1x64xf32>
    %c0_190 = arith.constant 0 : index
    %c0_191 = arith.constant 0 : index
    %412 = vector.load %arg5[%c0_190, %c0_191] : memref<16x64xf32, #tpu.memory_space<vmem>>, vector<16x64xf32>
    %c0_192 = arith.constant 0 : index
    %c0_193 = arith.constant 0 : index
    %c0_194 = arith.constant 0 : index
    %413 = vector.load %arg23[%c0_192, %c0_193, %c0_194] : memref<8x2x8xf32, #tpu.memory_space<vmem>>, vector<1x2x8xf32>
    %414 = vector.shape_cast %413 : vector<1x2x8xf32> to vector<2x8xf32>
    %cst_195 = arith.constant dense<0.000000e+00> : vector<2x64xf32>
    %415 = tpu.matmul %414, %409, %cst_195 {dimension_numbers = #tpu.dot_dimension_numbers<[1], [0], [0], [1], [0, 0, 1, 1], [], []>} : vector<2x8xf32>, vector<8x64xf32>, vector<2x64xf32> -> vector<2x64xf32>
    %c0_196 = arith.constant 0 : index
    %c0_197 = arith.constant 0 : index
    %c0_198 = arith.constant 0 : index
    %416 = vector.load %arg24[%c0_196, %c0_197, %c0_198] : memref<8x2x8xf32, #tpu.memory_space<vmem>>, vector<1x2x8xf32>
    %417 = vector.shape_cast %416 : vector<1x2x8xf32> to vector<2x8xf32>
    %cst_199 = arith.constant dense<0.000000e+00> : vector<2x64xf32>
    %418 = tpu.matmul %417, %410, %cst_199 {dimension_numbers = #tpu.dot_dimension_numbers<[1], [0], [0], [1], [0, 0, 1, 1], [], []>} : vector<2x8xf32>, vector<8x64xf32>, vector<2x64xf32> -> vector<2x64xf32>
    %419 = arith.addf %415, %418 : vector<2x64xf32>
    %420 = vector.broadcast %411 : vector<1x64xf32> to vector<2x64xf32>
    %421 = arith.addf %419, %420 : vector<2x64xf32>
    %c0_200 = arith.constant 0 : index
    %c0_201 = arith.constant 0 : index
    %c0_202 = arith.constant 0 : index
    %422 = vector.load %arg22[%c0_200, %c0_201, %c0_202] : memref<8x2x64xf32, #tpu.memory_space<vmem>>, vector<1x2x64xf32>
    %423 = vector.shape_cast %422 : vector<1x2x64xf32> to vector<2x64xf32>
    %424 = vector.shape_cast %421 : vector<2x64xf32> to vector<1x2x64xf32>
    tpu.vector_store %arg22[%c0_200, %c0_201, %c0_202], %424 {strides = array<i32>} : memref<8x2x64xf32, #tpu.memory_space<vmem>>, vector<1x2x64xf32>,
    %c1_203 = arith.constant 1 : index
    %c0_204 = arith.constant 0 : index
    %c0_205 = arith.constant 0 : index
    %425 = vector.load %arg23[%c1_203, %c0_204, %c0_205] : memref<8x2x8xf32, #tpu.memory_space<vmem>>, vector<1x2x8xf32>
    %426 = vector.shape_cast %425 : vector<1x2x8xf32> to vector<2x8xf32>
    %cst_206 = arith.constant dense<0.000000e+00> : vector<2x64xf32>
    %427 = tpu.matmul %426, %409, %cst_206 {dimension_numbers = #tpu.dot_dimension_numbers<[1], [0], [0], [1], [0, 0, 1, 1], [], []>} : vector<2x8xf32>, vector<8x64xf32>, vector<2x64xf32> -> vector<2x64xf32>
    %c1_207 = arith.constant 1 : index
    %c0_208 = arith.constant 0 : index
    %c0_209 = arith.constant 0 : index
    %428 = vector.load %arg24[%c1_207, %c0_208, %c0_209] : memref<8x2x8xf32, #tpu.memory_space<vmem>>, vector<1x2x8xf32>
    %429 = vector.shape_cast %428 : vector<1x2x8xf32> to vector<2x8xf32>
    %cst_210 = arith.constant dense<0.000000e+00> : vector<2x64xf32>
    %430 = tpu.matmul %429, %410, %cst_210 {dimension_numbers = #tpu.dot_dimension_numbers<[1], [0], [0], [1], [0, 0, 1, 1], [], []>} : vector<2x8xf32>, vector<8x64xf32>, vector<2x64xf32> -> vector<2x64xf32>
    %431 = arith.addf %427, %430 : vector<2x64xf32>
    %432 = vector.broadcast %411 : vector<1x64xf32> to vector<2x64xf32>
    %433 = arith.addf %431, %432 : vector<2x64xf32>
    %c1_211 = arith.constant 1 : index
    %c0_212 = arith.constant 0 : index
    %c0_213 = arith.constant 0 : index
    %434 = vector.load %arg22[%c1_211, %c0_212, %c0_213] : memref<8x2x64xf32, #tpu.memory_space<vmem>>, vector<1x2x64xf32>
    %435 = vector.shape_cast %434 : vector<1x2x64xf32> to vector<2x64xf32>
    %436 = vector.shape_cast %433 : vector<2x64xf32> to vector<1x2x64xf32>
    tpu.vector_store %arg22[%c1_211, %c0_212, %c0_213], %436 {strides = array<i32>} : memref<8x2x64xf32, #tpu.memory_space<vmem>>, vector<1x2x64xf32>,
    %c2_214 = arith.constant 2 : index
    %c0_215 = arith.constant 0 : index
    %c0_216 = arith.constant 0 : index
    %437 = vector.load %arg23[%c2_214, %c0_215, %c0_216] : memref<8x2x8xf32, #tpu.memory_space<vmem>>, vector<1x2x8xf32>
    %438 = vector.shape_cast %437 : vector<1x2x8xf32> to vector<2x8xf32>
    %cst_217 = arith.constant dense<0.000000e+00> : vector<2x64xf32>
    %439 = tpu.matmul %438, %409, %cst_217 {dimension_numbers = #tpu.dot_dimension_numbers<[1], [0], [0], [1], [0, 0, 1, 1], [], []>} : vector<2x8xf32>, vector<8x64xf32>, vector<2x64xf32> -> vector<2x64xf32>
    %c2_218 = arith.constant 2 : index
    %c0_219 = arith.constant 0 : index
    %c0_220 = arith.constant 0 : index
    %440 = vector.load %arg24[%c2_218, %c0_219, %c0_220] : memref<8x2x8xf32, #tpu.memory_space<vmem>>, vector<1x2x8xf32>
    %441 = vector.shape_cast %440 : vector<1x2x8xf32> to vector<2x8xf32>
    %cst_221 = arith.constant dense<0.000000e+00> : vector<2x64xf32>
    %442 = tpu.matmul %441, %410, %cst_221 {dimension_numbers = #tpu.dot_dimension_numbers<[1], [0], [0], [1], [0, 0, 1, 1], [], []>} : vector<2x8xf32>, vector<8x64xf32>, vector<2x64xf32> -> vector<2x64xf32>
    %443 = arith.addf %439, %442 : vector<2x64xf32>
    %444 = vector.broadcast %411 : vector<1x64xf32> to vector<2x64xf32>
    %445 = arith.addf %443, %444 : vector<2x64xf32>
    %c2_222 = arith.constant 2 : index
    %c0_223 = arith.constant 0 : index
    %c0_224 = arith.constant 0 : index
    %446 = vector.load %arg22[%c2_222, %c0_223, %c0_224] : memref<8x2x64xf32, #tpu.memory_space<vmem>>, vector<1x2x64xf32>
    %447 = vector.shape_cast %446 : vector<1x2x64xf32> to vector<2x64xf32>
    %448 = vector.shape_cast %445 : vector<2x64xf32> to vector<1x2x64xf32>
    tpu.vector_store %arg22[%c2_222, %c0_223, %c0_224], %448 {strides = array<i32>} : memref<8x2x64xf32, #tpu.memory_space<vmem>>, vector<1x2x64xf32>,
    %c3_225 = arith.constant 3 : index
    %c0_226 = arith.constant 0 : index
    %c0_227 = arith.constant 0 : index
    %449 = vector.load %arg23[%c3_225, %c0_226, %c0_227] : memref<8x2x8xf32, #tpu.memory_space<vmem>>, vector<1x2x8xf32>
    %450 = vector.shape_cast %449 : vector<1x2x8xf32> to vector<2x8xf32>
    %cst_228 = arith.constant dense<0.000000e+00> : vector<2x64xf32>
    %451 = tpu.matmul %450, %409, %cst_228 {dimension_numbers = #tpu.dot_dimension_numbers<[1], [0], [0], [1], [0, 0, 1, 1], [], []>} : vector<2x8xf32>, vector<8x64xf32>, vector<2x64xf32> -> vector<2x64xf32>
    %c3_229 = arith.constant 3 : index
    %c0_230 = arith.constant 0 : index
    %c0_231 = arith.constant 0 : index
    %452 = vector.load %arg24[%c3_229, %c0_230, %c0_231] : memref<8x2x8xf32, #tpu.memory_space<vmem>>, vector<1x2x8xf32>
    %453 = vector.shape_cast %452 : vector<1x2x8xf32> to vector<2x8xf32>
    %cst_232 = arith.constant dense<0.000000e+00> : vector<2x64xf32>
    %454 = tpu.matmul %453, %410, %cst_232 {dimension_numbers = #tpu.dot_dimension_numbers<[1], [0], [0], [1], [0, 0, 1, 1], [], []>} : vector<2x8xf32>, vector<8x64xf32>, vector<2x64xf32> -> vector<2x64xf32>
    %455 = arith.addf %451, %454 : vector<2x64xf32>
    %456 = vector.broadcast %411 : vector<1x64xf32> to vector<2x64xf32>
    %457 = arith.addf %455, %456 : vector<2x64xf32>
    %c3_233 = arith.constant 3 : index
    %c0_234 = arith.constant 0 : index
    %c0_235 = arith.constant 0 : index
    %458 = vector.load %arg22[%c3_233, %c0_234, %c0_235] : memref<8x2x64xf32, #tpu.memory_space<vmem>>, vector<1x2x64xf32>
    %459 = vector.shape_cast %458 : vector<1x2x64xf32> to vector<2x64xf32>
    %460 = vector.shape_cast %457 : vector<2x64xf32> to vector<1x2x64xf32>
    tpu.vector_store %arg22[%c3_233, %c0_234, %c0_235], %460 {strides = array<i32>} : memref<8x2x64xf32, #tpu.memory_space<vmem>>, vector<1x2x64xf32>,
    %c4_236 = arith.constant 4 : index
    %c0_237 = arith.constant 0 : index
    %c0_238 = arith.constant 0 : index
    %461 = vector.load %arg23[%c4_236, %c0_237, %c0_238] : memref<8x2x8xf32, #tpu.memory_space<vmem>>, vector<1x2x8xf32>
    %462 = vector.shape_cast %461 : vector<1x2x8xf32> to vector<2x8xf32>
    %cst_239 = arith.constant dense<0.000000e+00> : vector<2x64xf32>
    %463 = tpu.matmul %462, %409, %cst_239 {dimension_numbers = #tpu.dot_dimension_numbers<[1], [0], [0], [1], [0, 0, 1, 1], [], []>} : vector<2x8xf32>, vector<8x64xf32>, vector<2x64xf32> -> vector<2x64xf32>
    %c4_240 = arith.constant 4 : index
    %c0_241 = arith.constant 0 : index
    %c0_242 = arith.constant 0 : index
    %464 = vector.load %arg24[%c4_240, %c0_241, %c0_242] : memref<8x2x8xf32, #tpu.memory_space<vmem>>, vector<1x2x8xf32>
    %465 = vector.shape_cast %464 : vector<1x2x8xf32> to vector<2x8xf32>
    %cst_243 = arith.constant dense<0.000000e+00> : vector<2x64xf32>
    %466 = tpu.matmul %465, %410, %cst_243 {dimension_numbers = #tpu.dot_dimension_numbers<[1], [0], [0], [1], [0, 0, 1, 1], [], []>} : vector<2x8xf32>, vector<8x64xf32>, vector<2x64xf32> -> vector<2x64xf32>
    %467 = arith.addf %463, %466 : vector<2x64xf32>
    %468 = vector.broadcast %411 : vector<1x64xf32> to vector<2x64xf32>
    %469 = arith.addf %467, %468 : vector<2x64xf32>
    %c4_244 = arith.constant 4 : index
    %c0_245 = arith.constant 0 : index
    %c0_246 = arith.constant 0 : index
    %470 = vector.load %arg22[%c4_244, %c0_245, %c0_246] : memref<8x2x64xf32, #tpu.memory_space<vmem>>, vector<1x2x64xf32>
    %471 = vector.shape_cast %470 : vector<1x2x64xf32> to vector<2x64xf32>
    %472 = vector.shape_cast %469 : vector<2x64xf32> to vector<1x2x64xf32>
    tpu.vector_store %arg22[%c4_244, %c0_245, %c0_246], %472 {strides = array<i32>} : memref<8x2x64xf32, #tpu.memory_space<vmem>>, vector<1x2x64xf32>,
    %c5_247 = arith.constant 5 : index
    %c0_248 = arith.constant 0 : index
    %c0_249 = arith.constant 0 : index
    %473 = vector.load %arg23[%c5_247, %c0_248, %c0_249] : memref<8x2x8xf32, #tpu.memory_space<vmem>>, vector<1x2x8xf32>
    %474 = vector.shape_cast %473 : vector<1x2x8xf32> to vector<2x8xf32>
    %cst_250 = arith.constant dense<0.000000e+00> : vector<2x64xf32>
    %475 = tpu.matmul %474, %409, %cst_250 {dimension_numbers = #tpu.dot_dimension_numbers<[1], [0], [0], [1], [0, 0, 1, 1], [], []>} : vector<2x8xf32>, vector<8x64xf32>, vector<2x64xf32> -> vector<2x64xf32>
    %c5_251 = arith.constant 5 : index
    %c0_252 = arith.constant 0 : index
    %c0_253 = arith.constant 0 : index
    %476 = vector.load %arg24[%c5_251, %c0_252, %c0_253] : memref<8x2x8xf32, #tpu.memory_space<vmem>>, vector<1x2x8xf32>
    %477 = vector.shape_cast %476 : vector<1x2x8xf32> to vector<2x8xf32>
    %cst_254 = arith.constant dense<0.000000e+00> : vector<2x64xf32>
    %478 = tpu.matmul %477, %410, %cst_254 {dimension_numbers = #tpu.dot_dimension_numbers<[1], [0], [0], [1], [0, 0, 1, 1], [], []>} : vector<2x8xf32>, vector<8x64xf32>, vector<2x64xf32> -> vector<2x64xf32>
    %479 = arith.addf %475, %478 : vector<2x64xf32>
    %480 = vector.broadcast %411 : vector<1x64xf32> to vector<2x64xf32>
    %481 = arith.addf %479, %480 : vector<2x64xf32>
    %c5_255 = arith.constant 5 : index
    %c0_256 = arith.constant 0 : index
    %c0_257 = arith.constant 0 : index
    %482 = vector.load %arg22[%c5_255, %c0_256, %c0_257] : memref<8x2x64xf32, #tpu.memory_space<vmem>>, vector<1x2x64xf32>
    %483 = vector.shape_cast %482 : vector<1x2x64xf32> to vector<2x64xf32>
    %484 = vector.shape_cast %481 : vector<2x64xf32> to vector<1x2x64xf32>
    tpu.vector_store %arg22[%c5_255, %c0_256, %c0_257], %484 {strides = array<i32>} : memref<8x2x64xf32, #tpu.memory_space<vmem>>, vector<1x2x64xf32>,
    %c6_258 = arith.constant 6 : index
    %c0_259 = arith.constant 0 : index
    %c0_260 = arith.constant 0 : index
    %485 = vector.load %arg23[%c6_258, %c0_259, %c0_260] : memref<8x2x8xf32, #tpu.memory_space<vmem>>, vector<1x2x8xf32>
    %486 = vector.shape_cast %485 : vector<1x2x8xf32> to vector<2x8xf32>
    %cst_261 = arith.constant dense<0.000000e+00> : vector<2x64xf32>
    %487 = tpu.matmul %486, %409, %cst_261 {dimension_numbers = #tpu.dot_dimension_numbers<[1], [0], [0], [1], [0, 0, 1, 1], [], []>} : vector<2x8xf32>, vector<8x64xf32>, vector<2x64xf32> -> vector<2x64xf32>
    %c6_262 = arith.constant 6 : index
    %c0_263 = arith.constant 0 : index
    %c0_264 = arith.constant 0 : index
    %488 = vector.load %arg24[%c6_262, %c0_263, %c0_264] : memref<8x2x8xf32, #tpu.memory_space<vmem>>, vector<1x2x8xf32>
    %489 = vector.shape_cast %488 : vector<1x2x8xf32> to vector<2x8xf32>
    %cst_265 = arith.constant dense<0.000000e+00> : vector<2x64xf32>
    %490 = tpu.matmul %489, %410, %cst_265 {dimension_numbers = #tpu.dot_dimension_numbers<[1], [0], [0], [1], [0, 0, 1, 1], [], []>} : vector<2x8xf32>, vector<8x64xf32>, vector<2x64xf32> -> vector<2x64xf32>
    %491 = arith.addf %487, %490 : vector<2x64xf32>
    %492 = vector.broadcast %411 : vector<1x64xf32> to vector<2x64xf32>
    %493 = arith.addf %491, %492 : vector<2x64xf32>
    %c6_266 = arith.constant 6 : index
    %c0_267 = arith.constant 0 : index
    %c0_268 = arith.constant 0 : index
    %494 = vector.load %arg22[%c6_266, %c0_267, %c0_268] : memref<8x2x64xf32, #tpu.memory_space<vmem>>, vector<1x2x64xf32>
    %495 = vector.shape_cast %494 : vector<1x2x64xf32> to vector<2x64xf32>
    %496 = vector.shape_cast %493 : vector<2x64xf32> to vector<1x2x64xf32>
    tpu.vector_store %arg22[%c6_266, %c0_267, %c0_268], %496 {strides = array<i32>} : memref<8x2x64xf32, #tpu.memory_space<vmem>>, vector<1x2x64xf32>,
    %c7_269 = arith.constant 7 : index
    %c0_270 = arith.constant 0 : index
    %c0_271 = arith.constant 0 : index
    %497 = vector.load %arg23[%c7_269, %c0_270, %c0_271] : memref<8x2x8xf32, #tpu.memory_space<vmem>>, vector<1x2x8xf32>
    %498 = vector.shape_cast %497 : vector<1x2x8xf32> to vector<2x8xf32>
    %cst_272 = arith.constant dense<0.000000e+00> : vector<2x64xf32>
    %499 = tpu.matmul %498, %409, %cst_272 {dimension_numbers = #tpu.dot_dimension_numbers<[1], [0], [0], [1], [0, 0, 1, 1], [], []>} : vector<2x8xf32>, vector<8x64xf32>, vector<2x64xf32> -> vector<2x64xf32>
    %c7_273 = arith.constant 7 : index
    %c0_274 = arith.constant 0 : index
    %c0_275 = arith.constant 0 : index
    %500 = vector.load %arg24[%c7_273, %c0_274, %c0_275] : memref<8x2x8xf32, #tpu.memory_space<vmem>>, vector<1x2x8xf32>
    %501 = vector.shape_cast %500 : vector<1x2x8xf32> to vector<2x8xf32>
    %cst_276 = arith.constant dense<0.000000e+00> : vector<2x64xf32>
    %502 = tpu.matmul %501, %410, %cst_276 {dimension_numbers = #tpu.dot_dimension_numbers<[1], [0], [0], [1], [0, 0, 1, 1], [], []>} : vector<2x8xf32>, vector<8x64xf32>, vector<2x64xf32> -> vector<2x64xf32>
    %503 = arith.addf %499, %502 : vector<2x64xf32>
    %504 = vector.broadcast %411 : vector<1x64xf32> to vector<2x64xf32>
    %505 = arith.addf %503, %504 : vector<2x64xf32>
    %c7_277 = arith.constant 7 : index
    %c0_278 = arith.constant 0 : index
    %c0_279 = arith.constant 0 : index
    %506 = vector.load %arg22[%c7_277, %c0_278, %c0_279] : memref<8x2x64xf32, #tpu.memory_space<vmem>>, vector<1x2x64xf32>
    %507 = vector.shape_cast %506 : vector<1x2x64xf32> to vector<2x64xf32>
    %508 = vector.shape_cast %505 : vector<2x64xf32> to vector<1x2x64xf32>
    tpu.vector_store %arg22[%c7_277, %c0_278, %c0_279], %508 {strides = array<i32>} : memref<8x2x64xf32, #tpu.memory_space<vmem>>, vector<1x2x64xf32>,
    %c0_280 = arith.constant 0 : index
    %c0_281 = arith.constant 0 : index
    %c0_282 = arith.constant 0 : index
    %509 = vector.load %arg22[%c0_280, %c0_281, %c0_282] : memref<8x2x64xf32, #tpu.memory_space<vmem>>, vector<1x2x64xf32>
    %510 = vector.shape_cast %509 : vector<1x2x64xf32> to vector<2x64xf32>
    %c7_283 = arith.constant 7 : index
    %c0_284 = arith.constant 0 : index
    %c0_285 = arith.constant 0 : index
    %511 = vector.load %arg22[%c7_283, %c0_284, %c0_285] : memref<8x2x64xf32, #tpu.memory_space<vmem>>, vector<1x2x64xf32>
    %512 = vector.shape_cast %511 : vector<1x2x64xf32> to vector<2x64xf32>
    %513 = arith.select %18, %510, %512 : vector<2x64xi1>, vector<2x64xf32>
    %cst_286 = arith.constant dense<0.000000e+00> : vector<2x64xf32>
    %514 = tpu.matmul %20, %412, %cst_286 {dimension_numbers = #tpu.dot_dimension_numbers<[1], [0], [0], [1], [0, 0, 1, 1], [], []>} : vector<2x16xf32>, vector<16x64xf32>, vector<2x64xf32> -> vector<2x64xf32>
    %515 = arith.addf %513, %514 : vector<2x64xf32>
    %516 = vector.extract_strided_slice %515 {offsets = [0, 0], sizes = [2, 16], strides = [1, 1]} : vector<2x64xf32> to vector<2x16xf32>
    %517 = arith.negf %516 : vector<2x16xf32>
    %518 = math.exp %517 : vector<2x16xf32>
    %cst_287 = arith.constant 1.000000e+00 : f32
    %519 = vector.broadcast %cst_287 : f32 to vector<2x16xf32>
    %520 = arith.addf %519, %518 : vector<2x16xf32>
    %521 = arith.divf %519, %520 : vector<2x16xf32>
    %522 = vector.extract_strided_slice %515 {offsets = [0, 16], sizes = [2, 16], strides = [1, 1]} : vector<2x64xf32> to vector<2x16xf32>
    %523 = arith.negf %522 : vector<2x16xf32>
    %524 = math.exp %523 : vector<2x16xf32>
    %cst_288 = arith.constant 1.000000e+00 : f32
    %525 = vector.broadcast %cst_288 : f32 to vector<2x16xf32>
    %526 = arith.addf %525, %524 : vector<2x16xf32>
    %527 = arith.divf %525, %526 : vector<2x16xf32>
    %528 = vector.extract_strided_slice %515 {offsets = [0, 32], sizes = [2, 16], strides = [1, 1]} : vector<2x64xf32> to vector<2x16xf32>
    %529 = math.tanh %528 : vector<2x16xf32>
    %530 = vector.extract_strided_slice %515 {offsets = [0, 48], sizes = [2, 16], strides = [1, 1]} : vector<2x64xf32> to vector<2x16xf32>
    %531 = arith.negf %530 : vector<2x16xf32>
    %532 = math.exp %531 : vector<2x16xf32>
    %cst_289 = arith.constant 1.000000e+00 : f32
    %533 = vector.broadcast %cst_289 : f32 to vector<2x16xf32>
    %534 = arith.addf %533, %532 : vector<2x16xf32>
    %535 = arith.divf %533, %534 : vector<2x16xf32>
    %536 = arith.mulf %527, %20 : vector<2x16xf32>
    %537 = arith.mulf %521, %529 : vector<2x16xf32>
    %538 = arith.addf %536, %537 : vector<2x16xf32>
    %539 = math.tanh %538 : vector<2x16xf32>
    %540 = arith.mulf %535, %539 : vector<2x16xf32>
    %541 = vector.extract_strided_slice %540 {offsets = [0, 0], sizes = [2, 8], strides = [1, 1]} : vector<2x16xf32> to vector<2x8xf32>
    %c0_290 = arith.constant 0 : index
    %c0_291 = arith.constant 0 : index
    %c0_292 = arith.constant 0 : index
    %542 = vector.load %arg23[%c0_290, %c0_291, %c0_292] : memref<8x2x8xf32, #tpu.memory_space<vmem>>, vector<1x2x8xf32>
    %543 = vector.shape_cast %542 : vector<1x2x8xf32> to vector<2x8xf32>
    %544 = vector.shape_cast %541 : vector<2x8xf32> to vector<1x2x8xf32>
    tpu.vector_store %arg23[%c0_290, %c0_291, %c0_292], %544 {strides = array<i32>} : memref<8x2x8xf32, #tpu.memory_space<vmem>>, vector<1x2x8xf32>,
    %545 = vector.extract_strided_slice %540 {offsets = [0, 8], sizes = [2, 8], strides = [1, 1]} : vector<2x16xf32> to vector<2x8xf32>
    %c7_293 = arith.constant 7 : index
    %c0_294 = arith.constant 0 : index
    %c0_295 = arith.constant 0 : index
    %546 = vector.load %arg24[%c7_293, %c0_294, %c0_295] : memref<8x2x8xf32, #tpu.memory_space<vmem>>, vector<1x2x8xf32>
    %547 = vector.shape_cast %546 : vector<1x2x8xf32> to vector<2x8xf32>
    %548 = vector.shape_cast %545 : vector<2x8xf32> to vector<1x2x8xf32>
    tpu.vector_store %arg24[%c7_293, %c0_294, %c0_295], %548 {strides = array<i32>} : memref<8x2x8xf32, #tpu.memory_space<vmem>>, vector<1x2x8xf32>,
    %c1_296 = arith.constant 1 : index
    %c0_297 = arith.constant 0 : index
    %c0_298 = arith.constant 0 : index
    %549 = vector.load %arg22[%c1_296, %c0_297, %c0_298] : memref<8x2x64xf32, #tpu.memory_space<vmem>>, vector<1x2x64xf32>
    %550 = vector.shape_cast %549 : vector<1x2x64xf32> to vector<2x64xf32>
    %c6_299 = arith.constant 6 : index
    %c0_300 = arith.constant 0 : index
    %c0_301 = arith.constant 0 : index
    %551 = vector.load %arg22[%c6_299, %c0_300, %c0_301] : memref<8x2x64xf32, #tpu.memory_space<vmem>>, vector<1x2x64xf32>
    %552 = vector.shape_cast %551 : vector<1x2x64xf32> to vector<2x64xf32>
    %553 = arith.select %18, %550, %552 : vector<2x64xi1>, vector<2x64xf32>
    %cst_302 = arith.constant dense<0.000000e+00> : vector<2x64xf32>
    %554 = tpu.matmul %540, %412, %cst_302 {dimension_numbers = #tpu.dot_dimension_numbers<[1], [0], [0], [1], [0, 0, 1, 1], [], []>} : vector<2x16xf32>, vector<16x64xf32>, vector<2x64xf32> -> vector<2x64xf32>
    %555 = arith.addf %553, %554 : vector<2x64xf32>
    %556 = vector.extract_strided_slice %555 {offsets = [0, 0], sizes = [2, 16], strides = [1, 1]} : vector<2x64xf32> to vector<2x16xf32>
    %557 = arith.negf %556 : vector<2x16xf32>
    %558 = math.exp %557 : vector<2x16xf32>
    %cst_303 = arith.constant 1.000000e+00 : f32
    %559 = vector.broadcast %cst_303 : f32 to vector<2x16xf32>
    %560 = arith.addf %559, %558 : vector<2x16xf32>
    %561 = arith.divf %559, %560 : vector<2x16xf32>
    %562 = vector.extract_strided_slice %555 {offsets = [0, 16], sizes = [2, 16], strides = [1, 1]} : vector<2x64xf32> to vector<2x16xf32>
    %563 = arith.negf %562 : vector<2x16xf32>
    %564 = math.exp %563 : vector<2x16xf32>
    %cst_304 = arith.constant 1.000000e+00 : f32
    %565 = vector.broadcast %cst_304 : f32 to vector<2x16xf32>
    %566 = arith.addf %565, %564 : vector<2x16xf32>
    %567 = arith.divf %565, %566 : vector<2x16xf32>
    %568 = vector.extract_strided_slice %555 {offsets = [0, 32], sizes = [2, 16], strides = [1, 1]} : vector<2x64xf32> to vector<2x16xf32>
    %569 = math.tanh %568 : vector<2x16xf32>
    %570 = vector.extract_strided_slice %555 {offsets = [0, 48], sizes = [2, 16], strides = [1, 1]} : vector<2x64xf32> to vector<2x16xf32>
    %571 = arith.negf %570 : vector<2x16xf32>
    %572 = math.exp %571 : vector<2x16xf32>
    %cst_305 = arith.constant 1.000000e+00 : f32
    %573 = vector.broadcast %cst_305 : f32 to vector<2x16xf32>
    %574 = arith.addf %573, %572 : vector<2x16xf32>
    %575 = arith.divf %573, %574 : vector<2x16xf32>
    %576 = arith.mulf %567, %538 : vector<2x16xf32>
    %577 = arith.mulf %561, %569 : vector<2x16xf32>
    %578 = arith.addf %576, %577 : vector<2x16xf32>
    %579 = math.tanh %578 : vector<2x16xf32>
    %580 = arith.mulf %575, %579 : vector<2x16xf32>
    %581 = vector.extract_strided_slice %580 {offsets = [0, 0], sizes = [2, 8], strides = [1, 1]} : vector<2x16xf32> to vector<2x8xf32>
    %c1_306 = arith.constant 1 : index
    %c0_307 = arith.constant 0 : index
    %c0_308 = arith.constant 0 : index
    %582 = vector.load %arg23[%c1_306, %c0_307, %c0_308] : memref<8x2x8xf32, #tpu.memory_space<vmem>>, vector<1x2x8xf32>
    %583 = vector.shape_cast %582 : vector<1x2x8xf32> to vector<2x8xf32>
    %584 = vector.shape_cast %581 : vector<2x8xf32> to vector<1x2x8xf32>
    tpu.vector_store %arg23[%c1_306, %c0_307, %c0_308], %584 {strides = array<i32>} : memref<8x2x8xf32, #tpu.memory_space<vmem>>, vector<1x2x8xf32>,
    %585 = vector.extract_strided_slice %580 {offsets = [0, 8], sizes = [2, 8], strides = [1, 1]} : vector<2x16xf32> to vector<2x8xf32>
    %c6_309 = arith.constant 6 : index
    %c0_310 = arith.constant 0 : index
    %c0_311 = arith.constant 0 : index
    %586 = vector.load %arg24[%c6_309, %c0_310, %c0_311] : memref<8x2x8xf32, #tpu.memory_space<vmem>>, vector<1x2x8xf32>
    %587 = vector.shape_cast %586 : vector<1x2x8xf32> to vector<2x8xf32>
    %588 = vector.shape_cast %585 : vector<2x8xf32> to vector<1x2x8xf32>
    tpu.vector_store %arg24[%c6_309, %c0_310, %c0_311], %588 {strides = array<i32>} : memref<8x2x8xf32, #tpu.memory_space<vmem>>, vector<1x2x8xf32>,
    %c2_312 = arith.constant 2 : index
    %c0_313 = arith.constant 0 : index
    %c0_314 = arith.constant 0 : index
    %589 = vector.load %arg22[%c2_312, %c0_313, %c0_314] : memref<8x2x64xf32, #tpu.memory_space<vmem>>, vector<1x2x64xf32>
    %590 = vector.shape_cast %589 : vector<1x2x64xf32> to vector<2x64xf32>
    %c5_315 = arith.constant 5 : index
    %c0_316 = arith.constant 0 : index
    %c0_317 = arith.constant 0 : index
    %591 = vector.load %arg22[%c5_315, %c0_316, %c0_317] : memref<8x2x64xf32, #tpu.memory_space<vmem>>, vector<1x2x64xf32>
    %592 = vector.shape_cast %591 : vector<1x2x64xf32> to vector<2x64xf32>
    %593 = arith.select %18, %590, %592 : vector<2x64xi1>, vector<2x64xf32>
    %cst_318 = arith.constant dense<0.000000e+00> : vector<2x64xf32>
    %594 = tpu.matmul %580, %412, %cst_318 {dimension_numbers = #tpu.dot_dimension_numbers<[1], [0], [0], [1], [0, 0, 1, 1], [], []>} : vector<2x16xf32>, vector<16x64xf32>, vector<2x64xf32> -> vector<2x64xf32>
    %595 = arith.addf %593, %594 : vector<2x64xf32>
    %596 = vector.extract_strided_slice %595 {offsets = [0, 0], sizes = [2, 16], strides = [1, 1]} : vector<2x64xf32> to vector<2x16xf32>
    %597 = arith.negf %596 : vector<2x16xf32>
    %598 = math.exp %597 : vector<2x16xf32>
    %cst_319 = arith.constant 1.000000e+00 : f32
    %599 = vector.broadcast %cst_319 : f32 to vector<2x16xf32>
    %600 = arith.addf %599, %598 : vector<2x16xf32>
    %601 = arith.divf %599, %600 : vector<2x16xf32>
    %602 = vector.extract_strided_slice %595 {offsets = [0, 16], sizes = [2, 16], strides = [1, 1]} : vector<2x64xf32> to vector<2x16xf32>
    %603 = arith.negf %602 : vector<2x16xf32>
    %604 = math.exp %603 : vector<2x16xf32>
    %cst_320 = arith.constant 1.000000e+00 : f32
    %605 = vector.broadcast %cst_320 : f32 to vector<2x16xf32>
    %606 = arith.addf %605, %604 : vector<2x16xf32>
    %607 = arith.divf %605, %606 : vector<2x16xf32>
    %608 = vector.extract_strided_slice %595 {offsets = [0, 32], sizes = [2, 16], strides = [1, 1]} : vector<2x64xf32> to vector<2x16xf32>
    %609 = math.tanh %608 : vector<2x16xf32>
    %610 = vector.extract_strided_slice %595 {offsets = [0, 48], sizes = [2, 16], strides = [1, 1]} : vector<2x64xf32> to vector<2x16xf32>
    %611 = arith.negf %610 : vector<2x16xf32>
    %612 = math.exp %611 : vector<2x16xf32>
    %cst_321 = arith.constant 1.000000e+00 : f32
    %613 = vector.broadcast %cst_321 : f32 to vector<2x16xf32>
    %614 = arith.addf %613, %612 : vector<2x16xf32>
    %615 = arith.divf %613, %614 : vector<2x16xf32>
    %616 = arith.mulf %607, %578 : vector<2x16xf32>
    %617 = arith.mulf %601, %609 : vector<2x16xf32>
    %618 = arith.addf %616, %617 : vector<2x16xf32>
    %619 = math.tanh %618 : vector<2x16xf32>
    %620 = arith.mulf %615, %619 : vector<2x16xf32>
    %621 = vector.extract_strided_slice %620 {offsets = [0, 0], sizes = [2, 8], strides = [1, 1]} : vector<2x16xf32> to vector<2x8xf32>
    %c2_322 = arith.constant 2 : index
    %c0_323 = arith.constant 0 : index
    %c0_324 = arith.constant 0 : index
    %622 = vector.load %arg23[%c2_322, %c0_323, %c0_324] : memref<8x2x8xf32, #tpu.memory_space<vmem>>, vector<1x2x8xf32>
    %623 = vector.shape_cast %622 : vector<1x2x8xf32> to vector<2x8xf32>
    %624 = vector.shape_cast %621 : vector<2x8xf32> to vector<1x2x8xf32>
    tpu.vector_store %arg23[%c2_322, %c0_323, %c0_324], %624 {strides = array<i32>} : memref<8x2x8xf32, #tpu.memory_space<vmem>>, vector<1x2x8xf32>,
    %625 = vector.extract_strided_slice %620 {offsets = [0, 8], sizes = [2, 8], strides = [1, 1]} : vector<2x16xf32> to vector<2x8xf32>
    %c5_325 = arith.constant 5 : index
    %c0_326 = arith.constant 0 : index
    %c0_327 = arith.constant 0 : index
    %626 = vector.load %arg24[%c5_325, %c0_326, %c0_327] : memref<8x2x8xf32, #tpu.memory_space<vmem>>, vector<1x2x8xf32>
    %627 = vector.shape_cast %626 : vector<1x2x8xf32> to vector<2x8xf32>
    %628 = vector.shape_cast %625 : vector<2x8xf32> to vector<1x2x8xf32>
    tpu.vector_store %arg24[%c5_325, %c0_326, %c0_327], %628 {strides = array<i32>} : memref<8x2x8xf32, #tpu.memory_space<vmem>>, vector<1x2x8xf32>,
    %c3_328 = arith.constant 3 : index
    %c0_329 = arith.constant 0 : index
    %c0_330 = arith.constant 0 : index
    %629 = vector.load %arg22[%c3_328, %c0_329, %c0_330] : memref<8x2x64xf32, #tpu.memory_space<vmem>>, vector<1x2x64xf32>
    %630 = vector.shape_cast %629 : vector<1x2x64xf32> to vector<2x64xf32>
    %c4_331 = arith.constant 4 : index
    %c0_332 = arith.constant 0 : index
    %c0_333 = arith.constant 0 : index
    %631 = vector.load %arg22[%c4_331, %c0_332, %c0_333] : memref<8x2x64xf32, #tpu.memory_space<vmem>>, vector<1x2x64xf32>
    %632 = vector.shape_cast %631 : vector<1x2x64xf32> to vector<2x64xf32>
    %633 = arith.select %18, %630, %632 : vector<2x64xi1>, vector<2x64xf32>
    %cst_334 = arith.constant dense<0.000000e+00> : vector<2x64xf32>
    %634 = tpu.matmul %620, %412, %cst_334 {dimension_numbers = #tpu.dot_dimension_numbers<[1], [0], [0], [1], [0, 0, 1, 1], [], []>} : vector<2x16xf32>, vector<16x64xf32>, vector<2x64xf32> -> vector<2x64xf32>
    %635 = arith.addf %633, %634 : vector<2x64xf32>
    %636 = vector.extract_strided_slice %635 {offsets = [0, 0], sizes = [2, 16], strides = [1, 1]} : vector<2x64xf32> to vector<2x16xf32>
    %637 = arith.negf %636 : vector<2x16xf32>
    %638 = math.exp %637 : vector<2x16xf32>
    %cst_335 = arith.constant 1.000000e+00 : f32
    %639 = vector.broadcast %cst_335 : f32 to vector<2x16xf32>
    %640 = arith.addf %639, %638 : vector<2x16xf32>
    %641 = arith.divf %639, %640 : vector<2x16xf32>
    %642 = vector.extract_strided_slice %635 {offsets = [0, 16], sizes = [2, 16], strides = [1, 1]} : vector<2x64xf32> to vector<2x16xf32>
    %643 = arith.negf %642 : vector<2x16xf32>
    %644 = math.exp %643 : vector<2x16xf32>
    %cst_336 = arith.constant 1.000000e+00 : f32
    %645 = vector.broadcast %cst_336 : f32 to vector<2x16xf32>
    %646 = arith.addf %645, %644 : vector<2x16xf32>
    %647 = arith.divf %645, %646 : vector<2x16xf32>
    %648 = vector.extract_strided_slice %635 {offsets = [0, 32], sizes = [2, 16], strides = [1, 1]} : vector<2x64xf32> to vector<2x16xf32>
    %649 = math.tanh %648 : vector<2x16xf32>
    %650 = vector.extract_strided_slice %635 {offsets = [0, 48], sizes = [2, 16], strides = [1, 1]} : vector<2x64xf32> to vector<2x16xf32>
    %651 = arith.negf %650 : vector<2x16xf32>
    %652 = math.exp %651 : vector<2x16xf32>
    %cst_337 = arith.constant 1.000000e+00 : f32
    %653 = vector.broadcast %cst_337 : f32 to vector<2x16xf32>
    %654 = arith.addf %653, %652 : vector<2x16xf32>
    %655 = arith.divf %653, %654 : vector<2x16xf32>
    %656 = arith.mulf %647, %618 : vector<2x16xf32>
    %657 = arith.mulf %641, %649 : vector<2x16xf32>
    %658 = arith.addf %656, %657 : vector<2x16xf32>
    %659 = math.tanh %658 : vector<2x16xf32>
    %660 = arith.mulf %655, %659 : vector<2x16xf32>
    %661 = vector.extract_strided_slice %660 {offsets = [0, 0], sizes = [2, 8], strides = [1, 1]} : vector<2x16xf32> to vector<2x8xf32>
    %c3_338 = arith.constant 3 : index
    %c0_339 = arith.constant 0 : index
    %c0_340 = arith.constant 0 : index
    %662 = vector.load %arg23[%c3_338, %c0_339, %c0_340] : memref<8x2x8xf32, #tpu.memory_space<vmem>>, vector<1x2x8xf32>
    %663 = vector.shape_cast %662 : vector<1x2x8xf32> to vector<2x8xf32>
    %664 = vector.shape_cast %661 : vector<2x8xf32> to vector<1x2x8xf32>
    tpu.vector_store %arg23[%c3_338, %c0_339, %c0_340], %664 {strides = array<i32>} : memref<8x2x8xf32, #tpu.memory_space<vmem>>, vector<1x2x8xf32>,
    %665 = vector.extract_strided_slice %660 {offsets = [0, 8], sizes = [2, 8], strides = [1, 1]} : vector<2x16xf32> to vector<2x8xf32>
    %c4_341 = arith.constant 4 : index
    %c0_342 = arith.constant 0 : index
    %c0_343 = arith.constant 0 : index
    %666 = vector.load %arg24[%c4_341, %c0_342, %c0_343] : memref<8x2x8xf32, #tpu.memory_space<vmem>>, vector<1x2x8xf32>
    %667 = vector.shape_cast %666 : vector<1x2x8xf32> to vector<2x8xf32>
    %668 = vector.shape_cast %665 : vector<2x8xf32> to vector<1x2x8xf32>
    tpu.vector_store %arg24[%c4_341, %c0_342, %c0_343], %668 {strides = array<i32>} : memref<8x2x8xf32, #tpu.memory_space<vmem>>, vector<1x2x8xf32>,
    %c4_344 = arith.constant 4 : index
    %c0_345 = arith.constant 0 : index
    %c0_346 = arith.constant 0 : index
    %669 = vector.load %arg22[%c4_344, %c0_345, %c0_346] : memref<8x2x64xf32, #tpu.memory_space<vmem>>, vector<1x2x64xf32>
    %670 = vector.shape_cast %669 : vector<1x2x64xf32> to vector<2x64xf32>
    %c3_347 = arith.constant 3 : index
    %c0_348 = arith.constant 0 : index
    %c0_349 = arith.constant 0 : index
    %671 = vector.load %arg22[%c3_347, %c0_348, %c0_349] : memref<8x2x64xf32, #tpu.memory_space<vmem>>, vector<1x2x64xf32>
    %672 = vector.shape_cast %671 : vector<1x2x64xf32> to vector<2x64xf32>
    %673 = arith.select %18, %670, %672 : vector<2x64xi1>, vector<2x64xf32>
    %cst_350 = arith.constant dense<0.000000e+00> : vector<2x64xf32>
    %674 = tpu.matmul %660, %412, %cst_350 {dimension_numbers = #tpu.dot_dimension_numbers<[1], [0], [0], [1], [0, 0, 1, 1], [], []>} : vector<2x16xf32>, vector<16x64xf32>, vector<2x64xf32> -> vector<2x64xf32>
    %675 = arith.addf %673, %674 : vector<2x64xf32>
    %676 = vector.extract_strided_slice %675 {offsets = [0, 0], sizes = [2, 16], strides = [1, 1]} : vector<2x64xf32> to vector<2x16xf32>
    %677 = arith.negf %676 : vector<2x16xf32>
    %678 = math.exp %677 : vector<2x16xf32>
    %cst_351 = arith.constant 1.000000e+00 : f32
    %679 = vector.broadcast %cst_351 : f32 to vector<2x16xf32>
    %680 = arith.addf %679, %678 : vector<2x16xf32>
    %681 = arith.divf %679, %680 : vector<2x16xf32>
    %682 = vector.extract_strided_slice %675 {offsets = [0, 16], sizes = [2, 16], strides = [1, 1]} : vector<2x64xf32> to vector<2x16xf32>
    %683 = arith.negf %682 : vector<2x16xf32>
    %684 = math.exp %683 : vector<2x16xf32>
    %cst_352 = arith.constant 1.000000e+00 : f32
    %685 = vector.broadcast %cst_352 : f32 to vector<2x16xf32>
    %686 = arith.addf %685, %684 : vector<2x16xf32>
    %687 = arith.divf %685, %686 : vector<2x16xf32>
    %688 = vector.extract_strided_slice %675 {offsets = [0, 32], sizes = [2, 16], strides = [1, 1]} : vector<2x64xf32> to vector<2x16xf32>
    %689 = math.tanh %688 : vector<2x16xf32>
    %690 = vector.extract_strided_slice %675 {offsets = [0, 48], sizes = [2, 16], strides = [1, 1]} : vector<2x64xf32> to vector<2x16xf32>
    %691 = arith.negf %690 : vector<2x16xf32>
    %692 = math.exp %691 : vector<2x16xf32>
    %cst_353 = arith.constant 1.000000e+00 : f32
    %693 = vector.broadcast %cst_353 : f32 to vector<2x16xf32>
    %694 = arith.addf %693, %692 : vector<2x16xf32>
    %695 = arith.divf %693, %694 : vector<2x16xf32>
    %696 = arith.mulf %687, %658 : vector<2x16xf32>
    %697 = arith.mulf %681, %689 : vector<2x16xf32>
    %698 = arith.addf %696, %697 : vector<2x16xf32>
    %699 = math.tanh %698 : vector<2x16xf32>
    %700 = arith.mulf %695, %699 : vector<2x16xf32>
    %701 = vector.extract_strided_slice %700 {offsets = [0, 0], sizes = [2, 8], strides = [1, 1]} : vector<2x16xf32> to vector<2x8xf32>
    %c4_354 = arith.constant 4 : index
    %c0_355 = arith.constant 0 : index
    %c0_356 = arith.constant 0 : index
    %702 = vector.load %arg23[%c4_354, %c0_355, %c0_356] : memref<8x2x8xf32, #tpu.memory_space<vmem>>, vector<1x2x8xf32>
    %703 = vector.shape_cast %702 : vector<1x2x8xf32> to vector<2x8xf32>
    %704 = vector.shape_cast %701 : vector<2x8xf32> to vector<1x2x8xf32>
    tpu.vector_store %arg23[%c4_354, %c0_355, %c0_356], %704 {strides = array<i32>} : memref<8x2x8xf32, #tpu.memory_space<vmem>>, vector<1x2x8xf32>,
    %705 = vector.extract_strided_slice %700 {offsets = [0, 8], sizes = [2, 8], strides = [1, 1]} : vector<2x16xf32> to vector<2x8xf32>
    %c3_357 = arith.constant 3 : index
    %c0_358 = arith.constant 0 : index
    %c0_359 = arith.constant 0 : index
    %706 = vector.load %arg24[%c3_357, %c0_358, %c0_359] : memref<8x2x8xf32, #tpu.memory_space<vmem>>, vector<1x2x8xf32>
    %707 = vector.shape_cast %706 : vector<1x2x8xf32> to vector<2x8xf32>
    %708 = vector.shape_cast %705 : vector<2x8xf32> to vector<1x2x8xf32>
    tpu.vector_store %arg24[%c3_357, %c0_358, %c0_359], %708 {strides = array<i32>} : memref<8x2x8xf32, #tpu.memory_space<vmem>>, vector<1x2x8xf32>,
    %c5_360 = arith.constant 5 : index
    %c0_361 = arith.constant 0 : index
    %c0_362 = arith.constant 0 : index
    %709 = vector.load %arg22[%c5_360, %c0_361, %c0_362] : memref<8x2x64xf32, #tpu.memory_space<vmem>>, vector<1x2x64xf32>
    %710 = vector.shape_cast %709 : vector<1x2x64xf32> to vector<2x64xf32>
    %c2_363 = arith.constant 2 : index
    %c0_364 = arith.constant 0 : index
    %c0_365 = arith.constant 0 : index
    %711 = vector.load %arg22[%c2_363, %c0_364, %c0_365] : memref<8x2x64xf32, #tpu.memory_space<vmem>>, vector<1x2x64xf32>
    %712 = vector.shape_cast %711 : vector<1x2x64xf32> to vector<2x64xf32>
    %713 = arith.select %18, %710, %712 : vector<2x64xi1>, vector<2x64xf32>
    %cst_366 = arith.constant dense<0.000000e+00> : vector<2x64xf32>
    %714 = tpu.matmul %700, %412, %cst_366 {dimension_numbers = #tpu.dot_dimension_numbers<[1], [0], [0], [1], [0, 0, 1, 1], [], []>} : vector<2x16xf32>, vector<16x64xf32>, vector<2x64xf32> -> vector<2x64xf32>
    %715 = arith.addf %713, %714 : vector<2x64xf32>
    %716 = vector.extract_strided_slice %715 {offsets = [0, 0], sizes = [2, 16], strides = [1, 1]} : vector<2x64xf32> to vector<2x16xf32>
    %717 = arith.negf %716 : vector<2x16xf32>
    %718 = math.exp %717 : vector<2x16xf32>
    %cst_367 = arith.constant 1.000000e+00 : f32
    %719 = vector.broadcast %cst_367 : f32 to vector<2x16xf32>
    %720 = arith.addf %719, %718 : vector<2x16xf32>
    %721 = arith.divf %719, %720 : vector<2x16xf32>
    %722 = vector.extract_strided_slice %715 {offsets = [0, 16], sizes = [2, 16], strides = [1, 1]} : vector<2x64xf32> to vector<2x16xf32>
    %723 = arith.negf %722 : vector<2x16xf32>
    %724 = math.exp %723 : vector<2x16xf32>
    %cst_368 = arith.constant 1.000000e+00 : f32
    %725 = vector.broadcast %cst_368 : f32 to vector<2x16xf32>
    %726 = arith.addf %725, %724 : vector<2x16xf32>
    %727 = arith.divf %725, %726 : vector<2x16xf32>
    %728 = vector.extract_strided_slice %715 {offsets = [0, 32], sizes = [2, 16], strides = [1, 1]} : vector<2x64xf32> to vector<2x16xf32>
    %729 = math.tanh %728 : vector<2x16xf32>
    %730 = vector.extract_strided_slice %715 {offsets = [0, 48], sizes = [2, 16], strides = [1, 1]} : vector<2x64xf32> to vector<2x16xf32>
    %731 = arith.negf %730 : vector<2x16xf32>
    %732 = math.exp %731 : vector<2x16xf32>
    %cst_369 = arith.constant 1.000000e+00 : f32
    %733 = vector.broadcast %cst_369 : f32 to vector<2x16xf32>
    %734 = arith.addf %733, %732 : vector<2x16xf32>
    %735 = arith.divf %733, %734 : vector<2x16xf32>
    %736 = arith.mulf %727, %698 : vector<2x16xf32>
    %737 = arith.mulf %721, %729 : vector<2x16xf32>
    %738 = arith.addf %736, %737 : vector<2x16xf32>
    %739 = math.tanh %738 : vector<2x16xf32>
    %740 = arith.mulf %735, %739 : vector<2x16xf32>
    %741 = vector.extract_strided_slice %740 {offsets = [0, 0], sizes = [2, 8], strides = [1, 1]} : vector<2x16xf32> to vector<2x8xf32>
    %c5_370 = arith.constant 5 : index
    %c0_371 = arith.constant 0 : index
    %c0_372 = arith.constant 0 : index
    %742 = vector.load %arg23[%c5_370, %c0_371, %c0_372] : memref<8x2x8xf32, #tpu.memory_space<vmem>>, vector<1x2x8xf32>
    %743 = vector.shape_cast %742 : vector<1x2x8xf32> to vector<2x8xf32>
    %744 = vector.shape_cast %741 : vector<2x8xf32> to vector<1x2x8xf32>
    tpu.vector_store %arg23[%c5_370, %c0_371, %c0_372], %744 {strides = array<i32>} : memref<8x2x8xf32, #tpu.memory_space<vmem>>, vector<1x2x8xf32>,
    %745 = vector.extract_strided_slice %740 {offsets = [0, 8], sizes = [2, 8], strides = [1, 1]} : vector<2x16xf32> to vector<2x8xf32>
    %c2_373 = arith.constant 2 : index
    %c0_374 = arith.constant 0 : index
    %c0_375 = arith.constant 0 : index
    %746 = vector.load %arg24[%c2_373, %c0_374, %c0_375] : memref<8x2x8xf32, #tpu.memory_space<vmem>>, vector<1x2x8xf32>
    %747 = vector.shape_cast %746 : vector<1x2x8xf32> to vector<2x8xf32>
    %748 = vector.shape_cast %745 : vector<2x8xf32> to vector<1x2x8xf32>
    tpu.vector_store %arg24[%c2_373, %c0_374, %c0_375], %748 {strides = array<i32>} : memref<8x2x8xf32, #tpu.memory_space<vmem>>, vector<1x2x8xf32>,
    %c6_376 = arith.constant 6 : index
    %c0_377 = arith.constant 0 : index
    %c0_378 = arith.constant 0 : index
    %749 = vector.load %arg22[%c6_376, %c0_377, %c0_378] : memref<8x2x64xf32, #tpu.memory_space<vmem>>, vector<1x2x64xf32>
    %750 = vector.shape_cast %749 : vector<1x2x64xf32> to vector<2x64xf32>
    %c1_379 = arith.constant 1 : index
    %c0_380 = arith.constant 0 : index
    %c0_381 = arith.constant 0 : index
    %751 = vector.load %arg22[%c1_379, %c0_380, %c0_381] : memref<8x2x64xf32, #tpu.memory_space<vmem>>, vector<1x2x64xf32>
    %752 = vector.shape_cast %751 : vector<1x2x64xf32> to vector<2x64xf32>
    %753 = arith.select %18, %750, %752 : vector<2x64xi1>, vector<2x64xf32>
    %cst_382 = arith.constant dense<0.000000e+00> : vector<2x64xf32>
    %754 = tpu.matmul %740, %412, %cst_382 {dimension_numbers = #tpu.dot_dimension_numbers<[1], [0], [0], [1], [0, 0, 1, 1], [], []>} : vector<2x16xf32>, vector<16x64xf32>, vector<2x64xf32> -> vector<2x64xf32>
    %755 = arith.addf %753, %754 : vector<2x64xf32>
    %756 = vector.extract_strided_slice %755 {offsets = [0, 0], sizes = [2, 16], strides = [1, 1]} : vector<2x64xf32> to vector<2x16xf32>
    %757 = arith.negf %756 : vector<2x16xf32>
    %758 = math.exp %757 : vector<2x16xf32>
    %cst_383 = arith.constant 1.000000e+00 : f32
    %759 = vector.broadcast %cst_383 : f32 to vector<2x16xf32>
    %760 = arith.addf %759, %758 : vector<2x16xf32>
    %761 = arith.divf %759, %760 : vector<2x16xf32>
    %762 = vector.extract_strided_slice %755 {offsets = [0, 16], sizes = [2, 16], strides = [1, 1]} : vector<2x64xf32> to vector<2x16xf32>
    %763 = arith.negf %762 : vector<2x16xf32>
    %764 = math.exp %763 : vector<2x16xf32>
    %cst_384 = arith.constant 1.000000e+00 : f32
    %765 = vector.broadcast %cst_384 : f32 to vector<2x16xf32>
    %766 = arith.addf %765, %764 : vector<2x16xf32>
    %767 = arith.divf %765, %766 : vector<2x16xf32>
    %768 = vector.extract_strided_slice %755 {offsets = [0, 32], sizes = [2, 16], strides = [1, 1]} : vector<2x64xf32> to vector<2x16xf32>
    %769 = math.tanh %768 : vector<2x16xf32>
    %770 = vector.extract_strided_slice %755 {offsets = [0, 48], sizes = [2, 16], strides = [1, 1]} : vector<2x64xf32> to vector<2x16xf32>
    %771 = arith.negf %770 : vector<2x16xf32>
    %772 = math.exp %771 : vector<2x16xf32>
    %cst_385 = arith.constant 1.000000e+00 : f32
    %773 = vector.broadcast %cst_385 : f32 to vector<2x16xf32>
    %774 = arith.addf %773, %772 : vector<2x16xf32>
    %775 = arith.divf %773, %774 : vector<2x16xf32>
    %776 = arith.mulf %767, %738 : vector<2x16xf32>
    %777 = arith.mulf %761, %769 : vector<2x16xf32>
    %778 = arith.addf %776, %777 : vector<2x16xf32>
    %779 = math.tanh %778 : vector<2x16xf32>
    %780 = arith.mulf %775, %779 : vector<2x16xf32>
    %781 = vector.extract_strided_slice %780 {offsets = [0, 0], sizes = [2, 8], strides = [1, 1]} : vector<2x16xf32> to vector<2x8xf32>
    %c6_386 = arith.constant 6 : index
    %c0_387 = arith.constant 0 : index
    %c0_388 = arith.constant 0 : index
    %782 = vector.load %arg23[%c6_386, %c0_387, %c0_388] : memref<8x2x8xf32, #tpu.memory_space<vmem>>, vector<1x2x8xf32>
    %783 = vector.shape_cast %782 : vector<1x2x8xf32> to vector<2x8xf32>
    %784 = vector.shape_cast %781 : vector<2x8xf32> to vector<1x2x8xf32>
    tpu.vector_store %arg23[%c6_386, %c0_387, %c0_388], %784 {strides = array<i32>} : memref<8x2x8xf32, #tpu.memory_space<vmem>>, vector<1x2x8xf32>,
    %785 = vector.extract_strided_slice %780 {offsets = [0, 8], sizes = [2, 8], strides = [1, 1]} : vector<2x16xf32> to vector<2x8xf32>
    %c1_389 = arith.constant 1 : index
    %c0_390 = arith.constant 0 : index
    %c0_391 = arith.constant 0 : index
    %786 = vector.load %arg24[%c1_389, %c0_390, %c0_391] : memref<8x2x8xf32, #tpu.memory_space<vmem>>, vector<1x2x8xf32>
    %787 = vector.shape_cast %786 : vector<1x2x8xf32> to vector<2x8xf32>
    %788 = vector.shape_cast %785 : vector<2x8xf32> to vector<1x2x8xf32>
    tpu.vector_store %arg24[%c1_389, %c0_390, %c0_391], %788 {strides = array<i32>} : memref<8x2x8xf32, #tpu.memory_space<vmem>>, vector<1x2x8xf32>,
    %c7_392 = arith.constant 7 : index
    %c0_393 = arith.constant 0 : index
    %c0_394 = arith.constant 0 : index
    %789 = vector.load %arg22[%c7_392, %c0_393, %c0_394] : memref<8x2x64xf32, #tpu.memory_space<vmem>>, vector<1x2x64xf32>
    %790 = vector.shape_cast %789 : vector<1x2x64xf32> to vector<2x64xf32>
    %c0_395 = arith.constant 0 : index
    %c0_396 = arith.constant 0 : index
    %c0_397 = arith.constant 0 : index
    %791 = vector.load %arg22[%c0_395, %c0_396, %c0_397] : memref<8x2x64xf32, #tpu.memory_space<vmem>>, vector<1x2x64xf32>
    %792 = vector.shape_cast %791 : vector<1x2x64xf32> to vector<2x64xf32>
    %793 = arith.select %18, %790, %792 : vector<2x64xi1>, vector<2x64xf32>
    %cst_398 = arith.constant dense<0.000000e+00> : vector<2x64xf32>
    %794 = tpu.matmul %780, %412, %cst_398 {dimension_numbers = #tpu.dot_dimension_numbers<[1], [0], [0], [1], [0, 0, 1, 1], [], []>} : vector<2x16xf32>, vector<16x64xf32>, vector<2x64xf32> -> vector<2x64xf32>
    %795 = arith.addf %793, %794 : vector<2x64xf32>
    %796 = vector.extract_strided_slice %795 {offsets = [0, 0], sizes = [2, 16], strides = [1, 1]} : vector<2x64xf32> to vector<2x16xf32>
    %797 = arith.negf %796 : vector<2x16xf32>
    %798 = math.exp %797 : vector<2x16xf32>
    %cst_399 = arith.constant 1.000000e+00 : f32
    %799 = vector.broadcast %cst_399 : f32 to vector<2x16xf32>
    %800 = arith.addf %799, %798 : vector<2x16xf32>
    %801 = arith.divf %799, %800 : vector<2x16xf32>
    %802 = vector.extract_strided_slice %795 {offsets = [0, 16], sizes = [2, 16], strides = [1, 1]} : vector<2x64xf32> to vector<2x16xf32>
    %803 = arith.negf %802 : vector<2x16xf32>
    %804 = math.exp %803 : vector<2x16xf32>
    %cst_400 = arith.constant 1.000000e+00 : f32
    %805 = vector.broadcast %cst_400 : f32 to vector<2x16xf32>
    %806 = arith.addf %805, %804 : vector<2x16xf32>
    %807 = arith.divf %805, %806 : vector<2x16xf32>
    %808 = vector.extract_strided_slice %795 {offsets = [0, 32], sizes = [2, 16], strides = [1, 1]} : vector<2x64xf32> to vector<2x16xf32>
    %809 = math.tanh %808 : vector<2x16xf32>
    %810 = vector.extract_strided_slice %795 {offsets = [0, 48], sizes = [2, 16], strides = [1, 1]} : vector<2x64xf32> to vector<2x16xf32>
    %811 = arith.negf %810 : vector<2x16xf32>
    %812 = math.exp %811 : vector<2x16xf32>
    %cst_401 = arith.constant 1.000000e+00 : f32
    %813 = vector.broadcast %cst_401 : f32 to vector<2x16xf32>
    %814 = arith.addf %813, %812 : vector<2x16xf32>
    %815 = arith.divf %813, %814 : vector<2x16xf32>
    %816 = arith.mulf %807, %778 : vector<2x16xf32>
    %817 = arith.mulf %801, %809 : vector<2x16xf32>
    %818 = arith.addf %816, %817 : vector<2x16xf32>
    %819 = math.tanh %818 : vector<2x16xf32>
    %820 = arith.mulf %815, %819 : vector<2x16xf32>
    %821 = vector.extract_strided_slice %820 {offsets = [0, 0], sizes = [2, 8], strides = [1, 1]} : vector<2x16xf32> to vector<2x8xf32>
    %c7_402 = arith.constant 7 : index
    %c0_403 = arith.constant 0 : index
    %c0_404 = arith.constant 0 : index
    %822 = vector.load %arg23[%c7_402, %c0_403, %c0_404] : memref<8x2x8xf32, #tpu.memory_space<vmem>>, vector<1x2x8xf32>
    %823 = vector.shape_cast %822 : vector<1x2x8xf32> to vector<2x8xf32>
    %824 = vector.shape_cast %821 : vector<2x8xf32> to vector<1x2x8xf32>
    tpu.vector_store %arg23[%c7_402, %c0_403, %c0_404], %824 {strides = array<i32>} : memref<8x2x8xf32, #tpu.memory_space<vmem>>, vector<1x2x8xf32>,
    %825 = vector.extract_strided_slice %820 {offsets = [0, 8], sizes = [2, 8], strides = [1, 1]} : vector<2x16xf32> to vector<2x8xf32>
    %c0_405 = arith.constant 0 : index
    %c0_406 = arith.constant 0 : index
    %c0_407 = arith.constant 0 : index
    %826 = vector.load %arg24[%c0_405, %c0_406, %c0_407] : memref<8x2x8xf32, #tpu.memory_space<vmem>>, vector<1x2x8xf32>
    %827 = vector.shape_cast %826 : vector<1x2x8xf32> to vector<2x8xf32>
    %828 = vector.shape_cast %825 : vector<2x8xf32> to vector<1x2x8xf32>
    tpu.vector_store %arg24[%c0_405, %c0_406, %c0_407], %828 {strides = array<i32>} : memref<8x2x8xf32, #tpu.memory_space<vmem>>, vector<1x2x8xf32>,
    %c7_408 = arith.constant 7 : index
    %c0_409 = arith.constant 0 : index
    %c0_410 = arith.constant 0 : index
    %829 = vector.load %arg23[%c7_408, %c0_409, %c0_410] : memref<8x2x8xf32, #tpu.memory_space<vmem>>, vector<1x2x8xf32>
    %830 = vector.shape_cast %829 : vector<1x2x8xf32> to vector<2x8xf32>
    %c7_411 = arith.constant 7 : index
    %c0_412 = arith.constant 0 : index
    %c0_413 = arith.constant 0 : index
    %831 = vector.load %arg24[%c7_411, %c0_412, %c0_413] : memref<8x2x8xf32, #tpu.memory_space<vmem>>, vector<1x2x8xf32>
    %832 = vector.shape_cast %831 : vector<1x2x8xf32> to vector<2x8xf32>
    %833 = tpu.concatenate %830, %832 in 1 : vector<2x8xf32>, vector<2x8xf32> -> vector<2x16xf32>
    %c0_414 = arith.constant 0 : index
    %c0_415 = arith.constant 0 : index
    %834 = vector.load %arg19[%c0_414, %c0_415] : memref<2x16xf32, #tpu.memory_space<vmem>>, vector<2x16xf32>
    tpu.vector_store %arg19[%c0_414, %c0_415], %833 {strides = array<i32>} : memref<2x16xf32, #tpu.memory_space<vmem>>, vector<2x16xf32>,
    %c0_416 = arith.constant 0 : index
    %c0_417 = arith.constant 0 : index
    %835 = vector.load %arg7[%c0_416, %c0_417] : memref<4x64xf32, #tpu.memory_space<vmem>>, vector<4x64xf32>
    %c0_418 = arith.constant 0 : index
    %c0_419 = arith.constant 0 : index
    %836 = vector.load %arg9[%c0_418, %c0_419] : memref<1x64xf32, #tpu.memory_space<vmem>>, vector<1x64xf32>
    %c0_420 = arith.constant 0 : index
    %c0_421 = arith.constant 0 : index
    %837 = vector.load %arg8[%c0_420, %c0_421] : memref<16x64xf32, #tpu.memory_space<vmem>>, vector<16x64xf32>
    %cst_422 = arith.constant dense<0.000000e+00> : vector<2x64xf32>
    %838 = tpu.matmul %19, %835, %cst_422 {dimension_numbers = #tpu.dot_dimension_numbers<[1], [0], [0], [1], [0, 0, 1, 1], [], []>} : vector<2x4xf32>, vector<4x64xf32>, vector<2x64xf32> -> vector<2x64xf32>
    %839 = vector.broadcast %836 : vector<1x64xf32> to vector<2x64xf32>
    %840 = arith.addf %838, %839 : vector<2x64xf32>
    %c0_423 = arith.constant 0 : index
    %c0_424 = arith.constant 0 : index
    %c0_425 = arith.constant 0 : index
    %841 = vector.load %arg22[%c0_423, %c0_424, %c0_425] : memref<8x2x64xf32, #tpu.memory_space<vmem>>, vector<1x2x64xf32>
    %842 = vector.shape_cast %841 : vector<1x2x64xf32> to vector<2x64xf32>
    %843 = vector.shape_cast %840 : vector<2x64xf32> to vector<1x2x64xf32>
    tpu.vector_store %arg22[%c0_423, %c0_424, %c0_425], %843 {strides = array<i32>} : memref<8x2x64xf32, #tpu.memory_space<vmem>>, vector<1x2x64xf32>,
    %c7_426 = arith.constant 7 : index
    %c0_427 = arith.constant 0 : index
    %c0_428 = arith.constant 0 : index
    %844 = vector.load %arg0[%c7_426, %c0_427, %c0_428] : memref<8x2x4xf32, #tpu.memory_space<vmem>>, vector<1x2x4xf32>
    %845 = vector.shape_cast %844 : vector<1x2x4xf32> to vector<2x4xf32>
    %cst_429 = arith.constant dense<0.000000e+00> : vector<2x64xf32>
    %846 = tpu.matmul %845, %835, %cst_429 {dimension_numbers = #tpu.dot_dimension_numbers<[1], [0], [0], [1], [0, 0, 1, 1], [], []>} : vector<2x4xf32>, vector<4x64xf32>, vector<2x64xf32> -> vector<2x64xf32>
    %847 = vector.broadcast %836 : vector<1x64xf32> to vector<2x64xf32>
    %848 = arith.addf %846, %847 : vector<2x64xf32>
    %c1_430 = arith.constant 1 : index
    %c0_431 = arith.constant 0 : index
    %c0_432 = arith.constant 0 : index
    %849 = vector.load %arg22[%c1_430, %c0_431, %c0_432] : memref<8x2x64xf32, #tpu.memory_space<vmem>>, vector<1x2x64xf32>
    %850 = vector.shape_cast %849 : vector<1x2x64xf32> to vector<2x64xf32>
    %851 = vector.shape_cast %848 : vector<2x64xf32> to vector<1x2x64xf32>
    tpu.vector_store %arg22[%c1_430, %c0_431, %c0_432], %851 {strides = array<i32>} : memref<8x2x64xf32, #tpu.memory_space<vmem>>, vector<1x2x64xf32>,
    %c6_433 = arith.constant 6 : index
    %c0_434 = arith.constant 0 : index
    %c0_435 = arith.constant 0 : index
    %852 = vector.load %arg0[%c6_433, %c0_434, %c0_435] : memref<8x2x4xf32, #tpu.memory_space<vmem>>, vector<1x2x4xf32>
    %853 = vector.shape_cast %852 : vector<1x2x4xf32> to vector<2x4xf32>
    %cst_436 = arith.constant dense<0.000000e+00> : vector<2x64xf32>
    %854 = tpu.matmul %853, %835, %cst_436 {dimension_numbers = #tpu.dot_dimension_numbers<[1], [0], [0], [1], [0, 0, 1, 1], [], []>} : vector<2x4xf32>, vector<4x64xf32>, vector<2x64xf32> -> vector<2x64xf32>
    %855 = vector.broadcast %836 : vector<1x64xf32> to vector<2x64xf32>
    %856 = arith.addf %854, %855 : vector<2x64xf32>
    %c2_437 = arith.constant 2 : index
    %c0_438 = arith.constant 0 : index
    %c0_439 = arith.constant 0 : index
    %857 = vector.load %arg22[%c2_437, %c0_438, %c0_439] : memref<8x2x64xf32, #tpu.memory_space<vmem>>, vector<1x2x64xf32>
    %858 = vector.shape_cast %857 : vector<1x2x64xf32> to vector<2x64xf32>
    %859 = vector.shape_cast %856 : vector<2x64xf32> to vector<1x2x64xf32>
    tpu.vector_store %arg22[%c2_437, %c0_438, %c0_439], %859 {strides = array<i32>} : memref<8x2x64xf32, #tpu.memory_space<vmem>>, vector<1x2x64xf32>,
    %c5_440 = arith.constant 5 : index
    %c0_441 = arith.constant 0 : index
    %c0_442 = arith.constant 0 : index
    %860 = vector.load %arg0[%c5_440, %c0_441, %c0_442] : memref<8x2x4xf32, #tpu.memory_space<vmem>>, vector<1x2x4xf32>
    %861 = vector.shape_cast %860 : vector<1x2x4xf32> to vector<2x4xf32>
    %cst_443 = arith.constant dense<0.000000e+00> : vector<2x64xf32>
    %862 = tpu.matmul %861, %835, %cst_443 {dimension_numbers = #tpu.dot_dimension_numbers<[1], [0], [0], [1], [0, 0, 1, 1], [], []>} : vector<2x4xf32>, vector<4x64xf32>, vector<2x64xf32> -> vector<2x64xf32>
    %863 = vector.broadcast %836 : vector<1x64xf32> to vector<2x64xf32>
    %864 = arith.addf %862, %863 : vector<2x64xf32>
    %c3_444 = arith.constant 3 : index
    %c0_445 = arith.constant 0 : index
    %c0_446 = arith.constant 0 : index
    %865 = vector.load %arg22[%c3_444, %c0_445, %c0_446] : memref<8x2x64xf32, #tpu.memory_space<vmem>>, vector<1x2x64xf32>
    %866 = vector.shape_cast %865 : vector<1x2x64xf32> to vector<2x64xf32>
    %867 = vector.shape_cast %864 : vector<2x64xf32> to vector<1x2x64xf32>
    tpu.vector_store %arg22[%c3_444, %c0_445, %c0_446], %867 {strides = array<i32>} : memref<8x2x64xf32, #tpu.memory_space<vmem>>, vector<1x2x64xf32>,
    %c4_447 = arith.constant 4 : index
    %c0_448 = arith.constant 0 : index
    %c0_449 = arith.constant 0 : index
    %868 = vector.load %arg0[%c4_447, %c0_448, %c0_449] : memref<8x2x4xf32, #tpu.memory_space<vmem>>, vector<1x2x4xf32>
    %869 = vector.shape_cast %868 : vector<1x2x4xf32> to vector<2x4xf32>
    %cst_450 = arith.constant dense<0.000000e+00> : vector<2x64xf32>
    %870 = tpu.matmul %869, %835, %cst_450 {dimension_numbers = #tpu.dot_dimension_numbers<[1], [0], [0], [1], [0, 0, 1, 1], [], []>} : vector<2x4xf32>, vector<4x64xf32>, vector<2x64xf32> -> vector<2x64xf32>
    %871 = vector.broadcast %836 : vector<1x64xf32> to vector<2x64xf32>
    %872 = arith.addf %870, %871 : vector<2x64xf32>
    %c4_451 = arith.constant 4 : index
    %c0_452 = arith.constant 0 : index
    %c0_453 = arith.constant 0 : index
    %873 = vector.load %arg22[%c4_451, %c0_452, %c0_453] : memref<8x2x64xf32, #tpu.memory_space<vmem>>, vector<1x2x64xf32>
    %874 = vector.shape_cast %873 : vector<1x2x64xf32> to vector<2x64xf32>
    %875 = vector.shape_cast %872 : vector<2x64xf32> to vector<1x2x64xf32>
    tpu.vector_store %arg22[%c4_451, %c0_452, %c0_453], %875 {strides = array<i32>} : memref<8x2x64xf32, #tpu.memory_space<vmem>>, vector<1x2x64xf32>,
    %c3_454 = arith.constant 3 : index
    %c0_455 = arith.constant 0 : index
    %c0_456 = arith.constant 0 : index
    %876 = vector.load %arg0[%c3_454, %c0_455, %c0_456] : memref<8x2x4xf32, #tpu.memory_space<vmem>>, vector<1x2x4xf32>
    %877 = vector.shape_cast %876 : vector<1x2x4xf32> to vector<2x4xf32>
    %cst_457 = arith.constant dense<0.000000e+00> : vector<2x64xf32>
    %878 = tpu.matmul %877, %835, %cst_457 {dimension_numbers = #tpu.dot_dimension_numbers<[1], [0], [0], [1], [0, 0, 1, 1], [], []>} : vector<2x4xf32>, vector<4x64xf32>, vector<2x64xf32> -> vector<2x64xf32>
    %879 = vector.broadcast %836 : vector<1x64xf32> to vector<2x64xf32>
    %880 = arith.addf %878, %879 : vector<2x64xf32>
    %c5_458 = arith.constant 5 : index
    %c0_459 = arith.constant 0 : index
    %c0_460 = arith.constant 0 : index
    %881 = vector.load %arg22[%c5_458, %c0_459, %c0_460] : memref<8x2x64xf32, #tpu.memory_space<vmem>>, vector<1x2x64xf32>
    %882 = vector.shape_cast %881 : vector<1x2x64xf32> to vector<2x64xf32>
    %883 = vector.shape_cast %880 : vector<2x64xf32> to vector<1x2x64xf32>
    tpu.vector_store %arg22[%c5_458, %c0_459, %c0_460], %883 {strides = array<i32>} : memref<8x2x64xf32, #tpu.memory_space<vmem>>, vector<1x2x64xf32>,
    %c2_461 = arith.constant 2 : index
    %c0_462 = arith.constant 0 : index
    %c0_463 = arith.constant 0 : index
    %884 = vector.load %arg0[%c2_461, %c0_462, %c0_463] : memref<8x2x4xf32, #tpu.memory_space<vmem>>, vector<1x2x4xf32>
    %885 = vector.shape_cast %884 : vector<1x2x4xf32> to vector<2x4xf32>
    %cst_464 = arith.constant dense<0.000000e+00> : vector<2x64xf32>
    %886 = tpu.matmul %885, %835, %cst_464 {dimension_numbers = #tpu.dot_dimension_numbers<[1], [0], [0], [1], [0, 0, 1, 1], [], []>} : vector<2x4xf32>, vector<4x64xf32>, vector<2x64xf32> -> vector<2x64xf32>
    %887 = vector.broadcast %836 : vector<1x64xf32> to vector<2x64xf32>
    %888 = arith.addf %886, %887 : vector<2x64xf32>
    %c6_465 = arith.constant 6 : index
    %c0_466 = arith.constant 0 : index
    %c0_467 = arith.constant 0 : index
    %889 = vector.load %arg22[%c6_465, %c0_466, %c0_467] : memref<8x2x64xf32, #tpu.memory_space<vmem>>, vector<1x2x64xf32>
    %890 = vector.shape_cast %889 : vector<1x2x64xf32> to vector<2x64xf32>
    %891 = vector.shape_cast %888 : vector<2x64xf32> to vector<1x2x64xf32>
    tpu.vector_store %arg22[%c6_465, %c0_466, %c0_467], %891 {strides = array<i32>} : memref<8x2x64xf32, #tpu.memory_space<vmem>>, vector<1x2x64xf32>,
    %c1_468 = arith.constant 1 : index
    %c0_469 = arith.constant 0 : index
    %c0_470 = arith.constant 0 : index
    %892 = vector.load %arg0[%c1_468, %c0_469, %c0_470] : memref<8x2x4xf32, #tpu.memory_space<vmem>>, vector<1x2x4xf32>
    %893 = vector.shape_cast %892 : vector<1x2x4xf32> to vector<2x4xf32>
    %cst_471 = arith.constant dense<0.000000e+00> : vector<2x64xf32>
    %894 = tpu.matmul %893, %835, %cst_471 {dimension_numbers = #tpu.dot_dimension_numbers<[1], [0], [0], [1], [0, 0, 1, 1], [], []>} : vector<2x4xf32>, vector<4x64xf32>, vector<2x64xf32> -> vector<2x64xf32>
    %895 = vector.broadcast %836 : vector<1x64xf32> to vector<2x64xf32>
    %896 = arith.addf %894, %895 : vector<2x64xf32>
    %c7_472 = arith.constant 7 : index
    %c0_473 = arith.constant 0 : index
    %c0_474 = arith.constant 0 : index
    %897 = vector.load %arg22[%c7_472, %c0_473, %c0_474] : memref<8x2x64xf32, #tpu.memory_space<vmem>>, vector<1x2x64xf32>
    %898 = vector.shape_cast %897 : vector<1x2x64xf32> to vector<2x64xf32>
    %899 = vector.shape_cast %896 : vector<2x64xf32> to vector<1x2x64xf32>
    tpu.vector_store %arg22[%c7_472, %c0_473, %c0_474], %899 {strides = array<i32>} : memref<8x2x64xf32, #tpu.memory_space<vmem>>, vector<1x2x64xf32>,
    %c0_475 = arith.constant 0 : index
    %c0_476 = arith.constant 0 : index
    %c0_477 = arith.constant 0 : index
    %900 = vector.load %arg22[%c0_475, %c0_476, %c0_477] : memref<8x2x64xf32, #tpu.memory_space<vmem>>, vector<1x2x64xf32>
    %901 = vector.shape_cast %900 : vector<1x2x64xf32> to vector<2x64xf32>
    %c7_478 = arith.constant 7 : index
    %c0_479 = arith.constant 0 : index
    %c0_480 = arith.constant 0 : index
    %902 = vector.load %arg22[%c7_478, %c0_479, %c0_480] : memref<8x2x64xf32, #tpu.memory_space<vmem>>, vector<1x2x64xf32>
    %903 = vector.shape_cast %902 : vector<1x2x64xf32> to vector<2x64xf32>
    %904 = arith.select %18, %901, %903 : vector<2x64xi1>, vector<2x64xf32>
    %cst_481 = arith.constant dense<0.000000e+00> : vector<2x64xf32>
    %905 = tpu.matmul %399, %837, %cst_481 {dimension_numbers = #tpu.dot_dimension_numbers<[1], [0], [0], [1], [0, 0, 1, 1], [], []>} : vector<2x16xf32>, vector<16x64xf32>, vector<2x64xf32> -> vector<2x64xf32>
    %906 = arith.addf %904, %905 : vector<2x64xf32>
    %907 = vector.extract_strided_slice %906 {offsets = [0, 0], sizes = [2, 16], strides = [1, 1]} : vector<2x64xf32> to vector<2x16xf32>
    %908 = arith.negf %907 : vector<2x16xf32>
    %909 = math.exp %908 : vector<2x16xf32>
    %cst_482 = arith.constant 1.000000e+00 : f32
    %910 = vector.broadcast %cst_482 : f32 to vector<2x16xf32>
    %911 = arith.addf %910, %909 : vector<2x16xf32>
    %912 = arith.divf %910, %911 : vector<2x16xf32>
    %913 = vector.extract_strided_slice %906 {offsets = [0, 16], sizes = [2, 16], strides = [1, 1]} : vector<2x64xf32> to vector<2x16xf32>
    %914 = arith.negf %913 : vector<2x16xf32>
    %915 = math.exp %914 : vector<2x16xf32>
    %cst_483 = arith.constant 1.000000e+00 : f32
    %916 = vector.broadcast %cst_483 : f32 to vector<2x16xf32>
    %917 = arith.addf %916, %915 : vector<2x16xf32>
    %918 = arith.divf %916, %917 : vector<2x16xf32>
    %919 = vector.extract_strided_slice %906 {offsets = [0, 32], sizes = [2, 16], strides = [1, 1]} : vector<2x64xf32> to vector<2x16xf32>
    %920 = math.tanh %919 : vector<2x16xf32>
    %921 = vector.extract_strided_slice %906 {offsets = [0, 48], sizes = [2, 16], strides = [1, 1]} : vector<2x64xf32> to vector<2x16xf32>
    %922 = arith.negf %921 : vector<2x16xf32>
    %923 = math.exp %922 : vector<2x16xf32>
    %cst_484 = arith.constant 1.000000e+00 : f32
    %924 = vector.broadcast %cst_484 : f32 to vector<2x16xf32>
    %925 = arith.addf %924, %923 : vector<2x16xf32>
    %926 = arith.divf %924, %925 : vector<2x16xf32>
    %927 = arith.mulf %918, %397 : vector<2x16xf32>
    %928 = arith.mulf %912, %920 : vector<2x16xf32>
    %929 = arith.addf %927, %928 : vector<2x16xf32>
    %930 = math.tanh %929 : vector<2x16xf32>
    %931 = arith.mulf %926, %930 : vector<2x16xf32>
    %932 = vector.extract_strided_slice %931 {offsets = [0, 0], sizes = [2, 8], strides = [1, 1]} : vector<2x16xf32> to vector<2x8xf32>
    %c0_485 = arith.constant 0 : index
    %c0_486 = arith.constant 0 : index
    %c0_487 = arith.constant 0 : index
    %933 = vector.load %arg23[%c0_485, %c0_486, %c0_487] : memref<8x2x8xf32, #tpu.memory_space<vmem>>, vector<1x2x8xf32>
    %934 = vector.shape_cast %933 : vector<1x2x8xf32> to vector<2x8xf32>
    %935 = vector.shape_cast %932 : vector<2x8xf32> to vector<1x2x8xf32>
    tpu.vector_store %arg23[%c0_485, %c0_486, %c0_487], %935 {strides = array<i32>} : memref<8x2x8xf32, #tpu.memory_space<vmem>>, vector<1x2x8xf32>,
    %936 = vector.extract_strided_slice %931 {offsets = [0, 8], sizes = [2, 8], strides = [1, 1]} : vector<2x16xf32> to vector<2x8xf32>
    %c7_488 = arith.constant 7 : index
    %c0_489 = arith.constant 0 : index
    %c0_490 = arith.constant 0 : index
    %937 = vector.load %arg24[%c7_488, %c0_489, %c0_490] : memref<8x2x8xf32, #tpu.memory_space<vmem>>, vector<1x2x8xf32>
    %938 = vector.shape_cast %937 : vector<1x2x8xf32> to vector<2x8xf32>
    %939 = vector.shape_cast %936 : vector<2x8xf32> to vector<1x2x8xf32>
    tpu.vector_store %arg24[%c7_488, %c0_489, %c0_490], %939 {strides = array<i32>} : memref<8x2x8xf32, #tpu.memory_space<vmem>>, vector<1x2x8xf32>,
    %c1_491 = arith.constant 1 : index
    %c0_492 = arith.constant 0 : index
    %c0_493 = arith.constant 0 : index
    %940 = vector.load %arg22[%c1_491, %c0_492, %c0_493] : memref<8x2x64xf32, #tpu.memory_space<vmem>>, vector<1x2x64xf32>
    %941 = vector.shape_cast %940 : vector<1x2x64xf32> to vector<2x64xf32>
    %c6_494 = arith.constant 6 : index
    %c0_495 = arith.constant 0 : index
    %c0_496 = arith.constant 0 : index
    %942 = vector.load %arg22[%c6_494, %c0_495, %c0_496] : memref<8x2x64xf32, #tpu.memory_space<vmem>>, vector<1x2x64xf32>
    %943 = vector.shape_cast %942 : vector<1x2x64xf32> to vector<2x64xf32>
    %944 = arith.select %18, %941, %943 : vector<2x64xi1>, vector<2x64xf32>
    %cst_497 = arith.constant dense<0.000000e+00> : vector<2x64xf32>
    %945 = tpu.matmul %931, %837, %cst_497 {dimension_numbers = #tpu.dot_dimension_numbers<[1], [0], [0], [1], [0, 0, 1, 1], [], []>} : vector<2x16xf32>, vector<16x64xf32>, vector<2x64xf32> -> vector<2x64xf32>
    %946 = arith.addf %944, %945 : vector<2x64xf32>
    %947 = vector.extract_strided_slice %946 {offsets = [0, 0], sizes = [2, 16], strides = [1, 1]} : vector<2x64xf32> to vector<2x16xf32>
    %948 = arith.negf %947 : vector<2x16xf32>
    %949 = math.exp %948 : vector<2x16xf32>
    %cst_498 = arith.constant 1.000000e+00 : f32
    %950 = vector.broadcast %cst_498 : f32 to vector<2x16xf32>
    %951 = arith.addf %950, %949 : vector<2x16xf32>
    %952 = arith.divf %950, %951 : vector<2x16xf32>
    %953 = vector.extract_strided_slice %946 {offsets = [0, 16], sizes = [2, 16], strides = [1, 1]} : vector<2x64xf32> to vector<2x16xf32>
    %954 = arith.negf %953 : vector<2x16xf32>
    %955 = math.exp %954 : vector<2x16xf32>
    %cst_499 = arith.constant 1.000000e+00 : f32
    %956 = vector.broadcast %cst_499 : f32 to vector<2x16xf32>
    %957 = arith.addf %956, %955 : vector<2x16xf32>
    %958 = arith.divf %956, %957 : vector<2x16xf32>
    %959 = vector.extract_strided_slice %946 {offsets = [0, 32], sizes = [2, 16], strides = [1, 1]} : vector<2x64xf32> to vector<2x16xf32>
    %960 = math.tanh %959 : vector<2x16xf32>
    %961 = vector.extract_strided_slice %946 {offsets = [0, 48], sizes = [2, 16], strides = [1, 1]} : vector<2x64xf32> to vector<2x16xf32>
    %962 = arith.negf %961 : vector<2x16xf32>
    %963 = math.exp %962 : vector<2x16xf32>
    %cst_500 = arith.constant 1.000000e+00 : f32
    %964 = vector.broadcast %cst_500 : f32 to vector<2x16xf32>
    %965 = arith.addf %964, %963 : vector<2x16xf32>
    %966 = arith.divf %964, %965 : vector<2x16xf32>
    %967 = arith.mulf %958, %929 : vector<2x16xf32>
    %968 = arith.mulf %952, %960 : vector<2x16xf32>
    %969 = arith.addf %967, %968 : vector<2x16xf32>
    %970 = math.tanh %969 : vector<2x16xf32>
    %971 = arith.mulf %966, %970 : vector<2x16xf32>
    %972 = vector.extract_strided_slice %971 {offsets = [0, 0], sizes = [2, 8], strides = [1, 1]} : vector<2x16xf32> to vector<2x8xf32>
    %c1_501 = arith.constant 1 : index
    %c0_502 = arith.constant 0 : index
    %c0_503 = arith.constant 0 : index
    %973 = vector.load %arg23[%c1_501, %c0_502, %c0_503] : memref<8x2x8xf32, #tpu.memory_space<vmem>>, vector<1x2x8xf32>
    %974 = vector.shape_cast %973 : vector<1x2x8xf32> to vector<2x8xf32>
    %975 = vector.shape_cast %972 : vector<2x8xf32> to vector<1x2x8xf32>
    tpu.vector_store %arg23[%c1_501, %c0_502, %c0_503], %975 {strides = array<i32>} : memref<8x2x8xf32, #tpu.memory_space<vmem>>, vector<1x2x8xf32>,
    %976 = vector.extract_strided_slice %971 {offsets = [0, 8], sizes = [2, 8], strides = [1, 1]} : vector<2x16xf32> to vector<2x8xf32>
    %c6_504 = arith.constant 6 : index
    %c0_505 = arith.constant 0 : index
    %c0_506 = arith.constant 0 : index
    %977 = vector.load %arg24[%c6_504, %c0_505, %c0_506] : memref<8x2x8xf32, #tpu.memory_space<vmem>>, vector<1x2x8xf32>
    %978 = vector.shape_cast %977 : vector<1x2x8xf32> to vector<2x8xf32>
    %979 = vector.shape_cast %976 : vector<2x8xf32> to vector<1x2x8xf32>
    tpu.vector_store %arg24[%c6_504, %c0_505, %c0_506], %979 {strides = array<i32>} : memref<8x2x8xf32, #tpu.memory_space<vmem>>, vector<1x2x8xf32>,
    %c2_507 = arith.constant 2 : index
    %c0_508 = arith.constant 0 : index
    %c0_509 = arith.constant 0 : index
    %980 = vector.load %arg22[%c2_507, %c0_508, %c0_509] : memref<8x2x64xf32, #tpu.memory_space<vmem>>, vector<1x2x64xf32>
    %981 = vector.shape_cast %980 : vector<1x2x64xf32> to vector<2x64xf32>
    %c5_510 = arith.constant 5 : index
    %c0_511 = arith.constant 0 : index
    %c0_512 = arith.constant 0 : index
    %982 = vector.load %arg22[%c5_510, %c0_511, %c0_512] : memref<8x2x64xf32, #tpu.memory_space<vmem>>, vector<1x2x64xf32>
    %983 = vector.shape_cast %982 : vector<1x2x64xf32> to vector<2x64xf32>
    %984 = arith.select %18, %981, %983 : vector<2x64xi1>, vector<2x64xf32>
    %cst_513 = arith.constant dense<0.000000e+00> : vector<2x64xf32>
    %985 = tpu.matmul %971, %837, %cst_513 {dimension_numbers = #tpu.dot_dimension_numbers<[1], [0], [0], [1], [0, 0, 1, 1], [], []>} : vector<2x16xf32>, vector<16x64xf32>, vector<2x64xf32> -> vector<2x64xf32>
    %986 = arith.addf %984, %985 : vector<2x64xf32>
    %987 = vector.extract_strided_slice %986 {offsets = [0, 0], sizes = [2, 16], strides = [1, 1]} : vector<2x64xf32> to vector<2x16xf32>
    %988 = arith.negf %987 : vector<2x16xf32>
    %989 = math.exp %988 : vector<2x16xf32>
    %cst_514 = arith.constant 1.000000e+00 : f32
    %990 = vector.broadcast %cst_514 : f32 to vector<2x16xf32>
    %991 = arith.addf %990, %989 : vector<2x16xf32>
    %992 = arith.divf %990, %991 : vector<2x16xf32>
    %993 = vector.extract_strided_slice %986 {offsets = [0, 16], sizes = [2, 16], strides = [1, 1]} : vector<2x64xf32> to vector<2x16xf32>
    %994 = arith.negf %993 : vector<2x16xf32>
    %995 = math.exp %994 : vector<2x16xf32>
    %cst_515 = arith.constant 1.000000e+00 : f32
    %996 = vector.broadcast %cst_515 : f32 to vector<2x16xf32>
    %997 = arith.addf %996, %995 : vector<2x16xf32>
    %998 = arith.divf %996, %997 : vector<2x16xf32>
    %999 = vector.extract_strided_slice %986 {offsets = [0, 32], sizes = [2, 16], strides = [1, 1]} : vector<2x64xf32> to vector<2x16xf32>
    %1000 = math.tanh %999 : vector<2x16xf32>
    %1001 = vector.extract_strided_slice %986 {offsets = [0, 48], sizes = [2, 16], strides = [1, 1]} : vector<2x64xf32> to vector<2x16xf32>
    %1002 = arith.negf %1001 : vector<2x16xf32>
    %1003 = math.exp %1002 : vector<2x16xf32>
    %cst_516 = arith.constant 1.000000e+00 : f32
    %1004 = vector.broadcast %cst_516 : f32 to vector<2x16xf32>
    %1005 = arith.addf %1004, %1003 : vector<2x16xf32>
    %1006 = arith.divf %1004, %1005 : vector<2x16xf32>
    %1007 = arith.mulf %998, %969 : vector<2x16xf32>
    %1008 = arith.mulf %992, %1000 : vector<2x16xf32>
    %1009 = arith.addf %1007, %1008 : vector<2x16xf32>
    %1010 = math.tanh %1009 : vector<2x16xf32>
    %1011 = arith.mulf %1006, %1010 : vector<2x16xf32>
    %1012 = vector.extract_strided_slice %1011 {offsets = [0, 0], sizes = [2, 8], strides = [1, 1]} : vector<2x16xf32> to vector<2x8xf32>
    %c2_517 = arith.constant 2 : index
    %c0_518 = arith.constant 0 : index
    %c0_519 = arith.constant 0 : index
    %1013 = vector.load %arg23[%c2_517, %c0_518, %c0_519] : memref<8x2x8xf32, #tpu.memory_space<vmem>>, vector<1x2x8xf32>
    %1014 = vector.shape_cast %1013 : vector<1x2x8xf32> to vector<2x8xf32>
    %1015 = vector.shape_cast %1012 : vector<2x8xf32> to vector<1x2x8xf32>
    tpu.vector_store %arg23[%c2_517, %c0_518, %c0_519], %1015 {strides = array<i32>} : memref<8x2x8xf32, #tpu.memory_space<vmem>>, vector<1x2x8xf32>,
    %1016 = vector.extract_strided_slice %1011 {offsets = [0, 8], sizes = [2, 8], strides = [1, 1]} : vector<2x16xf32> to vector<2x8xf32>
    %c5_520 = arith.constant 5 : index
    %c0_521 = arith.constant 0 : index
    %c0_522 = arith.constant 0 : index
    %1017 = vector.load %arg24[%c5_520, %c0_521, %c0_522] : memref<8x2x8xf32, #tpu.memory_space<vmem>>, vector<1x2x8xf32>
    %1018 = vector.shape_cast %1017 : vector<1x2x8xf32> to vector<2x8xf32>
    %1019 = vector.shape_cast %1016 : vector<2x8xf32> to vector<1x2x8xf32>
    tpu.vector_store %arg24[%c5_520, %c0_521, %c0_522], %1019 {strides = array<i32>} : memref<8x2x8xf32, #tpu.memory_space<vmem>>, vector<1x2x8xf32>,
    %c3_523 = arith.constant 3 : index
    %c0_524 = arith.constant 0 : index
    %c0_525 = arith.constant 0 : index
    %1020 = vector.load %arg22[%c3_523, %c0_524, %c0_525] : memref<8x2x64xf32, #tpu.memory_space<vmem>>, vector<1x2x64xf32>
    %1021 = vector.shape_cast %1020 : vector<1x2x64xf32> to vector<2x64xf32>
    %c4_526 = arith.constant 4 : index
    %c0_527 = arith.constant 0 : index
    %c0_528 = arith.constant 0 : index
    %1022 = vector.load %arg22[%c4_526, %c0_527, %c0_528] : memref<8x2x64xf32, #tpu.memory_space<vmem>>, vector<1x2x64xf32>
    %1023 = vector.shape_cast %1022 : vector<1x2x64xf32> to vector<2x64xf32>
    %1024 = arith.select %18, %1021, %1023 : vector<2x64xi1>, vector<2x64xf32>
    %cst_529 = arith.constant dense<0.000000e+00> : vector<2x64xf32>
    %1025 = tpu.matmul %1011, %837, %cst_529 {dimension_numbers = #tpu.dot_dimension_numbers<[1], [0], [0], [1], [0, 0, 1, 1], [], []>} : vector<2x16xf32>, vector<16x64xf32>, vector<2x64xf32> -> vector<2x64xf32>
    %1026 = arith.addf %1024, %1025 : vector<2x64xf32>
    %1027 = vector.extract_strided_slice %1026 {offsets = [0, 0], sizes = [2, 16], strides = [1, 1]} : vector<2x64xf32> to vector<2x16xf32>
    %1028 = arith.negf %1027 : vector<2x16xf32>
    %1029 = math.exp %1028 : vector<2x16xf32>
    %cst_530 = arith.constant 1.000000e+00 : f32
    %1030 = vector.broadcast %cst_530 : f32 to vector<2x16xf32>
    %1031 = arith.addf %1030, %1029 : vector<2x16xf32>
    %1032 = arith.divf %1030, %1031 : vector<2x16xf32>
    %1033 = vector.extract_strided_slice %1026 {offsets = [0, 16], sizes = [2, 16], strides = [1, 1]} : vector<2x64xf32> to vector<2x16xf32>
    %1034 = arith.negf %1033 : vector<2x16xf32>
    %1035 = math.exp %1034 : vector<2x16xf32>
    %cst_531 = arith.constant 1.000000e+00 : f32
    %1036 = vector.broadcast %cst_531 : f32 to vector<2x16xf32>
    %1037 = arith.addf %1036, %1035 : vector<2x16xf32>
    %1038 = arith.divf %1036, %1037 : vector<2x16xf32>
    %1039 = vector.extract_strided_slice %1026 {offsets = [0, 32], sizes = [2, 16], strides = [1, 1]} : vector<2x64xf32> to vector<2x16xf32>
    %1040 = math.tanh %1039 : vector<2x16xf32>
    %1041 = vector.extract_strided_slice %1026 {offsets = [0, 48], sizes = [2, 16], strides = [1, 1]} : vector<2x64xf32> to vector<2x16xf32>
    %1042 = arith.negf %1041 : vector<2x16xf32>
    %1043 = math.exp %1042 : vector<2x16xf32>
    %cst_532 = arith.constant 1.000000e+00 : f32
    %1044 = vector.broadcast %cst_532 : f32 to vector<2x16xf32>
    %1045 = arith.addf %1044, %1043 : vector<2x16xf32>
    %1046 = arith.divf %1044, %1045 : vector<2x16xf32>
    %1047 = arith.mulf %1038, %1009 : vector<2x16xf32>
    %1048 = arith.mulf %1032, %1040 : vector<2x16xf32>
    %1049 = arith.addf %1047, %1048 : vector<2x16xf32>
    %1050 = math.tanh %1049 : vector<2x16xf32>
    %1051 = arith.mulf %1046, %1050 : vector<2x16xf32>
    %1052 = vector.extract_strided_slice %1051 {offsets = [0, 0], sizes = [2, 8], strides = [1, 1]} : vector<2x16xf32> to vector<2x8xf32>
    %c3_533 = arith.constant 3 : index
    %c0_534 = arith.constant 0 : index
    %c0_535 = arith.constant 0 : index
    %1053 = vector.load %arg23[%c3_533, %c0_534, %c0_535] : memref<8x2x8xf32, #tpu.memory_space<vmem>>, vector<1x2x8xf32>
    %1054 = vector.shape_cast %1053 : vector<1x2x8xf32> to vector<2x8xf32>
    %1055 = vector.shape_cast %1052 : vector<2x8xf32> to vector<1x2x8xf32>
    tpu.vector_store %arg23[%c3_533, %c0_534, %c0_535], %1055 {strides = array<i32>} : memref<8x2x8xf32, #tpu.memory_space<vmem>>, vector<1x2x8xf32>,
    %1056 = vector.extract_strided_slice %1051 {offsets = [0, 8], sizes = [2, 8], strides = [1, 1]} : vector<2x16xf32> to vector<2x8xf32>
    %c4_536 = arith.constant 4 : index
    %c0_537 = arith.constant 0 : index
    %c0_538 = arith.constant 0 : index
    %1057 = vector.load %arg24[%c4_536, %c0_537, %c0_538] : memref<8x2x8xf32, #tpu.memory_space<vmem>>, vector<1x2x8xf32>
    %1058 = vector.shape_cast %1057 : vector<1x2x8xf32> to vector<2x8xf32>
    %1059 = vector.shape_cast %1056 : vector<2x8xf32> to vector<1x2x8xf32>
    tpu.vector_store %arg24[%c4_536, %c0_537, %c0_538], %1059 {strides = array<i32>} : memref<8x2x8xf32, #tpu.memory_space<vmem>>, vector<1x2x8xf32>,
    %c4_539 = arith.constant 4 : index
    %c0_540 = arith.constant 0 : index
    %c0_541 = arith.constant 0 : index
    %1060 = vector.load %arg22[%c4_539, %c0_540, %c0_541] : memref<8x2x64xf32, #tpu.memory_space<vmem>>, vector<1x2x64xf32>
    %1061 = vector.shape_cast %1060 : vector<1x2x64xf32> to vector<2x64xf32>
    %c3_542 = arith.constant 3 : index
    %c0_543 = arith.constant 0 : index
    %c0_544 = arith.constant 0 : index
    %1062 = vector.load %arg22[%c3_542, %c0_543, %c0_544] : memref<8x2x64xf32, #tpu.memory_space<vmem>>, vector<1x2x64xf32>
    %1063 = vector.shape_cast %1062 : vector<1x2x64xf32> to vector<2x64xf32>
    %1064 = arith.select %18, %1061, %1063 : vector<2x64xi1>, vector<2x64xf32>
    %cst_545 = arith.constant dense<0.000000e+00> : vector<2x64xf32>
    %1065 = tpu.matmul %1051, %837, %cst_545 {dimension_numbers = #tpu.dot_dimension_numbers<[1], [0], [0], [1], [0, 0, 1, 1], [], []>} : vector<2x16xf32>, vector<16x64xf32>, vector<2x64xf32> -> vector<2x64xf32>
    %1066 = arith.addf %1064, %1065 : vector<2x64xf32>
    %1067 = vector.extract_strided_slice %1066 {offsets = [0, 0], sizes = [2, 16], strides = [1, 1]} : vector<2x64xf32> to vector<2x16xf32>
    %1068 = arith.negf %1067 : vector<2x16xf32>
    %1069 = math.exp %1068 : vector<2x16xf32>
    %cst_546 = arith.constant 1.000000e+00 : f32
    %1070 = vector.broadcast %cst_546 : f32 to vector<2x16xf32>
    %1071 = arith.addf %1070, %1069 : vector<2x16xf32>
    %1072 = arith.divf %1070, %1071 : vector<2x16xf32>
    %1073 = vector.extract_strided_slice %1066 {offsets = [0, 16], sizes = [2, 16], strides = [1, 1]} : vector<2x64xf32> to vector<2x16xf32>
    %1074 = arith.negf %1073 : vector<2x16xf32>
    %1075 = math.exp %1074 : vector<2x16xf32>
    %cst_547 = arith.constant 1.000000e+00 : f32
    %1076 = vector.broadcast %cst_547 : f32 to vector<2x16xf32>
    %1077 = arith.addf %1076, %1075 : vector<2x16xf32>
    %1078 = arith.divf %1076, %1077 : vector<2x16xf32>
    %1079 = vector.extract_strided_slice %1066 {offsets = [0, 32], sizes = [2, 16], strides = [1, 1]} : vector<2x64xf32> to vector<2x16xf32>
    %1080 = math.tanh %1079 : vector<2x16xf32>
    %1081 = vector.extract_strided_slice %1066 {offsets = [0, 48], sizes = [2, 16], strides = [1, 1]} : vector<2x64xf32> to vector<2x16xf32>
    %1082 = arith.negf %1081 : vector<2x16xf32>
    %1083 = math.exp %1082 : vector<2x16xf32>
    %cst_548 = arith.constant 1.000000e+00 : f32
    %1084 = vector.broadcast %cst_548 : f32 to vector<2x16xf32>
    %1085 = arith.addf %1084, %1083 : vector<2x16xf32>
    %1086 = arith.divf %1084, %1085 : vector<2x16xf32>
    %1087 = arith.mulf %1078, %1049 : vector<2x16xf32>
    %1088 = arith.mulf %1072, %1080 : vector<2x16xf32>
    %1089 = arith.addf %1087, %1088 : vector<2x16xf32>
    %1090 = math.tanh %1089 : vector<2x16xf32>
    %1091 = arith.mulf %1086, %1090 : vector<2x16xf32>
    %1092 = vector.extract_strided_slice %1091 {offsets = [0, 0], sizes = [2, 8], strides = [1, 1]} : vector<2x16xf32> to vector<2x8xf32>
    %c4_549 = arith.constant 4 : index
    %c0_550 = arith.constant 0 : index
    %c0_551 = arith.constant 0 : index
    %1093 = vector.load %arg23[%c4_549, %c0_550, %c0_551] : memref<8x2x8xf32, #tpu.memory_space<vmem>>, vector<1x2x8xf32>
    %1094 = vector.shape_cast %1093 : vector<1x2x8xf32> to vector<2x8xf32>
    %1095 = vector.shape_cast %1092 : vector<2x8xf32> to vector<1x2x8xf32>
    tpu.vector_store %arg23[%c4_549, %c0_550, %c0_551], %1095 {strides = array<i32>} : memref<8x2x8xf32, #tpu.memory_space<vmem>>, vector<1x2x8xf32>,
    %1096 = vector.extract_strided_slice %1091 {offsets = [0, 8], sizes = [2, 8], strides = [1, 1]} : vector<2x16xf32> to vector<2x8xf32>
    %c3_552 = arith.constant 3 : index
    %c0_553 = arith.constant 0 : index
    %c0_554 = arith.constant 0 : index
    %1097 = vector.load %arg24[%c3_552, %c0_553, %c0_554] : memref<8x2x8xf32, #tpu.memory_space<vmem>>, vector<1x2x8xf32>
    %1098 = vector.shape_cast %1097 : vector<1x2x8xf32> to vector<2x8xf32>
    %1099 = vector.shape_cast %1096 : vector<2x8xf32> to vector<1x2x8xf32>
    tpu.vector_store %arg24[%c3_552, %c0_553, %c0_554], %1099 {strides = array<i32>} : memref<8x2x8xf32, #tpu.memory_space<vmem>>, vector<1x2x8xf32>,
    %c5_555 = arith.constant 5 : index
    %c0_556 = arith.constant 0 : index
    %c0_557 = arith.constant 0 : index
    %1100 = vector.load %arg22[%c5_555, %c0_556, %c0_557] : memref<8x2x64xf32, #tpu.memory_space<vmem>>, vector<1x2x64xf32>
    %1101 = vector.shape_cast %1100 : vector<1x2x64xf32> to vector<2x64xf32>
    %c2_558 = arith.constant 2 : index
    %c0_559 = arith.constant 0 : index
    %c0_560 = arith.constant 0 : index
    %1102 = vector.load %arg22[%c2_558, %c0_559, %c0_560] : memref<8x2x64xf32, #tpu.memory_space<vmem>>, vector<1x2x64xf32>
    %1103 = vector.shape_cast %1102 : vector<1x2x64xf32> to vector<2x64xf32>
    %1104 = arith.select %18, %1101, %1103 : vector<2x64xi1>, vector<2x64xf32>
    %cst_561 = arith.constant dense<0.000000e+00> : vector<2x64xf32>
    %1105 = tpu.matmul %1091, %837, %cst_561 {dimension_numbers = #tpu.dot_dimension_numbers<[1], [0], [0], [1], [0, 0, 1, 1], [], []>} : vector<2x16xf32>, vector<16x64xf32>, vector<2x64xf32> -> vector<2x64xf32>
    %1106 = arith.addf %1104, %1105 : vector<2x64xf32>
    %1107 = vector.extract_strided_slice %1106 {offsets = [0, 0], sizes = [2, 16], strides = [1, 1]} : vector<2x64xf32> to vector<2x16xf32>
    %1108 = arith.negf %1107 : vector<2x16xf32>
    %1109 = math.exp %1108 : vector<2x16xf32>
    %cst_562 = arith.constant 1.000000e+00 : f32
    %1110 = vector.broadcast %cst_562 : f32 to vector<2x16xf32>
    %1111 = arith.addf %1110, %1109 : vector<2x16xf32>
    %1112 = arith.divf %1110, %1111 : vector<2x16xf32>
    %1113 = vector.extract_strided_slice %1106 {offsets = [0, 16], sizes = [2, 16], strides = [1, 1]} : vector<2x64xf32> to vector<2x16xf32>
    %1114 = arith.negf %1113 : vector<2x16xf32>
    %1115 = math.exp %1114 : vector<2x16xf32>
    %cst_563 = arith.constant 1.000000e+00 : f32
    %1116 = vector.broadcast %cst_563 : f32 to vector<2x16xf32>
    %1117 = arith.addf %1116, %1115 : vector<2x16xf32>
    %1118 = arith.divf %1116, %1117 : vector<2x16xf32>
    %1119 = vector.extract_strided_slice %1106 {offsets = [0, 32], sizes = [2, 16], strides = [1, 1]} : vector<2x64xf32> to vector<2x16xf32>
    %1120 = math.tanh %1119 : vector<2x16xf32>
    %1121 = vector.extract_strided_slice %1106 {offsets = [0, 48], sizes = [2, 16], strides = [1, 1]} : vector<2x64xf32> to vector<2x16xf32>
    %1122 = arith.negf %1121 : vector<2x16xf32>
    %1123 = math.exp %1122 : vector<2x16xf32>
    %cst_564 = arith.constant 1.000000e+00 : f32
    %1124 = vector.broadcast %cst_564 : f32 to vector<2x16xf32>
    %1125 = arith.addf %1124, %1123 : vector<2x16xf32>
    %1126 = arith.divf %1124, %1125 : vector<2x16xf32>
    %1127 = arith.mulf %1118, %1089 : vector<2x16xf32>
    %1128 = arith.mulf %1112, %1120 : vector<2x16xf32>
    %1129 = arith.addf %1127, %1128 : vector<2x16xf32>
    %1130 = math.tanh %1129 : vector<2x16xf32>
    %1131 = arith.mulf %1126, %1130 : vector<2x16xf32>
    %1132 = vector.extract_strided_slice %1131 {offsets = [0, 0], sizes = [2, 8], strides = [1, 1]} : vector<2x16xf32> to vector<2x8xf32>
    %c5_565 = arith.constant 5 : index
    %c0_566 = arith.constant 0 : index
    %c0_567 = arith.constant 0 : index
    %1133 = vector.load %arg23[%c5_565, %c0_566, %c0_567] : memref<8x2x8xf32, #tpu.memory_space<vmem>>, vector<1x2x8xf32>
    %1134 = vector.shape_cast %1133 : vector<1x2x8xf32> to vector<2x8xf32>
    %1135 = vector.shape_cast %1132 : vector<2x8xf32> to vector<1x2x8xf32>
    tpu.vector_store %arg23[%c5_565, %c0_566, %c0_567], %1135 {strides = array<i32>} : memref<8x2x8xf32, #tpu.memory_space<vmem>>, vector<1x2x8xf32>,
    %1136 = vector.extract_strided_slice %1131 {offsets = [0, 8], sizes = [2, 8], strides = [1, 1]} : vector<2x16xf32> to vector<2x8xf32>
    %c2_568 = arith.constant 2 : index
    %c0_569 = arith.constant 0 : index
    %c0_570 = arith.constant 0 : index
    %1137 = vector.load %arg24[%c2_568, %c0_569, %c0_570] : memref<8x2x8xf32, #tpu.memory_space<vmem>>, vector<1x2x8xf32>
    %1138 = vector.shape_cast %1137 : vector<1x2x8xf32> to vector<2x8xf32>
    %1139 = vector.shape_cast %1136 : vector<2x8xf32> to vector<1x2x8xf32>
    tpu.vector_store %arg24[%c2_568, %c0_569, %c0_570], %1139 {strides = array<i32>} : memref<8x2x8xf32, #tpu.memory_space<vmem>>, vector<1x2x8xf32>,
    %c6_571 = arith.constant 6 : index
    %c0_572 = arith.constant 0 : index
    %c0_573 = arith.constant 0 : index
    %1140 = vector.load %arg22[%c6_571, %c0_572, %c0_573] : memref<8x2x64xf32, #tpu.memory_space<vmem>>, vector<1x2x64xf32>
    %1141 = vector.shape_cast %1140 : vector<1x2x64xf32> to vector<2x64xf32>
    %c1_574 = arith.constant 1 : index
    %c0_575 = arith.constant 0 : index
    %c0_576 = arith.constant 0 : index
    %1142 = vector.load %arg22[%c1_574, %c0_575, %c0_576] : memref<8x2x64xf32, #tpu.memory_space<vmem>>, vector<1x2x64xf32>
    %1143 = vector.shape_cast %1142 : vector<1x2x64xf32> to vector<2x64xf32>
    %1144 = arith.select %18, %1141, %1143 : vector<2x64xi1>, vector<2x64xf32>
    %cst_577 = arith.constant dense<0.000000e+00> : vector<2x64xf32>
    %1145 = tpu.matmul %1131, %837, %cst_577 {dimension_numbers = #tpu.dot_dimension_numbers<[1], [0], [0], [1], [0, 0, 1, 1], [], []>} : vector<2x16xf32>, vector<16x64xf32>, vector<2x64xf32> -> vector<2x64xf32>
    %1146 = arith.addf %1144, %1145 : vector<2x64xf32>
    %1147 = vector.extract_strided_slice %1146 {offsets = [0, 0], sizes = [2, 16], strides = [1, 1]} : vector<2x64xf32> to vector<2x16xf32>
    %1148 = arith.negf %1147 : vector<2x16xf32>
    %1149 = math.exp %1148 : vector<2x16xf32>
    %cst_578 = arith.constant 1.000000e+00 : f32
    %1150 = vector.broadcast %cst_578 : f32 to vector<2x16xf32>
    %1151 = arith.addf %1150, %1149 : vector<2x16xf32>
    %1152 = arith.divf %1150, %1151 : vector<2x16xf32>
    %1153 = vector.extract_strided_slice %1146 {offsets = [0, 16], sizes = [2, 16], strides = [1, 1]} : vector<2x64xf32> to vector<2x16xf32>
    %1154 = arith.negf %1153 : vector<2x16xf32>
    %1155 = math.exp %1154 : vector<2x16xf32>
    %cst_579 = arith.constant 1.000000e+00 : f32
    %1156 = vector.broadcast %cst_579 : f32 to vector<2x16xf32>
    %1157 = arith.addf %1156, %1155 : vector<2x16xf32>
    %1158 = arith.divf %1156, %1157 : vector<2x16xf32>
    %1159 = vector.extract_strided_slice %1146 {offsets = [0, 32], sizes = [2, 16], strides = [1, 1]} : vector<2x64xf32> to vector<2x16xf32>
    %1160 = math.tanh %1159 : vector<2x16xf32>
    %1161 = vector.extract_strided_slice %1146 {offsets = [0, 48], sizes = [2, 16], strides = [1, 1]} : vector<2x64xf32> to vector<2x16xf32>
    %1162 = arith.negf %1161 : vector<2x16xf32>
    %1163 = math.exp %1162 : vector<2x16xf32>
    %cst_580 = arith.constant 1.000000e+00 : f32
    %1164 = vector.broadcast %cst_580 : f32 to vector<2x16xf32>
    %1165 = arith.addf %1164, %1163 : vector<2x16xf32>
    %1166 = arith.divf %1164, %1165 : vector<2x16xf32>
    %1167 = arith.mulf %1158, %1129 : vector<2x16xf32>
    %1168 = arith.mulf %1152, %1160 : vector<2x16xf32>
    %1169 = arith.addf %1167, %1168 : vector<2x16xf32>
    %1170 = math.tanh %1169 : vector<2x16xf32>
    %1171 = arith.mulf %1166, %1170 : vector<2x16xf32>
    %1172 = vector.extract_strided_slice %1171 {offsets = [0, 0], sizes = [2, 8], strides = [1, 1]} : vector<2x16xf32> to vector<2x8xf32>
    %c6_581 = arith.constant 6 : index
    %c0_582 = arith.constant 0 : index
    %c0_583 = arith.constant 0 : index
    %1173 = vector.load %arg23[%c6_581, %c0_582, %c0_583] : memref<8x2x8xf32, #tpu.memory_space<vmem>>, vector<1x2x8xf32>
    %1174 = vector.shape_cast %1173 : vector<1x2x8xf32> to vector<2x8xf32>
    %1175 = vector.shape_cast %1172 : vector<2x8xf32> to vector<1x2x8xf32>
    tpu.vector_store %arg23[%c6_581, %c0_582, %c0_583], %1175 {strides = array<i32>} : memref<8x2x8xf32, #tpu.memory_space<vmem>>, vector<1x2x8xf32>,
    %1176 = vector.extract_strided_slice %1171 {offsets = [0, 8], sizes = [2, 8], strides = [1, 1]} : vector<2x16xf32> to vector<2x8xf32>
    %c1_584 = arith.constant 1 : index
    %c0_585 = arith.constant 0 : index
    %c0_586 = arith.constant 0 : index
    %1177 = vector.load %arg24[%c1_584, %c0_585, %c0_586] : memref<8x2x8xf32, #tpu.memory_space<vmem>>, vector<1x2x8xf32>
    %1178 = vector.shape_cast %1177 : vector<1x2x8xf32> to vector<2x8xf32>
    %1179 = vector.shape_cast %1176 : vector<2x8xf32> to vector<1x2x8xf32>
    tpu.vector_store %arg24[%c1_584, %c0_585, %c0_586], %1179 {strides = array<i32>} : memref<8x2x8xf32, #tpu.memory_space<vmem>>, vector<1x2x8xf32>,
    %c7_587 = arith.constant 7 : index
    %c0_588 = arith.constant 0 : index
    %c0_589 = arith.constant 0 : index
    %1180 = vector.load %arg22[%c7_587, %c0_588, %c0_589] : memref<8x2x64xf32, #tpu.memory_space<vmem>>, vector<1x2x64xf32>
    %1181 = vector.shape_cast %1180 : vector<1x2x64xf32> to vector<2x64xf32>
    %c0_590 = arith.constant 0 : index
    %c0_591 = arith.constant 0 : index
    %c0_592 = arith.constant 0 : index
    %1182 = vector.load %arg22[%c0_590, %c0_591, %c0_592] : memref<8x2x64xf32, #tpu.memory_space<vmem>>, vector<1x2x64xf32>
    %1183 = vector.shape_cast %1182 : vector<1x2x64xf32> to vector<2x64xf32>
    %1184 = arith.select %18, %1181, %1183 : vector<2x64xi1>, vector<2x64xf32>
    %cst_593 = arith.constant dense<0.000000e+00> : vector<2x64xf32>
    %1185 = tpu.matmul %1171, %837, %cst_593 {dimension_numbers = #tpu.dot_dimension_numbers<[1], [0], [0], [1], [0, 0, 1, 1], [], []>} : vector<2x16xf32>, vector<16x64xf32>, vector<2x64xf32> -> vector<2x64xf32>
    %1186 = arith.addf %1184, %1185 : vector<2x64xf32>
    %1187 = vector.extract_strided_slice %1186 {offsets = [0, 0], sizes = [2, 16], strides = [1, 1]} : vector<2x64xf32> to vector<2x16xf32>
    %1188 = arith.negf %1187 : vector<2x16xf32>
    %1189 = math.exp %1188 : vector<2x16xf32>
    %cst_594 = arith.constant 1.000000e+00 : f32
    %1190 = vector.broadcast %cst_594 : f32 to vector<2x16xf32>
    %1191 = arith.addf %1190, %1189 : vector<2x16xf32>
    %1192 = arith.divf %1190, %1191 : vector<2x16xf32>
    %1193 = vector.extract_strided_slice %1186 {offsets = [0, 16], sizes = [2, 16], strides = [1, 1]} : vector<2x64xf32> to vector<2x16xf32>
    %1194 = arith.negf %1193 : vector<2x16xf32>
    %1195 = math.exp %1194 : vector<2x16xf32>
    %cst_595 = arith.constant 1.000000e+00 : f32
    %1196 = vector.broadcast %cst_595 : f32 to vector<2x16xf32>
    %1197 = arith.addf %1196, %1195 : vector<2x16xf32>
    %1198 = arith.divf %1196, %1197 : vector<2x16xf32>
    %1199 = vector.extract_strided_slice %1186 {offsets = [0, 32], sizes = [2, 16], strides = [1, 1]} : vector<2x64xf32> to vector<2x16xf32>
    %1200 = math.tanh %1199 : vector<2x16xf32>
    %1201 = vector.extract_strided_slice %1186 {offsets = [0, 48], sizes = [2, 16], strides = [1, 1]} : vector<2x64xf32> to vector<2x16xf32>
    %1202 = arith.negf %1201 : vector<2x16xf32>
    %1203 = math.exp %1202 : vector<2x16xf32>
    %cst_596 = arith.constant 1.000000e+00 : f32
    %1204 = vector.broadcast %cst_596 : f32 to vector<2x16xf32>
    %1205 = arith.addf %1204, %1203 : vector<2x16xf32>
    %1206 = arith.divf %1204, %1205 : vector<2x16xf32>
    %1207 = arith.mulf %1198, %1169 : vector<2x16xf32>
    %1208 = arith.mulf %1192, %1200 : vector<2x16xf32>
    %1209 = arith.addf %1207, %1208 : vector<2x16xf32>
    %1210 = math.tanh %1209 : vector<2x16xf32>
    %1211 = arith.mulf %1206, %1210 : vector<2x16xf32>
    %1212 = vector.extract_strided_slice %1211 {offsets = [0, 0], sizes = [2, 8], strides = [1, 1]} : vector<2x16xf32> to vector<2x8xf32>
    %c7_597 = arith.constant 7 : index
    %c0_598 = arith.constant 0 : index
    %c0_599 = arith.constant 0 : index
    %1213 = vector.load %arg23[%c7_597, %c0_598, %c0_599] : memref<8x2x8xf32, #tpu.memory_space<vmem>>, vector<1x2x8xf32>
    %1214 = vector.shape_cast %1213 : vector<1x2x8xf32> to vector<2x8xf32>
    %1215 = vector.shape_cast %1212 : vector<2x8xf32> to vector<1x2x8xf32>
    tpu.vector_store %arg23[%c7_597, %c0_598, %c0_599], %1215 {strides = array<i32>} : memref<8x2x8xf32, #tpu.memory_space<vmem>>, vector<1x2x8xf32>,
    %1216 = vector.extract_strided_slice %1211 {offsets = [0, 8], sizes = [2, 8], strides = [1, 1]} : vector<2x16xf32> to vector<2x8xf32>
    %c0_600 = arith.constant 0 : index
    %c0_601 = arith.constant 0 : index
    %c0_602 = arith.constant 0 : index
    %1217 = vector.load %arg24[%c0_600, %c0_601, %c0_602] : memref<8x2x8xf32, #tpu.memory_space<vmem>>, vector<1x2x8xf32>
    %1218 = vector.shape_cast %1217 : vector<1x2x8xf32> to vector<2x8xf32>
    %1219 = vector.shape_cast %1216 : vector<2x8xf32> to vector<1x2x8xf32>
    tpu.vector_store %arg24[%c0_600, %c0_601, %c0_602], %1219 {strides = array<i32>} : memref<8x2x8xf32, #tpu.memory_space<vmem>>, vector<1x2x8xf32>,
    %c0_603 = arith.constant 0 : index
    %c0_604 = arith.constant 0 : index
    %1220 = vector.load %arg10[%c0_603, %c0_604] : memref<16x64xf32, #tpu.memory_space<vmem>>, vector<16x64xf32>
    %1221 = vector.extract_strided_slice %1220 {offsets = [0, 0], sizes = [8, 64], strides = [1, 1]} : vector<16x64xf32> to vector<8x64xf32>
    %1222 = vector.extract_strided_slice %1220 {offsets = [8, 0], sizes = [8, 64], strides = [1, 1]} : vector<16x64xf32> to vector<8x64xf32>
    %c0_605 = arith.constant 0 : index
    %c0_606 = arith.constant 0 : index
    %1223 = vector.load %arg12[%c0_605, %c0_606] : memref<1x64xf32, #tpu.memory_space<vmem>>, vector<1x64xf32>
    %c0_607 = arith.constant 0 : index
    %c0_608 = arith.constant 0 : index
    %1224 = vector.load %arg11[%c0_607, %c0_608] : memref<16x64xf32, #tpu.memory_space<vmem>>, vector<16x64xf32>
    %c0_609 = arith.constant 0 : index
    %c0_610 = arith.constant 0 : index
    %c0_611 = arith.constant 0 : index
    %1225 = vector.load %arg23[%c0_609, %c0_610, %c0_611] : memref<8x2x8xf32, #tpu.memory_space<vmem>>, vector<1x2x8xf32>
    %1226 = vector.shape_cast %1225 : vector<1x2x8xf32> to vector<2x8xf32>
    %cst_612 = arith.constant dense<0.000000e+00> : vector<2x64xf32>
    %1227 = tpu.matmul %1226, %1221, %cst_612 {dimension_numbers = #tpu.dot_dimension_numbers<[1], [0], [0], [1], [0, 0, 1, 1], [], []>} : vector<2x8xf32>, vector<8x64xf32>, vector<2x64xf32> -> vector<2x64xf32>
    %c0_613 = arith.constant 0 : index
    %c0_614 = arith.constant 0 : index
    %c0_615 = arith.constant 0 : index
    %1228 = vector.load %arg24[%c0_613, %c0_614, %c0_615] : memref<8x2x8xf32, #tpu.memory_space<vmem>>, vector<1x2x8xf32>
    %1229 = vector.shape_cast %1228 : vector<1x2x8xf32> to vector<2x8xf32>
    %cst_616 = arith.constant dense<0.000000e+00> : vector<2x64xf32>
    %1230 = tpu.matmul %1229, %1222, %cst_616 {dimension_numbers = #tpu.dot_dimension_numbers<[1], [0], [0], [1], [0, 0, 1, 1], [], []>} : vector<2x8xf32>, vector<8x64xf32>, vector<2x64xf32> -> vector<2x64xf32>
    %1231 = arith.addf %1227, %1230 : vector<2x64xf32>
    %1232 = vector.broadcast %1223 : vector<1x64xf32> to vector<2x64xf32>
    %1233 = arith.addf %1231, %1232 : vector<2x64xf32>
    %c0_617 = arith.constant 0 : index
    %c0_618 = arith.constant 0 : index
    %c0_619 = arith.constant 0 : index
    %1234 = vector.load %arg22[%c0_617, %c0_618, %c0_619] : memref<8x2x64xf32, #tpu.memory_space<vmem>>, vector<1x2x64xf32>
    %1235 = vector.shape_cast %1234 : vector<1x2x64xf32> to vector<2x64xf32>
    %1236 = vector.shape_cast %1233 : vector<2x64xf32> to vector<1x2x64xf32>
    tpu.vector_store %arg22[%c0_617, %c0_618, %c0_619], %1236 {strides = array<i32>} : memref<8x2x64xf32, #tpu.memory_space<vmem>>, vector<1x2x64xf32>,
    %c1_620 = arith.constant 1 : index
    %c0_621 = arith.constant 0 : index
    %c0_622 = arith.constant 0 : index
    %1237 = vector.load %arg23[%c1_620, %c0_621, %c0_622] : memref<8x2x8xf32, #tpu.memory_space<vmem>>, vector<1x2x8xf32>
    %1238 = vector.shape_cast %1237 : vector<1x2x8xf32> to vector<2x8xf32>
    %cst_623 = arith.constant dense<0.000000e+00> : vector<2x64xf32>
    %1239 = tpu.matmul %1238, %1221, %cst_623 {dimension_numbers = #tpu.dot_dimension_numbers<[1], [0], [0], [1], [0, 0, 1, 1], [], []>} : vector<2x8xf32>, vector<8x64xf32>, vector<2x64xf32> -> vector<2x64xf32>
    %c1_624 = arith.constant 1 : index
    %c0_625 = arith.constant 0 : index
    %c0_626 = arith.constant 0 : index
    %1240 = vector.load %arg24[%c1_624, %c0_625, %c0_626] : memref<8x2x8xf32, #tpu.memory_space<vmem>>, vector<1x2x8xf32>
    %1241 = vector.shape_cast %1240 : vector<1x2x8xf32> to vector<2x8xf32>
    %cst_627 = arith.constant dense<0.000000e+00> : vector<2x64xf32>
    %1242 = tpu.matmul %1241, %1222, %cst_627 {dimension_numbers = #tpu.dot_dimension_numbers<[1], [0], [0], [1], [0, 0, 1, 1], [], []>} : vector<2x8xf32>, vector<8x64xf32>, vector<2x64xf32> -> vector<2x64xf32>
    %1243 = arith.addf %1239, %1242 : vector<2x64xf32>
    %1244 = vector.broadcast %1223 : vector<1x64xf32> to vector<2x64xf32>
    %1245 = arith.addf %1243, %1244 : vector<2x64xf32>
    %c1_628 = arith.constant 1 : index
    %c0_629 = arith.constant 0 : index
    %c0_630 = arith.constant 0 : index
    %1246 = vector.load %arg22[%c1_628, %c0_629, %c0_630] : memref<8x2x64xf32, #tpu.memory_space<vmem>>, vector<1x2x64xf32>
    %1247 = vector.shape_cast %1246 : vector<1x2x64xf32> to vector<2x64xf32>
    %1248 = vector.shape_cast %1245 : vector<2x64xf32> to vector<1x2x64xf32>
    tpu.vector_store %arg22[%c1_628, %c0_629, %c0_630], %1248 {strides = array<i32>} : memref<8x2x64xf32, #tpu.memory_space<vmem>>, vector<1x2x64xf32>,
    %c2_631 = arith.constant 2 : index
    %c0_632 = arith.constant 0 : index
    %c0_633 = arith.constant 0 : index
    %1249 = vector.load %arg23[%c2_631, %c0_632, %c0_633] : memref<8x2x8xf32, #tpu.memory_space<vmem>>, vector<1x2x8xf32>
    %1250 = vector.shape_cast %1249 : vector<1x2x8xf32> to vector<2x8xf32>
    %cst_634 = arith.constant dense<0.000000e+00> : vector<2x64xf32>
    %1251 = tpu.matmul %1250, %1221, %cst_634 {dimension_numbers = #tpu.dot_dimension_numbers<[1], [0], [0], [1], [0, 0, 1, 1], [], []>} : vector<2x8xf32>, vector<8x64xf32>, vector<2x64xf32> -> vector<2x64xf32>
    %c2_635 = arith.constant 2 : index
    %c0_636 = arith.constant 0 : index
    %c0_637 = arith.constant 0 : index
    %1252 = vector.load %arg24[%c2_635, %c0_636, %c0_637] : memref<8x2x8xf32, #tpu.memory_space<vmem>>, vector<1x2x8xf32>
    %1253 = vector.shape_cast %1252 : vector<1x2x8xf32> to vector<2x8xf32>
    %cst_638 = arith.constant dense<0.000000e+00> : vector<2x64xf32>
    %1254 = tpu.matmul %1253, %1222, %cst_638 {dimension_numbers = #tpu.dot_dimension_numbers<[1], [0], [0], [1], [0, 0, 1, 1], [], []>} : vector<2x8xf32>, vector<8x64xf32>, vector<2x64xf32> -> vector<2x64xf32>
    %1255 = arith.addf %1251, %1254 : vector<2x64xf32>
    %1256 = vector.broadcast %1223 : vector<1x64xf32> to vector<2x64xf32>
    %1257 = arith.addf %1255, %1256 : vector<2x64xf32>
    %c2_639 = arith.constant 2 : index
    %c0_640 = arith.constant 0 : index
    %c0_641 = arith.constant 0 : index
    %1258 = vector.load %arg22[%c2_639, %c0_640, %c0_641] : memref<8x2x64xf32, #tpu.memory_space<vmem>>, vector<1x2x64xf32>
    %1259 = vector.shape_cast %1258 : vector<1x2x64xf32> to vector<2x64xf32>
    %1260 = vector.shape_cast %1257 : vector<2x64xf32> to vector<1x2x64xf32>
    tpu.vector_store %arg22[%c2_639, %c0_640, %c0_641], %1260 {strides = array<i32>} : memref<8x2x64xf32, #tpu.memory_space<vmem>>, vector<1x2x64xf32>,
    %c3_642 = arith.constant 3 : index
    %c0_643 = arith.constant 0 : index
    %c0_644 = arith.constant 0 : index
    %1261 = vector.load %arg23[%c3_642, %c0_643, %c0_644] : memref<8x2x8xf32, #tpu.memory_space<vmem>>, vector<1x2x8xf32>
    %1262 = vector.shape_cast %1261 : vector<1x2x8xf32> to vector<2x8xf32>
    %cst_645 = arith.constant dense<0.000000e+00> : vector<2x64xf32>
    %1263 = tpu.matmul %1262, %1221, %cst_645 {dimension_numbers = #tpu.dot_dimension_numbers<[1], [0], [0], [1], [0, 0, 1, 1], [], []>} : vector<2x8xf32>, vector<8x64xf32>, vector<2x64xf32> -> vector<2x64xf32>
    %c3_646 = arith.constant 3 : index
    %c0_647 = arith.constant 0 : index
    %c0_648 = arith.constant 0 : index
    %1264 = vector.load %arg24[%c3_646, %c0_647, %c0_648] : memref<8x2x8xf32, #tpu.memory_space<vmem>>, vector<1x2x8xf32>
    %1265 = vector.shape_cast %1264 : vector<1x2x8xf32> to vector<2x8xf32>
    %cst_649 = arith.constant dense<0.000000e+00> : vector<2x64xf32>
    %1266 = tpu.matmul %1265, %1222, %cst_649 {dimension_numbers = #tpu.dot_dimension_numbers<[1], [0], [0], [1], [0, 0, 1, 1], [], []>} : vector<2x8xf32>, vector<8x64xf32>, vector<2x64xf32> -> vector<2x64xf32>
    %1267 = arith.addf %1263, %1266 : vector<2x64xf32>
    %1268 = vector.broadcast %1223 : vector<1x64xf32> to vector<2x64xf32>
    %1269 = arith.addf %1267, %1268 : vector<2x64xf32>
    %c3_650 = arith.constant 3 : index
    %c0_651 = arith.constant 0 : index
    %c0_652 = arith.constant 0 : index
    %1270 = vector.load %arg22[%c3_650, %c0_651, %c0_652] : memref<8x2x64xf32, #tpu.memory_space<vmem>>, vector<1x2x64xf32>
    %1271 = vector.shape_cast %1270 : vector<1x2x64xf32> to vector<2x64xf32>
    %1272 = vector.shape_cast %1269 : vector<2x64xf32> to vector<1x2x64xf32>
    tpu.vector_store %arg22[%c3_650, %c0_651, %c0_652], %1272 {strides = array<i32>} : memref<8x2x64xf32, #tpu.memory_space<vmem>>, vector<1x2x64xf32>,
    %c4_653 = arith.constant 4 : index
    %c0_654 = arith.constant 0 : index
    %c0_655 = arith.constant 0 : index
    %1273 = vector.load %arg23[%c4_653, %c0_654, %c0_655] : memref<8x2x8xf32, #tpu.memory_space<vmem>>, vector<1x2x8xf32>
    %1274 = vector.shape_cast %1273 : vector<1x2x8xf32> to vector<2x8xf32>
    %cst_656 = arith.constant dense<0.000000e+00> : vector<2x64xf32>
    %1275 = tpu.matmul %1274, %1221, %cst_656 {dimension_numbers = #tpu.dot_dimension_numbers<[1], [0], [0], [1], [0, 0, 1, 1], [], []>} : vector<2x8xf32>, vector<8x64xf32>, vector<2x64xf32> -> vector<2x64xf32>
    %c4_657 = arith.constant 4 : index
    %c0_658 = arith.constant 0 : index
    %c0_659 = arith.constant 0 : index
    %1276 = vector.load %arg24[%c4_657, %c0_658, %c0_659] : memref<8x2x8xf32, #tpu.memory_space<vmem>>, vector<1x2x8xf32>
    %1277 = vector.shape_cast %1276 : vector<1x2x8xf32> to vector<2x8xf32>
    %cst_660 = arith.constant dense<0.000000e+00> : vector<2x64xf32>
    %1278 = tpu.matmul %1277, %1222, %cst_660 {dimension_numbers = #tpu.dot_dimension_numbers<[1], [0], [0], [1], [0, 0, 1, 1], [], []>} : vector<2x8xf32>, vector<8x64xf32>, vector<2x64xf32> -> vector<2x64xf32>
    %1279 = arith.addf %1275, %1278 : vector<2x64xf32>
    %1280 = vector.broadcast %1223 : vector<1x64xf32> to vector<2x64xf32>
    %1281 = arith.addf %1279, %1280 : vector<2x64xf32>
    %c4_661 = arith.constant 4 : index
    %c0_662 = arith.constant 0 : index
    %c0_663 = arith.constant 0 : index
    %1282 = vector.load %arg22[%c4_661, %c0_662, %c0_663] : memref<8x2x64xf32, #tpu.memory_space<vmem>>, vector<1x2x64xf32>
    %1283 = vector.shape_cast %1282 : vector<1x2x64xf32> to vector<2x64xf32>
    %1284 = vector.shape_cast %1281 : vector<2x64xf32> to vector<1x2x64xf32>
    tpu.vector_store %arg22[%c4_661, %c0_662, %c0_663], %1284 {strides = array<i32>} : memref<8x2x64xf32, #tpu.memory_space<vmem>>, vector<1x2x64xf32>,
    %c5_664 = arith.constant 5 : index
    %c0_665 = arith.constant 0 : index
    %c0_666 = arith.constant 0 : index
    %1285 = vector.load %arg23[%c5_664, %c0_665, %c0_666] : memref<8x2x8xf32, #tpu.memory_space<vmem>>, vector<1x2x8xf32>
    %1286 = vector.shape_cast %1285 : vector<1x2x8xf32> to vector<2x8xf32>
    %cst_667 = arith.constant dense<0.000000e+00> : vector<2x64xf32>
    %1287 = tpu.matmul %1286, %1221, %cst_667 {dimension_numbers = #tpu.dot_dimension_numbers<[1], [0], [0], [1], [0, 0, 1, 1], [], []>} : vector<2x8xf32>, vector<8x64xf32>, vector<2x64xf32> -> vector<2x64xf32>
    %c5_668 = arith.constant 5 : index
    %c0_669 = arith.constant 0 : index
    %c0_670 = arith.constant 0 : index
    %1288 = vector.load %arg24[%c5_668, %c0_669, %c0_670] : memref<8x2x8xf32, #tpu.memory_space<vmem>>, vector<1x2x8xf32>
    %1289 = vector.shape_cast %1288 : vector<1x2x8xf32> to vector<2x8xf32>
    %cst_671 = arith.constant dense<0.000000e+00> : vector<2x64xf32>
    %1290 = tpu.matmul %1289, %1222, %cst_671 {dimension_numbers = #tpu.dot_dimension_numbers<[1], [0], [0], [1], [0, 0, 1, 1], [], []>} : vector<2x8xf32>, vector<8x64xf32>, vector<2x64xf32> -> vector<2x64xf32>
    %1291 = arith.addf %1287, %1290 : vector<2x64xf32>
    %1292 = vector.broadcast %1223 : vector<1x64xf32> to vector<2x64xf32>
    %1293 = arith.addf %1291, %1292 : vector<2x64xf32>
    %c5_672 = arith.constant 5 : index
    %c0_673 = arith.constant 0 : index
    %c0_674 = arith.constant 0 : index
    %1294 = vector.load %arg22[%c5_672, %c0_673, %c0_674] : memref<8x2x64xf32, #tpu.memory_space<vmem>>, vector<1x2x64xf32>
    %1295 = vector.shape_cast %1294 : vector<1x2x64xf32> to vector<2x64xf32>
    %1296 = vector.shape_cast %1293 : vector<2x64xf32> to vector<1x2x64xf32>
    tpu.vector_store %arg22[%c5_672, %c0_673, %c0_674], %1296 {strides = array<i32>} : memref<8x2x64xf32, #tpu.memory_space<vmem>>, vector<1x2x64xf32>,
    %c6_675 = arith.constant 6 : index
    %c0_676 = arith.constant 0 : index
    %c0_677 = arith.constant 0 : index
    %1297 = vector.load %arg23[%c6_675, %c0_676, %c0_677] : memref<8x2x8xf32, #tpu.memory_space<vmem>>, vector<1x2x8xf32>
    %1298 = vector.shape_cast %1297 : vector<1x2x8xf32> to vector<2x8xf32>
    %cst_678 = arith.constant dense<0.000000e+00> : vector<2x64xf32>
    %1299 = tpu.matmul %1298, %1221, %cst_678 {dimension_numbers = #tpu.dot_dimension_numbers<[1], [0], [0], [1], [0, 0, 1, 1], [], []>} : vector<2x8xf32>, vector<8x64xf32>, vector<2x64xf32> -> vector<2x64xf32>
    %c6_679 = arith.constant 6 : index
    %c0_680 = arith.constant 0 : index
    %c0_681 = arith.constant 0 : index
    %1300 = vector.load %arg24[%c6_679, %c0_680, %c0_681] : memref<8x2x8xf32, #tpu.memory_space<vmem>>, vector<1x2x8xf32>
    %1301 = vector.shape_cast %1300 : vector<1x2x8xf32> to vector<2x8xf32>
    %cst_682 = arith.constant dense<0.000000e+00> : vector<2x64xf32>
    %1302 = tpu.matmul %1301, %1222, %cst_682 {dimension_numbers = #tpu.dot_dimension_numbers<[1], [0], [0], [1], [0, 0, 1, 1], [], []>} : vector<2x8xf32>, vector<8x64xf32>, vector<2x64xf32> -> vector<2x64xf32>
    %1303 = arith.addf %1299, %1302 : vector<2x64xf32>
    %1304 = vector.broadcast %1223 : vector<1x64xf32> to vector<2x64xf32>
    %1305 = arith.addf %1303, %1304 : vector<2x64xf32>
    %c6_683 = arith.constant 6 : index
    %c0_684 = arith.constant 0 : index
    %c0_685 = arith.constant 0 : index
    %1306 = vector.load %arg22[%c6_683, %c0_684, %c0_685] : memref<8x2x64xf32, #tpu.memory_space<vmem>>, vector<1x2x64xf32>
    %1307 = vector.shape_cast %1306 : vector<1x2x64xf32> to vector<2x64xf32>
    %1308 = vector.shape_cast %1305 : vector<2x64xf32> to vector<1x2x64xf32>
    tpu.vector_store %arg22[%c6_683, %c0_684, %c0_685], %1308 {strides = array<i32>} : memref<8x2x64xf32, #tpu.memory_space<vmem>>, vector<1x2x64xf32>,
    %c7_686 = arith.constant 7 : index
    %c0_687 = arith.constant 0 : index
    %c0_688 = arith.constant 0 : index
    %1309 = vector.load %arg23[%c7_686, %c0_687, %c0_688] : memref<8x2x8xf32, #tpu.memory_space<vmem>>, vector<1x2x8xf32>
    %1310 = vector.shape_cast %1309 : vector<1x2x8xf32> to vector<2x8xf32>
    %cst_689 = arith.constant dense<0.000000e+00> : vector<2x64xf32>
    %1311 = tpu.matmul %1310, %1221, %cst_689 {dimension_numbers = #tpu.dot_dimension_numbers<[1], [0], [0], [1], [0, 0, 1, 1], [], []>} : vector<2x8xf32>, vector<8x64xf32>, vector<2x64xf32> -> vector<2x64xf32>
    %c7_690 = arith.constant 7 : index
    %c0_691 = arith.constant 0 : index
    %c0_692 = arith.constant 0 : index
    %1312 = vector.load %arg24[%c7_690, %c0_691, %c0_692] : memref<8x2x8xf32, #tpu.memory_space<vmem>>, vector<1x2x8xf32>
    %1313 = vector.shape_cast %1312 : vector<1x2x8xf32> to vector<2x8xf32>
    %cst_693 = arith.constant dense<0.000000e+00> : vector<2x64xf32>
    %1314 = tpu.matmul %1313, %1222, %cst_693 {dimension_numbers = #tpu.dot_dimension_numbers<[1], [0], [0], [1], [0, 0, 1, 1], [], []>} : vector<2x8xf32>, vector<8x64xf32>, vector<2x64xf32> -> vector<2x64xf32>
    %1315 = arith.addf %1311, %1314 : vector<2x64xf32>
    %1316 = vector.broadcast %1223 : vector<1x64xf32> to vector<2x64xf32>
    %1317 = arith.addf %1315, %1316 : vector<2x64xf32>
    %c7_694 = arith.constant 7 : index
    %c0_695 = arith.constant 0 : index
    %c0_696 = arith.constant 0 : index
    %1318 = vector.load %arg22[%c7_694, %c0_695, %c0_696] : memref<8x2x64xf32, #tpu.memory_space<vmem>>, vector<1x2x64xf32>
    %1319 = vector.shape_cast %1318 : vector<1x2x64xf32> to vector<2x64xf32>
    %1320 = vector.shape_cast %1317 : vector<2x64xf32> to vector<1x2x64xf32>
    tpu.vector_store %arg22[%c7_694, %c0_695, %c0_696], %1320 {strides = array<i32>} : memref<8x2x64xf32, #tpu.memory_space<vmem>>, vector<1x2x64xf32>,
    %c0_697 = arith.constant 0 : index
    %c0_698 = arith.constant 0 : index
    %c0_699 = arith.constant 0 : index
    %1321 = vector.load %arg22[%c0_697, %c0_698, %c0_699] : memref<8x2x64xf32, #tpu.memory_space<vmem>>, vector<1x2x64xf32>
    %1322 = vector.shape_cast %1321 : vector<1x2x64xf32> to vector<2x64xf32>
    %c7_700 = arith.constant 7 : index
    %c0_701 = arith.constant 0 : index
    %c0_702 = arith.constant 0 : index
    %1323 = vector.load %arg22[%c7_700, %c0_701, %c0_702] : memref<8x2x64xf32, #tpu.memory_space<vmem>>, vector<1x2x64xf32>
    %1324 = vector.shape_cast %1323 : vector<1x2x64xf32> to vector<2x64xf32>
    %1325 = arith.select %18, %1322, %1324 : vector<2x64xi1>, vector<2x64xf32>
    %cst_703 = arith.constant dense<0.000000e+00> : vector<2x64xf32>
    %1326 = tpu.matmul %820, %1224, %cst_703 {dimension_numbers = #tpu.dot_dimension_numbers<[1], [0], [0], [1], [0, 0, 1, 1], [], []>} : vector<2x16xf32>, vector<16x64xf32>, vector<2x64xf32> -> vector<2x64xf32>
    %1327 = arith.addf %1325, %1326 : vector<2x64xf32>
    %1328 = vector.extract_strided_slice %1327 {offsets = [0, 0], sizes = [2, 16], strides = [1, 1]} : vector<2x64xf32> to vector<2x16xf32>
    %1329 = arith.negf %1328 : vector<2x16xf32>
    %1330 = math.exp %1329 : vector<2x16xf32>
    %cst_704 = arith.constant 1.000000e+00 : f32
    %1331 = vector.broadcast %cst_704 : f32 to vector<2x16xf32>
    %1332 = arith.addf %1331, %1330 : vector<2x16xf32>
    %1333 = arith.divf %1331, %1332 : vector<2x16xf32>
    %1334 = vector.extract_strided_slice %1327 {offsets = [0, 16], sizes = [2, 16], strides = [1, 1]} : vector<2x64xf32> to vector<2x16xf32>
    %1335 = arith.negf %1334 : vector<2x16xf32>
    %1336 = math.exp %1335 : vector<2x16xf32>
    %cst_705 = arith.constant 1.000000e+00 : f32
    %1337 = vector.broadcast %cst_705 : f32 to vector<2x16xf32>
    %1338 = arith.addf %1337, %1336 : vector<2x16xf32>
    %1339 = arith.divf %1337, %1338 : vector<2x16xf32>
    %1340 = vector.extract_strided_slice %1327 {offsets = [0, 32], sizes = [2, 16], strides = [1, 1]} : vector<2x64xf32> to vector<2x16xf32>
    %1341 = math.tanh %1340 : vector<2x16xf32>
    %1342 = vector.extract_strided_slice %1327 {offsets = [0, 48], sizes = [2, 16], strides = [1, 1]} : vector<2x64xf32> to vector<2x16xf32>
    %1343 = arith.negf %1342 : vector<2x16xf32>
    %1344 = math.exp %1343 : vector<2x16xf32>
    %cst_706 = arith.constant 1.000000e+00 : f32
    %1345 = vector.broadcast %cst_706 : f32 to vector<2x16xf32>
    %1346 = arith.addf %1345, %1344 : vector<2x16xf32>
    %1347 = arith.divf %1345, %1346 : vector<2x16xf32>
    %1348 = arith.mulf %1339, %818 : vector<2x16xf32>
    %1349 = arith.mulf %1333, %1341 : vector<2x16xf32>
    %1350 = arith.addf %1348, %1349 : vector<2x16xf32>
    %1351 = math.tanh %1350 : vector<2x16xf32>
    %1352 = arith.mulf %1347, %1351 : vector<2x16xf32>
    %1353 = vector.extract_strided_slice %1352 {offsets = [0, 0], sizes = [2, 8], strides = [1, 1]} : vector<2x16xf32> to vector<2x8xf32>
    %c0_707 = arith.constant 0 : index
    %c0_708 = arith.constant 0 : index
    %c0_709 = arith.constant 0 : index
    %1354 = vector.load %arg23[%c0_707, %c0_708, %c0_709] : memref<8x2x8xf32, #tpu.memory_space<vmem>>, vector<1x2x8xf32>
    %1355 = vector.shape_cast %1354 : vector<1x2x8xf32> to vector<2x8xf32>
    %1356 = vector.shape_cast %1353 : vector<2x8xf32> to vector<1x2x8xf32>
    tpu.vector_store %arg23[%c0_707, %c0_708, %c0_709], %1356 {strides = array<i32>} : memref<8x2x8xf32, #tpu.memory_space<vmem>>, vector<1x2x8xf32>,
    %1357 = vector.extract_strided_slice %1352 {offsets = [0, 8], sizes = [2, 8], strides = [1, 1]} : vector<2x16xf32> to vector<2x8xf32>
    %c7_710 = arith.constant 7 : index
    %c0_711 = arith.constant 0 : index
    %c0_712 = arith.constant 0 : index
    %1358 = vector.load %arg24[%c7_710, %c0_711, %c0_712] : memref<8x2x8xf32, #tpu.memory_space<vmem>>, vector<1x2x8xf32>
    %1359 = vector.shape_cast %1358 : vector<1x2x8xf32> to vector<2x8xf32>
    %1360 = vector.shape_cast %1357 : vector<2x8xf32> to vector<1x2x8xf32>
    tpu.vector_store %arg24[%c7_710, %c0_711, %c0_712], %1360 {strides = array<i32>} : memref<8x2x8xf32, #tpu.memory_space<vmem>>, vector<1x2x8xf32>,
    %c1_713 = arith.constant 1 : index
    %c0_714 = arith.constant 0 : index
    %c0_715 = arith.constant 0 : index
    %1361 = vector.load %arg22[%c1_713, %c0_714, %c0_715] : memref<8x2x64xf32, #tpu.memory_space<vmem>>, vector<1x2x64xf32>
    %1362 = vector.shape_cast %1361 : vector<1x2x64xf32> to vector<2x64xf32>
    %c6_716 = arith.constant 6 : index
    %c0_717 = arith.constant 0 : index
    %c0_718 = arith.constant 0 : index
    %1363 = vector.load %arg22[%c6_716, %c0_717, %c0_718] : memref<8x2x64xf32, #tpu.memory_space<vmem>>, vector<1x2x64xf32>
    %1364 = vector.shape_cast %1363 : vector<1x2x64xf32> to vector<2x64xf32>
    %1365 = arith.select %18, %1362, %1364 : vector<2x64xi1>, vector<2x64xf32>
    %cst_719 = arith.constant dense<0.000000e+00> : vector<2x64xf32>
    %1366 = tpu.matmul %1352, %1224, %cst_719 {dimension_numbers = #tpu.dot_dimension_numbers<[1], [0], [0], [1], [0, 0, 1, 1], [], []>} : vector<2x16xf32>, vector<16x64xf32>, vector<2x64xf32> -> vector<2x64xf32>
    %1367 = arith.addf %1365, %1366 : vector<2x64xf32>
    %1368 = vector.extract_strided_slice %1367 {offsets = [0, 0], sizes = [2, 16], strides = [1, 1]} : vector<2x64xf32> to vector<2x16xf32>
    %1369 = arith.negf %1368 : vector<2x16xf32>
    %1370 = math.exp %1369 : vector<2x16xf32>
    %cst_720 = arith.constant 1.000000e+00 : f32
    %1371 = vector.broadcast %cst_720 : f32 to vector<2x16xf32>
    %1372 = arith.addf %1371, %1370 : vector<2x16xf32>
    %1373 = arith.divf %1371, %1372 : vector<2x16xf32>
    %1374 = vector.extract_strided_slice %1367 {offsets = [0, 16], sizes = [2, 16], strides = [1, 1]} : vector<2x64xf32> to vector<2x16xf32>
    %1375 = arith.negf %1374 : vector<2x16xf32>
    %1376 = math.exp %1375 : vector<2x16xf32>
    %cst_721 = arith.constant 1.000000e+00 : f32
    %1377 = vector.broadcast %cst_721 : f32 to vector<2x16xf32>
    %1378 = arith.addf %1377, %1376 : vector<2x16xf32>
    %1379 = arith.divf %1377, %1378 : vector<2x16xf32>
    %1380 = vector.extract_strided_slice %1367 {offsets = [0, 32], sizes = [2, 16], strides = [1, 1]} : vector<2x64xf32> to vector<2x16xf32>
    %1381 = math.tanh %1380 : vector<2x16xf32>
    %1382 = vector.extract_strided_slice %1367 {offsets = [0, 48], sizes = [2, 16], strides = [1, 1]} : vector<2x64xf32> to vector<2x16xf32>
    %1383 = arith.negf %1382 : vector<2x16xf32>
    %1384 = math.exp %1383 : vector<2x16xf32>
    %cst_722 = arith.constant 1.000000e+00 : f32
    %1385 = vector.broadcast %cst_722 : f32 to vector<2x16xf32>
    %1386 = arith.addf %1385, %1384 : vector<2x16xf32>
    %1387 = arith.divf %1385, %1386 : vector<2x16xf32>
    %1388 = arith.mulf %1379, %1350 : vector<2x16xf32>
    %1389 = arith.mulf %1373, %1381 : vector<2x16xf32>
    %1390 = arith.addf %1388, %1389 : vector<2x16xf32>
    %1391 = math.tanh %1390 : vector<2x16xf32>
    %1392 = arith.mulf %1387, %1391 : vector<2x16xf32>
    %1393 = vector.extract_strided_slice %1392 {offsets = [0, 0], sizes = [2, 8], strides = [1, 1]} : vector<2x16xf32> to vector<2x8xf32>
    %c1_723 = arith.constant 1 : index
    %c0_724 = arith.constant 0 : index
    %c0_725 = arith.constant 0 : index
    %1394 = vector.load %arg23[%c1_723, %c0_724, %c0_725] : memref<8x2x8xf32, #tpu.memory_space<vmem>>, vector<1x2x8xf32>
    %1395 = vector.shape_cast %1394 : vector<1x2x8xf32> to vector<2x8xf32>
    %1396 = vector.shape_cast %1393 : vector<2x8xf32> to vector<1x2x8xf32>
    tpu.vector_store %arg23[%c1_723, %c0_724, %c0_725], %1396 {strides = array<i32>} : memref<8x2x8xf32, #tpu.memory_space<vmem>>, vector<1x2x8xf32>,
    %1397 = vector.extract_strided_slice %1392 {offsets = [0, 8], sizes = [2, 8], strides = [1, 1]} : vector<2x16xf32> to vector<2x8xf32>
    %c6_726 = arith.constant 6 : index
    %c0_727 = arith.constant 0 : index
    %c0_728 = arith.constant 0 : index
    %1398 = vector.load %arg24[%c6_726, %c0_727, %c0_728] : memref<8x2x8xf32, #tpu.memory_space<vmem>>, vector<1x2x8xf32>
    %1399 = vector.shape_cast %1398 : vector<1x2x8xf32> to vector<2x8xf32>
    %1400 = vector.shape_cast %1397 : vector<2x8xf32> to vector<1x2x8xf32>
    tpu.vector_store %arg24[%c6_726, %c0_727, %c0_728], %1400 {strides = array<i32>} : memref<8x2x8xf32, #tpu.memory_space<vmem>>, vector<1x2x8xf32>,
    %c2_729 = arith.constant 2 : index
    %c0_730 = arith.constant 0 : index
    %c0_731 = arith.constant 0 : index
    %1401 = vector.load %arg22[%c2_729, %c0_730, %c0_731] : memref<8x2x64xf32, #tpu.memory_space<vmem>>, vector<1x2x64xf32>
    %1402 = vector.shape_cast %1401 : vector<1x2x64xf32> to vector<2x64xf32>
    %c5_732 = arith.constant 5 : index
    %c0_733 = arith.constant 0 : index
    %c0_734 = arith.constant 0 : index
    %1403 = vector.load %arg22[%c5_732, %c0_733, %c0_734] : memref<8x2x64xf32, #tpu.memory_space<vmem>>, vector<1x2x64xf32>
    %1404 = vector.shape_cast %1403 : vector<1x2x64xf32> to vector<2x64xf32>
    %1405 = arith.select %18, %1402, %1404 : vector<2x64xi1>, vector<2x64xf32>
    %cst_735 = arith.constant dense<0.000000e+00> : vector<2x64xf32>
    %1406 = tpu.matmul %1392, %1224, %cst_735 {dimension_numbers = #tpu.dot_dimension_numbers<[1], [0], [0], [1], [0, 0, 1, 1], [], []>} : vector<2x16xf32>, vector<16x64xf32>, vector<2x64xf32> -> vector<2x64xf32>
    %1407 = arith.addf %1405, %1406 : vector<2x64xf32>
    %1408 = vector.extract_strided_slice %1407 {offsets = [0, 0], sizes = [2, 16], strides = [1, 1]} : vector<2x64xf32> to vector<2x16xf32>
    %1409 = arith.negf %1408 : vector<2x16xf32>
    %1410 = math.exp %1409 : vector<2x16xf32>
    %cst_736 = arith.constant 1.000000e+00 : f32
    %1411 = vector.broadcast %cst_736 : f32 to vector<2x16xf32>
    %1412 = arith.addf %1411, %1410 : vector<2x16xf32>
    %1413 = arith.divf %1411, %1412 : vector<2x16xf32>
    %1414 = vector.extract_strided_slice %1407 {offsets = [0, 16], sizes = [2, 16], strides = [1, 1]} : vector<2x64xf32> to vector<2x16xf32>
    %1415 = arith.negf %1414 : vector<2x16xf32>
    %1416 = math.exp %1415 : vector<2x16xf32>
    %cst_737 = arith.constant 1.000000e+00 : f32
    %1417 = vector.broadcast %cst_737 : f32 to vector<2x16xf32>
    %1418 = arith.addf %1417, %1416 : vector<2x16xf32>
    %1419 = arith.divf %1417, %1418 : vector<2x16xf32>
    %1420 = vector.extract_strided_slice %1407 {offsets = [0, 32], sizes = [2, 16], strides = [1, 1]} : vector<2x64xf32> to vector<2x16xf32>
    %1421 = math.tanh %1420 : vector<2x16xf32>
    %1422 = vector.extract_strided_slice %1407 {offsets = [0, 48], sizes = [2, 16], strides = [1, 1]} : vector<2x64xf32> to vector<2x16xf32>
    %1423 = arith.negf %1422 : vector<2x16xf32>
    %1424 = math.exp %1423 : vector<2x16xf32>
    %cst_738 = arith.constant 1.000000e+00 : f32
    %1425 = vector.broadcast %cst_738 : f32 to vector<2x16xf32>
    %1426 = arith.addf %1425, %1424 : vector<2x16xf32>
    %1427 = arith.divf %1425, %1426 : vector<2x16xf32>
    %1428 = arith.mulf %1419, %1390 : vector<2x16xf32>
    %1429 = arith.mulf %1413, %1421 : vector<2x16xf32>
    %1430 = arith.addf %1428, %1429 : vector<2x16xf32>
    %1431 = math.tanh %1430 : vector<2x16xf32>
    %1432 = arith.mulf %1427, %1431 : vector<2x16xf32>
    %1433 = vector.extract_strided_slice %1432 {offsets = [0, 0], sizes = [2, 8], strides = [1, 1]} : vector<2x16xf32> to vector<2x8xf32>
    %c2_739 = arith.constant 2 : index
    %c0_740 = arith.constant 0 : index
    %c0_741 = arith.constant 0 : index
    %1434 = vector.load %arg23[%c2_739, %c0_740, %c0_741] : memref<8x2x8xf32, #tpu.memory_space<vmem>>, vector<1x2x8xf32>
    %1435 = vector.shape_cast %1434 : vector<1x2x8xf32> to vector<2x8xf32>
    %1436 = vector.shape_cast %1433 : vector<2x8xf32> to vector<1x2x8xf32>
    tpu.vector_store %arg23[%c2_739, %c0_740, %c0_741], %1436 {strides = array<i32>} : memref<8x2x8xf32, #tpu.memory_space<vmem>>, vector<1x2x8xf32>,
    %1437 = vector.extract_strided_slice %1432 {offsets = [0, 8], sizes = [2, 8], strides = [1, 1]} : vector<2x16xf32> to vector<2x8xf32>
    %c5_742 = arith.constant 5 : index
    %c0_743 = arith.constant 0 : index
    %c0_744 = arith.constant 0 : index
    %1438 = vector.load %arg24[%c5_742, %c0_743, %c0_744] : memref<8x2x8xf32, #tpu.memory_space<vmem>>, vector<1x2x8xf32>
    %1439 = vector.shape_cast %1438 : vector<1x2x8xf32> to vector<2x8xf32>
    %1440 = vector.shape_cast %1437 : vector<2x8xf32> to vector<1x2x8xf32>
    tpu.vector_store %arg24[%c5_742, %c0_743, %c0_744], %1440 {strides = array<i32>} : memref<8x2x8xf32, #tpu.memory_space<vmem>>, vector<1x2x8xf32>,
    %c3_745 = arith.constant 3 : index
    %c0_746 = arith.constant 0 : index
    %c0_747 = arith.constant 0 : index
    %1441 = vector.load %arg22[%c3_745, %c0_746, %c0_747] : memref<8x2x64xf32, #tpu.memory_space<vmem>>, vector<1x2x64xf32>
    %1442 = vector.shape_cast %1441 : vector<1x2x64xf32> to vector<2x64xf32>
    %c4_748 = arith.constant 4 : index
    %c0_749 = arith.constant 0 : index
    %c0_750 = arith.constant 0 : index
    %1443 = vector.load %arg22[%c4_748, %c0_749, %c0_750] : memref<8x2x64xf32, #tpu.memory_space<vmem>>, vector<1x2x64xf32>
    %1444 = vector.shape_cast %1443 : vector<1x2x64xf32> to vector<2x64xf32>
    %1445 = arith.select %18, %1442, %1444 : vector<2x64xi1>, vector<2x64xf32>
    %cst_751 = arith.constant dense<0.000000e+00> : vector<2x64xf32>
    %1446 = tpu.matmul %1432, %1224, %cst_751 {dimension_numbers = #tpu.dot_dimension_numbers<[1], [0], [0], [1], [0, 0, 1, 1], [], []>} : vector<2x16xf32>, vector<16x64xf32>, vector<2x64xf32> -> vector<2x64xf32>
    %1447 = arith.addf %1445, %1446 : vector<2x64xf32>
    %1448 = vector.extract_strided_slice %1447 {offsets = [0, 0], sizes = [2, 16], strides = [1, 1]} : vector<2x64xf32> to vector<2x16xf32>
    %1449 = arith.negf %1448 : vector<2x16xf32>
    %1450 = math.exp %1449 : vector<2x16xf32>
    %cst_752 = arith.constant 1.000000e+00 : f32
    %1451 = vector.broadcast %cst_752 : f32 to vector<2x16xf32>
    %1452 = arith.addf %1451, %1450 : vector<2x16xf32>
    %1453 = arith.divf %1451, %1452 : vector<2x16xf32>
    %1454 = vector.extract_strided_slice %1447 {offsets = [0, 16], sizes = [2, 16], strides = [1, 1]} : vector<2x64xf32> to vector<2x16xf32>
    %1455 = arith.negf %1454 : vector<2x16xf32>
    %1456 = math.exp %1455 : vector<2x16xf32>
    %cst_753 = arith.constant 1.000000e+00 : f32
    %1457 = vector.broadcast %cst_753 : f32 to vector<2x16xf32>
    %1458 = arith.addf %1457, %1456 : vector<2x16xf32>
    %1459 = arith.divf %1457, %1458 : vector<2x16xf32>
    %1460 = vector.extract_strided_slice %1447 {offsets = [0, 32], sizes = [2, 16], strides = [1, 1]} : vector<2x64xf32> to vector<2x16xf32>
    %1461 = math.tanh %1460 : vector<2x16xf32>
    %1462 = vector.extract_strided_slice %1447 {offsets = [0, 48], sizes = [2, 16], strides = [1, 1]} : vector<2x64xf32> to vector<2x16xf32>
    %1463 = arith.negf %1462 : vector<2x16xf32>
    %1464 = math.exp %1463 : vector<2x16xf32>
    %cst_754 = arith.constant 1.000000e+00 : f32
    %1465 = vector.broadcast %cst_754 : f32 to vector<2x16xf32>
    %1466 = arith.addf %1465, %1464 : vector<2x16xf32>
    %1467 = arith.divf %1465, %1466 : vector<2x16xf32>
    %1468 = arith.mulf %1459, %1430 : vector<2x16xf32>
    %1469 = arith.mulf %1453, %1461 : vector<2x16xf32>
    %1470 = arith.addf %1468, %1469 : vector<2x16xf32>
    %1471 = math.tanh %1470 : vector<2x16xf32>
    %1472 = arith.mulf %1467, %1471 : vector<2x16xf32>
    %1473 = vector.extract_strided_slice %1472 {offsets = [0, 0], sizes = [2, 8], strides = [1, 1]} : vector<2x16xf32> to vector<2x8xf32>
    %c3_755 = arith.constant 3 : index
    %c0_756 = arith.constant 0 : index
    %c0_757 = arith.constant 0 : index
    %1474 = vector.load %arg23[%c3_755, %c0_756, %c0_757] : memref<8x2x8xf32, #tpu.memory_space<vmem>>, vector<1x2x8xf32>
    %1475 = vector.shape_cast %1474 : vector<1x2x8xf32> to vector<2x8xf32>
    %1476 = vector.shape_cast %1473 : vector<2x8xf32> to vector<1x2x8xf32>
    tpu.vector_store %arg23[%c3_755, %c0_756, %c0_757], %1476 {strides = array<i32>} : memref<8x2x8xf32, #tpu.memory_space<vmem>>, vector<1x2x8xf32>,
    %1477 = vector.extract_strided_slice %1472 {offsets = [0, 8], sizes = [2, 8], strides = [1, 1]} : vector<2x16xf32> to vector<2x8xf32>
    %c4_758 = arith.constant 4 : index
    %c0_759 = arith.constant 0 : index
    %c0_760 = arith.constant 0 : index
    %1478 = vector.load %arg24[%c4_758, %c0_759, %c0_760] : memref<8x2x8xf32, #tpu.memory_space<vmem>>, vector<1x2x8xf32>
    %1479 = vector.shape_cast %1478 : vector<1x2x8xf32> to vector<2x8xf32>
    %1480 = vector.shape_cast %1477 : vector<2x8xf32> to vector<1x2x8xf32>
    tpu.vector_store %arg24[%c4_758, %c0_759, %c0_760], %1480 {strides = array<i32>} : memref<8x2x8xf32, #tpu.memory_space<vmem>>, vector<1x2x8xf32>,
    %c4_761 = arith.constant 4 : index
    %c0_762 = arith.constant 0 : index
    %c0_763 = arith.constant 0 : index
    %1481 = vector.load %arg22[%c4_761, %c0_762, %c0_763] : memref<8x2x64xf32, #tpu.memory_space<vmem>>, vector<1x2x64xf32>
    %1482 = vector.shape_cast %1481 : vector<1x2x64xf32> to vector<2x64xf32>
    %c3_764 = arith.constant 3 : index
    %c0_765 = arith.constant 0 : index
    %c0_766 = arith.constant 0 : index
    %1483 = vector.load %arg22[%c3_764, %c0_765, %c0_766] : memref<8x2x64xf32, #tpu.memory_space<vmem>>, vector<1x2x64xf32>
    %1484 = vector.shape_cast %1483 : vector<1x2x64xf32> to vector<2x64xf32>
    %1485 = arith.select %18, %1482, %1484 : vector<2x64xi1>, vector<2x64xf32>
    %cst_767 = arith.constant dense<0.000000e+00> : vector<2x64xf32>
    %1486 = tpu.matmul %1472, %1224, %cst_767 {dimension_numbers = #tpu.dot_dimension_numbers<[1], [0], [0], [1], [0, 0, 1, 1], [], []>} : vector<2x16xf32>, vector<16x64xf32>, vector<2x64xf32> -> vector<2x64xf32>
    %1487 = arith.addf %1485, %1486 : vector<2x64xf32>
    %1488 = vector.extract_strided_slice %1487 {offsets = [0, 0], sizes = [2, 16], strides = [1, 1]} : vector<2x64xf32> to vector<2x16xf32>
    %1489 = arith.negf %1488 : vector<2x16xf32>
    %1490 = math.exp %1489 : vector<2x16xf32>
    %cst_768 = arith.constant 1.000000e+00 : f32
    %1491 = vector.broadcast %cst_768 : f32 to vector<2x16xf32>
    %1492 = arith.addf %1491, %1490 : vector<2x16xf32>
    %1493 = arith.divf %1491, %1492 : vector<2x16xf32>
    %1494 = vector.extract_strided_slice %1487 {offsets = [0, 16], sizes = [2, 16], strides = [1, 1]} : vector<2x64xf32> to vector<2x16xf32>
    %1495 = arith.negf %1494 : vector<2x16xf32>
    %1496 = math.exp %1495 : vector<2x16xf32>
    %cst_769 = arith.constant 1.000000e+00 : f32
    %1497 = vector.broadcast %cst_769 : f32 to vector<2x16xf32>
    %1498 = arith.addf %1497, %1496 : vector<2x16xf32>
    %1499 = arith.divf %1497, %1498 : vector<2x16xf32>
    %1500 = vector.extract_strided_slice %1487 {offsets = [0, 32], sizes = [2, 16], strides = [1, 1]} : vector<2x64xf32> to vector<2x16xf32>
    %1501 = math.tanh %1500 : vector<2x16xf32>
    %1502 = vector.extract_strided_slice %1487 {offsets = [0, 48], sizes = [2, 16], strides = [1, 1]} : vector<2x64xf32> to vector<2x16xf32>
    %1503 = arith.negf %1502 : vector<2x16xf32>
    %1504 = math.exp %1503 : vector<2x16xf32>
    %cst_770 = arith.constant 1.000000e+00 : f32
    %1505 = vector.broadcast %cst_770 : f32 to vector<2x16xf32>
    %1506 = arith.addf %1505, %1504 : vector<2x16xf32>
    %1507 = arith.divf %1505, %1506 : vector<2x16xf32>
    %1508 = arith.mulf %1499, %1470 : vector<2x16xf32>
    %1509 = arith.mulf %1493, %1501 : vector<2x16xf32>
    %1510 = arith.addf %1508, %1509 : vector<2x16xf32>
    %1511 = math.tanh %1510 : vector<2x16xf32>
    %1512 = arith.mulf %1507, %1511 : vector<2x16xf32>
    %1513 = vector.extract_strided_slice %1512 {offsets = [0, 0], sizes = [2, 8], strides = [1, 1]} : vector<2x16xf32> to vector<2x8xf32>
    %c4_771 = arith.constant 4 : index
    %c0_772 = arith.constant 0 : index
    %c0_773 = arith.constant 0 : index
    %1514 = vector.load %arg23[%c4_771, %c0_772, %c0_773] : memref<8x2x8xf32, #tpu.memory_space<vmem>>, vector<1x2x8xf32>
    %1515 = vector.shape_cast %1514 : vector<1x2x8xf32> to vector<2x8xf32>
    %1516 = vector.shape_cast %1513 : vector<2x8xf32> to vector<1x2x8xf32>
    tpu.vector_store %arg23[%c4_771, %c0_772, %c0_773], %1516 {strides = array<i32>} : memref<8x2x8xf32, #tpu.memory_space<vmem>>, vector<1x2x8xf32>,
    %1517 = vector.extract_strided_slice %1512 {offsets = [0, 8], sizes = [2, 8], strides = [1, 1]} : vector<2x16xf32> to vector<2x8xf32>
    %c3_774 = arith.constant 3 : index
    %c0_775 = arith.constant 0 : index
    %c0_776 = arith.constant 0 : index
    %1518 = vector.load %arg24[%c3_774, %c0_775, %c0_776] : memref<8x2x8xf32, #tpu.memory_space<vmem>>, vector<1x2x8xf32>
    %1519 = vector.shape_cast %1518 : vector<1x2x8xf32> to vector<2x8xf32>
    %1520 = vector.shape_cast %1517 : vector<2x8xf32> to vector<1x2x8xf32>
    tpu.vector_store %arg24[%c3_774, %c0_775, %c0_776], %1520 {strides = array<i32>} : memref<8x2x8xf32, #tpu.memory_space<vmem>>, vector<1x2x8xf32>,
    %c5_777 = arith.constant 5 : index
    %c0_778 = arith.constant 0 : index
    %c0_779 = arith.constant 0 : index
    %1521 = vector.load %arg22[%c5_777, %c0_778, %c0_779] : memref<8x2x64xf32, #tpu.memory_space<vmem>>, vector<1x2x64xf32>
    %1522 = vector.shape_cast %1521 : vector<1x2x64xf32> to vector<2x64xf32>
    %c2_780 = arith.constant 2 : index
    %c0_781 = arith.constant 0 : index
    %c0_782 = arith.constant 0 : index
    %1523 = vector.load %arg22[%c2_780, %c0_781, %c0_782] : memref<8x2x64xf32, #tpu.memory_space<vmem>>, vector<1x2x64xf32>
    %1524 = vector.shape_cast %1523 : vector<1x2x64xf32> to vector<2x64xf32>
    %1525 = arith.select %18, %1522, %1524 : vector<2x64xi1>, vector<2x64xf32>
    %cst_783 = arith.constant dense<0.000000e+00> : vector<2x64xf32>
    %1526 = tpu.matmul %1512, %1224, %cst_783 {dimension_numbers = #tpu.dot_dimension_numbers<[1], [0], [0], [1], [0, 0, 1, 1], [], []>} : vector<2x16xf32>, vector<16x64xf32>, vector<2x64xf32> -> vector<2x64xf32>
    %1527 = arith.addf %1525, %1526 : vector<2x64xf32>
    %1528 = vector.extract_strided_slice %1527 {offsets = [0, 0], sizes = [2, 16], strides = [1, 1]} : vector<2x64xf32> to vector<2x16xf32>
    %1529 = arith.negf %1528 : vector<2x16xf32>
    %1530 = math.exp %1529 : vector<2x16xf32>
    %cst_784 = arith.constant 1.000000e+00 : f32
    %1531 = vector.broadcast %cst_784 : f32 to vector<2x16xf32>
    %1532 = arith.addf %1531, %1530 : vector<2x16xf32>
    %1533 = arith.divf %1531, %1532 : vector<2x16xf32>
    %1534 = vector.extract_strided_slice %1527 {offsets = [0, 16], sizes = [2, 16], strides = [1, 1]} : vector<2x64xf32> to vector<2x16xf32>
    %1535 = arith.negf %1534 : vector<2x16xf32>
    %1536 = math.exp %1535 : vector<2x16xf32>
    %cst_785 = arith.constant 1.000000e+00 : f32
    %1537 = vector.broadcast %cst_785 : f32 to vector<2x16xf32>
    %1538 = arith.addf %1537, %1536 : vector<2x16xf32>
    %1539 = arith.divf %1537, %1538 : vector<2x16xf32>
    %1540 = vector.extract_strided_slice %1527 {offsets = [0, 32], sizes = [2, 16], strides = [1, 1]} : vector<2x64xf32> to vector<2x16xf32>
    %1541 = math.tanh %1540 : vector<2x16xf32>
    %1542 = vector.extract_strided_slice %1527 {offsets = [0, 48], sizes = [2, 16], strides = [1, 1]} : vector<2x64xf32> to vector<2x16xf32>
    %1543 = arith.negf %1542 : vector<2x16xf32>
    %1544 = math.exp %1543 : vector<2x16xf32>
    %cst_786 = arith.constant 1.000000e+00 : f32
    %1545 = vector.broadcast %cst_786 : f32 to vector<2x16xf32>
    %1546 = arith.addf %1545, %1544 : vector<2x16xf32>
    %1547 = arith.divf %1545, %1546 : vector<2x16xf32>
    %1548 = arith.mulf %1539, %1510 : vector<2x16xf32>
    %1549 = arith.mulf %1533, %1541 : vector<2x16xf32>
    %1550 = arith.addf %1548, %1549 : vector<2x16xf32>
    %1551 = math.tanh %1550 : vector<2x16xf32>
    %1552 = arith.mulf %1547, %1551 : vector<2x16xf32>
    %1553 = vector.extract_strided_slice %1552 {offsets = [0, 0], sizes = [2, 8], strides = [1, 1]} : vector<2x16xf32> to vector<2x8xf32>
    %c5_787 = arith.constant 5 : index
    %c0_788 = arith.constant 0 : index
    %c0_789 = arith.constant 0 : index
    %1554 = vector.load %arg23[%c5_787, %c0_788, %c0_789] : memref<8x2x8xf32, #tpu.memory_space<vmem>>, vector<1x2x8xf32>
    %1555 = vector.shape_cast %1554 : vector<1x2x8xf32> to vector<2x8xf32>
    %1556 = vector.shape_cast %1553 : vector<2x8xf32> to vector<1x2x8xf32>
    tpu.vector_store %arg23[%c5_787, %c0_788, %c0_789], %1556 {strides = array<i32>} : memref<8x2x8xf32, #tpu.memory_space<vmem>>, vector<1x2x8xf32>,
    %1557 = vector.extract_strided_slice %1552 {offsets = [0, 8], sizes = [2, 8], strides = [1, 1]} : vector<2x16xf32> to vector<2x8xf32>
    %c2_790 = arith.constant 2 : index
    %c0_791 = arith.constant 0 : index
    %c0_792 = arith.constant 0 : index
    %1558 = vector.load %arg24[%c2_790, %c0_791, %c0_792] : memref<8x2x8xf32, #tpu.memory_space<vmem>>, vector<1x2x8xf32>
    %1559 = vector.shape_cast %1558 : vector<1x2x8xf32> to vector<2x8xf32>
    %1560 = vector.shape_cast %1557 : vector<2x8xf32> to vector<1x2x8xf32>
    tpu.vector_store %arg24[%c2_790, %c0_791, %c0_792], %1560 {strides = array<i32>} : memref<8x2x8xf32, #tpu.memory_space<vmem>>, vector<1x2x8xf32>,
    %c6_793 = arith.constant 6 : index
    %c0_794 = arith.constant 0 : index
    %c0_795 = arith.constant 0 : index
    %1561 = vector.load %arg22[%c6_793, %c0_794, %c0_795] : memref<8x2x64xf32, #tpu.memory_space<vmem>>, vector<1x2x64xf32>
    %1562 = vector.shape_cast %1561 : vector<1x2x64xf32> to vector<2x64xf32>
    %c1_796 = arith.constant 1 : index
    %c0_797 = arith.constant 0 : index
    %c0_798 = arith.constant 0 : index
    %1563 = vector.load %arg22[%c1_796, %c0_797, %c0_798] : memref<8x2x64xf32, #tpu.memory_space<vmem>>, vector<1x2x64xf32>
    %1564 = vector.shape_cast %1563 : vector<1x2x64xf32> to vector<2x64xf32>
    %1565 = arith.select %18, %1562, %1564 : vector<2x64xi1>, vector<2x64xf32>
    %cst_799 = arith.constant dense<0.000000e+00> : vector<2x64xf32>
    %1566 = tpu.matmul %1552, %1224, %cst_799 {dimension_numbers = #tpu.dot_dimension_numbers<[1], [0], [0], [1], [0, 0, 1, 1], [], []>} : vector<2x16xf32>, vector<16x64xf32>, vector<2x64xf32> -> vector<2x64xf32>
    %1567 = arith.addf %1565, %1566 : vector<2x64xf32>
    %1568 = vector.extract_strided_slice %1567 {offsets = [0, 0], sizes = [2, 16], strides = [1, 1]} : vector<2x64xf32> to vector<2x16xf32>
    %1569 = arith.negf %1568 : vector<2x16xf32>
    %1570 = math.exp %1569 : vector<2x16xf32>
    %cst_800 = arith.constant 1.000000e+00 : f32
    %1571 = vector.broadcast %cst_800 : f32 to vector<2x16xf32>
    %1572 = arith.addf %1571, %1570 : vector<2x16xf32>
    %1573 = arith.divf %1571, %1572 : vector<2x16xf32>
    %1574 = vector.extract_strided_slice %1567 {offsets = [0, 16], sizes = [2, 16], strides = [1, 1]} : vector<2x64xf32> to vector<2x16xf32>
    %1575 = arith.negf %1574 : vector<2x16xf32>
    %1576 = math.exp %1575 : vector<2x16xf32>
    %cst_801 = arith.constant 1.000000e+00 : f32
    %1577 = vector.broadcast %cst_801 : f32 to vector<2x16xf32>
    %1578 = arith.addf %1577, %1576 : vector<2x16xf32>
    %1579 = arith.divf %1577, %1578 : vector<2x16xf32>
    %1580 = vector.extract_strided_slice %1567 {offsets = [0, 32], sizes = [2, 16], strides = [1, 1]} : vector<2x64xf32> to vector<2x16xf32>
    %1581 = math.tanh %1580 : vector<2x16xf32>
    %1582 = vector.extract_strided_slice %1567 {offsets = [0, 48], sizes = [2, 16], strides = [1, 1]} : vector<2x64xf32> to vector<2x16xf32>
    %1583 = arith.negf %1582 : vector<2x16xf32>
    %1584 = math.exp %1583 : vector<2x16xf32>
    %cst_802 = arith.constant 1.000000e+00 : f32
    %1585 = vector.broadcast %cst_802 : f32 to vector<2x16xf32>
    %1586 = arith.addf %1585, %1584 : vector<2x16xf32>
    %1587 = arith.divf %1585, %1586 : vector<2x16xf32>
    %1588 = arith.mulf %1579, %1550 : vector<2x16xf32>
    %1589 = arith.mulf %1573, %1581 : vector<2x16xf32>
    %1590 = arith.addf %1588, %1589 : vector<2x16xf32>
    %1591 = math.tanh %1590 : vector<2x16xf32>
    %1592 = arith.mulf %1587, %1591 : vector<2x16xf32>
    %1593 = vector.extract_strided_slice %1592 {offsets = [0, 0], sizes = [2, 8], strides = [1, 1]} : vector<2x16xf32> to vector<2x8xf32>
    %c6_803 = arith.constant 6 : index
    %c0_804 = arith.constant 0 : index
    %c0_805 = arith.constant 0 : index
    %1594 = vector.load %arg23[%c6_803, %c0_804, %c0_805] : memref<8x2x8xf32, #tpu.memory_space<vmem>>, vector<1x2x8xf32>
    %1595 = vector.shape_cast %1594 : vector<1x2x8xf32> to vector<2x8xf32>
    %1596 = vector.shape_cast %1593 : vector<2x8xf32> to vector<1x2x8xf32>
    tpu.vector_store %arg23[%c6_803, %c0_804, %c0_805], %1596 {strides = array<i32>} : memref<8x2x8xf32, #tpu.memory_space<vmem>>, vector<1x2x8xf32>,
    %1597 = vector.extract_strided_slice %1592 {offsets = [0, 8], sizes = [2, 8], strides = [1, 1]} : vector<2x16xf32> to vector<2x8xf32>
    %c1_806 = arith.constant 1 : index
    %c0_807 = arith.constant 0 : index
    %c0_808 = arith.constant 0 : index
    %1598 = vector.load %arg24[%c1_806, %c0_807, %c0_808] : memref<8x2x8xf32, #tpu.memory_space<vmem>>, vector<1x2x8xf32>
    %1599 = vector.shape_cast %1598 : vector<1x2x8xf32> to vector<2x8xf32>
    %1600 = vector.shape_cast %1597 : vector<2x8xf32> to vector<1x2x8xf32>
    tpu.vector_store %arg24[%c1_806, %c0_807, %c0_808], %1600 {strides = array<i32>} : memref<8x2x8xf32, #tpu.memory_space<vmem>>, vector<1x2x8xf32>,
    %c7_809 = arith.constant 7 : index
    %c0_810 = arith.constant 0 : index
    %c0_811 = arith.constant 0 : index
    %1601 = vector.load %arg22[%c7_809, %c0_810, %c0_811] : memref<8x2x64xf32, #tpu.memory_space<vmem>>, vector<1x2x64xf32>
    %1602 = vector.shape_cast %1601 : vector<1x2x64xf32> to vector<2x64xf32>
    %c0_812 = arith.constant 0 : index
    %c0_813 = arith.constant 0 : index
    %c0_814 = arith.constant 0 : index
    %1603 = vector.load %arg22[%c0_812, %c0_813, %c0_814] : memref<8x2x64xf32, #tpu.memory_space<vmem>>, vector<1x2x64xf32>
    %1604 = vector.shape_cast %1603 : vector<1x2x64xf32> to vector<2x64xf32>
    %1605 = arith.select %18, %1602, %1604 : vector<2x64xi1>, vector<2x64xf32>
    %cst_815 = arith.constant dense<0.000000e+00> : vector<2x64xf32>
    %1606 = tpu.matmul %1592, %1224, %cst_815 {dimension_numbers = #tpu.dot_dimension_numbers<[1], [0], [0], [1], [0, 0, 1, 1], [], []>} : vector<2x16xf32>, vector<16x64xf32>, vector<2x64xf32> -> vector<2x64xf32>
    %1607 = arith.addf %1605, %1606 : vector<2x64xf32>
    %1608 = vector.extract_strided_slice %1607 {offsets = [0, 0], sizes = [2, 16], strides = [1, 1]} : vector<2x64xf32> to vector<2x16xf32>
    %1609 = arith.negf %1608 : vector<2x16xf32>
    %1610 = math.exp %1609 : vector<2x16xf32>
    %cst_816 = arith.constant 1.000000e+00 : f32
    %1611 = vector.broadcast %cst_816 : f32 to vector<2x16xf32>
    %1612 = arith.addf %1611, %1610 : vector<2x16xf32>
    %1613 = arith.divf %1611, %1612 : vector<2x16xf32>
    %1614 = vector.extract_strided_slice %1607 {offsets = [0, 16], sizes = [2, 16], strides = [1, 1]} : vector<2x64xf32> to vector<2x16xf32>
    %1615 = arith.negf %1614 : vector<2x16xf32>
    %1616 = math.exp %1615 : vector<2x16xf32>
    %cst_817 = arith.constant 1.000000e+00 : f32
    %1617 = vector.broadcast %cst_817 : f32 to vector<2x16xf32>
    %1618 = arith.addf %1617, %1616 : vector<2x16xf32>
    %1619 = arith.divf %1617, %1618 : vector<2x16xf32>
    %1620 = vector.extract_strided_slice %1607 {offsets = [0, 32], sizes = [2, 16], strides = [1, 1]} : vector<2x64xf32> to vector<2x16xf32>
    %1621 = math.tanh %1620 : vector<2x16xf32>
    %1622 = vector.extract_strided_slice %1607 {offsets = [0, 48], sizes = [2, 16], strides = [1, 1]} : vector<2x64xf32> to vector<2x16xf32>
    %1623 = arith.negf %1622 : vector<2x16xf32>
    %1624 = math.exp %1623 : vector<2x16xf32>
    %cst_818 = arith.constant 1.000000e+00 : f32
    %1625 = vector.broadcast %cst_818 : f32 to vector<2x16xf32>
    %1626 = arith.addf %1625, %1624 : vector<2x16xf32>
    %1627 = arith.divf %1625, %1626 : vector<2x16xf32>
    %1628 = arith.mulf %1619, %1590 : vector<2x16xf32>
    %1629 = arith.mulf %1613, %1621 : vector<2x16xf32>
    %1630 = arith.addf %1628, %1629 : vector<2x16xf32>
    %1631 = math.tanh %1630 : vector<2x16xf32>
    %1632 = arith.mulf %1627, %1631 : vector<2x16xf32>
    %1633 = vector.extract_strided_slice %1632 {offsets = [0, 0], sizes = [2, 8], strides = [1, 1]} : vector<2x16xf32> to vector<2x8xf32>
    %c7_819 = arith.constant 7 : index
    %c0_820 = arith.constant 0 : index
    %c0_821 = arith.constant 0 : index
    %1634 = vector.load %arg23[%c7_819, %c0_820, %c0_821] : memref<8x2x8xf32, #tpu.memory_space<vmem>>, vector<1x2x8xf32>
    %1635 = vector.shape_cast %1634 : vector<1x2x8xf32> to vector<2x8xf32>
    %1636 = vector.shape_cast %1633 : vector<2x8xf32> to vector<1x2x8xf32>
    tpu.vector_store %arg23[%c7_819, %c0_820, %c0_821], %1636 {strides = array<i32>} : memref<8x2x8xf32, #tpu.memory_space<vmem>>, vector<1x2x8xf32>,
    %1637 = vector.extract_strided_slice %1632 {offsets = [0, 8], sizes = [2, 8], strides = [1, 1]} : vector<2x16xf32> to vector<2x8xf32>
    %c0_822 = arith.constant 0 : index
    %c0_823 = arith.constant 0 : index
    %c0_824 = arith.constant 0 : index
    %1638 = vector.load %arg24[%c0_822, %c0_823, %c0_824] : memref<8x2x8xf32, #tpu.memory_space<vmem>>, vector<1x2x8xf32>
    %1639 = vector.shape_cast %1638 : vector<1x2x8xf32> to vector<2x8xf32>
    %1640 = vector.shape_cast %1637 : vector<2x8xf32> to vector<1x2x8xf32>
    tpu.vector_store %arg24[%c0_822, %c0_823, %c0_824], %1640 {strides = array<i32>} : memref<8x2x8xf32, #tpu.memory_space<vmem>>, vector<1x2x8xf32>,
    %c0_825 = arith.constant 0 : index
    %c0_826 = arith.constant 0 : index
    %1641 = vector.load %arg13[%c0_825, %c0_826] : memref<16x4xf32, #tpu.memory_space<vmem>>, vector<16x4xf32>
    %1642 = vector.extract_strided_slice %1641 {offsets = [0, 0], sizes = [8, 4], strides = [1, 1]} : vector<16x4xf32> to vector<8x4xf32>
    %1643 = vector.extract_strided_slice %1641 {offsets = [8, 0], sizes = [8, 4], strides = [1, 1]} : vector<16x4xf32> to vector<8x4xf32>
    %c0_827 = arith.constant 0 : index
    %c0_828 = arith.constant 0 : index
    %1644 = vector.load %arg14[%c0_827, %c0_828] : memref<1x4xf32, #tpu.memory_space<vmem>>, vector<1x4xf32>
    %c0_829 = arith.constant 0 : index
    %c0_830 = arith.constant 0 : index
    %c0_831 = arith.constant 0 : index
    %1645 = vector.load %arg23[%c0_829, %c0_830, %c0_831] : memref<8x2x8xf32, #tpu.memory_space<vmem>>, vector<1x2x8xf32>
    %1646 = vector.shape_cast %1645 : vector<1x2x8xf32> to vector<2x8xf32>
    %cst_832 = arith.constant dense<0.000000e+00> : vector<2x4xf32>
    %1647 = tpu.matmul %1646, %1642, %cst_832 {dimension_numbers = #tpu.dot_dimension_numbers<[1], [0], [0], [1], [0, 0, 1, 1], [], []>} : vector<2x8xf32>, vector<8x4xf32>, vector<2x4xf32> -> vector<2x4xf32>
    %c0_833 = arith.constant 0 : index
    %c0_834 = arith.constant 0 : index
    %c0_835 = arith.constant 0 : index
    %1648 = vector.load %arg24[%c0_833, %c0_834, %c0_835] : memref<8x2x8xf32, #tpu.memory_space<vmem>>, vector<1x2x8xf32>
    %1649 = vector.shape_cast %1648 : vector<1x2x8xf32> to vector<2x8xf32>
    %cst_836 = arith.constant dense<0.000000e+00> : vector<2x4xf32>
    %1650 = tpu.matmul %1649, %1643, %cst_836 {dimension_numbers = #tpu.dot_dimension_numbers<[1], [0], [0], [1], [0, 0, 1, 1], [], []>} : vector<2x8xf32>, vector<8x4xf32>, vector<2x4xf32> -> vector<2x4xf32>
    %1651 = arith.addf %1647, %1650 : vector<2x4xf32>
    %1652 = vector.broadcast %1644 : vector<1x4xf32> to vector<2x4xf32>
    %1653 = arith.addf %1651, %1652 : vector<2x4xf32>
    %c7_837 = arith.constant 7 : index
    %c0_838 = arith.constant 0 : index
    %c0_839 = arith.constant 0 : index
    %1654 = vector.load %arg20[%c7_837, %c0_838, %c0_839] : memref<8x2x4xf32, #tpu.memory_space<vmem>>, vector<1x2x4xf32>
    %1655 = vector.shape_cast %1654 : vector<1x2x4xf32> to vector<2x4xf32>
    %1656 = vector.shape_cast %1653 : vector<2x4xf32> to vector<1x2x4xf32>
    tpu.vector_store %arg20[%c7_837, %c0_838, %c0_839], %1656 {strides = array<i32>} : memref<8x2x4xf32, #tpu.memory_space<vmem>>, vector<1x2x4xf32>,
    %c1_840 = arith.constant 1 : index
    %c0_841 = arith.constant 0 : index
    %c0_842 = arith.constant 0 : index
    %1657 = vector.load %arg23[%c1_840, %c0_841, %c0_842] : memref<8x2x8xf32, #tpu.memory_space<vmem>>, vector<1x2x8xf32>
    %1658 = vector.shape_cast %1657 : vector<1x2x8xf32> to vector<2x8xf32>
    %cst_843 = arith.constant dense<0.000000e+00> : vector<2x4xf32>
    %1659 = tpu.matmul %1658, %1642, %cst_843 {dimension_numbers = #tpu.dot_dimension_numbers<[1], [0], [0], [1], [0, 0, 1, 1], [], []>} : vector<2x8xf32>, vector<8x4xf32>, vector<2x4xf32> -> vector<2x4xf32>
    %c1_844 = arith.constant 1 : index
    %c0_845 = arith.constant 0 : index
    %c0_846 = arith.constant 0 : index
    %1660 = vector.load %arg24[%c1_844, %c0_845, %c0_846] : memref<8x2x8xf32, #tpu.memory_space<vmem>>, vector<1x2x8xf32>
    %1661 = vector.shape_cast %1660 : vector<1x2x8xf32> to vector<2x8xf32>
    %cst_847 = arith.constant dense<0.000000e+00> : vector<2x4xf32>
    %1662 = tpu.matmul %1661, %1643, %cst_847 {dimension_numbers = #tpu.dot_dimension_numbers<[1], [0], [0], [1], [0, 0, 1, 1], [], []>} : vector<2x8xf32>, vector<8x4xf32>, vector<2x4xf32> -> vector<2x4xf32>
    %1663 = arith.addf %1659, %1662 : vector<2x4xf32>
    %1664 = vector.broadcast %1644 : vector<1x4xf32> to vector<2x4xf32>
    %1665 = arith.addf %1663, %1664 : vector<2x4xf32>
    %c6_848 = arith.constant 6 : index
    %c0_849 = arith.constant 0 : index
    %c0_850 = arith.constant 0 : index
    %1666 = vector.load %arg20[%c6_848, %c0_849, %c0_850] : memref<8x2x4xf32, #tpu.memory_space<vmem>>, vector<1x2x4xf32>
    %1667 = vector.shape_cast %1666 : vector<1x2x4xf32> to vector<2x4xf32>
    %1668 = vector.shape_cast %1665 : vector<2x4xf32> to vector<1x2x4xf32>
    tpu.vector_store %arg20[%c6_848, %c0_849, %c0_850], %1668 {strides = array<i32>} : memref<8x2x4xf32, #tpu.memory_space<vmem>>, vector<1x2x4xf32>,
    %c2_851 = arith.constant 2 : index
    %c0_852 = arith.constant 0 : index
    %c0_853 = arith.constant 0 : index
    %1669 = vector.load %arg23[%c2_851, %c0_852, %c0_853] : memref<8x2x8xf32, #tpu.memory_space<vmem>>, vector<1x2x8xf32>
    %1670 = vector.shape_cast %1669 : vector<1x2x8xf32> to vector<2x8xf32>
    %cst_854 = arith.constant dense<0.000000e+00> : vector<2x4xf32>
    %1671 = tpu.matmul %1670, %1642, %cst_854 {dimension_numbers = #tpu.dot_dimension_numbers<[1], [0], [0], [1], [0, 0, 1, 1], [], []>} : vector<2x8xf32>, vector<8x4xf32>, vector<2x4xf32> -> vector<2x4xf32>
    %c2_855 = arith.constant 2 : index
    %c0_856 = arith.constant 0 : index
    %c0_857 = arith.constant 0 : index
    %1672 = vector.load %arg24[%c2_855, %c0_856, %c0_857] : memref<8x2x8xf32, #tpu.memory_space<vmem>>, vector<1x2x8xf32>
    %1673 = vector.shape_cast %1672 : vector<1x2x8xf32> to vector<2x8xf32>
    %cst_858 = arith.constant dense<0.000000e+00> : vector<2x4xf32>
    %1674 = tpu.matmul %1673, %1643, %cst_858 {dimension_numbers = #tpu.dot_dimension_numbers<[1], [0], [0], [1], [0, 0, 1, 1], [], []>} : vector<2x8xf32>, vector<8x4xf32>, vector<2x4xf32> -> vector<2x4xf32>
    %1675 = arith.addf %1671, %1674 : vector<2x4xf32>
    %1676 = vector.broadcast %1644 : vector<1x4xf32> to vector<2x4xf32>
    %1677 = arith.addf %1675, %1676 : vector<2x4xf32>
    %c5_859 = arith.constant 5 : index
    %c0_860 = arith.constant 0 : index
    %c0_861 = arith.constant 0 : index
    %1678 = vector.load %arg20[%c5_859, %c0_860, %c0_861] : memref<8x2x4xf32, #tpu.memory_space<vmem>>, vector<1x2x4xf32>
    %1679 = vector.shape_cast %1678 : vector<1x2x4xf32> to vector<2x4xf32>
    %1680 = vector.shape_cast %1677 : vector<2x4xf32> to vector<1x2x4xf32>
    tpu.vector_store %arg20[%c5_859, %c0_860, %c0_861], %1680 {strides = array<i32>} : memref<8x2x4xf32, #tpu.memory_space<vmem>>, vector<1x2x4xf32>,
    %c3_862 = arith.constant 3 : index
    %c0_863 = arith.constant 0 : index
    %c0_864 = arith.constant 0 : index
    %1681 = vector.load %arg23[%c3_862, %c0_863, %c0_864] : memref<8x2x8xf32, #tpu.memory_space<vmem>>, vector<1x2x8xf32>
    %1682 = vector.shape_cast %1681 : vector<1x2x8xf32> to vector<2x8xf32>
    %cst_865 = arith.constant dense<0.000000e+00> : vector<2x4xf32>
    %1683 = tpu.matmul %1682, %1642, %cst_865 {dimension_numbers = #tpu.dot_dimension_numbers<[1], [0], [0], [1], [0, 0, 1, 1], [], []>} : vector<2x8xf32>, vector<8x4xf32>, vector<2x4xf32> -> vector<2x4xf32>
    %c3_866 = arith.constant 3 : index
    %c0_867 = arith.constant 0 : index
    %c0_868 = arith.constant 0 : index
    %1684 = vector.load %arg24[%c3_866, %c0_867, %c0_868] : memref<8x2x8xf32, #tpu.memory_space<vmem>>, vector<1x2x8xf32>
    %1685 = vector.shape_cast %1684 : vector<1x2x8xf32> to vector<2x8xf32>
    %cst_869 = arith.constant dense<0.000000e+00> : vector<2x4xf32>
    %1686 = tpu.matmul %1685, %1643, %cst_869 {dimension_numbers = #tpu.dot_dimension_numbers<[1], [0], [0], [1], [0, 0, 1, 1], [], []>} : vector<2x8xf32>, vector<8x4xf32>, vector<2x4xf32> -> vector<2x4xf32>
    %1687 = arith.addf %1683, %1686 : vector<2x4xf32>
    %1688 = vector.broadcast %1644 : vector<1x4xf32> to vector<2x4xf32>
    %1689 = arith.addf %1687, %1688 : vector<2x4xf32>
    %c4_870 = arith.constant 4 : index
    %c0_871 = arith.constant 0 : index
    %c0_872 = arith.constant 0 : index
    %1690 = vector.load %arg20[%c4_870, %c0_871, %c0_872] : memref<8x2x4xf32, #tpu.memory_space<vmem>>, vector<1x2x4xf32>
    %1691 = vector.shape_cast %1690 : vector<1x2x4xf32> to vector<2x4xf32>
    %1692 = vector.shape_cast %1689 : vector<2x4xf32> to vector<1x2x4xf32>
    tpu.vector_store %arg20[%c4_870, %c0_871, %c0_872], %1692 {strides = array<i32>} : memref<8x2x4xf32, #tpu.memory_space<vmem>>, vector<1x2x4xf32>,
    %c4_873 = arith.constant 4 : index
    %c0_874 = arith.constant 0 : index
    %c0_875 = arith.constant 0 : index
    %1693 = vector.load %arg23[%c4_873, %c0_874, %c0_875] : memref<8x2x8xf32, #tpu.memory_space<vmem>>, vector<1x2x8xf32>
    %1694 = vector.shape_cast %1693 : vector<1x2x8xf32> to vector<2x8xf32>
    %cst_876 = arith.constant dense<0.000000e+00> : vector<2x4xf32>
    %1695 = tpu.matmul %1694, %1642, %cst_876 {dimension_numbers = #tpu.dot_dimension_numbers<[1], [0], [0], [1], [0, 0, 1, 1], [], []>} : vector<2x8xf32>, vector<8x4xf32>, vector<2x4xf32> -> vector<2x4xf32>
    %c4_877 = arith.constant 4 : index
    %c0_878 = arith.constant 0 : index
    %c0_879 = arith.constant 0 : index
    %1696 = vector.load %arg24[%c4_877, %c0_878, %c0_879] : memref<8x2x8xf32, #tpu.memory_space<vmem>>, vector<1x2x8xf32>
    %1697 = vector.shape_cast %1696 : vector<1x2x8xf32> to vector<2x8xf32>
    %cst_880 = arith.constant dense<0.000000e+00> : vector<2x4xf32>
    %1698 = tpu.matmul %1697, %1643, %cst_880 {dimension_numbers = #tpu.dot_dimension_numbers<[1], [0], [0], [1], [0, 0, 1, 1], [], []>} : vector<2x8xf32>, vector<8x4xf32>, vector<2x4xf32> -> vector<2x4xf32>
    %1699 = arith.addf %1695, %1698 : vector<2x4xf32>
    %1700 = vector.broadcast %1644 : vector<1x4xf32> to vector<2x4xf32>
    %1701 = arith.addf %1699, %1700 : vector<2x4xf32>
    %c3_881 = arith.constant 3 : index
    %c0_882 = arith.constant 0 : index
    %c0_883 = arith.constant 0 : index
    %1702 = vector.load %arg20[%c3_881, %c0_882, %c0_883] : memref<8x2x4xf32, #tpu.memory_space<vmem>>, vector<1x2x4xf32>
    %1703 = vector.shape_cast %1702 : vector<1x2x4xf32> to vector<2x4xf32>
    %1704 = vector.shape_cast %1701 : vector<2x4xf32> to vector<1x2x4xf32>
    tpu.vector_store %arg20[%c3_881, %c0_882, %c0_883], %1704 {strides = array<i32>} : memref<8x2x4xf32, #tpu.memory_space<vmem>>, vector<1x2x4xf32>,
    %c5_884 = arith.constant 5 : index
    %c0_885 = arith.constant 0 : index
    %c0_886 = arith.constant 0 : index
    %1705 = vector.load %arg23[%c5_884, %c0_885, %c0_886] : memref<8x2x8xf32, #tpu.memory_space<vmem>>, vector<1x2x8xf32>
    %1706 = vector.shape_cast %1705 : vector<1x2x8xf32> to vector<2x8xf32>
    %cst_887 = arith.constant dense<0.000000e+00> : vector<2x4xf32>
    %1707 = tpu.matmul %1706, %1642, %cst_887 {dimension_numbers = #tpu.dot_dimension_numbers<[1], [0], [0], [1], [0, 0, 1, 1], [], []>} : vector<2x8xf32>, vector<8x4xf32>, vector<2x4xf32> -> vector<2x4xf32>
    %c5_888 = arith.constant 5 : index
    %c0_889 = arith.constant 0 : index
    %c0_890 = arith.constant 0 : index
    %1708 = vector.load %arg24[%c5_888, %c0_889, %c0_890] : memref<8x2x8xf32, #tpu.memory_space<vmem>>, vector<1x2x8xf32>
    %1709 = vector.shape_cast %1708 : vector<1x2x8xf32> to vector<2x8xf32>
    %cst_891 = arith.constant dense<0.000000e+00> : vector<2x4xf32>
    %1710 = tpu.matmul %1709, %1643, %cst_891 {dimension_numbers = #tpu.dot_dimension_numbers<[1], [0], [0], [1], [0, 0, 1, 1], [], []>} : vector<2x8xf32>, vector<8x4xf32>, vector<2x4xf32> -> vector<2x4xf32>
    %1711 = arith.addf %1707, %1710 : vector<2x4xf32>
    %1712 = vector.broadcast %1644 : vector<1x4xf32> to vector<2x4xf32>
    %1713 = arith.addf %1711, %1712 : vector<2x4xf32>
    %c2_892 = arith.constant 2 : index
    %c0_893 = arith.constant 0 : index
    %c0_894 = arith.constant 0 : index
    %1714 = vector.load %arg20[%c2_892, %c0_893, %c0_894] : memref<8x2x4xf32, #tpu.memory_space<vmem>>, vector<1x2x4xf32>
    %1715 = vector.shape_cast %1714 : vector<1x2x4xf32> to vector<2x4xf32>
    %1716 = vector.shape_cast %1713 : vector<2x4xf32> to vector<1x2x4xf32>
    tpu.vector_store %arg20[%c2_892, %c0_893, %c0_894], %1716 {strides = array<i32>} : memref<8x2x4xf32, #tpu.memory_space<vmem>>, vector<1x2x4xf32>,
    %c6_895 = arith.constant 6 : index
    %c0_896 = arith.constant 0 : index
    %c0_897 = arith.constant 0 : index
    %1717 = vector.load %arg23[%c6_895, %c0_896, %c0_897] : memref<8x2x8xf32, #tpu.memory_space<vmem>>, vector<1x2x8xf32>
    %1718 = vector.shape_cast %1717 : vector<1x2x8xf32> to vector<2x8xf32>
    %cst_898 = arith.constant dense<0.000000e+00> : vector<2x4xf32>
    %1719 = tpu.matmul %1718, %1642, %cst_898 {dimension_numbers = #tpu.dot_dimension_numbers<[1], [0], [0], [1], [0, 0, 1, 1], [], []>} : vector<2x8xf32>, vector<8x4xf32>, vector<2x4xf32> -> vector<2x4xf32>
    %c6_899 = arith.constant 6 : index
    %c0_900 = arith.constant 0 : index
    %c0_901 = arith.constant 0 : index
    %1720 = vector.load %arg24[%c6_899, %c0_900, %c0_901] : memref<8x2x8xf32, #tpu.memory_space<vmem>>, vector<1x2x8xf32>
    %1721 = vector.shape_cast %1720 : vector<1x2x8xf32> to vector<2x8xf32>
    %cst_902 = arith.constant dense<0.000000e+00> : vector<2x4xf32>
    %1722 = tpu.matmul %1721, %1643, %cst_902 {dimension_numbers = #tpu.dot_dimension_numbers<[1], [0], [0], [1], [0, 0, 1, 1], [], []>} : vector<2x8xf32>, vector<8x4xf32>, vector<2x4xf32> -> vector<2x4xf32>
    %1723 = arith.addf %1719, %1722 : vector<2x4xf32>
    %1724 = vector.broadcast %1644 : vector<1x4xf32> to vector<2x4xf32>
    %1725 = arith.addf %1723, %1724 : vector<2x4xf32>
    %c1_903 = arith.constant 1 : index
    %c0_904 = arith.constant 0 : index
    %c0_905 = arith.constant 0 : index
    %1726 = vector.load %arg20[%c1_903, %c0_904, %c0_905] : memref<8x2x4xf32, #tpu.memory_space<vmem>>, vector<1x2x4xf32>
    %1727 = vector.shape_cast %1726 : vector<1x2x4xf32> to vector<2x4xf32>
    %1728 = vector.shape_cast %1725 : vector<2x4xf32> to vector<1x2x4xf32>
    tpu.vector_store %arg20[%c1_903, %c0_904, %c0_905], %1728 {strides = array<i32>} : memref<8x2x4xf32, #tpu.memory_space<vmem>>, vector<1x2x4xf32>,
    %c7_906 = arith.constant 7 : index
    %c0_907 = arith.constant 0 : index
    %c0_908 = arith.constant 0 : index
    %1729 = vector.load %arg23[%c7_906, %c0_907, %c0_908] : memref<8x2x8xf32, #tpu.memory_space<vmem>>, vector<1x2x8xf32>
    %1730 = vector.shape_cast %1729 : vector<1x2x8xf32> to vector<2x8xf32>
    %cst_909 = arith.constant dense<0.000000e+00> : vector<2x4xf32>
    %1731 = tpu.matmul %1730, %1642, %cst_909 {dimension_numbers = #tpu.dot_dimension_numbers<[1], [0], [0], [1], [0, 0, 1, 1], [], []>} : vector<2x8xf32>, vector<8x4xf32>, vector<2x4xf32> -> vector<2x4xf32>
    %c7_910 = arith.constant 7 : index
    %c0_911 = arith.constant 0 : index
    %c0_912 = arith.constant 0 : index
    %1732 = vector.load %arg24[%c7_910, %c0_911, %c0_912] : memref<8x2x8xf32, #tpu.memory_space<vmem>>, vector<1x2x8xf32>
    %1733 = vector.shape_cast %1732 : vector<1x2x8xf32> to vector<2x8xf32>
    %cst_913 = arith.constant dense<0.000000e+00> : vector<2x4xf32>
    %1734 = tpu.matmul %1733, %1643, %cst_913 {dimension_numbers = #tpu.dot_dimension_numbers<[1], [0], [0], [1], [0, 0, 1, 1], [], []>} : vector<2x8xf32>, vector<8x4xf32>, vector<2x4xf32> -> vector<2x4xf32>
    %1735 = arith.addf %1731, %1734 : vector<2x4xf32>
    %1736 = vector.broadcast %1644 : vector<1x4xf32> to vector<2x4xf32>
    %1737 = arith.addf %1735, %1736 : vector<2x4xf32>
    %c0_914 = arith.constant 0 : index
    %c0_915 = arith.constant 0 : index
    %c0_916 = arith.constant 0 : index
    %1738 = vector.load %arg20[%c0_914, %c0_915, %c0_916] : memref<8x2x4xf32, #tpu.memory_space<vmem>>, vector<1x2x4xf32>
    %1739 = vector.shape_cast %1738 : vector<1x2x4xf32> to vector<2x4xf32>
    %1740 = vector.shape_cast %1737 : vector<2x4xf32> to vector<1x2x4xf32>
    tpu.vector_store %arg20[%c0_914, %c0_915, %c0_916], %1740 {strides = array<i32>} : memref<8x2x4xf32, #tpu.memory_space<vmem>>, vector<1x2x4xf32>,
    %c0_917 = arith.constant 0 : index
    %c0_918 = arith.constant 0 : index
    %1741 = vector.load %arg15[%c0_917, %c0_918] : memref<16x16xf32, #tpu.memory_space<vmem>>, vector<16x16xf32>
    %cst_919 = arith.constant dense<0.000000e+00> : vector<2x16xf32>
    %1742 = tpu.matmul %833, %1741, %cst_919 {dimension_numbers = #tpu.dot_dimension_numbers<[1], [0], [0], [1], [0, 0, 1, 1], [], []>} : vector<2x16xf32>, vector<16x16xf32>, vector<2x16xf32> -> vector<2x16xf32>
    %c0_920 = arith.constant 0 : index
    %c0_921 = arith.constant 0 : index
    %1743 = vector.load %arg16[%c0_920, %c0_921] : memref<1x16xf32, #tpu.memory_space<vmem>>, vector<1x16xf32>
    %1744 = vector.broadcast %1743 : vector<1x16xf32> to vector<2x16xf32>
    %1745 = arith.addf %1742, %1744 : vector<2x16xf32>
    %cst_922 = arith.constant dense<0xFF800000> : vector<2xf32>
    %1746 = vector.multi_reduction <maximumf>, %1745, %cst_922 [1] : vector<2x16xf32> to vector<2xf32>
    %1747 = vector.shape_cast %1746 : vector<2xf32> to vector<2x1xf32>
    %1748 = vector.broadcast %1747 : vector<2x1xf32> to vector<2x16xf32>
    %1749 = arith.subf %1745, %1748 : vector<2x16xf32>
    %1750 = math.exp %1749 : vector<2x16xf32>
    %cst_923 = arith.constant dense<0.000000e+00> : vector<2xf32>
    %1751 = vector.multi_reduction <add>, %1750, %cst_923 [1] : vector<2x16xf32> to vector<2xf32>
    %1752 = vector.shape_cast %1751 : vector<2xf32> to vector<2x1xf32>
    %1753 = vector.broadcast %1752 : vector<2x1xf32> to vector<2x16xf32>
    %1754 = arith.divf %1750, %1753 : vector<2x16xf32>
    %c0_924 = arith.constant 0 : index
    %c0_925 = arith.constant 0 : index
    %1755 = vector.load %arg17[%c0_924, %c0_925] : memref<16x1xf32, #tpu.memory_space<vmem>>, vector<16x1xf32>
    %cst_926 = arith.constant dense<0.000000e+00> : vector<2x1xf32>
    %1756 = tpu.matmul %1754, %1755, %cst_926 {dimension_numbers = #tpu.dot_dimension_numbers<[1], [0], [0], [1], [0, 0, 1, 1], [], []>} : vector<2x16xf32>, vector<16x1xf32>, vector<2x1xf32> -> vector<2x1xf32>
    %c0_927 = arith.constant 0 : index
    %c0_928 = arith.constant 0 : index
    %1757 = vector.load %arg18[%c0_927, %c0_928] : memref<1x1xf32, #tpu.memory_space<vmem>>, vector<1x1xf32>
    %1758 = vector.broadcast %1757 : vector<1x1xf32> to vector<2x1xf32>
    %1759 = arith.addf %1756, %1758 : vector<2x1xf32>
    %1760 = arith.negf %1759 : vector<2x1xf32>
    %1761 = math.exp %1760 : vector<2x1xf32>
    %cst_929 = arith.constant 1.000000e+00 : f32
    %1762 = vector.broadcast %cst_929 : f32 to vector<2x1xf32>
    %1763 = arith.addf %1762, %1761 : vector<2x1xf32>
    %1764 = arith.divf %1762, %1763 : vector<2x1xf32>
    %c0_930 = arith.constant 0 : index
    %c0_931 = arith.constant 0 : index
    %1765 = vector.load %arg21[%c0_930, %c0_931] : memref<2x1xf32, #tpu.memory_space<vmem>>, vector<2x1xf32>
    tpu.vector_store %arg21[%c0_930, %c0_931], %1764 {strides = array<i32>} : memref<2x1xf32, #tpu.memory_space<vmem>>, vector<2x1xf32>,
    return
  }
}

</mosaic_0001>

<bundles_post_ra>
// kernel: model_forward.1
= control target key start
LH: loop header
LB: loop body
LE: loop exit
PB: predicated region body
PF: predicated region fallthrough
CT: control target
= control target key end

     0   :  { %s11830_s0 = inlined_call_operand.vmem [shape: f32[8,2,4], index: 0, kind: input, shape index: {}]   ;;  %s11831_s1 = inlined_call_operand.hbm [shape: f32[4,64], index: 1, kind: input, shape index: {}]   ;;  %s11832_s2 = inlined_call_operand.hbm [shape: f32[16,64], index: 2, kind: input, shape index: {}]   ;;  %s11833_s3 = inlined_call_operand.hbm [shape: f32[1,64], index: 3, kind: input, shape index: {}]   ;;  %s11834_s4 = inlined_call_operand.hbm [shape: f32[16,64], index: 4, kind: input, shape index: {}]   ;;  %s11835_s5 = inlined_call_operand.hbm [shape: f32[16,64], index: 5, kind: input, shape index: {}]   ;;  %s11836_s6 = inlined_call_operand.hbm [shape: f32[1,64], index: 6, kind: input, shape index: {}]   ;;  %s11837_s7 = inlined_call_operand.hbm [shape: f32[4,64], index: 7, kind: input, shape index: {}]   ;;  %s11838_s8 = inlined_call_operand.hbm [shape: f32[16,64], index: 8, kind: input, shape index: {}]   ;;  %s11839_s9 = inlined_call_operand.hbm [shape: f32[1,64], index: 9, kind: input, shape index: {}]   ;;  %s11840_s10 = inlined_call_operand.vmem [shape: f32[16,64], index: 10, kind: input, shape index: {}]   ;;  %s11841_s11 = inlined_call_operand.vmem [shape: f32[16,64], index: 11, kind: input, shape index: {}]   ;;  %s11842_s12 = inlined_call_operand.vmem [shape: f32[1,64], index: 12, kind: input, shape index: {}]   ;;  %s11843_s13 = inlined_call_operand.vmem [shape: f32[16,4], index: 13, kind: input, shape index: {}]   ;;  %s11844_s14 = inlined_call_operand.vmem [shape: f32[1,4], index: 14, kind: input, shape index: {}]   ;;  %s11845_s15 = inlined_call_operand.vmem [shape: f32[16,16], index: 15, kind: input, shape index: {}]   ;;  %s11846_s16 = inlined_call_operand.vmem [shape: f32[1,16], index: 16, kind: input, shape index: {}]   ;;  %s11847_s17 = inlined_call_operand.vmem [shape: f32[16,1], index: 17, kind: input, shape index: {}]   ;;  %s11848_s18 = inlined_call_operand.<no memory space> [shape: f32[1,1], index: 18, kind: input, shape index: {}]   ;;  %s11849_s19 = inlined_call_operand.hbm [shape: f32[2,16], index: 19, kind: output, shape index: {0}]   ;;  %s11850_s20 = inlined_call_operand.vmem [shape: f32[8,2,4], index: 20, kind: output, shape index: {1}]   ;;  %s11851_s21 = inlined_call_operand.vmem [shape: f32[2,1], index: 21, kind: output, shape index: {2}]  }
   0x1   :  { %11859 = sst [smem:[#allocation28_spill]] %s11830_s0  ;;  %v27_v0 = vstv %s11848_s18 }
   0x2   :  { %11860 = sst [smem:[#allocation29_spill]] %s11831_s1  ;;  %28 = vst [vmem:[#allocation5] sm:$0x1] %v27_v0 }
   0x3   :  { %11861 = sst [smem:[#allocation30_spill]] %s11832_s2 }
   0x4   :  { %11862 = sst [smem:[#allocation31_spill]] %s11833_s3 }
   0x5   :  { %11863 = sst [smem:[#allocation32_spill]] %s11834_s4 }
   0x6   :  { %11864 = sst [smem:[#allocation33_spill]] %s11835_s5 }
   0x7   :  { %11865 = sst [smem:[#allocation34_spill]] %s11849_s19 }
   0x8   :  { %11866 = sst [smem:[#allocation35_spill]] %s11851_s21 }
   0x9   :  { %29 = vsyncpa [#allocation7], 0 }
   0xa   :  { %30 = vsyncpa [#allocation10], 0 }
   0xb   :  { %31 = vsyncpa [#allocation13], 0 }
   0xc   :  { %32 = vsyncpa [#allocation16], 0 }
   0xd   :  { %33 = vsyncpa [#allocation19], 0 }
   0xe   :  { %34 = vsyncpa [#allocation8], 0  ;;  %s10376_s26 = smov [#allocation9]   ;;  %s11867_s29 = sld [smem:[#allocation30_spill]] }
   0xf   :  { %s52_s27 = sshll.u32 %s10376_s26, 4  ;;  %s53_s27 = int_to_ptr.vmem [resolvable:$true] %s52_s27 }
  0x14   :  { %s10144_s0 = scalar_lea.hbm %s11867_s29, 256 }
  0x15   :  { %p10145_p0 = scmp.ne.s32.totalorder %s11867_s29, %s10144_s0  ;;  %p10148_p1 = scmp.lt.u32.totalorder %s10144_s0, %s11867_s29 }
  0x17   :  { %p10150_p2 = pnand %p10148_p1, %p10145_p0 }
  0x19   :  { %10153 = shalt.err (!%p10150_p2)
}
  0x1a   :  { %s10154_s22 = scalar_lea.vmem %s53_s27, 256  ;;  %p10159_p4 = scmp.lt.s32.totalorder %s53_s27, %s53_s27 }
  0x1b   :  { %p10155_p3 = scmp.ne.s32.totalorder %s53_s27, %s10154_s22  ;;  %p10160_p5 = scmp.lt.s32.totalorder %s10154_s22, %s10154_s22 }
  0x1d   :  { %p10161_p6 = por %p10160_p5, %p10159_p4 }
  0x1f   :  { %p10162_p7 = pnand %p10161_p6, %p10155_p3 }
  0x21   :  { %10165 = shalt.err (!%p10162_p7)
}
  0x22   :  { %s10377_s23 = smov 128   ;;  %s10378_s1 = smov 8  }
  0x23   :  { %58 = dma.hbm_to_vmem [thread:$0]  %s11867_s29, 256, %s53_s27, [#allocation10], %s10377_s23, %s10377_s23, %s10378_s1  }
  0x24   :  { %s10379_s25 = smov [#allocation12]   ;;  %s10380_s3 = smov [#allocation15]  }
  0x25   :  { %s74_s26 = sshll.u32 %s10379_s25, 4  ;;  %s99_s28 = sshll.u32 %s10380_s3, 4  ;;  %s75_s26 = int_to_ptr.vmem [resolvable:$true] %s74_s26  ;;  %s100_s28 = int_to_ptr.vmem [resolvable:$true] %s99_s28 }
  0x26   :  { %s11868_s30 = sld [smem:[#allocation32_spill]] }
  0x2c   :  { %s10166_s5 = scalar_lea.hbm %s11868_s30, 256 }
  0x2d   :  { %p10167_p8 = scmp.ne.s32.totalorder %s11868_s30, %s10166_s5  ;;  %p10170_p9 = scmp.lt.u32.totalorder %s10166_s5, %s11868_s30 }
  0x2f   :  { %p10172_p10 = pnand %p10170_p9, %p10167_p8 }
  0x31   :  { %10175 = shalt.err (!%p10172_p10)
}
  0x32   :  { %s10176_s27 = scalar_lea.vmem %s75_s26, 256  ;;  %p10181_p12 = scmp.lt.s32.totalorder %s75_s26, %s75_s26 }
  0x33   :  { %p10177_p11 = scmp.ne.s32.totalorder %s75_s26, %s10176_s27  ;;  %p10182_p13 = scmp.lt.s32.totalorder %s10176_s27, %s10176_s27 }
  0x35   :  { %p10183_p0 = por %p10182_p13, %p10181_p12 }
  0x37   :  { %p10184_p1 = pnand %p10183_p0, %p10177_p11 }
  0x39   :  { %10187 = shalt.err (!%p10184_p1)
}
  0x3a   :  { %80 = dma.hbm_to_vmem [thread:$0]  %s11868_s30, 256, %s75_s26, [#allocation13], %s10377_s23, %s10377_s23, %s10378_s1  }
  0x3b   :  { %s10188_s21 = scalar_lea.hbm %s11836_s6, 16 }
  0x3c   :  { %p10189_p2 = scmp.ne.s32.totalorder %s11836_s6, %s10188_s21  ;;  %p10192_p3 = scmp.lt.u32.totalorder %s10188_s21, %s11836_s6 }
  0x3e   :  { %p10194_p4 = pnand %p10192_p3, %p10189_p2 }
  0x40   :  { %10197 = shalt.err (!%p10194_p4)
}
  0x41   :  { %s10198_s5 = scalar_lea.vmem %s100_s28, 16  ;;  %s10202_s18 = scalar_lea.vmem %s100_s28, 32 }
  0x42   :  { %p10199_p5 = scmp.ne.s32.totalorder %s100_s28, %s10198_s5  ;;  %p10203_p6 = scmp.lt.s32.totalorder %s100_s28, %s100_s28 }
  0x43   :  { %p10204_p7 = scmp.lt.s32.totalorder %s10202_s18, %s10198_s5 }
  0x45   :  { %p10205_p8 = por %p10204_p7, %p10203_p6 }
  0x47   :  { %p10206_p9 = pnand %p10205_p8, %p10199_p5 }
  0x49   :  { %10209 = shalt.err (!%p10206_p9)
}
  0x4a   :  { %102 = dma.hbm_to_vmem [thread:$0]  %s11836_s6, 16, %s100_s28, [#allocation16]  }
  0x4b   :  { %s10381_s22 = smov [#allocation18]   ;;  %s10382_s29 = smov [#allocation6]  }
  0x4c   :  { %s118_s27 = sshll.u32 %s10381_s22, 4  ;;  %s43_s24 = sshll.u32 %s10382_s29, 4  ;;  %s119_s27 = int_to_ptr.vmem [resolvable:$true] %s118_s27  ;;  %s44_s24 = int_to_ptr.vmem [resolvable:$true] %s43_s24 }
  0x4d   :  { %s10210_s21 = scalar_lea.hbm %s11838_s8, 256 }
  0x4e   :  { %p10211_p10 = scmp.ne.s32.totalorder %s11838_s8, %s10210_s21  ;;  %p10214_p11 = scmp.lt.u32.totalorder %s10210_s21, %s11838_s8 }
  0x50   :  { %p10216_p12 = pnand %p10214_p11, %p10211_p10 }
  0x52   :  { %10219 = shalt.err (!%p10216_p12)
}
  0x53   :  { %s10220_s6 = scalar_lea.vmem %s119_s27, 256  ;;  %p10225_p0 = scmp.lt.s32.totalorder %s119_s27, %s119_s27 }
  0x54   :  { %p10221_p13 = scmp.ne.s32.totalorder %s119_s27, %s10220_s6  ;;  %p10226_p1 = scmp.lt.s32.totalorder %s10220_s6, %s10220_s6 }
  0x56   :  { %p10227_p2 = por %p10226_p1, %p10225_p0 }
  0x58   :  { %p10228_p3 = pnand %p10227_p2, %p10221_p13 }
  0x5a   :  { %10231 = shalt.err (!%p10228_p3)
}
  0x5b   :  { %124 = dma.hbm_to_vmem [thread:$0]  %s11838_s8, 256, %s119_s27, [#allocation19], %s10377_s23, %s10377_s23, %s10378_s1  }
  0x5c   :  { %s11869_s30 = sld [smem:[#allocation29_spill]] }
  0x62   :  { %s10232_s22 = scalar_lea.hbm %s11869_s30, 64 }
  0x63   :  { %p10233_p4 = scmp.ne.s32.totalorder %s11869_s30, %s10232_s22  ;;  %p10236_p5 = scmp.lt.u32.totalorder %s10232_s22, %s11869_s30 }
  0x65   :  { %p10238_p6 = pnand %p10236_p5, %p10233_p4 }
  0x67   :  { %10241 = shalt.err (!%p10238_p6)
}
  0x68   :  { %s10242_s25 = scalar_lea.vmem %s44_s24, 64  ;;  %p10247_p8 = scmp.lt.s32.totalorder %s44_s24, %s44_s24 }
  0x69   :  { %p10243_p7 = scmp.ne.s32.totalorder %s44_s24, %s10242_s25  ;;  %p10248_p9 = scmp.lt.s32.totalorder %s10242_s25, %s10242_s25 }
  0x6b   :  { %p10249_p10 = por %p10248_p9, %p10247_p8 }
  0x6d   :  { %p10250_p11 = pnand %p10249_p10, %p10243_p7 }
  0x6f   :  { %10253 = shalt.err (!%p10250_p11)
}
  0x70   :  { %46 = dma.hbm_to_vmem [thread:$0]  %s11869_s30, 64, %s44_s24, [#allocation7]  }
  0x71   :  { %s10383_s3 = smov [#allocation11]   ;;  %s10384_s4 = smov [#allocation14]  }
  0x72   :  { %s65_s0 = sshll.u32 %s10383_s3, 4  ;;  %s86_s6 = sshll.u32 %s10384_s4, 4  ;;  %s66_s0 = int_to_ptr.vmem [resolvable:$true] %s65_s0  ;;  %s87_s6 = int_to_ptr.vmem [resolvable:$true] %s86_s6 }
  0x73   :  { %s11870_s18 = sld [smem:[#allocation31_spill]] }
  0x79   :  { %s10254_s26 = scalar_lea.hbm %s11870_s18, 16 }
  0x7a   :  { %p10255_p12 = scmp.ne.s32.totalorder %s11870_s18, %s10254_s26  ;;  %p10258_p13 = scmp.lt.u32.totalorder %s10254_s26, %s11870_s18 }
  0x7c   :  { %p10260_p0 = pnand %p10258_p13, %p10255_p12 }
  0x7e   :  { %10263 = shalt.err (!%p10260_p0)
}
  0x7f   :  { %s10264_s24 = scalar_lea.vmem %s66_s0, 16  ;;  %s10268_s30 = scalar_lea.vmem %s66_s0, 32 }
  0x80   :  { %p10265_p1 = scmp.ne.s32.totalorder %s66_s0, %s10264_s24  ;;  %p10269_p2 = scmp.lt.s32.totalorder %s66_s0, %s66_s0 }
  0x81   :  { %p10270_p3 = scmp.lt.s32.totalorder %s10268_s30, %s10264_s24 }
  0x83   :  { %p10271_p4 = por %p10270_p3, %p10269_p2 }
  0x85   :  { %p10272_p5 = pnand %p10271_p4, %p10265_p1 }
  0x87   :  { %10275 = shalt.err (!%p10272_p5)
}
  0x88   :  { %68 = dma.hbm_to_vmem [thread:$0]  %s11870_s18, 16, %s66_s0, [#allocation10]  }
  0x89   :  { %s11871_s3 = sld [smem:[#allocation33_spill]] }
  0x8f   :  { %s10276_s4 = scalar_lea.hbm %s11871_s3, 256 }
  0x90   :  { %p10277_p6 = scmp.ne.s32.totalorder %s11871_s3, %s10276_s4  ;;  %p10280_p7 = scmp.lt.u32.totalorder %s10276_s4, %s11871_s3 }
  0x92   :  { %p10282_p8 = pnand %p10280_p7, %p10277_p6 }
  0x94   :  { %10285 = shalt.err (!%p10282_p8)
}
  0x95   :  { %s10286_s29 = scalar_lea.vmem %s87_s6, 256  ;;  %p10291_p10 = scmp.lt.s32.totalorder %s87_s6, %s87_s6 }
  0x96   :  { %p10287_p9 = scmp.ne.s32.totalorder %s87_s6, %s10286_s29  ;;  %p10292_p11 = scmp.lt.s32.totalorder %s10286_s29, %s10286_s29 }
  0x98   :  { %p10293_p12 = por %p10292_p11, %p10291_p10 }
  0x9a   :  { %p10294_p13 = pnand %p10293_p12, %p10287_p9 }
  0x9c   :  { %10297 = shalt.err (!%p10294_p13)
}
  0x9d   :  { %92 = dma.hbm_to_vmem [thread:$0]  %s11871_s3, 256, %s87_s6, [#allocation13], %s10377_s23, %s10377_s23, %s10378_s1  }
  0x9e   :  { %s10385_s2 = smov [#allocation17]   ;;  %s10386_s24 = smov [#allocation20]  }
  0x9f   :  { %s109_s19 = sshll.u32 %s10385_s2, 4  ;;  %s131_s30 = sshll.u32 %s10386_s24, 4  ;;  %s110_s19 = int_to_ptr.vmem [resolvable:$true] %s109_s19  ;;  %s132_s30 = int_to_ptr.vmem [resolvable:$true] %s131_s30 }
  0xa0   :  { %s10298_s8 = scalar_lea.hbm %s11837_s7, 64 }
  0xa1   :  { %p10299_p0 = scmp.ne.s32.totalorder %s11837_s7, %s10298_s8  ;;  %p10302_p1 = scmp.lt.u32.totalorder %s10298_s8, %s11837_s7 }
  0xa3   :  { %p10304_p2 = pnand %p10302_p1, %p10299_p0 }
  0xa5   :  { %10307 = shalt.err (!%p10304_p2)
}
  0xa6   :  { %s10308_s23 = scalar_lea.vmem %s110_s19, 64  ;;  %p10313_p4 = scmp.lt.s32.totalorder %s110_s19, %s110_s19 }
  0xa7   :  { %p10309_p3 = scmp.ne.s32.totalorder %s110_s19, %s10308_s23  ;;  %p10314_p5 = scmp.lt.s32.totalorder %s10308_s23, %s10308_s23 }
  0xa9   :  { %p10315_p6 = por %p10314_p5, %p10313_p4 }
  0xab   :  { %p10316_p7 = pnand %p10315_p6, %p10309_p3 }
  0xad   :  { %10319 = shalt.err (!%p10316_p7)
}
  0xae   :  { %112 = dma.hbm_to_vmem [thread:$0]  %s11837_s7, 64, %s110_s19, [#allocation16]  }
  0xaf   :  { %s10320_s29 = scalar_lea.hbm %s11839_s9, 16 }
  0xb0   :  { %p10321_p8 = scmp.ne.s32.totalorder %s11839_s9, %s10320_s29  ;;  %p10324_p9 = scmp.lt.u32.totalorder %s10320_s29, %s11839_s9 }
  0xb2   :  { %p10326_p10 = pnand %p10324_p9, %p10321_p8 }
  0xb4   :  { %10329 = shalt.err (!%p10326_p10)
}
  0xb5   :  { %s10330_s21 = scalar_lea.vmem %s132_s30, 16  ;;  %s10334_s25 = scalar_lea.vmem %s132_s30, 32 }
  0xb6   :  { %p10331_p11 = scmp.ne.s32.totalorder %s132_s30, %s10330_s21  ;;  %p10335_p12 = scmp.lt.s32.totalorder %s132_s30, %s132_s30 }
  0xb7   :  { %p10336_p13 = scmp.lt.s32.totalorder %s10334_s25, %s10330_s21 }
  0xb9   :  { %p10337_p0 = por %p10336_p13, %p10335_p12 }
  0xbb   :  { %p10338_p1 = pnand %p10337_p0, %p10331_p11 }
  0xbd   :  { %10341 = shalt.err (!%p10338_p1)
}
  0xbe   :  { %134 = dma.hbm_to_vmem [thread:$0]  %s11839_s9, 16, %s132_s30, [#allocation19]  }
  0xbf   :  { %10364 = dma.done.wait [#allocation7], 64  }
  0xc0   :  { %10365 = vsyncadd [#allocation7], 4294967232 }
  0xc1   :  { %10366 = dma.done.wait [#allocation10], 272  }
  0xc2   :  { %10367 = vsyncadd [#allocation10], 4294967024 }
  0xc3   :  { %10368 = dma.done.wait [#allocation13], 512  }
  0xc4   :  { %10369 = vsyncadd [#allocation13], 4294966784 }
  0xc5   :  { %10370 = dma.done.wait [#allocation16], 80  }
  0xc6   :  { %10371 = vsyncadd [#allocation16], 4294967216 }
  0xc7   :  { %10372 = dma.done.wait [#allocation19], 272  }
  0xc8   :  { %10373 = vsyncadd [#allocation19], 4294967024  ;;  %v10387_v1 = vmov 0.0   ;;  %vm10388_vm0 = vmmov 0   ;;  %vm210_vm1 = vcmask 1043456   ;;  %vm206_vm2 = vcmask 31744  }
  0xc9   :  { %9200 = vmatprep.subr.mxu0 %v10387_v1  ;;  %9205 = vmatprep.subr.mxu1 %v10387_v1  ;;  %v195_v2 = vld [vmem:[#allocation6] sm:$0xf]  ;;  %s11872_s8 = sld [smem:[#allocation28_spill]]  ;;  %v197_v9 = vld [vmem:[#allocation9] sm:$0xff]  ;;  %v198_v10 = vld [vmem:[#allocation9 + $0x8] sm:$0xff]  ;;  %v10389_v14 = vmov 0.0|0.0   ;;  %v180_v34 = vlaneseq }
  0xca   :  { %9202 = vmatprep.mubr.msk.f32.mxu0 %vm10388_vm0, %v10387_v1  ;;  %9207 = vmatprep.mubr.msk.f32.mxu1 %vm10388_vm0, %v10387_v1  ;;  %v10687_v13 = vpack.c.bf16 %v198_v10, %v197_v9  ;;  %v8798_v15 = vld [vmem:[#allocation11] ss:$0 sm:$0xff]  ;;  %vm284_vm3 = vcmask 517120   ;;  %s10390_s21 = smov 96   ;;  %s10391_s25 = smov 16   ;;  %vm931_vm5 = vcmask 58368  }
  0xcb   :  { %9201 = vmatpush3.msk.msra.mxu0 %vm210_vm1, %v195_v2  ;;  %9206 = vmatpush3.msk.msra.mxu1 %vm210_vm1, %v195_v2  ;;  %v181_v41 = vand.u32 127, %v180_v34  ;;  %s10392_s7 = smov 32   ;;  %s10393_s19 = smov 80   ;;  %vm828_vm6 = vcmask 130048   ;;  %vm1721_vm7 = vcmask 64512   ;;  %vm3803_vm8 = vcmask 123904  }
  0xcc   :  { %9215 = vmatprep.subr.mxu1 %v10387_v1  ;;  %9210 = vmatprep.subr.mxu0 %v10387_v1  ;;  %s10394_s9 = smov 72   ;;  %vm7530_vm9 = vcmask 25600  }
  0xcd   :  { %v186_v43 = vand.u32 15, %v181_v41 }
  0xcf   :  { %v199_v3 = vld [vmem:[%s11872_s8] sm:$0x3]  ;;  %v8801_v4 = vld [vmem:[%s11872_s8 + $0x2] sm:$0x3]  ;;  %v8804_v5 = vld [vmem:[%s11872_s8 + $0x4] sm:$0x3] }
  0xd0   :  { %9203 = vmatmul.mubr.msk.f32.vlgmr.msra.gmra.mrb[0].mxu0 %vm206_vm2, %v199_v3  ;;  %9208 = vmatmul.mubr.msk.f32.vlgmr.msra.gmra.mrb[0].mxu1 %vm206_vm2, %v8801_v4  ;;  %v8807_v6 = vld [vmem:[%s11872_s8 + $0x6] sm:$0x3]  ;;  %v8810_v7 = vld [vmem:[%s11872_s8 + $0x8] sm:$0x3]  ;;  %v8813_v8 = vld [vmem:[%s11872_s8 + $0xa] sm:$0x3] }
  0xd1   :  { %9216 = vmatpush3.msk.msra.mxu1 %vm210_vm1, %v195_v2  ;;  %9211 = vmatpush3.msk.msra.mxu0 %vm210_vm1, %v195_v2  ;;  %v8816_v11 = vld [vmem:[%s11872_s8 + $0xc] sm:$0x3]  ;;  %v8819_v12 = vld [vmem:[%s11872_s8 + $0xe] sm:$0x3]  ;;  %vm10718_vm4 = vcmp.lt.s32.totalorder %v186_v43, 8 }
  0xd2   :  { %9212 = vmatprep.mubr.msk.f32.mxu0 %vm10388_vm0, %v10387_v1  ;;  %9217 = vmatprep.mubr.msk.f32.mxu1 %vm10388_vm0, %v10387_v1 }
  0xd3   :  { %9225 = vmatprep.subr.mxu1 %v10387_v1  ;;  %9220 = vmatprep.subr.mxu0 %v10387_v1 }
  0xd4   :  { %9213 = vmatmul.mubr.msk.f32.vlgmr.msra.gmra.mrb[2].mxu0 %vm206_vm2, %v8804_v5  ;;  %9218 = vmatmul.mubr.msk.f32.vlgmr.msra.gmra.mrb[2].mxu1 %vm206_vm2, %v8807_v6 }
  0xd5   :  { %9226 = vmatpush3.msk.msra.mxu1 %vm210_vm1, %v195_v2  ;;  %9221 = vmatpush3.msk.msra.mxu0 %vm210_vm1, %v195_v2 }
  0xd6   :  { %9222 = vmatprep.mubr.msk.f32.mxu0 %vm10388_vm0, %v10387_v1  ;;  %9227 = vmatprep.mubr.msk.f32.mxu1 %vm10388_vm0, %v10387_v1 }
  0xd7   :  { %9235 = vmatprep.subr.mxu1 %v10387_v1  ;;  %9230 = vmatprep.subr.mxu0 %v10387_v1 }
  0xd8   :  { %9223 = vmatmul.mubr.msk.f32.vlgmr.msra.gmra.mrb[4].mxu0 %vm206_vm2, %v8810_v7  ;;  %9228 = vmatmul.mubr.msk.f32.vlgmr.msra.gmra.mrb[4].mxu1 %vm206_vm2, %v8813_v8 }
  0xd9   :  { %9236 = vmatpush3.msk.msra.mxu1 %vm210_vm1, %v195_v2  ;;  %9231 = vmatpush3.msk.msra.mxu0 %vm210_vm1, %v195_v2 }
  0xda   :  { %9232 = vmatprep.mubr.msk.f32.mxu0 %vm10388_vm0, %v10387_v1  ;;  %9237 = vmatprep.mubr.msk.f32.mxu1 %vm10388_vm0, %v10387_v1 }
  0xdb   :  { %9758 = vmatprep.subr.bf16.mxu0 %v10389_v14  ;;  %9761 = vmatprep.subr.bf16.mxu1 %v10389_v14 }
  0xdc   :  { %9233 = vmatmul.mubr.msk.f32.vlgmr.msra.gmra.mrb[6].mxu0 %vm206_vm2, %v8816_v11  ;;  %9238 = vmatmul.mubr.msk.f32.vlgmr.msra.gmra.mrb[6].mxu1 %vm206_vm2, %v8819_v12 }
  0xdd   :  { %9244 = vmatprep.mubr.msk.f32.mxu0 %vm10388_vm0, %v10387_v1  ;;  %9760 = vmatpush3.bf16.msra.mxu0 %v10687_v13 }
  0xde   :  { %9763 = vmatpush3.bf16.msra.mxu1 %v10687_v13  ;;  %9251 = vmatprep.mubr.msk.f32.mxu1 %vm10388_vm0, %v10387_v1 }
  0xdf   :  { %9764 = vmatprep.subr.bf16.mxu0 %v10389_v14  ;;  %9767 = vmatprep.subr.bf16.mxu1 %v10389_v14 }
  0xe0   :  { %9245 = vmatmul.mubr.f32.vlgmr.msra.gmra.mrb[8].mxu0 %v10387_v1 }
  0xe1   :  { %9766 = vmatpush3.bf16.msra.mxu0 %v10687_v13  ;;  %9258 = vmatprep.mubr.msk.f32.mxu0 %vm10388_vm0, %v10387_v1 }
  0xe2   :  { %9770 = vmatprep.subr.bf16.mxu0 %v10389_v14 }
 0x1a3   :  { %v357_v16 = vpop.f32.mrb[0].mxu1  ;;  %v280_v17 = vpop.f32.mrb[0].mxu0 }
 0x1a4   :  { %v358_v18 = vadd.f32 %v8798_v15, %v357_v16  ;;  %v9209_v19 = vpop.f32.mrb[1].mxu1  ;;  %v281_v20 = vadd.f32 %v8798_v15, %v280_v17  ;;  %v9204_v21 = vpop.f32.mrb[1].mxu0 }
 0x1a6   :  { %362 = vst.msk [vmem:[#allocation2 + $0x2] sm:$0x3] %vm284_vm3, %v358_v18  ;;  %285 = vst.msk [vmem:[#allocation2] sm:$0x3] %vm284_vm3, %v281_v20 }
 0x1a7   :  { %v511_v22 = vpop.f32.mrb[2].mxu1  ;;  %v434_v23 = vpop.f32.mrb[2].mxu0 }
 0x1a8   :  { %v512_v24 = vadd.f32 %v8798_v15, %v511_v22  ;;  %v9219_v25 = vpop.f32.mrb[3].mxu1  ;;  %v435_v26 = vadd.f32 %v8798_v15, %v434_v23  ;;  %v9214_v27 = vpop.f32.mrb[3].mxu0 }
 0x1aa   :  { %516 = vst.msk [vmem:[#allocation2 + $0x6] sm:$0x3] %vm284_vm3, %v512_v24  ;;  %439 = vst.msk [vmem:[#allocation2 + $0x4] sm:$0x3] %vm284_vm3, %v435_v26 }
 0x1ab   :  { %v588_v28 = vpop.f32.mrb[4].mxu0  ;;  %v665_v29 = vpop.f32.mrb[4].mxu1 }
 0x1ac   :  { %v589_v30 = vadd.f32 %v8798_v15, %v588_v28  ;;  %v666_v31 = vadd.f32 %v8798_v15, %v665_v29  ;;  %v9229_v32 = vpop.f32.mrb[5].mxu1  ;;  %v9224_v33 = vpop.f32.mrb[5].mxu0 }
 0x1ad   :  { %v825_v46 = vld [vmem:[#allocation2] sm:$0x3]  ;;  %v938_v2 = vld [vmem:[#allocation2 + $0x2] sm:$0x3] }
 0x1ae   :  { %593 = vst.msk [vmem:[#allocation2 + $0x8] sm:$0x3] %vm284_vm3, %v589_v30  ;;  %670 = vst.msk [vmem:[#allocation2 + $0xa] sm:$0x3] %vm284_vm3, %v666_v31 }
 0x1af   :  { %v742_v35 = vpop.f32.mrb[6].mxu0  ;;  %v819_v36 = vpop.f32.mrb[6].mxu1 }
 0x1b0   :  { %v743_v37 = vadd.f32 %v8798_v15, %v742_v35  ;;  %v820_v38 = vadd.f32 %v8798_v15, %v819_v36  ;;  %v9239_v39 = vpop.f32.mrb[7].mxu1  ;;  %v9234_v40 = vpop.f32.mrb[7].mxu0 }
 0x1b1   :  { %v1049_v23 = vld [vmem:[#allocation2 + $0x4] sm:$0x3] }
 0x1b2   :  { %747 = vst.msk [vmem:[#allocation2 + $0xc] sm:$0x3] %vm284_vm3, %v743_v37  ;;  %824 = vst.msk [vmem:[#allocation2 + $0xe] sm:$0x3] %vm284_vm3, %v820_v38 }
 0x1b3   :  { %v898_v42 = vpop.f32.mrb[8].mxu0 }
 0x1b4   :  { %v9246_v44 = vpop.f32.mrb[9].mxu0 }
 0x1b5   :  { %v1050_v24 = vld [vmem:[#allocation2 + $0xa] sm:$0x3]  ;;  %v1161_v43 = vld [vmem:[#allocation2 + $0x8] sm:$0x3]  ;;  %v1160_v44 = vld [vmem:[#allocation2 + $0x6] sm:$0x3] }
 0x1b6   :  { %v1051_v25 = vsel %vm10718_vm4, %v1049_v23, %v1050_v24 }
 0x1b9   :  { %v826_v47 = vld [vmem:[#allocation2 + $0xe] sm:$0x3]  ;;  %v939_v0 = vld [vmem:[#allocation2 + $0xc] sm:$0x3] }
 0x1ba   :  { %v827_v48 = vsel %vm10718_vm4, %v825_v46, %v826_v47  ;;  %v940_v3 = vsel %vm10718_vm4, %v938_v2, %v939_v0  ;;  %v1162_v46 = vsel %vm10718_vm4, %v1160_v44, %v1161_v43  ;;  %v1271_v2 = vld [vmem:[#allocation2 + $0x8] sm:$0x3] }
 0x1bb   :  { %v902_v49 = vadd.f32 %v898_v42, %v827_v48 }
 0x1bd   :  { %9880 = vtanh.f32 %v902_v49  ;;  %v8822_v51 = vmul.f32 -1.442695, %v902_v49 }
 0x1bf   :  { %9882 = vpow2.f32 %v8822_v51 }
 0x1c7   :  { %v9881_v50 = vpop.eup %9880 }
 0x1c8   :  { %912 = vrot.lane.b32.xlu0 %v9881_v50, %s10390_s21 }
 0x1c9   :  { %v9883_v52 = vpop.eup %9882 }
 0x1ca   :  { %v906_v53 = vadd.f32 1.0, %v9883_v52 }
 0x1cc   :  { %9884 = vrcp.f32 %v906_v53 }
 0x1d6   :  { %v9885_v54 = vpop.eup %9884 }
 0x1d7   :  { %v910_v57 = vmul.f32 0.0, %v9885_v54 }
 0x23a   :  { %v913_v55 = vpop.permute.xlu0 %912 }
 0x23b   :  { %v915_v56 = vmul.f32 %v9885_v54, %v913_v55 }
 0x23d   :  { %917 = vrot.lane.b32.xlu0 %v915_v56, %s10391_s25 }
 0x2af   :  { %v918_v58 = vpop.permute.xlu0 %917 }
 0x2b0   :  { %v920_v59 = vadd.f32 %v918_v58, %v910_v57 }
 0x2b2   :  { %9886 = vtanh.f32 %v920_v59 }
 0x2bc   :  { %v9887_v60 = vpop.eup %9886 }
 0x2bd   :  { %923 = vrot.lane.b32.xlu1 %v9887_v60, %s10392_s7 }
 0x32f   :  { %v924_v61 = vpop.permute.xlu1 %923 }
 0x330   :  { %v10727_v62 = vmul.f32 %v9885_v54, %v924_v61 }
 0x332   :  { %928 = vrot.lane.b32.xlu1 %v10727_v62, %s10393_s19 }
 0x3a4   :  { %v929_v63 = vpop.permute.xlu1 %928 }
 0x3a5   :  { %932 = vst.msk [vmem:[#allocation3] sm:$0x3] %vm931_vm5, %v929_v63  ;;  %9252 = vmatmul.mubr.msk.f32.vlgmr.msra.gmra.mrb[8].mxu1 %vm828_vm6, %v929_v63 }
 0x3a6   :  { %9769 = vmatpush3.bf16.msra.mxu1 %v10687_v13  ;;  %9265 = vmatprep.mubr.msk.f32.mxu1 %vm10388_vm0, %v10387_v1 }
 0x3a7   :  { %9773 = vmatprep.subr.bf16.mxu1 %v10389_v14 }
 0x478   :  { %v1009_v4 = vpop.f32.mrb[8].mxu1 }
 0x479   :  { %v1013_v5 = vadd.f32 %v1009_v4, %v940_v3  ;;  %v9253_v6 = vpop.f32.mrb[9].mxu1  ;;  %v1272_v3 = vld [vmem:[#allocation2 + $0x6] sm:$0x3] }
 0x47a   :  { %v1273_v4 = vsel %vm10718_vm4, %v1271_v2, %v1272_v3 }
 0x47b   :  { %9888 = vtanh.f32 %v1013_v5  ;;  %v8824_v8 = vmul.f32 -1.442695, %v1013_v5 }
 0x47d   :  { %9890 = vpow2.f32 %v8824_v8 }
 0x485   :  { %v9889_v7 = vpop.eup %9888 }
 0x486   :  { %1023 = vrot.lane.b32.xlu0 %v9889_v7, %s10390_s21 }
 0x487   :  { %v9891_v9 = vpop.eup %9890 }
 0x488   :  { %v1017_v10 = vadd.f32 1.0, %v9891_v9 }
 0x48a   :  { %9892 = vrcp.f32 %v1017_v10 }
 0x494   :  { %v9893_v11 = vpop.eup %9892 }
 0x495   :  { %v1021_v16 = vmul.f32 %v9893_v11, %v920_v59 }
 0x4f8   :  { %v1024_v12 = vpop.permute.xlu0 %1023 }
 0x4f9   :  { %v1026_v15 = vmul.f32 %v9893_v11, %v1024_v12 }
 0x4fb   :  { %1028 = vrot.lane.b32.xlu1 %v1026_v15, %s10391_s25 }
 0x56d   :  { %v1029_v17 = vpop.permute.xlu1 %1028 }
 0x56e   :  { %v1031_v18 = vadd.f32 %v1029_v17, %v1021_v16 }
 0x570   :  { %9894 = vtanh.f32 %v1031_v18 }
 0x57a   :  { %v9895_v19 = vpop.eup %9894 }
 0x57b   :  { %1034 = vrot.lane.b32.xlu0 %v9895_v19, %s10392_s7 }
 0x5ed   :  { %v1035_v20 = vpop.permute.xlu0 %1034 }
 0x5ee   :  { %v10742_v21 = vmul.f32 %v9893_v11, %v1035_v20 }
 0x5f0   :  { %1039 = vrot.lane.b32.xlu1 %v10742_v21, %s10393_s19 }
 0x662   :  { %v1040_v22 = vpop.permute.xlu1 %1039 }
 0x663   :  { %1043 = vst.msk [vmem:[#allocation3 + $0x2] sm:$0x3] %vm931_vm5, %v1040_v22  ;;  %9259 = vmatmul.mubr.msk.f32.vlgmr.msra.gmra.mrb[10].mxu0 %vm828_vm6, %v1040_v22 }
 0x664   :  { %9772 = vmatpush3.bf16.msra.mxu0 %v10687_v13  ;;  %9272 = vmatprep.mubr.msk.f32.mxu0 %vm10388_vm0, %v10387_v1 }
 0x665   :  { %9776 = vmatprep.subr.bf16.mxu0 %v10389_v14 }
 0x736   :  { %v1120_v26 = vpop.f32.mrb[10].mxu0 }
 0x737   :  { %v1124_v27 = vadd.f32 %v1120_v26, %v1051_v25  ;;  %v9260_v28 = vpop.f32.mrb[11].mxu0  ;;  %v1382_v25 = vld [vmem:[#allocation2 + $0xa] sm:$0x3]  ;;  %v1383_v26 = vld [vmem:[#allocation2 + $0x4] sm:$0x3] }
 0x739   :  { %9896 = vtanh.f32 %v1124_v27  ;;  %v8826_v30 = vmul.f32 -1.442695, %v1124_v27  ;;  %v1384_v27 = vsel %vm10718_vm4, %v1382_v25, %v1383_v26 }
 0x73b   :  { %9898 = vpow2.f32 %v8826_v30 }
 0x743   :  { %v9897_v29 = vpop.eup %9896 }
 0x744   :  { %1134 = vrot.lane.b32.xlu0 %v9897_v29, %s10390_s21 }
 0x745   :  { %v9899_v31 = vpop.eup %9898 }
 0x746   :  { %v1128_v32 = vadd.f32 1.0, %v9899_v31 }
 0x748   :  { %9900 = vrcp.f32 %v1128_v32 }
 0x752   :  { %v9901_v33 = vpop.eup %9900 }
 0x753   :  { %v1132_v36 = vmul.f32 %v9901_v33, %v1031_v18 }
 0x7b6   :  { %v1135_v34 = vpop.permute.xlu0 %1134 }
 0x7b7   :  { %v1137_v35 = vmul.f32 %v9901_v33, %v1135_v34 }
 0x7b9   :  { %1139 = vrot.lane.b32.xlu1 %v1137_v35, %s10391_s25 }
 0x82b   :  { %v1140_v37 = vpop.permute.xlu1 %1139 }
 0x82c   :  { %v1142_v38 = vadd.f32 %v1140_v37, %v1132_v36 }
 0x82e   :  { %9902 = vtanh.f32 %v1142_v38 }
 0x838   :  { %v9903_v39 = vpop.eup %9902 }
 0x839   :  { %1145 = vrot.lane.b32.xlu0 %v9903_v39, %s10392_s7 }
 0x8ab   :  { %v1146_v40 = vpop.permute.xlu0 %1145 }
 0x8ac   :  { %v10757_v41 = vmul.f32 %v9901_v33, %v1146_v40 }
 0x8ae   :  { %1150 = vrot.lane.b32.xlu1 %v10757_v41, %s10393_s19 }
 0x920   :  { %v1151_v42 = vpop.permute.xlu1 %1150 }
 0x921   :  { %1154 = vst.msk [vmem:[#allocation3 + $0x4] sm:$0x3] %vm931_vm5, %v1151_v42  ;;  %9266 = vmatmul.mubr.msk.f32.vlgmr.msra.gmra.mrb[10].mxu1 %vm828_vm6, %v1151_v42 }
 0x922   :  { %9775 = vmatpush3.bf16.msra.mxu1 %v10687_v13  ;;  %9279 = vmatprep.mubr.msk.f32.mxu1 %vm10388_vm0, %v10387_v1 }
 0x923   :  { %9779 = vmatprep.subr.bf16.mxu1 %v10389_v14 }
 0x9f4   :  { %v1231_v47 = vpop.f32.mrb[10].mxu1 }
 0x9f5   :  { %v1235_v48 = vadd.f32 %v1231_v47, %v1162_v46  ;;  %v9267_v49 = vpop.f32.mrb[11].mxu1  ;;  %v1493_v46 = vld [vmem:[#allocation2 + $0xc] sm:$0x3]  ;;  %v1494_v47 = vld [vmem:[#allocation2 + $0x2] sm:$0x3] }
 0x9f7   :  { %9904 = vtanh.f32 %v1235_v48  ;;  %v8828_v51 = vmul.f32 -1.442695, %v1235_v48  ;;  %v1495_v48 = vsel %vm10718_vm4, %v1493_v46, %v1494_v47 }
 0x9f9   :  { %9906 = vpow2.f32 %v8828_v51 }
 0xa01   :  { %v9905_v50 = vpop.eup %9904 }
 0xa02   :  { %1245 = vrot.lane.b32.xlu0 %v9905_v50, %s10390_s21 }
 0xa03   :  { %v9907_v52 = vpop.eup %9906 }
 0xa04   :  { %v1239_v53 = vadd.f32 1.0, %v9907_v52 }
 0xa06   :  { %9908 = vrcp.f32 %v1239_v53 }
 0xa10   :  { %v9909_v54 = vpop.eup %9908 }
 0xa11   :  { %v1243_v57 = vmul.f32 %v9909_v54, %v1142_v38 }
 0xa74   :  { %v1246_v55 = vpop.permute.xlu0 %1245 }
 0xa75   :  { %v1248_v56 = vmul.f32 %v9909_v54, %v1246_v55 }
 0xa77   :  { %1250 = vrot.lane.b32.xlu1 %v1248_v56, %s10391_s25 }
 0xae9   :  { %v1251_v58 = vpop.permute.xlu1 %1250 }
 0xaea   :  { %v1253_v59 = vadd.f32 %v1251_v58, %v1243_v57 }
 0xaec   :  { %9910 = vtanh.f32 %v1253_v59 }
 0xaf6   :  { %v9911_v60 = vpop.eup %9910 }
 0xaf7   :  { %1256 = vrot.lane.b32.xlu0 %v9911_v60, %s10392_s7 }
 0xb69   :  { %v1257_v61 = vpop.permute.xlu0 %1256 }
 0xb6a   :  { %v10772_v63 = vmul.f32 %v9909_v54, %v1257_v61 }
 0xb6c   :  { %1261 = vrot.lane.b32.xlu1 %v10772_v63, %s10393_s19 }
 0xbde   :  { %v1262_v0 = vpop.permute.xlu1 %1261 }
 0xbdf   :  { %1265 = vst.msk [vmem:[#allocation3 + $0x6] sm:$0x3] %vm931_vm5, %v1262_v0  ;;  %9273 = vmatmul.mubr.msk.f32.vlgmr.msra.gmra.mrb[12].mxu0 %vm828_vm6, %v1262_v0 }
 0xbe0   :  { %9778 = vmatpush3.bf16.msra.mxu0 %v10687_v13  ;;  %9286 = vmatprep.mubr.msk.f32.mxu0 %vm10388_vm0, %v10387_v1 }
 0xbe1   :  { %9296 = vmatprep.subr.mxu0 %v10387_v1 }
 0xcb2   :  { %v1342_v5 = vpop.f32.mrb[12].mxu0 }
 0xcb3   :  { %v1346_v6 = vadd.f32 %v1342_v5, %v1273_v4  ;;  %v9274_v7 = vpop.f32.mrb[13].mxu0  ;;  %v1714_v4 = vld [vmem:[#allocation12] sm:$0xff] }
 0xcb4   :  { %v1876_v7 = vld [vmem:[#allocation3 + $0x2] sm:$0x3] }
 0xcb5   :  { %9912 = vtanh.f32 %v1346_v6  ;;  %v8830_v9 = vmul.f32 -1.442695, %v1346_v6  ;;  %v1719_v6 = vld [vmem:[#allocation3] sm:$0x3] }
 0xcb7   :  { %9914 = vpow2.f32 %v8830_v9  ;;  %v2176_v9 = vld [vmem:[#allocation3 + $0x6] sm:$0x3] }
 0xcbf   :  { %v9913_v8 = vpop.eup %9912 }
 0xcc0   :  { %1356 = vrot.lane.b32.xlu0 %v9913_v8, %s10390_s21  ;;  %v2026_v8 = vld [vmem:[#allocation3 + $0x4] sm:$0x3] }
 0xcc1   :  { %v9915_v10 = vpop.eup %9914 }
 0xcc2   :  { %v1350_v11 = vadd.f32 1.0, %v9915_v10 }
 0xcc4   :  { %9916 = vrcp.f32 %v1350_v11 }
 0xcce   :  { %v9917_v12 = vpop.eup %9916 }
 0xccf   :  { %v1354_v17 = vmul.f32 %v9917_v12, %v1253_v59 }
 0xd32   :  { %v1357_v15 = vpop.permute.xlu0 %1356 }
 0xd33   :  { %v1359_v16 = vmul.f32 %v9917_v12, %v1357_v15  ;;  %v1604_v15 = vld [vmem:[#allocation2 + $0xe] sm:$0x3] }
 0xd35   :  { %1361 = vrot.lane.b32.xlu1 %v1359_v16, %s10391_s25  ;;  %v1605_v16 = vld [vmem:[#allocation2] sm:$0x3] }
 0xda7   :  { %v1362_v18 = vpop.permute.xlu1 %1361 }
 0xda8   :  { %v1364_v19 = vadd.f32 %v1362_v18, %v1354_v17  ;;  %v1606_v17 = vsel %vm10718_vm4, %v1604_v15, %v1605_v16 }
 0xdaa   :  { %9918 = vtanh.f32 %v1364_v19 }
 0xdb4   :  { %v9919_v20 = vpop.eup %9918 }
 0xdb5   :  { %1367 = vrot.lane.b32.xlu0 %v9919_v20, %s10392_s7 }
 0xe27   :  { %v1368_v22 = vpop.permute.xlu0 %1367 }
 0xe28   :  { %v10787_v23 = vmul.f32 %v9917_v12, %v1368_v22 }
 0xe2a   :  { %1372 = vrot.lane.b32.xlu1 %v10787_v23, %s10393_s19 }
 0xe9c   :  { %v1373_v24 = vpop.permute.xlu1 %1372 }
 0xe9d   :  { %1376 = vst.msk [vmem:[#allocation3 + $0x8] sm:$0x3] %vm931_vm5, %v1373_v24  ;;  %9280 = vmatmul.mubr.msk.f32.vlgmr.msra.gmra.mrb[12].mxu1 %vm828_vm6, %v1373_v24 }
 0xe9e   :  { %9781 = vmatpush3.bf16.msra.mxu1 %v10687_v13  ;;  %9293 = vmatprep.mubr.msk.f32.mxu1 %vm10388_vm0, %v10387_v1 }
 0xe9f   :  { %9301 = vmatprep.subr.mxu1 %v10387_v1 }
 0xea4   :  { %v2326_v10 = vld [vmem:[#allocation3 + $0x8] sm:$0x3] }
 0xf70   :  { %v1453_v28 = vpop.f32.mrb[12].mxu1 }
 0xf71   :  { %v1457_v29 = vadd.f32 %v1453_v28, %v1384_v27  ;;  %v9281_v30 = vpop.f32.mrb[13].mxu1 }
 0xf73   :  { %9920 = vtanh.f32 %v1457_v29  ;;  %v8832_v32 = vmul.f32 -1.442695, %v1457_v29 }
 0xf75   :  { %9922 = vpow2.f32 %v8832_v32 }
 0xf7d   :  { %v9921_v31 = vpop.eup %9920 }
 0xf7e   :  { %1467 = vrot.lane.b32.xlu0 %v9921_v31, %s10390_s21 }
 0xf7f   :  { %v9923_v13 = vpop.eup %9922 }
 0xf80   :  { %v1461_v33 = vadd.f32 1.0, %v9923_v13 }
 0xf82   :  { %9924 = vrcp.f32 %v1461_v33 }
 0xf8c   :  { %v9925_v34 = vpop.eup %9924 }
 0xf8d   :  { %v1465_v37 = vmul.f32 %v9925_v34, %v1364_v19 }
 0xff0   :  { %v1468_v35 = vpop.permute.xlu0 %1467 }
 0xff1   :  { %v1470_v36 = vmul.f32 %v9925_v34, %v1468_v35 }
 0xff3   :  { %1472 = vrot.lane.b32.xlu1 %v1470_v36, %s10391_s25 }
0x1065   :  { %v1473_v38 = vpop.permute.xlu1 %1472 }
0x1066   :  { %v1475_v39 = vadd.f32 %v1473_v38, %v1465_v37 }
0x1068   :  { %9926 = vtanh.f32 %v1475_v39 }
0x1072   :  { %v9927_v40 = vpop.eup %9926 }
0x1073   :  { %1478 = vrot.lane.b32.xlu0 %v9927_v40, %s10392_s7 }
0x10e5   :  { %v1479_v42 = vpop.permute.xlu0 %1478 }
0x10e6   :  { %v10802_v43 = vmul.f32 %v9925_v34, %v1479_v42 }
0x10e8   :  { %1483 = vrot.lane.b32.xlu1 %v10802_v43, %s10393_s19 }
0x115a   :  { %v1484_v44 = vpop.permute.xlu1 %1483 }
0x115b   :  { %1487 = vst.msk [vmem:[#allocation3 + $0xa] sm:$0x3] %vm931_vm5, %v1484_v44  ;;  %9287 = vmatmul.mubr.msk.f32.vlgmr.msra.gmra.mrb[14].mxu0 %vm828_vm6, %v1484_v44 }
0x115c   :  { %9298 = vmatprep.mubr.msk.f32.mxu0 %vm10388_vm0, %v10387_v1 }
0x1162   :  { %v2476_v11 = vld [vmem:[#allocation3 + $0xa] sm:$0x3] }
0x122e   :  { %v1564_v49 = vpop.f32.mrb[14].mxu0 }
0x122f   :  { %v1568_v50 = vadd.f32 %v1564_v49, %v1495_v48  ;;  %v9288_v51 = vpop.f32.mrb[15].mxu0 }
0x1231   :  { %9928 = vtanh.f32 %v1568_v50  ;;  %v8834_v53 = vmul.f32 -1.442695, %v1568_v50  ;;  %v10886_v50 = vld [vmem:[#allocation12 + $0x8] sm:$0xff] }
0x1232   :  { %9297 = vmatpush3.msra.mxu0 %v10886_v50 }
0x1233   :  { %9930 = vpow2.f32 %v8834_v53  ;;  %9306 = vmatprep.subr.mxu0 %v10387_v1 }
0x123b   :  { %v9929_v52 = vpop.eup %9928 }
0x123c   :  { %1578 = vrot.lane.b32.xlu0 %v9929_v52, %s10390_s21 }
0x123d   :  { %v9931_v54 = vpop.eup %9930 }
0x123e   :  { %v1572_v55 = vadd.f32 1.0, %v9931_v54 }
0x1240   :  { %9932 = vrcp.f32 %v1572_v55 }
0x124a   :  { %v9933_v56 = vpop.eup %9932 }
0x124b   :  { %v1576_v59 = vmul.f32 %v9933_v56, %v1475_v39 }
0x12ae   :  { %v1579_v57 = vpop.permute.xlu0 %1578 }
0x12af   :  { %v1581_v58 = vmul.f32 %v9933_v56, %v1579_v57 }
0x12b1   :  { %1583 = vrot.lane.b32.xlu1 %v1581_v58, %s10391_s25 }
0x1323   :  { %v1584_v60 = vpop.permute.xlu1 %1583 }
0x1324   :  { %v10814_v61 = vadd.f32 %v1584_v60, %v1576_v59  ;;  %v1717_v60 = vld [vmem:[#allocation14] sm:$0xff] }
0x1326   :  { %9934 = vtanh.f32 %v10814_v61 }
0x1330   :  { %v9935_v0 = vpop.eup %9934 }
0x1331   :  { %1589 = vrot.lane.b32.xlu0 %v9935_v0, %s10392_s7 }
0x13a3   :  { %v1590_v2 = vpop.permute.xlu0 %1589 }
0x13a4   :  { %v10818_v3 = vmul.f32 %v9933_v56, %v1590_v2 }
0x13a6   :  { %1594 = vrot.lane.b32.xlu1 %v10818_v3, %s10393_s19 }
0x1418   :  { %v1595_v5 = vpop.permute.xlu1 %1594 }
0x1419   :  { %1598 = vst.msk [vmem:[#allocation3 + $0xc] sm:$0x3] %vm931_vm5, %v1595_v5  ;;  %9294 = vmatmul.mubr.msk.f32.vlgmr.msra.gmra.mrb[14].mxu1 %vm828_vm6, %v1595_v5 }
0x141a   :  { %9302 = vmatpush3.msra.mxu1 %v1714_v4  ;;  %9303 = vmatprep.mubr.msk.f32.mxu1 %vm10388_vm0, %v10387_v1 }
0x141b   :  { %9311 = vmatprep.subr.mxu1 %v10387_v1 }
0x141d   :  { %9304 = vmatmul.mubr.msk.f32.vlgmr.msra.gmra.mrb[16].mxu1 %vm1721_vm7, %v1719_v6 }
0x141e   :  { %9312 = vmatpush3.msra.mxu1 %v1714_v4  ;;  %9313 = vmatprep.mubr.msk.f32.mxu1 %vm10388_vm0, %v10387_v1 }
0x141f   :  { %9321 = vmatprep.subr.mxu1 %v10387_v1 }
0x1420   :  { %v2626_v12 = vld [vmem:[#allocation3 + $0xc] sm:$0x3] }
0x1421   :  { %9314 = vmatmul.mubr.msk.f32.vlgmr.msra.gmra.mrb[18].mxu1 %vm1721_vm7, %v1876_v7  ;;  %v8839_v7 = vld [vmem:[#allocation15] ss:$0 sm:$0xff] }
0x1422   :  { %9322 = vmatpush3.msra.mxu1 %v1714_v4  ;;  %9323 = vmatprep.mubr.msk.f32.mxu1 %vm10388_vm0, %v10387_v1 }
0x1423   :  { %9331 = vmatprep.subr.mxu1 %v10387_v1 }
0x1425   :  { %9324 = vmatmul.mubr.msk.f32.vlgmr.msra.gmra.mrb[20].mxu1 %vm1721_vm7, %v2026_v8 }
0x1426   :  { %9332 = vmatpush3.msra.mxu1 %v1714_v4  ;;  %9333 = vmatprep.mubr.msk.f32.mxu1 %vm10388_vm0, %v10387_v1 }
0x1427   :  { %9341 = vmatprep.subr.mxu1 %v10387_v1 }
0x1429   :  { %9334 = vmatmul.mubr.msk.f32.vlgmr.msra.gmra.mrb[22].mxu1 %vm1721_vm7, %v2176_v9 }
0x142a   :  { %9342 = vmatpush3.msra.mxu1 %v1714_v4  ;;  %9343 = vmatprep.mubr.msk.f32.mxu1 %vm10388_vm0, %v10387_v1 }
0x142b   :  { %9351 = vmatprep.subr.mxu1 %v10387_v1 }
0x142d   :  { %9344 = vmatmul.mubr.msk.f32.vlgmr.msra.gmra.mrb[24].mxu1 %vm1721_vm7, %v2326_v10 }
0x142e   :  { %9352 = vmatpush3.msra.mxu1 %v1714_v4  ;;  %9353 = vmatprep.mubr.msk.f32.mxu1 %vm10388_vm0, %v10387_v1 }
0x142f   :  { %9361 = vmatprep.subr.mxu1 %v10387_v1 }
0x1431   :  { %9354 = vmatmul.mubr.msk.f32.vlgmr.msra.gmra.mrb[26].mxu1 %vm1721_vm7, %v2476_v11 }
0x1432   :  { %9362 = vmatpush3.msra.mxu1 %v1714_v4  ;;  %9363 = vmatprep.mubr.msk.f32.mxu1 %vm10388_vm0, %v10387_v1 }
0x1433   :  { %9371 = vmatprep.subr.mxu1 %v10387_v1 }
0x1435   :  { %9364 = vmatmul.mubr.msk.f32.vlgmr.msra.gmra.mrb[28].mxu1 %vm1721_vm7, %v2626_v12 }
0x1436   :  { %9372 = vmatpush3.msra.mxu1 %v1714_v4  ;;  %9373 = vmatprep.mubr.msk.f32.mxu1 %vm10388_vm0, %v10387_v1 }
0x1437   :  { %9785 = vmatprep.subr.bf16.mxu1 %v10389_v14 }
0x14ec   :  { %v1675_v18 = vpop.f32.mrb[14].mxu1 }
0x14ed   :  { %v1679_v19 = vadd.f32 %v1675_v18, %v1606_v17  ;;  %v9295_v20 = vpop.f32.mrb[15].mxu1 }
0x14ef   :  { %9936 = vtanh.f32 %v1679_v19  ;;  %v8836_v37 = vmul.f32 -1.442695, %v1679_v19 }
0x14f0   :  { %v10857_v22 = vpop.f32.mrb[16].mxu1 }
0x14f1   :  { %v9305_v24 = vpop.f32.mrb[17].mxu1  ;;  %9938 = vpow2.f32 %v8836_v37 }
0x14f4   :  { %v10859_v25 = vpop.f32.mrb[18].mxu1 }
0x14f5   :  { %v9315_v26 = vpop.f32.mrb[19].mxu1 }
0x14f8   :  { %v10861_v27 = vpop.f32.mrb[20].mxu1 }
0x14f9   :  { %v9937_v28 = vpop.eup %9936  ;;  %v9325_v29 = vpop.f32.mrb[21].mxu1 }
0x14fa   :  { %1689 = vrot.lane.b32.xlu0 %v9937_v28, %s10390_s21 }
0x14fb   :  { %v9939_v38 = vpop.eup %9938 }
0x14fc   :  { %v10864_v30 = vpop.f32.mrb[22].mxu1  ;;  %v1683_v39 = vadd.f32 1.0, %v9939_v38 }
0x14fd   :  { %v9335_v31 = vpop.f32.mrb[23].mxu1 }
0x14fe   :  { %9940 = vrcp.f32 %v1683_v39 }
0x1500   :  { %v10866_v32 = vpop.f32.mrb[24].mxu1 }
0x1501   :  { %v9345_v13 = vpop.f32.mrb[25].mxu1 }
0x1504   :  { %v10868_v33 = vpop.f32.mrb[26].mxu1 }
0x1505   :  { %v9355_v34 = vpop.f32.mrb[27].mxu1 }
0x1508   :  { %v10870_v35 = vpop.f32.mrb[28].mxu1  ;;  %v9941_v40 = vpop.eup %9940 }
0x1509   :  { %v9365_v36 = vpop.f32.mrb[29].mxu1  ;;  %v1687_v46 = vmul.f32 %v9941_v40, %v10814_v61  ;;  %v1718_v61 = vld [vmem:[#allocation14 + $0x8] sm:$0xff] }
0x156c   :  { %v1690_v42 = vpop.permute.xlu0 %1689 }
0x156d   :  { %v1692_v44 = vmul.f32 %v9941_v40, %v1690_v42 }
0x156f   :  { %1694 = vrot.lane.b32.xlu1 %v1692_v44, %s10391_s25 }
0x15e1   :  { %v1695_v47 = vpop.permute.xlu1 %1694 }
0x15e2   :  { %v10874_v48 = vadd.f32 %v1695_v47, %v1687_v46 }
0x15e4   :  { %9942 = vtanh.f32 %v10874_v48 }
0x15ee   :  { %v9943_v49 = vpop.eup %9942 }
0x15ef   :  { %1700 = vrot.lane.b32.xlu0 %v9943_v49, %s10392_s7 }
0x15f3   :  { %1599 = vrot.lane.b32.xlu0 %v10818_v3, %s10394_s9  ;;  %v10932_v3 = vpack.c.bf16 %v1718_v61, %v1717_v60 }
0x15f7   :  { %1377 = vrot.lane.b32.xlu0 %v10787_v23, %s10394_s9 }
0x15fb   :  { %1155 = vrot.lane.b32.xlu0 %v10757_v41, %s10394_s9 }
0x15ff   :  { %933 = vrot.lane.b32.xlu0 %v10727_v62, %s10394_s9 }
0x1661   :  { %v1701_v51 = vpop.permute.xlu0 %1700 }
0x1662   :  { %v1703_v52 = vmul.f32 %v9941_v40, %v1701_v51 }
0x1664   :  { %1710 = vrot.lane.b32.xlu1 %v1703_v52, %s10394_s9 }
0x1665   :  { %v1600_v53 = vpop.permute.xlu0 %1599 }
0x1666   :  { %1603 = vst.msk [vmem:[#allocation4 + $0x2] sm:$0x3] %vm931_vm5, %v1600_v53 }
0x1668   :  { %1488 = vrot.lane.b32.xlu1 %v10802_v43, %s10394_s9 }
0x1669   :  { %v1378_v41 = vpop.permute.xlu0 %1377 }
0x166a   :  { %1381 = vst.msk [vmem:[#allocation4 + $0x6] sm:$0x3] %vm931_vm5, %v1378_v41 }
0x166c   :  { %1266 = vrot.lane.b32.xlu1 %v10772_v63, %s10394_s9 }
0x166d   :  { %v1156_v62 = vpop.permute.xlu0 %1155  ;;  %v1877_v63 = vld [vmem:[#allocation4 + $0x2] sm:$0x3] }
0x166e   :  { %1159 = vst.msk [vmem:[#allocation4 + $0xa] sm:$0x3] %vm931_vm5, %v1156_v62 }
0x1670   :  { %1044 = vrot.lane.b32.xlu1 %v10742_v21, %s10394_s9 }
0x1671   :  { %v934_v23 = vpop.permute.xlu0 %933  ;;  %v2177_v59 = vld [vmem:[#allocation4 + $0x6] sm:$0x3] }
0x1672   :  { %937 = vst.msk [vmem:[#allocation4 + $0xe] sm:$0x3] %vm931_vm5, %v934_v23 }
0x1674   :  { %1705 = vrot.lane.b32.xlu1 %v1703_v52, %s10393_s19 }
0x1675   :  { %v2477_v4 = vld [vmem:[#allocation4 + $0xa] sm:$0x3] }
0x1679   :  { %v2777_v6 = vld [vmem:[#allocation4 + $0xe] sm:$0x3] }
0x16d6   :  { %v1711_v54 = vpop.permute.xlu1 %1710 }
0x16d7   :  { %1713 = vst.msk [vmem:[#allocation4] sm:$0x3] %vm931_vm5, %v1711_v54 }
0x16da   :  { %v1489_v43 = vpop.permute.xlu1 %1488 }
0x16db   :  { %1492 = vst.msk [vmem:[#allocation4 + $0x4] sm:$0x3] %vm931_vm5, %v1489_v43 }
0x16de   :  { %v1267_v55 = vpop.permute.xlu1 %1266  ;;  %v1720_v56 = vld [vmem:[#allocation4] sm:$0x3] }
0x16df   :  { %1270 = vst.msk [vmem:[#allocation4 + $0x8] sm:$0x3] %vm931_vm5, %v1267_v55  ;;  %9299 = vmatmul.mubr.msk.f32.vlgmr.msra.gmra.mrb[16].mxu0 %vm1721_vm7, %v1720_v56 }
0x16e0   :  { %9307 = vmatpush3.msra.mxu0 %v10886_v50  ;;  %9308 = vmatprep.mubr.msk.f32.mxu0 %vm10388_vm0, %v10387_v1 }
0x16e1   :  { %9316 = vmatprep.subr.mxu0 %v10387_v1 }
0x16e2   :  { %v1045_v21 = vpop.permute.xlu1 %1044  ;;  %v2027_v58 = vld [vmem:[#allocation4 + $0x4] sm:$0x3] }
0x16e3   :  { %1048 = vst.msk [vmem:[#allocation4 + $0xc] sm:$0x3] %vm931_vm5, %v1045_v21  ;;  %9309 = vmatmul.mubr.msk.f32.vlgmr.msra.gmra.mrb[18].mxu0 %vm1721_vm7, %v1877_v63 }
0x16e4   :  { %9317 = vmatpush3.msra.mxu0 %v10886_v50  ;;  %9318 = vmatprep.mubr.msk.f32.mxu0 %vm10388_vm0, %v10387_v1 }
0x16e5   :  { %9326 = vmatprep.subr.mxu0 %v10387_v1 }
0x16e6   :  { %v10916_v57 = vpop.permute.xlu1 %1705  ;;  %v2327_v0 = vld [vmem:[#allocation4 + $0x8] sm:$0x3] }
0x16e7   :  { %1709 = vst.msk [vmem:[#allocation3 + $0xe] sm:$0x3] %vm931_vm5, %v10916_v57  ;;  %9319 = vmatmul.mubr.msk.f32.vlgmr.msra.gmra.mrb[20].mxu0 %vm1721_vm7, %v2027_v58 }
0x16e8   :  { %9327 = vmatpush3.msra.mxu0 %v10886_v50  ;;  %9328 = vmatprep.mubr.msk.f32.mxu0 %vm10388_vm0, %v10387_v1 }
0x16e9   :  { %9336 = vmatprep.subr.mxu0 %v10387_v1 }
0x16ea   :  { %v2627_v5 = vld [vmem:[#allocation4 + $0xc] sm:$0x3] }
0x16eb   :  { %9329 = vmatmul.mubr.msk.f32.vlgmr.msra.gmra.mrb[22].mxu0 %vm1721_vm7, %v2177_v59 }
0x16ec   :  { %9337 = vmatpush3.msra.mxu0 %v10886_v50  ;;  %9338 = vmatprep.mubr.msk.f32.mxu0 %vm10388_vm0, %v10387_v1 }
0x16ed   :  { %9346 = vmatprep.subr.mxu0 %v10387_v1 }
0x16ee   :  { %v2776_v2 = vld [vmem:[#allocation3 + $0xe] sm:$0x3] }
0x16ef   :  { %9339 = vmatmul.mubr.msk.f32.vlgmr.msra.gmra.mrb[24].mxu0 %vm1721_vm7, %v2327_v0  ;;  %9374 = vmatmul.mubr.msk.f32.vlgmr.msra.gmra.mrb[30].mxu1 %vm1721_vm7, %v2776_v2 }
0x16f0   :  { %9347 = vmatpush3.msra.mxu0 %v10886_v50  ;;  %9348 = vmatprep.mubr.msk.f32.mxu0 %vm10388_vm0, %v10387_v1 }
0x16f1   :  { %9356 = vmatprep.subr.mxu0 %v10387_v1  ;;  %9787 = vmatpush3.bf16.msra.mxu1 %v10932_v3 }
0x16f2   :  { %9387 = vmatprep.mubr.msk.f32.mxu1 %vm10388_vm0, %v10387_v1  ;;  %9791 = vmatprep.subr.bf16.mxu1 %v10389_v14 }
0x16f3   :  { %9349 = vmatmul.mubr.msk.f32.vlgmr.msra.gmra.mrb[26].mxu0 %vm1721_vm7, %v2477_v4 }
0x16f4   :  { %9357 = vmatpush3.msra.mxu0 %v10886_v50  ;;  %9358 = vmatprep.mubr.msk.f32.mxu0 %vm10388_vm0, %v10387_v1 }
0x16f5   :  { %9366 = vmatprep.subr.mxu0 %v10387_v1 }
0x16f7   :  { %9359 = vmatmul.mubr.msk.f32.vlgmr.msra.gmra.mrb[28].mxu0 %vm1721_vm7, %v2627_v5 }
0x16f8   :  { %9367 = vmatpush3.msra.mxu0 %v10886_v50  ;;  %9368 = vmatprep.mubr.msk.f32.mxu0 %vm10388_vm0, %v10387_v1 }
0x16f9   :  { %9782 = vmatprep.subr.bf16.mxu0 %v10389_v14 }
0x16fb   :  { %9369 = vmatmul.mubr.msk.f32.vlgmr.msra.gmra.mrb[30].mxu0 %vm1721_vm7, %v2777_v6 }
0x16fc   :  { %9784 = vmatpush3.bf16.msra.mxu0 %v10932_v3  ;;  %9380 = vmatprep.mubr.msk.f32.mxu0 %vm10388_vm0, %v10387_v1 }
0x16fd   :  { %9788 = vmatprep.subr.bf16.mxu0 %v10389_v14 }
0x16ff   :  { %9381 = vmatmul.mubr.f32.vlgmr.msra.gmra.mrb[32].mxu0 %v10387_v1 }
0x1700   :  { %9790 = vmatpush3.bf16.msra.mxu0 %v10932_v3  ;;  %9394 = vmatprep.mubr.msk.f32.mxu0 %vm10388_vm0, %v10387_v1 }
0x1701   :  { %9794 = vmatprep.subr.bf16.mxu0 %v10389_v14 }
0x17b2   :  { %v1791_v8 = vpop.f32.mrb[16].mxu0 }
0x17b3   :  { %v1865_v9 = vadd.f32 %v10857_v22, %v1791_v8  ;;  %v9300_v10 = vpop.f32.mrb[17].mxu0 }
0x17b5   :  { %v1874_v11 = vadd.f32 %v8839_v7, %v1865_v9 }
0x17b6   :  { %v1947_v12 = vpop.f32.mrb[18].mxu0 }
0x17b7   :  { %1875 = vst.msk [vmem:[#allocation2] sm:$0x3] %vm284_vm3, %v1874_v11  ;;  %v2021_v15 = vadd.f32 %v10859_v25, %v1947_v12  ;;  %v9310_v16 = vpop.f32.mrb[19].mxu0 }
0x17b9   :  { %v2024_v17 = vadd.f32 %v8839_v7, %v2021_v15 }
0x17ba   :  { %v2097_v18 = vpop.f32.mrb[20].mxu0 }
0x17bb   :  { %2025 = vst.msk [vmem:[#allocation2 + $0x2] sm:$0x3] %vm284_vm3, %v2024_v17  ;;  %v2171_v19 = vadd.f32 %v10861_v27, %v2097_v18  ;;  %v9320_v20 = vpop.f32.mrb[21].mxu0 }
0x17bd   :  { %v2174_v24 = vadd.f32 %v8839_v7, %v2171_v19 }
0x17be   :  { %v2247_v26 = vpop.f32.mrb[22].mxu0 }
0x17bf   :  { %2175 = vst.msk [vmem:[#allocation2 + $0x4] sm:$0x3] %vm284_vm3, %v2174_v24  ;;  %v2321_v22 = vadd.f32 %v10864_v30, %v2247_v26  ;;  %v9330_v28 = vpop.f32.mrb[23].mxu0 }
0x17c1   :  { %v2324_v29 = vadd.f32 %v8839_v7, %v2321_v22 }
0x17c2   :  { %v2397_v31 = vpop.f32.mrb[24].mxu0  ;;  %v2920_v13 = vpop.f32.mrb[30].mxu1  ;;  %v3033_v5 = vld [vmem:[#allocation2 + $0x2] sm:$0x3] }
0x17c3   :  { %2325 = vst.msk [vmem:[#allocation2 + $0x6] sm:$0x3] %vm284_vm3, %v2324_v29  ;;  %v2471_v25 = vadd.f32 %v10866_v32, %v2397_v31  ;;  %v9340_v34 = vpop.f32.mrb[25].mxu0  ;;  %v9375_v36 = vpop.f32.mrb[31].mxu1 }
0x17c5   :  { %v2474_v37 = vadd.f32 %v8839_v7, %v2471_v25 }
0x17c6   :  { %v2547_v38 = vpop.f32.mrb[26].mxu0 }
0x17c7   :  { %2475 = vst.msk [vmem:[#allocation2 + $0x8] sm:$0x3] %vm284_vm3, %v2474_v37  ;;  %v2621_v27 = vadd.f32 %v10868_v33, %v2547_v38  ;;  %v9350_v39 = vpop.f32.mrb[27].mxu0  ;;  %v2926_v33 = vld [vmem:[#allocation2] sm:$0x3] }
0x17c9   :  { %v2624_v40 = vadd.f32 %v8839_v7, %v2621_v27 }
0x17ca   :  { %v2697_v42 = vpop.f32.mrb[28].mxu0 }
0x17cb   :  { %2625 = vst.msk [vmem:[#allocation2 + $0xa] sm:$0x3] %vm284_vm3, %v2624_v40  ;;  %v2771_v30 = vadd.f32 %v10870_v35, %v2697_v42  ;;  %v9360_v44 = vpop.f32.mrb[29].mxu0 }
0x17cd   :  { %v2774_v46 = vadd.f32 %v8839_v7, %v2771_v30 }
0x17ce   :  { %v2847_v47 = vpop.f32.mrb[30].mxu0 }
0x17cf   :  { %2775 = vst.msk [vmem:[#allocation2 + $0xc] sm:$0x3] %vm284_vm3, %v2774_v46  ;;  %v2921_v32 = vadd.f32 %v2920_v13, %v2847_v47  ;;  %v9370_v49 = vpop.f32.mrb[31].mxu0  ;;  %v3142_v13 = vld [vmem:[#allocation2 + $0x4] sm:$0x3] }
0x17d1   :  { %v2924_v50 = vadd.f32 %v8839_v7, %v2921_v32 }
0x17d2   :  { %v2995_v51 = vpop.f32.mrb[32].mxu0  ;;  %v3143_v31 = vld [vmem:[#allocation2 + $0xa] sm:$0x3] }
0x17d3   :  { %2925 = vst.msk [vmem:[#allocation2 + $0xe] sm:$0x3] %vm284_vm3, %v2924_v50  ;;  %v9382_v52 = vpop.f32.mrb[33].mxu0  ;;  %v3144_v25 = vsel %vm10718_vm4, %v3142_v13, %v3143_v31 }
0x17d6   :  { %v3034_v4 = vld [vmem:[#allocation2 + $0xc] sm:$0x3] }
0x17d7   :  { %v3035_v6 = vsel %vm10718_vm4, %v3033_v5, %v3034_v4 }
0x17da   :  { %v2927_v53 = vld [vmem:[#allocation2 + $0xe] sm:$0x3] }
0x17db   :  { %v2928_v41 = vsel %vm10718_vm4, %v2926_v33, %v2927_v53  ;;  %v3252_v33 = vld [vmem:[#allocation2 + $0x8] sm:$0x3]  ;;  %v3251_v53 = vld [vmem:[#allocation2 + $0x6] sm:$0x3] }
0x17dc   :  { %v2999_v62 = vadd.f32 %v2995_v51, %v2928_v41  ;;  %v3253_v41 = vsel %vm10718_vm4, %v3251_v53, %v3252_v33 }
0x17de   :  { %9944 = vtanh.f32 %v2999_v62  ;;  %v8854_v23 = vmul.f32 -1.442695, %v2999_v62 }
0x17e0   :  { %9946 = vpow2.f32 %v8854_v23 }
0x17e8   :  { %v9945_v35 = vpop.eup %9944 }
0x17e9   :  { %3009 = vrot.lane.b32.xlu0 %v9945_v35, %s10390_s21 }
0x17ea   :  { %v9947_v54 = vpop.eup %9946 }
0x17eb   :  { %v3003_v43 = vadd.f32 1.0, %v9947_v54 }
0x17ed   :  { %9948 = vrcp.f32 %v3003_v43 }
0x17f7   :  { %v9949_v55 = vpop.eup %9948 }
0x17f8   :  { %v3007_v63 = vmul.f32 0.0, %v9949_v55 }
0x185b   :  { %v3010_v56 = vpop.permute.xlu0 %3009 }
0x185c   :  { %v3012_v21 = vmul.f32 %v9949_v55, %v3010_v56 }
0x185e   :  { %3014 = vrot.lane.b32.xlu1 %v3012_v21, %s10391_s25 }
0x18d0   :  { %v3015_v58 = vpop.permute.xlu1 %3014 }
0x18d1   :  { %v3017_v59 = vadd.f32 %v3015_v58, %v3007_v63 }
0x18d3   :  { %9950 = vtanh.f32 %v3017_v59 }
0x18dd   :  { %v9951_v60 = vpop.eup %9950 }
0x18de   :  { %3020 = vrot.lane.b32.xlu0 %v9951_v60, %s10392_s7 }
0x1950   :  { %v3021_v61 = vpop.permute.xlu0 %3020 }
0x1951   :  { %v10982_v0 = vmul.f32 %v9949_v55, %v3021_v61 }
0x1953   :  { %3025 = vrot.lane.b32.xlu1 %v10982_v0, %s10393_s19 }
0x19c5   :  { %v3026_v2 = vpop.permute.xlu1 %3025 }
0x19c6   :  { %3028 = vst.msk [vmem:[#allocation3] sm:$0x3] %vm931_vm5, %v3026_v2  ;;  %9388 = vmatmul.mubr.msk.f32.vlgmr.msra.gmra.mrb[32].mxu1 %vm828_vm6, %v3026_v2 }
0x19c7   :  { %9793 = vmatpush3.bf16.msra.mxu1 %v10932_v3  ;;  %9401 = vmatprep.mubr.msk.f32.mxu1 %vm10388_vm0, %v10387_v1 }
0x19c8   :  { %9797 = vmatprep.subr.bf16.mxu1 %v10389_v14 }
0x1a99   :  { %v3104_v7 = vpop.f32.mrb[32].mxu1 }
0x1a9a   :  { %v3108_v8 = vadd.f32 %v3104_v7, %v3035_v6  ;;  %v9389_v9 = vpop.f32.mrb[33].mxu1  ;;  %v3360_v7 = vld [vmem:[#allocation2 + $0x8] sm:$0x3] }
0x1a9c   :  { %9952 = vtanh.f32 %v3108_v8  ;;  %v8856_v11 = vmul.f32 -1.442695, %v3108_v8  ;;  %v3361_v8 = vld [vmem:[#allocation2 + $0x6] sm:$0x3] }
0x1a9d   :  { %v3362_v9 = vsel %vm10718_vm4, %v3360_v7, %v3361_v8  ;;  %v11118_v8 = vld [vmem:[#allocation2] sm:$0x3] }
0x1a9e   :  { %9954 = vpow2.f32 %v8856_v11 }
0x1aa6   :  { %v9953_v10 = vpop.eup %9952 }
0x1aa7   :  { %3118 = vrot.lane.b32.xlu0 %v9953_v10, %s10390_s21 }
0x1aa8   :  { %v9955_v12 = vpop.eup %9954 }
0x1aa9   :  { %v3112_v15 = vadd.f32 1.0, %v9955_v12 }
0x1aab   :  { %9956 = vrcp.f32 %v3112_v15 }
0x1ab5   :  { %v9957_v16 = vpop.eup %9956 }
0x1ab6   :  { %v3116_v19 = vmul.f32 %v9957_v16, %v3017_v59 }
0x1b19   :  { %v3119_v17 = vpop.permute.xlu0 %3118 }
0x1b1a   :  { %v3121_v18 = vmul.f32 %v9957_v16, %v3119_v17 }
0x1b1c   :  { %3123 = vrot.lane.b32.xlu1 %v3121_v18, %s10391_s25 }
0x1b8e   :  { %v3124_v20 = vpop.permute.xlu1 %3123 }
0x1b8f   :  { %v3126_v24 = vadd.f32 %v3124_v20, %v3116_v19 }
0x1b91   :  { %9958 = vtanh.f32 %v3126_v24 }
0x1b9b   :  { %v9959_v26 = vpop.eup %9958 }
0x1b9c   :  { %3129 = vrot.lane.b32.xlu0 %v9959_v26, %s10392_s7 }
0x1c0e   :  { %v3130_v22 = vpop.permute.xlu0 %3129 }
0x1c0f   :  { %v10997_v28 = vmul.f32 %v9957_v16, %v3130_v22 }
0x1c11   :  { %3134 = vrot.lane.b32.xlu1 %v10997_v28, %s10393_s19 }
0x1c83   :  { %v3135_v29 = vpop.permute.xlu1 %3134 }
0x1c84   :  { %3137 = vst.msk [vmem:[#allocation3 + $0x2] sm:$0x3] %vm931_vm5, %v3135_v29  ;;  %9395 = vmatmul.mubr.msk.f32.vlgmr.msra.gmra.mrb[34].mxu0 %vm828_vm6, %v3135_v29 }
0x1c85   :  { %9796 = vmatpush3.bf16.msra.mxu0 %v10932_v3  ;;  %9408 = vmatprep.mubr.msk.f32.mxu0 %vm10388_vm0, %v10387_v1 }
0x1c86   :  { %9800 = vmatprep.subr.bf16.mxu0 %v10389_v14 }
0x1d57   :  { %v3213_v34 = vpop.f32.mrb[34].mxu0 }
0x1d58   :  { %v3217_v36 = vadd.f32 %v3213_v34, %v3144_v25  ;;  %v9396_v37 = vpop.f32.mrb[35].mxu0 }
0x1d59   :  { %v3470_v37 = vld [vmem:[#allocation2 + $0x4] sm:$0x3] }
0x1d5a   :  { %9960 = vtanh.f32 %v3217_v36  ;;  %v8858_v27 = vmul.f32 -1.442695, %v3217_v36  ;;  %v3469_v36 = vld [vmem:[#allocation2 + $0xa] sm:$0x3] }
0x1d5c   :  { %9962 = vpow2.f32 %v8858_v27 }
0x1d64   :  { %v9961_v38 = vpop.eup %9960 }
0x1d65   :  { %3227 = vrot.lane.b32.xlu0 %v9961_v38, %s10390_s21  ;;  %v3471_v38 = vsel %vm10718_vm4, %v3469_v36, %v3470_v37 }
0x1d66   :  { %v9963_v39 = vpop.eup %9962 }
0x1d67   :  { %v3221_v40 = vadd.f32 1.0, %v9963_v39 }
0x1d69   :  { %9964 = vrcp.f32 %v3221_v40 }
0x1d73   :  { %v9965_v42 = vpop.eup %9964 }
0x1d74   :  { %v3225_v46 = vmul.f32 %v9965_v42, %v3126_v24 }
0x1dd7   :  { %v3228_v30 = vpop.permute.xlu0 %3227 }
0x1dd8   :  { %v3230_v44 = vmul.f32 %v9965_v42, %v3228_v30 }
0x1dda   :  { %3232 = vrot.lane.b32.xlu1 %v3230_v44, %s10391_s25 }
0x1e4c   :  { %v3233_v47 = vpop.permute.xlu1 %3232 }
0x1e4d   :  { %v3235_v32 = vadd.f32 %v3233_v47, %v3225_v46 }
0x1e4f   :  { %9966 = vtanh.f32 %v3235_v32 }
0x1e59   :  { %v9967_v49 = vpop.eup %9966 }
0x1e5a   :  { %3238 = vrot.lane.b32.xlu0 %v9967_v49, %s10392_s7 }
0x1ecc   :  { %v3239_v50 = vpop.permute.xlu0 %3238 }
0x1ecd   :  { %v11012_v51 = vmul.f32 %v9965_v42, %v3239_v50 }
0x1ecf   :  { %3243 = vrot.lane.b32.xlu1 %v11012_v51, %s10393_s19 }
0x1f41   :  { %v3244_v52 = vpop.permute.xlu1 %3243 }
0x1f42   :  { %3246 = vst.msk [vmem:[#allocation3 + $0x4] sm:$0x3] %vm931_vm5, %v3244_v52  ;;  %9402 = vmatmul.mubr.msk.f32.vlgmr.msra.gmra.mrb[34].mxu1 %vm828_vm6, %v3244_v52 }
0x1f43   :  { %9799 = vmatpush3.bf16.msra.mxu1 %v10932_v3  ;;  %9415 = vmatprep.mubr.msk.f32.mxu1 %vm10388_vm0, %v10387_v1 }
0x1f44   :  { %9803 = vmatprep.subr.bf16.mxu1 %v10389_v14 }
0x2015   :  { %v3322_v62 = vpop.f32.mrb[34].mxu1 }
0x2016   :  { %v3326_v35 = vadd.f32 %v3322_v62, %v3253_v41  ;;  %v9403_v23 = vpop.f32.mrb[35].mxu1  ;;  %v11064_v62 = vld [vmem:[#allocation17] sm:$0xf] }
0x2017   :  { %v8874_v23 = vld [vmem:[%s11872_s8 + $0xc] sm:$0x3] }
0x2018   :  { %9968 = vtanh.f32 %v3326_v35  ;;  %v8860_v43 = vmul.f32 -1.442695, %v3326_v35 }
0x201a   :  { %9970 = vpow2.f32 %v8860_v43  ;;  %v3807_v43 = vld [vmem:[#allocation18] sm:$0xff] }
0x2022   :  { %v9969_v54 = vpop.eup %9968 }
0x2023   :  { %3336 = vrot.lane.b32.xlu0 %v9969_v54, %s10390_s21  ;;  %v8880_v54 = vld [vmem:[%s11872_s8 + $0x8] sm:$0x3] }
0x2024   :  { %v9971_v55 = vpop.eup %9970 }
0x2025   :  { %v3330_v56 = vadd.f32 1.0, %v9971_v55  ;;  %v3808_v55 = vld [vmem:[#allocation18 + $0x8] sm:$0xff] }
0x2027   :  { %9972 = vrcp.f32 %v3330_v56  ;;  %v8886_v56 = vld [vmem:[%s11872_s8 + $0x4] sm:$0x3] }
0x2031   :  { %v9973_v21 = vpop.eup %9972 }
0x2032   :  { %v3334_v59 = vmul.f32 %v9973_v21, %v3235_v32 }
0x2095   :  { %v3337_v63 = vpop.permute.xlu0 %3336 }
0x2096   :  { %v3339_v58 = vmul.f32 %v9973_v21, %v3337_v63  ;;  %v3578_v63 = vld [vmem:[#allocation2 + $0xc] sm:$0x3] }
0x2098   :  { %3341 = vrot.lane.b32.xlu1 %v3339_v58, %s10391_s25  ;;  %v3579_v58 = vld [vmem:[#allocation2 + $0x2] sm:$0x3] }
0x210a   :  { %v3342_v60 = vpop.permute.xlu1 %3341 }
0x210b   :  { %v3344_v61 = vadd.f32 %v3342_v60, %v3334_v59  ;;  %v3580_v59 = vsel %vm10718_vm4, %v3578_v63, %v3579_v58  ;;  %v11191_v58 = vld [vmem:[#allocation2 + $0xe] sm:$0x3] }
0x210d   :  { %9974 = vtanh.f32 %v3344_v61 }
0x2117   :  { %v9975_v2 = vpop.eup %9974 }
0x2118   :  { %3347 = vrot.lane.b32.xlu0 %v9975_v2, %s10392_s7 }
0x218a   :  { %v3348_v4 = vpop.permute.xlu0 %3347 }
0x218b   :  { %v11027_v5 = vmul.f32 %v9973_v21, %v3348_v4  ;;  %v11099_v21 = vpack.c.bf16 %v3808_v55, %v3807_v43  ;;  %v11115_v4 = vld [vmem:[#allocation20] ss:$0 sm:$0xff] }
0x218d   :  { %3352 = vrot.lane.b32.xlu1 %v11027_v5, %s10393_s19 }
0x21ff   :  { %v3353_v6 = vpop.permute.xlu1 %3352 }
0x2200   :  { %3355 = vst.msk [vmem:[#allocation3 + $0x6] sm:$0x3] %vm931_vm5, %v3353_v6  ;;  %9409 = vmatmul.mubr.msk.f32.vlgmr.msra.gmra.mrb[36].mxu0 %vm828_vm6, %v3353_v6 }
0x2201   :  { %9802 = vmatpush3.bf16.msra.mxu0 %v10932_v3  ;;  %9422 = vmatprep.mubr.msk.f32.mxu0 %vm10388_vm0, %v10387_v1 }
0x2202   :  { %9432 = vmatprep.subr.mxu0 %v10387_v1 }
0x22d3   :  { %v3431_v10 = vpop.f32.mrb[36].mxu0 }
0x22d4   :  { %v3435_v11 = vadd.f32 %v3431_v10, %v3362_v9  ;;  %v9410_v12 = vpop.f32.mrb[37].mxu0 }
0x22d6   :  { %9976 = vtanh.f32 %v3435_v11  ;;  %v8862_v16 = vmul.f32 -1.442695, %v3435_v11 }
0x22d8   :  { %9978 = vpow2.f32 %v8862_v16 }
0x22e0   :  { %v9977_v15 = vpop.eup %9976 }
0x22e1   :  { %3445 = vrot.lane.b32.xlu0 %v9977_v15, %s10390_s21 }
0x22e2   :  { %v9979_v17 = vpop.eup %9978 }
0x22e3   :  { %v3439_v18 = vadd.f32 1.0, %v9979_v17 }
0x22e5   :  { %9980 = vrcp.f32 %v3439_v18 }
0x22ef   :  { %v9981_v19 = vpop.eup %9980 }
0x22f0   :  { %v3443_v26 = vmul.f32 %v9981_v19, %v3344_v61 }
0x2353   :  { %v3446_v20 = vpop.permute.xlu0 %3445 }
0x2354   :  { %v3448_v24 = vmul.f32 %v9981_v19, %v3446_v20 }
0x2356   :  { %3450 = vrot.lane.b32.xlu1 %v3448_v24, %s10391_s25 }
0x23c8   :  { %v3451_v22 = vpop.permute.xlu1 %3450 }
0x23c9   :  { %v3453_v29 = vadd.f32 %v3451_v22, %v3443_v26 }
0x23cb   :  { %9982 = vtanh.f32 %v3453_v29 }
0x23d5   :  { %v9983_v31 = vpop.eup %9982 }
0x23d6   :  { %3456 = vrot.lane.b32.xlu0 %v9983_v31, %s10392_s7 }
0x2448   :  { %v3457_v13 = vpop.permute.xlu0 %3456 }
0x2449   :  { %v11042_v25 = vmul.f32 %v9981_v19, %v3457_v13 }
0x244b   :  { %3461 = vrot.lane.b32.xlu1 %v11042_v25, %s10393_s19 }
0x24bd   :  { %v3462_v34 = vpop.permute.xlu1 %3461 }
0x24be   :  { %3464 = vst.msk [vmem:[#allocation3 + $0x8] sm:$0x3] %vm931_vm5, %v3462_v34  ;;  %9416 = vmatmul.mubr.msk.f32.vlgmr.msra.gmra.mrb[36].mxu1 %vm828_vm6, %v3462_v34 }
0x24bf   :  { %9805 = vmatpush3.bf16.msra.mxu1 %v10932_v3  ;;  %9429 = vmatprep.mubr.msk.f32.mxu1 %vm10388_vm0, %v10387_v1 }
0x24c0   :  { %9437 = vmatprep.subr.mxu1 %v10387_v1 }
0x2591   :  { %v3540_v27 = vpop.f32.mrb[36].mxu1 }
0x2592   :  { %v3544_v39 = vadd.f32 %v3540_v27, %v3471_v38  ;;  %v9417_v40 = vpop.f32.mrb[37].mxu1 }
0x2594   :  { %9984 = vtanh.f32 %v3544_v39  ;;  %v8864_v30 = vmul.f32 -1.442695, %v3544_v39 }
0x2596   :  { %9986 = vpow2.f32 %v8864_v30 }
0x259e   :  { %v9985_v42 = vpop.eup %9984 }
0x259f   :  { %3554 = vrot.lane.b32.xlu0 %v9985_v42, %s10390_s21 }
0x25a0   :  { %v9987_v3 = vpop.eup %9986 }
0x25a1   :  { %v3548_v44 = vadd.f32 1.0, %v9987_v3  ;;  %v8871_v3 = vld [vmem:[%s11872_s8 + $0xe] sm:$0x3] }
0x25a3   :  { %9988 = vrcp.f32 %v3548_v44  ;;  %v8877_v44 = vld [vmem:[%s11872_s8 + $0xa] sm:$0x3] }
0x25ad   :  { %v9989_v46 = vpop.eup %9988 }
0x25ae   :  { %v3552_v49 = vmul.f32 %v9989_v46, %v3453_v29 }
0x2611   :  { %v3555_v47 = vpop.permute.xlu0 %3554 }
0x2612   :  { %v3557_v32 = vmul.f32 %v9989_v46, %v3555_v47  ;;  %v8889_v47 = vld [vmem:[%s11872_s8 + $0x2] sm:$0x3] }
0x2614   :  { %3559 = vrot.lane.b32.xlu1 %v3557_v32, %s10391_s25 }
0x2686   :  { %v3560_v50 = vpop.permute.xlu1 %3559 }
0x2687   :  { %v11056_v52 = vadd.f32 %v3560_v50, %v3552_v49 }
0x2689   :  { %9990 = vtanh.f32 %v11056_v52 }
0x2693   :  { %v9991_v33 = vpop.eup %9990 }
0x2694   :  { %3565 = vrot.lane.b32.xlu0 %v9991_v33, %s10392_s7 }
0x2706   :  { %v3566_v53 = vpop.permute.xlu0 %3565 }
0x2707   :  { %v11060_v41 = vmul.f32 %v9989_v46, %v3566_v53  ;;  %v8883_v46 = vld [vmem:[%s11872_s8 + $0x6] sm:$0x3] }
0x2709   :  { %3570 = vrot.lane.b32.xlu1 %v11060_v41, %s10393_s19 }
0x277b   :  { %v3571_v35 = vpop.permute.xlu1 %3570 }
0x277c   :  { %3573 = vst.msk [vmem:[#allocation3 + $0xa] sm:$0x3] %vm931_vm5, %v3571_v35  ;;  %9423 = vmatmul.mubr.msk.f32.vlgmr.msra.gmra.mrb[38].mxu0 %vm828_vm6, %v3571_v35 }
0x277d   :  { %9433 = vmatpush3.msk.msra.mxu0 %vm210_vm1, %v11064_v62  ;;  %9434 = vmatprep.mubr.msk.f32.mxu0 %vm10388_vm0, %v10387_v1 }
0x277e   :  { %9442 = vmatprep.subr.mxu0 %v10387_v1 }
0x2780   :  { %9435 = vmatmul.mubr.f32.vlgmr.msra.gmra.mrb[40].mxu0 %v10387_v1 }
0x2781   :  { %9443 = vmatpush3.msk.msra.mxu0 %vm210_vm1, %v11064_v62  ;;  %9444 = vmatprep.mubr.msk.f32.mxu0 %vm10388_vm0, %v10387_v1 }
0x2782   :  { %9452 = vmatprep.subr.mxu0 %v10387_v1 }
0x2784   :  { %9445 = vmatmul.mubr.msk.f32.vlgmr.msra.gmra.mrb[42].mxu0 %vm206_vm2, %v8874_v23 }
0x2785   :  { %9453 = vmatpush3.msk.msra.mxu0 %vm210_vm1, %v11064_v62  ;;  %9454 = vmatprep.mubr.msk.f32.mxu0 %vm10388_vm0, %v10387_v1 }
0x2786   :  { %9462 = vmatprep.subr.mxu0 %v10387_v1 }
0x2788   :  { %9455 = vmatmul.mubr.msk.f32.vlgmr.msra.gmra.mrb[44].mxu0 %vm206_vm2, %v8880_v54 }
0x2789   :  { %9463 = vmatpush3.msk.msra.mxu0 %vm210_vm1, %v11064_v62  ;;  %9464 = vmatprep.mubr.msk.f32.mxu0 %vm10388_vm0, %v10387_v1 }
0x278a   :  { %9806 = vmatprep.subr.bf16.mxu0 %v10389_v14 }
0x278c   :  { %9465 = vmatmul.mubr.msk.f32.vlgmr.msra.gmra.mrb[46].mxu0 %vm206_vm2, %v8886_v56 }
0x278d   :  { %9808 = vmatpush3.bf16.msra.mxu0 %v11099_v21  ;;  %9476 = vmatprep.mubr.msk.f32.mxu0 %vm10388_vm0, %v10387_v1 }
0x278e   :  { %9812 = vmatprep.subr.bf16.mxu0 %v10389_v14 }
0x2790   :  { %9477 = vmatmul.mubr.msk.f32.vlgmr.msra.gmra.mrb[48].mxu0 %vm828_vm6, %v10916_v57 }
0x2791   :  { %9814 = vmatpush3.bf16.msra.mxu0 %v11099_v21  ;;  %9490 = vmatprep.mubr.msk.f32.mxu0 %vm10388_vm0, %v10387_v1 }
0x2792   :  { %9818 = vmatprep.subr.bf16.mxu0 %v10389_v14 }
0x284f   :  { %v3649_v60 = vpop.f32.mrb[38].mxu0 }
0x2850   :  { %v3653_v61 = vadd.f32 %v3649_v60, %v3580_v59  ;;  %v9424_v2 = vpop.f32.mrb[39].mxu0 }
0x2852   :  { %9992 = vtanh.f32 %v3653_v61  ;;  %v8866_v22 = vmul.f32 -1.442695, %v3653_v61 }
0x2853   :  { %v3886_v6 = vpop.f32.mrb[40].mxu0 }
0x2854   :  { %v3887_v57 = vadd.f32 %v11115_v4, %v3886_v6  ;;  %v9436_v7 = vpop.f32.mrb[41].mxu0  ;;  %9994 = vpow2.f32 %v8866_v22 }
0x2856   :  { %3890 = vst.msk [vmem:[#allocation2] sm:$0x3] %vm284_vm3, %v3887_v57 }
0x2857   :  { %v4036_v9 = vpop.f32.mrb[42].mxu0 }
0x2858   :  { %v4037_v10 = vadd.f32 %v11115_v4, %v4036_v9  ;;  %v9446_v11 = vpop.f32.mrb[43].mxu0 }
0x285a   :  { %4040 = vst.msk [vmem:[#allocation2 + $0x4] sm:$0x3] %vm284_vm3, %v4037_v10 }
0x285b   :  { %v4186_v12 = vpop.f32.mrb[44].mxu0 }
0x285c   :  { %v9993_v15 = vpop.eup %9992  ;;  %v4187_v16 = vadd.f32 %v11115_v4, %v4186_v12  ;;  %v9456_v17 = vpop.f32.mrb[45].mxu0 }
0x285d   :  { %3663 = vrot.lane.b32.xlu0 %v9993_v15, %s10390_s21  ;;  %v4416_v59 = vld [vmem:[#allocation2] sm:$0x3] }
0x285e   :  { %4190 = vst.msk [vmem:[#allocation2 + $0x8] sm:$0x3] %vm284_vm3, %v4187_v16  ;;  %v9995_v29 = vpop.eup %9994 }
0x285f   :  { %v4336_v18 = vpop.f32.mrb[46].mxu0  ;;  %v3657_v31 = vadd.f32 1.0, %v9995_v29 }
0x2860   :  { %v4337_v19 = vadd.f32 %v11115_v4, %v4336_v18  ;;  %v9466_v20 = vpop.f32.mrb[47].mxu0 }
0x2861   :  { %9996 = vrcp.f32 %v3657_v31 }
0x2862   :  { %4340 = vst.msk [vmem:[#allocation2 + $0xc] sm:$0x3] %vm284_vm3, %v4337_v19 }
0x2863   :  { %v11128_v24 = vpop.f32.mrb[48].mxu0 }
0x2864   :  { %v9478_v26 = vpop.f32.mrb[49].mxu0 }
0x286b   :  { %v9997_v13 = vpop.eup %9996 }
0x286c   :  { %v3661_v37 = vmul.f32 %v9997_v13, %v11056_v52 }
0x28cf   :  { %v3664_v34 = vpop.permute.xlu0 %3663 }
0x28d0   :  { %v3666_v36 = vmul.f32 %v9997_v13, %v3664_v34 }
0x28d2   :  { %3668 = vrot.lane.b32.xlu1 %v3666_v36, %s10391_s25 }
0x2944   :  { %v3669_v38 = vpop.permute.xlu1 %3668 }
0x2945   :  { %v11132_v27 = vadd.f32 %v3669_v38, %v3661_v37 }
0x2947   :  { %9998 = vtanh.f32 %v11132_v27 }
0x2951   :  { %v9999_v39 = vpop.eup %9998 }
0x2952   :  { %3674 = vrot.lane.b32.xlu0 %v9999_v39, %s10392_s7 }
0x29c4   :  { %v3675_v40 = vpop.permute.xlu0 %3674 }
0x29c5   :  { %v11136_v42 = vmul.f32 %v9997_v13, %v3675_v40 }
0x29c7   :  { %3679 = vrot.lane.b32.xlu1 %v11136_v42, %s10393_s19 }
0x2a39   :  { %v3680_v30 = vpop.permute.xlu1 %3679 }
0x2a3a   :  { %3682 = vst.msk [vmem:[#allocation3 + $0xc] sm:$0x3] %vm931_vm5, %v3680_v30  ;;  %9430 = vmatmul.mubr.msk.f32.vlgmr.msra.gmra.mrb[38].mxu1 %vm828_vm6, %v3680_v30 }
0x2a3b   :  { %9438 = vmatpush3.msk.msra.mxu1 %vm210_vm1, %v11064_v62  ;;  %9439 = vmatprep.mubr.msk.f32.mxu1 %vm10388_vm0, %v10387_v1 }
0x2a3c   :  { %9447 = vmatprep.subr.mxu1 %v10387_v1 }
0x2a3e   :  { %9440 = vmatmul.mubr.msk.f32.vlgmr.msra.gmra.mrb[40].mxu1 %vm206_vm2, %v8871_v3 }
0x2a3f   :  { %9448 = vmatpush3.msk.msra.mxu1 %vm210_vm1, %v11064_v62  ;;  %9449 = vmatprep.mubr.msk.f32.mxu1 %vm10388_vm0, %v10387_v1 }
0x2a40   :  { %9457 = vmatprep.subr.mxu1 %v10387_v1 }
0x2a42   :  { %9450 = vmatmul.mubr.msk.f32.vlgmr.msra.gmra.mrb[42].mxu1 %vm206_vm2, %v8877_v44 }
0x2a43   :  { %9458 = vmatpush3.msk.msra.mxu1 %vm210_vm1, %v11064_v62  ;;  %9459 = vmatprep.mubr.msk.f32.mxu1 %vm10388_vm0, %v10387_v1 }
0x2a44   :  { %9467 = vmatprep.subr.mxu1 %v10387_v1 }
0x2a46   :  { %9460 = vmatmul.mubr.msk.f32.vlgmr.msra.gmra.mrb[44].mxu1 %vm206_vm2, %v8883_v46 }
0x2a47   :  { %9468 = vmatpush3.msk.msra.mxu1 %vm210_vm1, %v11064_v62  ;;  %9469 = vmatprep.mubr.msk.f32.mxu1 %vm10388_vm0, %v10387_v1 }
0x2a48   :  { %9809 = vmatprep.subr.bf16.mxu1 %v10389_v14 }
0x2a4a   :  { %9470 = vmatmul.mubr.msk.f32.vlgmr.msra.gmra.mrb[46].mxu1 %vm206_vm2, %v8889_v47 }
0x2a4b   :  { %9811 = vmatpush3.bf16.msra.mxu1 %v11099_v21  ;;  %9483 = vmatprep.mubr.msk.f32.mxu1 %vm10388_vm0, %v10387_v1 }
0x2a4c   :  { %9815 = vmatprep.subr.bf16.mxu1 %v10389_v14 }
0x2b0d   :  { %v11182_v32 = vpop.f32.mrb[38].mxu1 }
0x2b0e   :  { %v9431_v49 = vpop.f32.mrb[39].mxu1 }
0x2b11   :  { %v3961_v50 = vpop.f32.mrb[40].mxu1 }
0x2b12   :  { %v3962_v52 = vadd.f32 %v11115_v4, %v3961_v50  ;;  %v9441_v33 = vpop.f32.mrb[41].mxu1 }
0x2b14   :  { %3965 = vst.msk [vmem:[#allocation2 + $0x2] sm:$0x3] %vm284_vm3, %v3962_v52  ;;  %v4634_v52 = vld [vmem:[#allocation2 + $0x4] sm:$0x3] }
0x2b15   :  { %v4111_v53 = vpop.f32.mrb[42].mxu1 }
0x2b16   :  { %v4112_v62 = vadd.f32 %v11115_v4, %v4111_v53  ;;  %v9451_v35 = vpop.f32.mrb[43].mxu1 }
0x2b18   :  { %4115 = vst.msk [vmem:[#allocation2 + $0x6] sm:$0x3] %vm284_vm3, %v4112_v62 }
0x2b19   :  { %v4261_v23 = vpop.f32.mrb[44].mxu1 }
0x2b1a   :  { %v4262_v54 = vadd.f32 %v11115_v4, %v4261_v23  ;;  %v9461_v43 = vpop.f32.mrb[45].mxu1 }
0x2b1c   :  { %4265 = vst.msk [vmem:[#allocation2 + $0xa] sm:$0x3] %vm284_vm3, %v4262_v54 }
0x2b1d   :  { %v4411_v55 = vpop.f32.mrb[46].mxu1 }
0x2b1e   :  { %v4412_v56 = vadd.f32 %v11115_v4, %v4411_v55  ;;  %v9471_v63 = vpop.f32.mrb[47].mxu1 }
0x2b20   :  { %4415 = vst.msk [vmem:[#allocation2 + $0xe] sm:$0x3] %vm284_vm3, %v4412_v56 }
0x2b23   :  { %v4635_v33 = vld [vmem:[#allocation2 + $0xa] sm:$0x3] }
0x2b24   :  { %v4636_v53 = vsel %vm10718_vm4, %v4634_v52, %v4635_v33 }
0x2b27   :  { %v4417_v60 = vld [vmem:[#allocation2 + $0xe] sm:$0x3] }
0x2b28   :  { %v4418_v61 = vsel %vm10718_vm4, %v4416_v59, %v4417_v60 }
0x2b29   :  { %v4491_v2 = vadd.f32 %v11128_v24, %v4418_v61  ;;  %v4526_v24 = vld [vmem:[#allocation2 + $0xc] sm:$0x3] }
0x2b2b   :  { %10000 = vtanh.f32 %v4491_v2  ;;  %v8893_v57 = vmul.f32 -1.442695, %v4491_v2 }
0x2b2d   :  { %10002 = vpow2.f32 %v8893_v57 }
0x2b35   :  { %v10001_v6 = vpop.eup %10000 }
0x2b36   :  { %4501 = vrot.lane.b32.xlu0 %v10001_v6, %s10390_s21 }
0x2b37   :  { %v10003_v7 = vpop.eup %10002 }
0x2b38   :  { %v4495_v4 = vadd.f32 1.0, %v10003_v7 }
0x2b3a   :  { %10004 = vrcp.f32 %v4495_v4 }
0x2b44   :  { %v10005_v9 = vpop.eup %10004 }
0x2b45   :  { %v4499_v12 = vmul.f32 %v10005_v9, %v10874_v48  ;;  %v4525_v48 = vld [vmem:[#allocation2 + $0x2] sm:$0x3] }
0x2b46   :  { %v4527_v26 = vsel %vm10718_vm4, %v4525_v48, %v4526_v24 }
0x2ba8   :  { %v4502_v10 = vpop.permute.xlu0 %4501 }
0x2ba9   :  { %v4504_v11 = vmul.f32 %v10005_v9, %v4502_v10  ;;  %v4743_v10 = vld [vmem:[#allocation2 + $0x6] sm:$0x3] }
0x2bab   :  { %4506 = vrot.lane.b32.xlu1 %v4504_v11, %s10391_s25  ;;  %v4744_v11 = vld [vmem:[#allocation2 + $0x8] sm:$0x3] }
0x2c1d   :  { %v4507_v15 = vpop.permute.xlu1 %4506 }
0x2c1e   :  { %v4509_v16 = vadd.f32 %v4507_v15, %v4499_v12  ;;  %v4745_v12 = vsel %vm10718_vm4, %v4743_v10, %v4744_v11 }
0x2c20   :  { %10006 = vtanh.f32 %v4509_v16 }
0x2c2a   :  { %v10007_v17 = vpop.eup %10006 }
0x2c2b   :  { %4512 = vrot.lane.b32.xlu0 %v10007_v17, %s10392_s7 }
0x2c9d   :  { %v4513_v18 = vpop.permute.xlu0 %4512 }
0x2c9e   :  { %v11201_v19 = vmul.f32 %v10005_v9, %v4513_v18 }
0x2ca0   :  { %4517 = vrot.lane.b32.xlu1 %v11201_v19, %s10393_s19 }
0x2d12   :  { %v4518_v20 = vpop.permute.xlu1 %4517 }
0x2d13   :  { %4520 = vst.msk [vmem:[#allocation3] sm:$0x3] %vm931_vm5, %v4518_v20  ;;  %9484 = vmatmul.mubr.msk.f32.vlgmr.msra.gmra.mrb[48].mxu1 %vm828_vm6, %v4518_v20 }
0x2d14   :  { %9817 = vmatpush3.bf16.msra.mxu1 %v11099_v21  ;;  %9497 = vmatprep.mubr.msk.f32.mxu1 %vm10388_vm0, %v10387_v1 }
0x2d15   :  { %9821 = vmatprep.subr.bf16.mxu1 %v10389_v14 }
0x2de6   :  { %v4596_v22 = vpop.f32.mrb[48].mxu1 }
0x2de7   :  { %v4600_v29 = vadd.f32 %v4596_v22, %v4527_v26  ;;  %v9485_v31 = vpop.f32.mrb[49].mxu1 }
0x2de9   :  { %10008 = vtanh.f32 %v4600_v29  ;;  %v8895_v34 = vmul.f32 -1.442695, %v4600_v29 }
0x2deb   :  { %10010 = vpow2.f32 %v8895_v34 }
0x2df3   :  { %v10009_v13 = vpop.eup %10008 }
0x2df4   :  { %4610 = vrot.lane.b32.xlu0 %v10009_v13, %s10390_s21 }
0x2df5   :  { %v10011_v36 = vpop.eup %10010 }
0x2df6   :  { %v4604_v37 = vadd.f32 1.0, %v10011_v36 }
0x2df8   :  { %10012 = vrcp.f32 %v4604_v37 }
0x2e02   :  { %v10013_v38 = vpop.eup %10012 }
0x2e03   :  { %v4608_v30 = vmul.f32 %v10013_v38, %v4509_v16 }
0x2e66   :  { %v4611_v39 = vpop.permute.xlu0 %4610 }
0x2e67   :  { %v4613_v40 = vmul.f32 %v10013_v38, %v4611_v39 }
0x2e69   :  { %4615 = vrot.lane.b32.xlu1 %v4613_v40, %s10391_s25  ;;  %v4852_v40 = vld [vmem:[#allocation2 + $0x8] sm:$0x3] }
0x2edb   :  { %v4616_v3 = vpop.permute.xlu1 %4615 }
0x2edc   :  { %v4618_v44 = vadd.f32 %v4616_v3, %v4608_v30  ;;  %v4853_v30 = vld [vmem:[#allocation2 + $0x6] sm:$0x3] }
0x2edd   :  { %v4854_v3 = vsel %vm10718_vm4, %v4852_v40, %v4853_v30 }
0x2ede   :  { %10014 = vtanh.f32 %v4618_v44 }
0x2ee8   :  { %v10015_v46 = vpop.eup %10014 }
0x2ee9   :  { %4621 = vrot.lane.b32.xlu0 %v10015_v46, %s10392_s7 }
0x2f5b   :  { %v4622_v47 = vpop.permute.xlu0 %4621 }
0x2f5c   :  { %v11216_v49 = vmul.f32 %v10013_v38, %v4622_v47 }
0x2f5e   :  { %4626 = vrot.lane.b32.xlu1 %v11216_v49, %s10393_s19 }
0x2fd0   :  { %v4627_v50 = vpop.permute.xlu1 %4626 }
0x2fd1   :  { %4629 = vst.msk [vmem:[#allocation3 + $0x2] sm:$0x3] %vm931_vm5, %v4627_v50  ;;  %9491 = vmatmul.mubr.msk.f32.vlgmr.msra.gmra.mrb[50].mxu0 %vm828_vm6, %v4627_v50 }
0x2fd2   :  { %9820 = vmatpush3.bf16.msra.mxu0 %v11099_v21  ;;  %9504 = vmatprep.mubr.msk.f32.mxu0 %vm10388_vm0, %v10387_v1 }
0x2fd3   :  { %9824 = vmatprep.subr.bf16.mxu0 %v10389_v14 }
0x30a4   :  { %v4705_v62 = vpop.f32.mrb[50].mxu0 }
0x30a5   :  { %v4709_v35 = vadd.f32 %v4705_v62, %v4636_v53  ;;  %v9492_v23 = vpop.f32.mrb[51].mxu0 }
0x30a7   :  { %10016 = vtanh.f32 %v4709_v35  ;;  %v8897_v43 = vmul.f32 -1.442695, %v4709_v35 }
0x30a9   :  { %10018 = vpow2.f32 %v8897_v43 }
0x30b1   :  { %v10017_v54 = vpop.eup %10016 }
0x30b2   :  { %4719 = vrot.lane.b32.xlu0 %v10017_v54, %s10390_s21 }
0x30b3   :  { %v10019_v55 = vpop.eup %10018 }
0x30b4   :  { %v4713_v56 = vadd.f32 1.0, %v10019_v55 }
0x30b6   :  { %10020 = vrcp.f32 %v4713_v56 }
0x30c0   :  { %v10021_v63 = vpop.eup %10020 }
0x30c1   :  { %v4717_v61 = vmul.f32 %v10021_v63, %v4618_v44 }
0x3124   :  { %v4720_v59 = vpop.permute.xlu0 %4719 }
0x3125   :  { %v4722_v60 = vmul.f32 %v10021_v63, %v4720_v59 }
0x3127   :  { %4724 = vrot.lane.b32.xlu1 %v4722_v60, %s10391_s25 }
0x3199   :  { %v4725_v2 = vpop.permute.xlu1 %4724 }
0x319a   :  { %v4727_v6 = vadd.f32 %v4725_v2, %v4717_v61  ;;  %v4961_v61 = vld [vmem:[#allocation2 + $0xa] sm:$0x3]  ;;  %v4962_v2 = vld [vmem:[#allocation2 + $0x4] sm:$0x3] }
0x319c   :  { %10022 = vtanh.f32 %v4727_v6 }
0x31a6   :  { %v10023_v57 = vpop.eup %10022 }
0x31a7   :  { %4730 = vrot.lane.b32.xlu0 %v10023_v57, %s10392_s7 }
0x3219   :  { %v4731_v7 = vpop.permute.xlu0 %4730 }
0x321a   :  { %v11231_v4 = vmul.f32 %v10021_v63, %v4731_v7 }
0x321c   :  { %4735 = vrot.lane.b32.xlu1 %v11231_v4, %s10393_s19 }
0x328e   :  { %v4736_v9 = vpop.permute.xlu1 %4735 }
0x328f   :  { %4738 = vst.msk [vmem:[#allocation3 + $0x4] sm:$0x3] %vm931_vm5, %v4736_v9  ;;  %9498 = vmatmul.mubr.msk.f32.vlgmr.msra.gmra.mrb[50].mxu1 %vm828_vm6, %v4736_v9 }
0x3290   :  { %9823 = vmatpush3.bf16.msra.mxu1 %v11099_v21  ;;  %9511 = vmatprep.mubr.msk.f32.mxu1 %vm10388_vm0, %v10387_v1 }
0x3291   :  { %9827 = vmatprep.subr.bf16.mxu1 %v10389_v14 }
0x3362   :  { %v4814_v15 = vpop.f32.mrb[50].mxu1 }
0x3363   :  { %v4818_v16 = vadd.f32 %v4814_v15, %v4745_v12  ;;  %v9499_v17 = vpop.f32.mrb[51].mxu1 }
0x3365   :  { %10024 = vtanh.f32 %v4818_v16  ;;  %v8899_v20 = vmul.f32 -1.442695, %v4818_v16 }
0x3367   :  { %10026 = vpow2.f32 %v8899_v20 }
0x336f   :  { %v10025_v18 = vpop.eup %10024 }
0x3370   :  { %4828 = vrot.lane.b32.xlu0 %v10025_v18, %s10390_s21 }
0x3371   :  { %v10027_v48 = vpop.eup %10026 }
0x3372   :  { %v4822_v24 = vadd.f32 1.0, %v10027_v48 }
0x3374   :  { %10028 = vrcp.f32 %v4822_v24 }
0x337e   :  { %v10029_v26 = vpop.eup %10028 }
0x337f   :  { %v4826_v31 = vmul.f32 %v10029_v26, %v4727_v6  ;;  %v4963_v6 = vsel %vm10718_vm4, %v4961_v61, %v4962_v2  ;;  %v5288_v61 = vld [vmem:[%s11840_s10] sm:$0xff] }
0x33e2   :  { %v4829_v22 = vpop.permute.xlu0 %4828 }
0x33e3   :  { %v4831_v29 = vmul.f32 %v10029_v26, %v4829_v22 }
0x33e5   :  { %4833 = vrot.lane.b32.xlu1 %v4831_v29, %s10391_s25 }
0x3457   :  { %v4834_v13 = vpop.permute.xlu1 %4833 }
0x3458   :  { %v4836_v34 = vadd.f32 %v4834_v13, %v4826_v31  ;;  %v5070_v31 = vld [vmem:[#allocation2 + $0xc] sm:$0x3]  ;;  %v5071_v13 = vld [vmem:[#allocation2 + $0x2] sm:$0x3] }
0x345a   :  { %10030 = vtanh.f32 %v4836_v34 }
0x3464   :  { %v10031_v36 = vpop.eup %10030 }
0x3465   :  { %4839 = vrot.lane.b32.xlu0 %v10031_v36, %s10392_s7 }
0x34d7   :  { %v4840_v37 = vpop.permute.xlu0 %4839 }
0x34d8   :  { %v11246_v38 = vmul.f32 %v10029_v26, %v4840_v37 }
0x34da   :  { %4844 = vrot.lane.b32.xlu1 %v11246_v38, %s10393_s19 }
0x354c   :  { %v4845_v39 = vpop.permute.xlu1 %4844 }
0x354d   :  { %4847 = vst.msk [vmem:[#allocation3 + $0x6] sm:$0x3] %vm931_vm5, %v4845_v39  ;;  %9505 = vmatmul.mubr.msk.f32.vlgmr.msra.gmra.mrb[52].mxu0 %vm828_vm6, %v4845_v39 }
0x354e   :  { %9826 = vmatpush3.bf16.msra.mxu0 %v11099_v21  ;;  %9518 = vmatprep.mubr.msk.f32.mxu0 %vm10388_vm0, %v10387_v1 }
0x354f   :  { %9528 = vmatprep.subr.mxu0 %v10387_v1 }
0x3620   :  { %v4923_v44 = vpop.f32.mrb[52].mxu0 }
0x3621   :  { %v4927_v46 = vadd.f32 %v4923_v44, %v4854_v3  ;;  %v9506_v47 = vpop.f32.mrb[53].mxu0 }
0x3623   :  { %10032 = vtanh.f32 %v4927_v46  ;;  %v8901_v52 = vmul.f32 -1.442695, %v4927_v46 }
0x3625   :  { %10034 = vpow2.f32 %v8901_v52 }
0x362d   :  { %v10033_v50 = vpop.eup %10032 }
0x362e   :  { %4937 = vrot.lane.b32.xlu0 %v10033_v50, %s10390_s21 }
0x362f   :  { %v10035_v33 = vpop.eup %10034 }
0x3630   :  { %v4931_v53 = vadd.f32 1.0, %v10035_v33 }
0x3632   :  { %10036 = vrcp.f32 %v4931_v53 }
0x363c   :  { %v10037_v62 = vpop.eup %10036 }
0x363d   :  { %v4935_v54 = vmul.f32 %v10037_v62, %v4836_v34  ;;  %v5072_v34 = vsel %vm10718_vm4, %v5070_v31, %v5071_v13 }
0x36a0   :  { %v4938_v35 = vpop.permute.xlu0 %4937 }
0x36a1   :  { %v4940_v23 = vmul.f32 %v10037_v62, %v4938_v35 }
0x36a3   :  { %4942 = vrot.lane.b32.xlu1 %v4940_v23, %s10391_s25 }
0x3715   :  { %v4943_v43 = vpop.permute.xlu1 %4942 }
0x3716   :  { %v4945_v55 = vadd.f32 %v4943_v43, %v4935_v54 }
0x3718   :  { %10038 = vtanh.f32 %v4945_v55 }
0x3722   :  { %v10039_v56 = vpop.eup %10038 }
0x3723   :  { %4948 = vrot.lane.b32.xlu0 %v10039_v56, %s10392_s7 }
0x3795   :  { %v4949_v63 = vpop.permute.xlu0 %4948 }
0x3796   :  { %v11261_v59 = vmul.f32 %v10037_v62, %v4949_v63  ;;  %v3689_v62 = vsel %vm10718_vm4, %v11191_v58, %v11118_v8 }
0x3797   :  { %v3762_v35 = vadd.f32 %v11182_v32, %v3689_v62 }
0x3798   :  { %4953 = vrot.lane.b32.xlu1 %v11261_v59, %s10393_s19 }
0x3799   :  { %v8868_v43 = vmul.f32 -1.442695, %v3762_v35 }
0x380a   :  { %v4954_v60 = vpop.permute.xlu1 %4953 }
0x380b   :  { %4956 = vst.msk [vmem:[#allocation3 + $0x8] sm:$0x3] %vm931_vm5, %v4954_v60  ;;  %9512 = vmatmul.mubr.msk.f32.vlgmr.msra.gmra.mrb[52].mxu1 %vm828_vm6, %v4954_v60 }
0x380c   :  { %9829 = vmatpush3.bf16.msra.mxu1 %v11099_v21  ;;  %9525 = vmatprep.mubr.msk.f32.mxu1 %vm10388_vm0, %v10387_v1 }
0x380d   :  { %9533 = vmatprep.subr.mxu1 %v10387_v1 }
0x38de   :  { %v5032_v57 = vpop.f32.mrb[52].mxu1 }
0x38df   :  { %v5036_v7 = vadd.f32 %v5032_v57, %v4963_v6  ;;  %v9513_v9 = vpop.f32.mrb[53].mxu1 }
0x38e1   :  { %10040 = vtanh.f32 %v5036_v7  ;;  %v8903_v11 = vmul.f32 -1.442695, %v5036_v7  ;;  %v5293_v7 = vld [vmem:[#allocation3] sm:$0x3] }
0x38e3   :  { %10042 = vpow2.f32 %v8903_v11  ;;  %v5749_v11 = vld [vmem:[#allocation3 + $0x6] sm:$0x3] }
0x38eb   :  { %v10041_v10 = vpop.eup %10040 }
0x38ec   :  { %5046 = vrot.lane.b32.xlu0 %v10041_v10, %s10390_s21  ;;  %v5449_v10 = vld [vmem:[#allocation3 + $0x2] sm:$0x3] }
0x38ed   :  { %v10043_v21 = vpop.eup %10042 }
0x38ee   :  { %v5040_v12 = vadd.f32 1.0, %v10043_v21 }
0x38f0   :  { %10044 = vrcp.f32 %v5040_v12  ;;  %v5899_v12 = vld [vmem:[#allocation3 + $0x8] sm:$0x3] }
0x38fa   :  { %v10045_v15 = vpop.eup %10044 }
0x38fb   :  { %v5044_v18 = vmul.f32 %v10045_v15, %v4945_v55 }
0x395e   :  { %v5047_v16 = vpop.permute.xlu0 %5046 }
0x395f   :  { %v5049_v17 = vmul.f32 %v10045_v15, %v5047_v16 }
0x3961   :  { %5051 = vrot.lane.b32.xlu1 %v5049_v17, %s10391_s25 }
0x39d3   :  { %v5052_v20 = vpop.permute.xlu1 %5051 }
0x39d4   :  { %v5054_v48 = vadd.f32 %v5052_v20, %v5044_v18  ;;  %v5180_v20 = vld [vmem:[#allocation2] sm:$0x3] }
0x39d6   :  { %10046 = vtanh.f32 %v5054_v48 }
0x39e0   :  { %v10047_v24 = vpop.eup %10046 }
0x39e1   :  { %5057 = vrot.lane.b32.xlu0 %v10047_v24, %s10392_s7 }
0x3a53   :  { %v5058_v26 = vpop.permute.xlu0 %5057 }
0x3a54   :  { %v11276_v22 = vmul.f32 %v10045_v15, %v5058_v26 }
0x3a56   :  { %5062 = vrot.lane.b32.xlu1 %v11276_v22, %s10393_s19 }
0x3ac8   :  { %v5063_v29 = vpop.permute.xlu1 %5062 }
0x3ac9   :  { %5065 = vst.msk [vmem:[#allocation3 + $0xa] sm:$0x3] %vm931_vm5, %v5063_v29  ;;  %9519 = vmatmul.mubr.msk.f32.vlgmr.msra.gmra.mrb[54].mxu0 %vm828_vm6, %v5063_v29 }
0x3aca   :  { %9530 = vmatprep.mubr.msk.f32.mxu0 %vm10388_vm0, %v10387_v1 }
0x3ad0   :  { %v6049_v15 = vld [vmem:[#allocation3 + $0xa] sm:$0x3] }
0x3b9c   :  { %v5141_v36 = vpop.f32.mrb[54].mxu0 }
0x3b9d   :  { %v5145_v37 = vadd.f32 %v5141_v36, %v5072_v34  ;;  %v9520_v39 = vpop.f32.mrb[55].mxu0 }
0x3b9f   :  { %10048 = vtanh.f32 %v5145_v37  ;;  %v8905_v30 = vmul.f32 -1.442695, %v5145_v37 }
0x3ba1   :  { %10050 = vpow2.f32 %v8905_v30 }
0x3ba9   :  { %v10049_v40 = vpop.eup %10048 }
0x3baa   :  { %5155 = vrot.lane.b32.xlu0 %v10049_v40, %s10390_s21 }
0x3bab   :  { %v10051_v3 = vpop.eup %10050 }
0x3bac   :  { %v5149_v44 = vadd.f32 1.0, %v10051_v3 }
0x3bae   :  { %10052 = vrcp.f32 %v5149_v44 }
0x3bb8   :  { %v10053_v46 = vpop.eup %10052 }
0x3bb9   :  { %v5153_v52 = vmul.f32 %v10053_v46, %v5054_v48 }
0x3c1c   :  { %v5156_v47 = vpop.permute.xlu0 %5155 }
0x3c1d   :  { %v5158_v50 = vmul.f32 %v10053_v46, %v5156_v47 }
0x3c1f   :  { %5160 = vrot.lane.b32.xlu1 %v5158_v50, %s10391_s25 }
0x3c91   :  { %v5161_v33 = vpop.permute.xlu1 %5160 }
0x3c92   :  { %v11288_v53 = vadd.f32 %v5161_v33, %v5153_v52 }
0x3c94   :  { %10054 = vtanh.f32 %v11288_v53 }
0x3c95   :  { %10056 = vtanh.f32 %v3762_v35 }
0x3c96   :  { %10058 = vpow2.f32 %v8868_v43 }
0x3c9e   :  { %v10055_v23 = vpop.eup %10054 }
0x3c9f   :  { %5166 = vrot.lane.b32.xlu0 %v10055_v23, %s10392_s7  ;;  %v10057_v54 = vpop.eup %10056 }
0x3ca0   :  { %v10059_v55 = vpop.eup %10058 }
0x3ca1   :  { %v3766_v56 = vadd.f32 1.0, %v10059_v55 }
0x3ca3   :  { %3772 = vrot.lane.b32.xlu0 %v10057_v54, %s10390_s21  ;;  %10060 = vrcp.f32 %v3766_v56 }
0x3cad   :  { %v10061_v8 = vpop.eup %10060 }
0x3cae   :  { %v3770_v6 = vmul.f32 %v10061_v8, %v11132_v27  ;;  %v5599_v27 = vld [vmem:[#allocation3 + $0x4] sm:$0x3] }
0x3d11   :  { %v5167_v63 = vpop.permute.xlu0 %5166 }
0x3d12   :  { %v11298_v60 = vmul.f32 %v10053_v46, %v5167_v63 }
0x3d14   :  { %5171 = vrot.lane.b32.xlu1 %v11298_v60, %s10393_s19 }
0x3d15   :  { %v3773_v32 = vpop.permute.xlu0 %3772 }
0x3d16   :  { %v3775_v58 = vmul.f32 %v10061_v8, %v3773_v32 }
0x3d18   :  { %3777 = vrot.lane.b32.xlu0 %v3775_v58, %s10391_s25 }
0x3d86   :  { %v5172_v2 = vpop.permute.xlu1 %5171 }
0x3d87   :  { %5174 = vst.msk [vmem:[#allocation3 + $0xc] sm:$0x3] %vm931_vm5, %v5172_v2  ;;  %9526 = vmatmul.mubr.msk.f32.vlgmr.msra.gmra.mrb[54].mxu1 %vm828_vm6, %v5172_v2  ;;  %v11396_v2 = vld [vmem:[%s11840_s10 + $0x8] sm:$0xff] }
0x3d88   :  { %9534 = vmatpush3.msra.mxu1 %v5288_v61  ;;  %9535 = vmatprep.mubr.msk.f32.mxu1 %vm10388_vm0, %v10387_v1 }
0x3d89   :  { %9543 = vmatprep.subr.mxu1 %v10387_v1  ;;  %9529 = vmatpush3.msra.mxu0 %v11396_v2 }
0x3d8a   :  { %v3778_v57 = vpop.permute.xlu0 %3777  ;;  %9538 = vmatprep.subr.mxu0 %v10387_v1 }
0x3d8b   :  { %v11312_v9 = vadd.f32 %v3778_v57, %v3770_v6  ;;  %9536 = vmatmul.mubr.msk.f32.vlgmr.msra.gmra.mrb[56].mxu1 %vm1721_vm7, %v5293_v7 }
0x3d8c   :  { %9544 = vmatpush3.msra.mxu1 %v5288_v61  ;;  %9545 = vmatprep.mubr.msk.f32.mxu1 %vm10388_vm0, %v10387_v1 }
0x3d8d   :  { %10062 = vtanh.f32 %v11312_v9  ;;  %9553 = vmatprep.subr.mxu1 %v10387_v1 }
0x3d8e   :  { %v6199_v16 = vld [vmem:[#allocation3 + $0xc] sm:$0x3] }
0x3d8f   :  { %9546 = vmatmul.mubr.msk.f32.vlgmr.msra.gmra.mrb[58].mxu1 %vm1721_vm7, %v5449_v10 }
0x3d90   :  { %9554 = vmatpush3.msra.mxu1 %v5288_v61  ;;  %9555 = vmatprep.mubr.msk.f32.mxu1 %vm10388_vm0, %v10387_v1 }
0x3d91   :  { %9563 = vmatprep.subr.mxu1 %v10387_v1 }
0x3d93   :  { %9556 = vmatmul.mubr.msk.f32.vlgmr.msra.gmra.mrb[60].mxu1 %vm1721_vm7, %v5599_v27 }
0x3d94   :  { %9564 = vmatpush3.msra.mxu1 %v5288_v61  ;;  %9565 = vmatprep.mubr.msk.f32.mxu1 %vm10388_vm0, %v10387_v1 }
0x3d95   :  { %9573 = vmatprep.subr.mxu1 %v10387_v1 }
0x3d97   :  { %v10063_v21 = vpop.eup %10062  ;;  %9566 = vmatmul.mubr.msk.f32.vlgmr.msra.gmra.mrb[62].mxu1 %vm1721_vm7, %v5749_v11 }
0x3d98   :  { %3783 = vrot.lane.b32.xlu0 %v10063_v21, %s10392_s7  ;;  %9574 = vmatpush3.msra.mxu1 %v5288_v61 }
0x3d99   :  { %9575 = vmatprep.mubr.msk.f32.mxu1 %vm10388_vm0, %v10387_v1  ;;  %9583 = vmatprep.subr.mxu1 %v10387_v1 }
0x3d9b   :  { %9576 = vmatmul.mubr.msk.f32.vlgmr.msra.gmra.mrb[64].mxu1 %vm1721_vm7, %v5899_v12 }
0x3d9c   :  { %9584 = vmatpush3.msra.mxu1 %v5288_v61  ;;  %9585 = vmatprep.mubr.msk.f32.mxu1 %vm10388_vm0, %v10387_v1 }
0x3d9d   :  { %9593 = vmatprep.subr.mxu1 %v10387_v1 }
0x3d9f   :  { %9586 = vmatmul.mubr.msk.f32.vlgmr.msra.gmra.mrb[66].mxu1 %vm1721_vm7, %v6049_v15 }
0x3da0   :  { %9594 = vmatpush3.msra.mxu1 %v5288_v61  ;;  %9595 = vmatprep.mubr.msk.f32.mxu1 %vm10388_vm0, %v10387_v1 }
0x3da1   :  { %9603 = vmatprep.subr.mxu1 %v10387_v1 }
0x3da3   :  { %9596 = vmatmul.mubr.msk.f32.vlgmr.msra.gmra.mrb[68].mxu1 %vm1721_vm7, %v6199_v16 }
0x3da4   :  { %9604 = vmatpush3.msra.mxu1 %v5288_v61  ;;  %9605 = vmatprep.mubr.msk.f32.mxu1 %vm10388_vm0, %v10387_v1 }
0x3da5   :  { %9833 = vmatprep.subr.bf16.mxu1 %v10389_v14 }
0x3e0a   :  { %v3784_v17 = vpop.permute.xlu0 %3783 }
0x3e0b   :  { %v3786_v18 = vmul.f32 %v10061_v8, %v3784_v17 }
0x3e0d   :  { %3792 = vrot.lane.b32.xlu0 %v3786_v18, %s10394_s9 }
0x3e11   :  { %3683 = vrot.lane.b32.xlu0 %v11136_v42, %s10394_s9  ;;  %v5179_v42 = vld [vmem:[#allocation2 + $0xe] sm:$0x3] }
0x3e15   :  { %3574 = vrot.lane.b32.xlu0 %v11060_v41, %s10394_s9  ;;  %v5181_v41 = vsel %vm10718_vm4, %v5179_v42, %v5180_v20  ;;  %v5291_v42 = vld [vmem:[%s11841_s11] sm:$0xff]  ;;  %v5292_v20 = vld [vmem:[%s11841_s11 + $0x8] sm:$0xff] }
0x3e19   :  { %3465 = vrot.lane.b32.xlu0 %v11042_v25, %s10394_s9 }
0x3e1d   :  { %3356 = vrot.lane.b32.xlu0 %v11027_v5, %s10394_s9 }
0x3e21   :  { %3247 = vrot.lane.b32.xlu0 %v11012_v51, %s10394_s9 }
0x3e25   :  { %3788 = vrot.lane.b32.xlu0 %v3786_v18, %s10393_s19 }
0x3e29   :  { %3138 = vrot.lane.b32.xlu0 %v10997_v28, %s10394_s9 }
0x3e2d   :  { %4521 = vrot.lane.b32.xlu0 %v11201_v19, %s10394_s9 }
0x3e5a   :  { %v5250_v25 = vpop.f32.mrb[54].mxu1 }
0x3e5b   :  { %v5254_v48 = vadd.f32 %v5250_v25, %v5181_v41  ;;  %v9527_v24 = vpop.f32.mrb[55].mxu1  ;;  %v11468_v25 = vpack.c.bf16 %v5292_v20, %v5291_v42 }
0x3e5d   :  { %10064 = vtanh.f32 %v5254_v48  ;;  %v8907_v23 = vmul.f32 -1.442695, %v5254_v48 }
0x3e5e   :  { %v11362_v5 = vpop.f32.mrb[56].mxu1 }
0x3e5f   :  { %v9537_v51 = vpop.f32.mrb[57].mxu1  ;;  %10066 = vpow2.f32 %v8907_v23 }
0x3e60   :  { %v8910_v51 = vld [vmem:[%s11842_s12] ss:$0 sm:$0xff] }
0x3e62   :  { %v11364_v26 = vpop.f32.mrb[58].mxu1 }
0x3e63   :  { %v9547_v29 = vpop.f32.mrb[59].mxu1 }
0x3e66   :  { %v11366_v31 = vpop.f32.mrb[60].mxu1 }
0x3e67   :  { %v10065_v28 = vpop.eup %10064  ;;  %v9557_v13 = vpop.f32.mrb[61].mxu1 }
0x3e68   :  { %5264 = vrot.lane.b32.xlu1 %v10065_v28, %s10390_s21 }
0x3e69   :  { %v10067_v54 = vpop.eup %10066 }
0x3e6a   :  { %v11369_v19 = vpop.f32.mrb[62].mxu1  ;;  %v5258_v43 = vadd.f32 1.0, %v10067_v54 }
0x3e6b   :  { %v9567_v34 = vpop.f32.mrb[63].mxu1 }
0x3e6c   :  { %10068 = vrcp.f32 %v5258_v43 }
0x3e6e   :  { %v11371_v36 = vpop.f32.mrb[64].mxu1 }
0x3e6f   :  { %v9577_v37 = vpop.f32.mrb[65].mxu1 }
0x3e72   :  { %v11373_v39 = vpop.f32.mrb[66].mxu1 }
0x3e73   :  { %v9587_v40 = vpop.f32.mrb[67].mxu1 }
0x3e76   :  { %v11375_v30 = vpop.f32.mrb[68].mxu1  ;;  %v10069_v55 = vpop.eup %10068 }
0x3e77   :  { %v9597_v3 = vpop.f32.mrb[69].mxu1  ;;  %v5262_v8 = vmul.f32 %v10069_v55, %v11288_v53 }
0x3e7f   :  { %v3793_v44 = vpop.permute.xlu0 %3792 }
0x3e80   :  { %3795 = vst.msk [vmem:[#allocation4] sm:$0x3] %vm931_vm5, %v3793_v44 }
0x3e83   :  { %v3684_v46 = vpop.permute.xlu0 %3683 }
0x3e84   :  { %3686 = vst.msk [vmem:[#allocation4 + $0x2] sm:$0x3] %vm931_vm5, %v3684_v46 }
0x3e87   :  { %v3575_v47 = vpop.permute.xlu0 %3574 }
0x3e88   :  { %3577 = vst.msk [vmem:[#allocation4 + $0x4] sm:$0x3] %vm931_vm5, %v3575_v47 }
0x3e8b   :  { %v3466_v50 = vpop.permute.xlu0 %3465 }
0x3e8c   :  { %3468 = vst.msk [vmem:[#allocation4 + $0x6] sm:$0x3] %vm931_vm5, %v3466_v50 }
0x3e8f   :  { %v3357_v52 = vpop.permute.xlu0 %3356 }
0x3e90   :  { %3359 = vst.msk [vmem:[#allocation4 + $0x8] sm:$0x3] %vm931_vm5, %v3357_v52 }
0x3e93   :  { %v3248_v33 = vpop.permute.xlu0 %3247 }
0x3e94   :  { %3250 = vst.msk [vmem:[#allocation4 + $0xa] sm:$0x3] %vm931_vm5, %v3248_v33 }
0x3e97   :  { %v11383_v62 = vpop.permute.xlu0 %3788 }
0x3e98   :  { %3791 = vst.msk [vmem:[#allocation3 + $0xe] sm:$0x3] %vm931_vm5, %v11383_v62 }
0x3e9b   :  { %v3139_v35 = vpop.permute.xlu0 %3138 }
0x3e9c   :  { %3141 = vst.msk [vmem:[#allocation4 + $0xc] sm:$0x3] %vm931_vm5, %v3139_v35 }
0x3e9f   :  { %v4522_v11 = vpop.permute.xlu0 %4521  ;;  %v11450_v17 = vld [vmem:[#allocation3 + $0xe] sm:$0x3] }
0x3eda   :  { %v5265_v56 = vpop.permute.xlu1 %5264 }
0x3edb   :  { %v5267_v63 = vmul.f32 %v10069_v55, %v5265_v56 }
0x3edd   :  { %5269 = vrot.lane.b32.xlu1 %v5267_v63, %s10391_s25 }
0x3f4f   :  { %v5270_v32 = vpop.permute.xlu1 %5269 }
0x3f50   :  { %v5272_v58 = vadd.f32 %v5270_v32, %v5262_v8 }
0x3f52   :  { %10070 = vtanh.f32 %v5272_v58 }
0x3f5c   :  { %v10071_v61 = vpop.eup %10070 }
0x3f5d   :  { %5275 = vrot.lane.b32.xlu1 %v10071_v61, %s10392_s7 }
0x3f61   :  { %5175 = vrot.lane.b32.xlu1 %v11298_v60, %s10394_s9 }
0x3fcf   :  { %v5276_v6 = vpop.permute.xlu1 %5275 }
0x3fd0   :  { %v5278_v53 = vmul.f32 %v10069_v55, %v5276_v6 }
0x3fd2   :  { %5284 = vrot.lane.b32.xlu1 %v5278_v53, %s10394_s9 }
0x3fd3   :  { %v5176_v57 = vpop.permute.xlu1 %5175 }
0x3fd4   :  { %5178 = vst.msk [vmem:[#allocation4 + $0x2] sm:$0x3] %vm931_vm5, %v5176_v57 }
0x3fd6   :  { %5066 = vrot.lane.b32.xlu1 %v11276_v22, %s10394_s9 }
0x3fda   :  { %4957 = vrot.lane.b32.xlu1 %v11261_v59, %s10394_s9 }
0x3fde   :  { %4848 = vrot.lane.b32.xlu1 %v11246_v38, %s10394_s9 }
0x3fe2   :  { %3029 = vrot.lane.b32.xlu1 %v10982_v0, %s10394_s9 }
0x3fe6   :  { %4739 = vrot.lane.b32.xlu1 %v11231_v4, %s10394_s9 }
0x3fea   :  { %4630 = vrot.lane.b32.xlu1 %v11216_v49, %s10394_s9  ;;  %v5450_v49 = vld [vmem:[#allocation4 + $0x2] sm:$0x3] }
0x3fee   :  { %5280 = vrot.lane.b32.xlu1 %v5278_v53, %s10393_s19 }
0x4044   :  { %v5285_v60 = vpop.permute.xlu1 %5284 }
0x4045   :  { %5287 = vst.msk [vmem:[#allocation4] sm:$0x3] %vm931_vm5, %v5285_v60 }
0x4048   :  { %v5067_v22 = vpop.permute.xlu1 %5066 }
0x4049   :  { %5069 = vst.msk [vmem:[#allocation4 + $0x4] sm:$0x3] %vm931_vm5, %v5067_v22 }
0x404c   :  { %v4958_v59 = vpop.permute.xlu1 %4957  ;;  %v5294_v7 = vld [vmem:[#allocation4] sm:$0x3] }
0x404d   :  { %4960 = vst.msk [vmem:[#allocation4 + $0x6] sm:$0x3] %vm931_vm5, %v4958_v59  ;;  %9531 = vmatmul.mubr.msk.f32.vlgmr.msra.gmra.mrb[56].mxu0 %vm1721_vm7, %v5294_v7 }
0x404e   :  { %9539 = vmatpush3.msra.mxu0 %v11396_v2  ;;  %9540 = vmatprep.mubr.msk.f32.mxu0 %vm10388_vm0, %v10387_v1 }
0x404f   :  { %9548 = vmatprep.subr.mxu0 %v10387_v1 }
0x4050   :  { %v4849_v0 = vpop.permute.xlu1 %4848  ;;  %v5600_v38 = vld [vmem:[#allocation4 + $0x4] sm:$0x3] }
0x4051   :  { %4851 = vst.msk [vmem:[#allocation4 + $0x8] sm:$0x3] %vm931_vm5, %v4849_v0  ;;  %9541 = vmatmul.mubr.msk.f32.vlgmr.msra.gmra.mrb[58].mxu0 %vm1721_vm7, %v5450_v49 }
0x4052   :  { %9549 = vmatpush3.msra.mxu0 %v11396_v2  ;;  %9550 = vmatprep.mubr.msk.f32.mxu0 %vm10388_vm0, %v10387_v1 }
0x4053   :  { %9558 = vmatprep.subr.mxu0 %v10387_v1 }
0x4054   :  { %v3030_v4 = vpop.permute.xlu1 %3029  ;;  %v5750_v27 = vld [vmem:[#allocation4 + $0x6] sm:$0x3] }
0x4055   :  { %3032 = vst.msk [vmem:[#allocation4 + $0xe] sm:$0x3] %vm931_vm5, %v3030_v4  ;;  %9551 = vmatmul.mubr.msk.f32.vlgmr.msra.gmra.mrb[60].mxu0 %vm1721_vm7, %v5600_v38 }
0x4056   :  { %9559 = vmatpush3.msra.mxu0 %v11396_v2  ;;  %9560 = vmatprep.mubr.msk.f32.mxu0 %vm10388_vm0, %v10387_v1 }
0x4057   :  { %9568 = vmatprep.subr.mxu0 %v10387_v1 }
0x4058   :  { %v4740_v10 = vpop.permute.xlu1 %4739  ;;  %v5900_v15 = vld [vmem:[#allocation4 + $0x8] sm:$0x3] }
0x4059   :  { %4742 = vst.msk [vmem:[#allocation4 + $0xa] sm:$0x3] %vm931_vm5, %v4740_v10  ;;  %9561 = vmatmul.mubr.msk.f32.vlgmr.msra.gmra.mrb[62].mxu0 %vm1721_vm7, %v5750_v27 }
0x405a   :  { %9569 = vmatpush3.msra.mxu0 %v11396_v2  ;;  %9570 = vmatprep.mubr.msk.f32.mxu0 %vm10388_vm0, %v10387_v1 }
0x405b   :  { %9578 = vmatprep.subr.mxu0 %v10387_v1 }
0x405c   :  { %v11441_v21 = vld [vmem:[#allocation4 + $0xe] sm:$0x3]  ;;  %v4631_v12 = vpop.permute.xlu1 %4630 }
0x405d   :  { %4524 = vst.msk [vmem:[#allocation4 + $0xe] sm:$0x3] %vm931_vm5, %v4522_v11  ;;  %4633 = vst.msk [vmem:[#allocation4 + $0xc] sm:$0x3] %vm931_vm5, %v4631_v12  ;;  %9571 = vmatmul.mubr.msk.f32.vlgmr.msra.gmra.mrb[64].mxu0 %vm1721_vm7, %v5900_v15 }
0x405e   :  { %9579 = vmatpush3.msra.mxu0 %v11396_v2  ;;  %9580 = vmatprep.mubr.msk.f32.mxu0 %vm10388_vm0, %v10387_v1 }
0x405f   :  { %9588 = vmatprep.subr.mxu0 %v10387_v1 }
0x4060   :  { %v5281_v16 = vpop.permute.xlu1 %5280  ;;  %v6050_v18 = vld [vmem:[#allocation4 + $0xa] sm:$0x3] }
0x4061   :  { %5283 = vst.msk [vmem:[#allocation3 + $0xe] sm:$0x3] %vm931_vm5, %v5281_v16  ;;  %9581 = vmatmul.mubr.msk.f32.vlgmr.msra.gmra.mrb[66].mxu0 %vm1721_vm7, %v6050_v18 }
0x4062   :  { %9589 = vmatpush3.msra.mxu0 %v11396_v2  ;;  %9590 = vmatprep.mubr.msk.f32.mxu0 %vm10388_vm0, %v10387_v1 }
0x4063   :  { %9598 = vmatprep.subr.mxu0 %v10387_v1 }
0x4064   :  { %v6200_v41 = vld [vmem:[#allocation4 + $0xc] sm:$0x3]  ;;  %v6350_v48 = vld [vmem:[#allocation4 + $0xe] sm:$0x3] }
0x4065   :  { %9591 = vmatmul.mubr.msk.f32.vlgmr.msra.gmra.mrb[68].mxu0 %vm1721_vm7, %v6200_v41 }
0x4066   :  { %9599 = vmatpush3.msra.mxu0 %v11396_v2  ;;  %9600 = vmatprep.mubr.msk.f32.mxu0 %vm10388_vm0, %v10387_v1 }
0x4067   :  { %9830 = vmatprep.subr.bf16.mxu0 %v10389_v14 }
0x4068   :  { %v6349_v24 = vld [vmem:[#allocation3 + $0xe] sm:$0x3] }
0x4069   :  { %9601 = vmatmul.mubr.msk.f32.vlgmr.msra.gmra.mrb[70].mxu0 %vm1721_vm7, %v6350_v48  ;;  %9606 = vmatmul.mubr.msk.f32.vlgmr.msra.gmra.mrb[70].mxu1 %vm1721_vm7, %v6349_v24 }
0x406a   :  { %9832 = vmatpush3.bf16.msra.mxu0 %v11468_v25  ;;  %9612 = vmatprep.mubr.msk.f32.mxu0 %vm10388_vm0, %v10387_v1 }
0x406b   :  { %9835 = vmatpush3.bf16.msra.mxu1 %v11468_v25  ;;  %9619 = vmatprep.mubr.msk.f32.mxu1 %vm10388_vm0, %v10387_v1 }
0x406c   :  { %9836 = vmatprep.subr.bf16.mxu0 %v10389_v14  ;;  %9839 = vmatprep.subr.bf16.mxu1 %v10389_v14 }
0x406d   :  { %9613 = vmatmul.mubr.msk.f32.vlgmr.msra.gmra.mrb[72].mxu0 %vm828_vm6, %v11383_v62 }
0x406e   :  { %9838 = vmatpush3.bf16.msra.mxu0 %v11468_v25  ;;  %9626 = vmatprep.mubr.msk.f32.mxu0 %vm10388_vm0, %v10387_v1 }
0x406f   :  { %9842 = vmatprep.subr.bf16.mxu0 %v10389_v14 }
0x4120   :  { %v5364_v29 = vpop.f32.mrb[56].mxu0 }
0x4121   :  { %v5438_v28 = vadd.f32 %v11362_v5, %v5364_v29  ;;  %v9532_v13 = vpop.f32.mrb[57].mxu0 }
0x4123   :  { %v5447_v34 = vadd.f32 %v8910_v51, %v5438_v28 }
0x4124   :  { %v5520_v37 = vpop.f32.mrb[58].mxu0 }
0x4125   :  { %5448 = vst.msk [vmem:[#allocation2] sm:$0x3] %vm284_vm3, %v5447_v34  ;;  %v5594_v40 = vadd.f32 %v11364_v26, %v5520_v37  ;;  %v9542_v3 = vpop.f32.mrb[59].mxu0 }
0x4127   :  { %v5597_v44 = vadd.f32 %v8910_v51, %v5594_v40 }
0x4128   :  { %v5670_v46 = vpop.f32.mrb[60].mxu0 }
0x4129   :  { %5598 = vst.msk [vmem:[#allocation2 + $0x2] sm:$0x3] %vm284_vm3, %v5597_v44  ;;  %v5744_v47 = vadd.f32 %v11366_v31, %v5670_v46  ;;  %v9552_v50 = vpop.f32.mrb[61].mxu0 }
0x412b   :  { %v5747_v52 = vadd.f32 %v8910_v51, %v5744_v47 }
0x412c   :  { %v5820_v33 = vpop.f32.mrb[62].mxu0  ;;  %v6499_v22 = vld [vmem:[#allocation2] sm:$0x3] }
0x412d   :  { %5748 = vst.msk [vmem:[#allocation2 + $0x4] sm:$0x3] %vm284_vm3, %v5747_v52  ;;  %v5894_v5 = vadd.f32 %v11369_v19, %v5820_v33  ;;  %v9562_v62 = vpop.f32.mrb[63].mxu0 }
0x412f   :  { %v5897_v35 = vadd.f32 %v8910_v51, %v5894_v5 }
0x4130   :  { %v5970_v23 = vpop.f32.mrb[64].mxu0  ;;  %v6608_v48 = vld [vmem:[#allocation2 + $0x2] sm:$0x3] }
0x4131   :  { %5898 = vst.msk [vmem:[#allocation2 + $0x6] sm:$0x3] %vm284_vm3, %v5897_v35  ;;  %v6044_v26 = vadd.f32 %v11371_v36, %v5970_v23  ;;  %v9572_v54 = vpop.f32.mrb[65].mxu0 }
0x4133   :  { %v6047_v43 = vadd.f32 %v8910_v51, %v6044_v26 }
0x4134   :  { %v6120_v55 = vpop.f32.mrb[66].mxu0  ;;  %v6717_v26 = vld [vmem:[#allocation2 + $0x4] sm:$0x3] }
0x4135   :  { %6048 = vst.msk [vmem:[#allocation2 + $0x8] sm:$0x3] %vm284_vm3, %v6047_v43  ;;  %v6194_v31 = vadd.f32 %v11373_v39, %v6120_v55  ;;  %v9582_v56 = vpop.f32.mrb[67].mxu0 }
0x4137   :  { %v6197_v63 = vadd.f32 %v8910_v51, %v6194_v31 }
0x4138   :  { %v6270_v8 = vpop.f32.mrb[68].mxu0 }
0x4139   :  { %6198 = vst.msk [vmem:[#allocation2 + $0xa] sm:$0x3] %vm284_vm3, %v6197_v63  ;;  %v6344_v19 = vadd.f32 %v11375_v30, %v6270_v8  ;;  %v9592_v32 = vpop.f32.mrb[69].mxu0 }
0x413b   :  { %v6347_v58 = vadd.f32 %v8910_v51, %v6344_v19 }
0x413c   :  { %v6420_v61 = vpop.f32.mrb[70].mxu0  ;;  %v6493_v2 = vpop.f32.mrb[70].mxu1 }
0x413d   :  { %6348 = vst.msk [vmem:[#allocation2 + $0xc] sm:$0x3] %vm284_vm3, %v6347_v58  ;;  %v6494_v36 = vadd.f32 %v6493_v2, %v6420_v61  ;;  %v9602_v6 = vpop.f32.mrb[71].mxu0  ;;  %v9607_v53 = vpop.f32.mrb[71].mxu1 }
0x413f   :  { %v6497_v57 = vadd.f32 %v8910_v51, %v6494_v36 }
0x4140   :  { %v6570_v60 = vpop.f32.mrb[72].mxu0  ;;  %v6718_v23 = vld [vmem:[#allocation2 + $0xa] sm:$0x3] }
0x4141   :  { %6498 = vst.msk [vmem:[#allocation2 + $0xe] sm:$0x3] %vm284_vm3, %v6497_v57  ;;  %v9614_v39 = vpop.f32.mrb[73].mxu0  ;;  %v6719_v54 = vsel %vm10718_vm4, %v6717_v26, %v6718_v23 }
0x4148   :  { %v6500_v59 = vld [vmem:[#allocation2 + $0xe] sm:$0x3] }
0x4149   :  { %v6501_v7 = vsel %vm10718_vm4, %v6499_v22, %v6500_v59  ;;  %v6827_v22 = vld [vmem:[#allocation2 + $0x8] sm:$0x3]  ;;  %v6826_v59 = vld [vmem:[#allocation2 + $0x6] sm:$0x3] }
0x414a   :  { %v6574_v30 = vadd.f32 %v6570_v60, %v6501_v7  ;;  %v6828_v7 = vsel %vm10718_vm4, %v6826_v59, %v6827_v22 }
0x414c   :  { %10072 = vtanh.f32 %v6574_v30  ;;  %v8926_v49 = vmul.f32 -1.442695, %v6574_v30 }
0x414e   :  { %10074 = vpow2.f32 %v8926_v49 }
0x4156   :  { %v10073_v0 = vpop.eup %10072 }
0x4157   :  { %6584 = vrot.lane.b32.xlu0 %v10073_v0, %s10390_s21 }
0x4158   :  { %v10075_v4 = vpop.eup %10074 }
0x4159   :  { %v6578_v38 = vadd.f32 1.0, %v10075_v4 }
0x415b   :  { %10076 = vrcp.f32 %v6578_v38 }
0x4165   :  { %v10077_v10 = vpop.eup %10076 }
0x4166   :  { %v6582_v12 = vmul.f32 %v10077_v10, %v11312_v9  ;;  %v6609_v9 = vld [vmem:[#allocation2 + $0xc] sm:$0x3] }
0x4167   :  { %v6610_v24 = vsel %vm10718_vm4, %v6608_v48, %v6609_v9 }
0x41c9   :  { %v6585_v27 = vpop.permute.xlu0 %6584 }
0x41ca   :  { %v6587_v11 = vmul.f32 %v10077_v10, %v6585_v27 }
0x41cc   :  { %6589 = vrot.lane.b32.xlu1 %v6587_v11, %s10391_s25 }
0x423e   :  { %v6590_v15 = vpop.permute.xlu1 %6589 }
0x423f   :  { %v6592_v16 = vadd.f32 %v6590_v15, %v6582_v12 }
0x4241   :  { %10078 = vtanh.f32 %v6592_v16 }
0x424b   :  { %v10079_v18 = vpop.eup %10078 }
0x424c   :  { %6595 = vrot.lane.b32.xlu0 %v10079_v18, %s10392_s7 }
0x42be   :  { %v6596_v42 = vpop.permute.xlu0 %6595 }
0x42bf   :  { %v11511_v20 = vmul.f32 %v10077_v10, %v6596_v42 }
0x42c1   :  { %6600 = vrot.lane.b32.xlu1 %v11511_v20, %s10393_s19 }
0x4333   :  { %v6601_v41 = vpop.permute.xlu1 %6600 }
0x4334   :  { %6603 = vst.msk [vmem:[#allocation3] sm:$0x3] %vm931_vm5, %v6601_v41  ;;  %9620 = vmatmul.mubr.msk.f32.vlgmr.msra.gmra.mrb[72].mxu1 %vm828_vm6, %v6601_v41 }
0x4335   :  { %9841 = vmatpush3.bf16.msra.mxu1 %v11468_v25  ;;  %9633 = vmatprep.mubr.msk.f32.mxu1 %vm10388_vm0, %v10387_v1 }
0x4336   :  { %9845 = vmatprep.subr.bf16.mxu1 %v10389_v14 }
0x4407   :  { %v6679_v51 = vpop.f32.mrb[72].mxu1 }
0x4408   :  { %v6683_v29 = vadd.f32 %v6679_v51, %v6610_v24  ;;  %v9621_v28 = vpop.f32.mrb[73].mxu1  ;;  %v6935_v51 = vld [vmem:[#allocation2 + $0x8] sm:$0x3] }
0x440a   :  { %10080 = vtanh.f32 %v6683_v29  ;;  %v8928_v34 = vmul.f32 -1.442695, %v6683_v29  ;;  %v6936_v29 = vld [vmem:[#allocation2 + $0x6] sm:$0x3] }
0x440b   :  { %v6937_v28 = vsel %vm10718_vm4, %v6935_v51, %v6936_v29 }
0x440c   :  { %10082 = vpow2.f32 %v8928_v34 }
0x4414   :  { %v10081_v13 = vpop.eup %10080 }
0x4415   :  { %6693 = vrot.lane.b32.xlu0 %v10081_v13, %s10390_s21 }
0x4416   :  { %v10083_v37 = vpop.eup %10082 }
0x4417   :  { %v6687_v40 = vadd.f32 1.0, %v10083_v37 }
0x4419   :  { %10084 = vrcp.f32 %v6687_v40 }
0x4423   :  { %v10085_v3 = vpop.eup %10084 }
0x4424   :  { %v6691_v47 = vmul.f32 %v10085_v3, %v6592_v16 }
0x4487   :  { %v6694_v44 = vpop.permute.xlu0 %6693 }
0x4488   :  { %v6696_v46 = vmul.f32 %v10085_v3, %v6694_v44 }
0x448a   :  { %6698 = vrot.lane.b32.xlu1 %v6696_v46, %s10391_s25 }
0x44fc   :  { %v6699_v50 = vpop.permute.xlu1 %6698 }
0x44fd   :  { %v6701_v52 = vadd.f32 %v6699_v50, %v6691_v47 }
0x44ff   :  { %10086 = vtanh.f32 %v6701_v52 }
0x4509   :  { %v10087_v33 = vpop.eup %10086 }
0x450a   :  { %6704 = vrot.lane.b32.xlu0 %v10087_v33, %s10392_s7 }
0x457c   :  { %v6705_v5 = vpop.permute.xlu0 %6704 }
0x457d   :  { %v11526_v62 = vmul.f32 %v10085_v3, %v6705_v5 }
0x457f   :  { %6709 = vrot.lane.b32.xlu1 %v11526_v62, %s10393_s19 }
0x45f1   :  { %v6710_v35 = vpop.permute.xlu1 %6709 }
0x45f2   :  { %6712 = vst.msk [vmem:[#allocation3 + $0x2] sm:$0x3] %vm931_vm5, %v6710_v35  ;;  %9627 = vmatmul.mubr.msk.f32.vlgmr.msra.gmra.mrb[74].mxu0 %vm828_vm6, %v6710_v35 }
0x45f3   :  { %9844 = vmatpush3.bf16.msra.mxu0 %v11468_v25  ;;  %9640 = vmatprep.mubr.msk.f32.mxu0 %vm10388_vm0, %v10387_v1 }
0x45f4   :  { %9848 = vmatprep.subr.bf16.mxu0 %v10389_v14 }
0x46c5   :  { %v6788_v43 = vpop.f32.mrb[74].mxu0 }
0x46c6   :  { %v6792_v55 = vadd.f32 %v6788_v43, %v6719_v54  ;;  %v9628_v31 = vpop.f32.mrb[75].mxu0 }
0x46c7   :  { %v7045_v31 = vld [vmem:[#allocation2 + $0x4] sm:$0x3] }
0x46c8   :  { %10088 = vtanh.f32 %v6792_v55  ;;  %v8930_v63 = vmul.f32 -1.442695, %v6792_v55  ;;  %v7044_v55 = vld [vmem:[#allocation2 + $0xa] sm:$0x3] }
0x46ca   :  { %10090 = vpow2.f32 %v8930_v63 }
0x46d2   :  { %v10089_v56 = vpop.eup %10088 }
0x46d3   :  { %6802 = vrot.lane.b32.xlu0 %v10089_v56, %s10390_s21  ;;  %v7046_v56 = vsel %vm10718_vm4, %v7044_v55, %v7045_v31 }
0x46d4   :  { %v10091_v8 = vpop.eup %10090 }
0x46d5   :  { %v6796_v19 = vadd.f32 1.0, %v10091_v8 }
0x46d7   :  { %10092 = vrcp.f32 %v6796_v19 }
0x46e1   :  { %v10093_v32 = vpop.eup %10092 }
0x46e2   :  { %v6800_v2 = vmul.f32 %v10093_v32, %v6701_v52 }
0x4745   :  { %v6803_v58 = vpop.permute.xlu0 %6802 }
0x4746   :  { %v6805_v61 = vmul.f32 %v10093_v32, %v6803_v58 }
0x4748   :  { %6807 = vrot.lane.b32.xlu1 %v6805_v61, %s10391_s25 }
0x47ba   :  { %v6808_v36 = vpop.permute.xlu1 %6807 }
0x47bb   :  { %v6810_v6 = vadd.f32 %v6808_v36, %v6800_v2 }
0x47bd   :  { %10094 = vtanh.f32 %v6810_v6 }
0x47c7   :  { %v10095_v53 = vpop.eup %10094 }
0x47c8   :  { %6813 = vrot.lane.b32.xlu0 %v10095_v53, %s10392_s7 }
0x483a   :  { %v6814_v57 = vpop.permute.xlu0 %6813 }
0x483b   :  { %v11541_v60 = vmul.f32 %v10093_v32, %v6814_v57 }
0x483d   :  { %6818 = vrot.lane.b32.xlu1 %v11541_v60, %s10393_s19 }
0x48af   :  { %v6819_v39 = vpop.permute.xlu1 %6818 }
0x48b0   :  { %6821 = vst.msk [vmem:[#allocation3 + $0x4] sm:$0x3] %vm931_vm5, %v6819_v39  ;;  %9634 = vmatmul.mubr.msk.f32.vlgmr.msra.gmra.mrb[74].mxu1 %vm828_vm6, %v6819_v39 }
0x48b1   :  { %9847 = vmatpush3.bf16.msra.mxu1 %v11468_v25  ;;  %9647 = vmatprep.mubr.msk.f32.mxu1 %vm10388_vm0, %v10387_v1 }
0x48b2   :  { %9851 = vmatprep.subr.bf16.mxu1 %v10389_v14 }
0x4983   :  { %v6897_v30 = vpop.f32.mrb[74].mxu1 }
0x4984   :  { %v6901_v0 = vadd.f32 %v6897_v30, %v6828_v7  ;;  %v9635_v49 = vpop.f32.mrb[75].mxu1 }
0x4985   :  { %v7154_v49 = vld [vmem:[#allocation2 + $0x2] sm:$0x3] }
0x4986   :  { %10096 = vtanh.f32 %v6901_v0  ;;  %v8932_v38 = vmul.f32 -1.442695, %v6901_v0  ;;  %v7153_v0 = vld [vmem:[#allocation2 + $0xc] sm:$0x3] }
0x4988   :  { %10098 = vpow2.f32 %v8932_v38 }
0x4990   :  { %v10097_v4 = vpop.eup %10096 }
0x4991   :  { %6911 = vrot.lane.b32.xlu0 %v10097_v4, %s10390_s21  ;;  %v7155_v4 = vsel %vm10718_vm4, %v7153_v0, %v7154_v49 }
0x4992   :  { %v10099_v10 = vpop.eup %10098 }
0x4993   :  { %v6905_v27 = vadd.f32 1.0, %v10099_v10 }
0x4995   :  { %10100 = vrcp.f32 %v6905_v27 }
0x499f   :  { %v10101_v11 = vpop.eup %10100 }
0x49a0   :  { %v6909_v16 = vmul.f32 %v10101_v11, %v6810_v6 }
0x4a03   :  { %v6912_v12 = vpop.permute.xlu0 %6911 }
0x4a04   :  { %v6914_v15 = vmul.f32 %v10101_v11, %v6912_v12 }
0x4a06   :  { %6916 = vrot.lane.b32.xlu1 %v6914_v15, %s10391_s25 }
0x4a78   :  { %v6917_v18 = vpop.permute.xlu1 %6916 }
0x4a79   :  { %v6919_v42 = vadd.f32 %v6917_v18, %v6909_v16 }
0x4a7b   :  { %10102 = vtanh.f32 %v6919_v42 }
0x4a85   :  { %v10103_v41 = vpop.eup %10102 }
0x4a86   :  { %6922 = vrot.lane.b32.xlu0 %v10103_v41, %s10392_s7 }
0x4af8   :  { %v6923_v9 = vpop.permute.xlu0 %6922 }
0x4af9   :  { %v11556_v48 = vmul.f32 %v10101_v11, %v6923_v9 }
0x4afb   :  { %6927 = vrot.lane.b32.xlu1 %v11556_v48, %s10393_s19 }
0x4b6d   :  { %v6928_v24 = vpop.permute.xlu1 %6927 }
0x4b6e   :  { %6930 = vst.msk [vmem:[#allocation3 + $0x6] sm:$0x3] %vm931_vm5, %v6928_v24  ;;  %9641 = vmatmul.mubr.msk.f32.vlgmr.msra.gmra.mrb[76].mxu0 %vm828_vm6, %v6928_v24 }
0x4b6f   :  { %9850 = vmatpush3.bf16.msra.mxu0 %v11468_v25  ;;  %9654 = vmatprep.mubr.msk.f32.mxu0 %vm10388_vm0, %v10387_v1 }
0x4b70   :  { %9664 = vmatprep.subr.mxu0 %v10387_v1 }
0x4c41   :  { %v7006_v13 = vpop.f32.mrb[76].mxu0 }
0x4c42   :  { %v7010_v34 = vadd.f32 %v7006_v13, %v6937_v28  ;;  %v9642_v37 = vpop.f32.mrb[77].mxu0 }
0x4c44   :  { %10104 = vtanh.f32 %v7010_v34  ;;  %v8934_v3 = vmul.f32 -1.442695, %v7010_v34  ;;  %v7371_v34 = vld [vmem:[%s11843_s13] sm:$0xff] }
0x4c46   :  { %10106 = vpow2.f32 %v8934_v3  ;;  %v7532_v3 = vld [vmem:[#allocation3 + $0x2] sm:$0x3] }
0x4c4e   :  { %v10105_v40 = vpop.eup %10104 }
0x4c4f   :  { %7020 = vrot.lane.b32.xlu0 %v10105_v40, %s10390_s21  ;;  %v7374_v40 = vld [vmem:[#allocation3] sm:$0x3] }
0x4c50   :  { %v10107_v44 = vpop.eup %10106 }
0x4c51   :  { %v7014_v46 = vadd.f32 1.0, %v10107_v44  ;;  %v7683_v44 = vld [vmem:[#allocation3 + $0x4] sm:$0x3] }
0x4c53   :  { %10108 = vrcp.f32 %v7014_v46  ;;  %v7834_v46 = vld [vmem:[#allocation3 + $0x6] sm:$0x3] }
0x4c5d   :  { %v10109_v47 = vpop.eup %10108 }
0x4c5e   :  { %v7018_v33 = vmul.f32 %v10109_v47, %v6919_v42 }
0x4cc1   :  { %v7021_v50 = vpop.permute.xlu0 %7020 }
0x4cc2   :  { %v7023_v52 = vmul.f32 %v10109_v47, %v7021_v50 }
0x4cc4   :  { %7025 = vrot.lane.b32.xlu1 %v7023_v52, %s10391_s25 }
0x4d36   :  { %v7026_v5 = vpop.permute.xlu1 %7025 }
0x4d37   :  { %v7028_v35 = vadd.f32 %v7026_v5, %v7018_v33  ;;  %v7262_v33 = vld [vmem:[#allocation2 + $0xe] sm:$0x3]  ;;  %v7263_v5 = vld [vmem:[#allocation2] sm:$0x3] }
0x4d39   :  { %10110 = vtanh.f32 %v7028_v35 }
0x4d43   :  { %v10111_v23 = vpop.eup %10110 }
0x4d44   :  { %7031 = vrot.lane.b32.xlu0 %v10111_v23, %s10392_s7 }
0x4db6   :  { %v7032_v26 = vpop.permute.xlu0 %7031 }
0x4db7   :  { %v11571_v54 = vmul.f32 %v10109_v47, %v7032_v26 }
0x4db9   :  { %7036 = vrot.lane.b32.xlu1 %v11571_v54, %s10393_s19 }
0x4e2b   :  { %v7037_v43 = vpop.permute.xlu1 %7036 }
0x4e2c   :  { %7039 = vst.msk [vmem:[#allocation3 + $0x8] sm:$0x3] %vm931_vm5, %v7037_v43  ;;  %9648 = vmatmul.mubr.msk.f32.vlgmr.msra.gmra.mrb[76].mxu1 %vm828_vm6, %v7037_v43 }
0x4e2d   :  { %9853 = vmatpush3.bf16.msra.mxu1 %v11468_v25  ;;  %9661 = vmatprep.mubr.msk.f32.mxu1 %vm10388_vm0, %v10387_v1 }
0x4e2e   :  { %9669 = vmatprep.subr.mxu1 %v10387_v1 }
0x4e33   :  { %v7985_v47 = vld [vmem:[#allocation3 + $0x8] sm:$0x3] }
0x4eff   :  { %v7115_v63 = vpop.f32.mrb[76].mxu1 }
0x4f00   :  { %v7119_v8 = vadd.f32 %v7115_v63, %v7046_v56  ;;  %v9649_v19 = vpop.f32.mrb[77].mxu1 }
0x4f02   :  { %10112 = vtanh.f32 %v7119_v8  ;;  %v8936_v58 = vmul.f32 -1.442695, %v7119_v8 }
0x4f04   :  { %10114 = vpow2.f32 %v8936_v58 }
0x4f0c   :  { %v10113_v32 = vpop.eup %10112 }
0x4f0d   :  { %7129 = vrot.lane.b32.xlu0 %v10113_v32, %s10390_s21 }
0x4f0e   :  { %v10115_v25 = vpop.eup %10114 }
0x4f0f   :  { %v7123_v61 = vadd.f32 1.0, %v10115_v25 }
0x4f11   :  { %10116 = vrcp.f32 %v7123_v61 }
0x4f1b   :  { %v10117_v2 = vpop.eup %10116 }
0x4f1c   :  { %v7127_v53 = vmul.f32 %v10117_v2, %v7028_v35  ;;  %v7264_v35 = vsel %vm10718_vm4, %v7262_v33, %v7263_v5 }
0x4f7f   :  { %v7130_v36 = vpop.permute.xlu0 %7129 }
0x4f80   :  { %v7132_v6 = vmul.f32 %v10117_v2, %v7130_v36 }
0x4f82   :  { %7134 = vrot.lane.b32.xlu1 %v7132_v6, %s10391_s25 }
0x4ff4   :  { %v7135_v57 = vpop.permute.xlu1 %7134 }
0x4ff5   :  { %v7137_v39 = vadd.f32 %v7135_v57, %v7127_v53 }
0x4ff7   :  { %10118 = vtanh.f32 %v7137_v39 }
0x5001   :  { %v10119_v22 = vpop.eup %10118 }
0x5002   :  { %7140 = vrot.lane.b32.xlu0 %v10119_v22, %s10392_s7 }
0x5074   :  { %v7141_v59 = vpop.permute.xlu0 %7140 }
0x5075   :  { %v11586_v7 = vmul.f32 %v10117_v2, %v7141_v59 }
0x5077   :  { %7145 = vrot.lane.b32.xlu1 %v11586_v7, %s10393_s19 }
0x50e9   :  { %v7146_v30 = vpop.permute.xlu1 %7145 }
0x50ea   :  { %7148 = vst.msk [vmem:[#allocation3 + $0xa] sm:$0x3] %vm931_vm5, %v7146_v30  ;;  %9655 = vmatmul.mubr.msk.f32.vlgmr.msra.gmra.mrb[78].mxu0 %vm828_vm6, %v7146_v30 }
0x50eb   :  { %9666 = vmatprep.mubr.msk.f32.mxu0 %vm10388_vm0, %v10387_v1 }
0x50f1   :  { %v8136_v50 = vld [vmem:[#allocation3 + $0xa] sm:$0x3] }
0x51bd   :  { %v7224_v38 = vpop.f32.mrb[78].mxu0 }
0x51be   :  { %v7228_v10 = vadd.f32 %v7224_v38, %v7155_v4  ;;  %v9656_v27 = vpop.f32.mrb[79].mxu0 }
0x51bf   :  { %v11673_v27 = vld [vmem:[%s11843_s13 + $0x8] sm:$0xff] }
0x51c0   :  { %10120 = vtanh.f32 %v7228_v10  ;;  %v8938_v12 = vmul.f32 -1.442695, %v7228_v10  ;;  %9665 = vmatpush3.msra.mxu0 %v11673_v27 }
0x51c1   :  { %9674 = vmatprep.subr.mxu0 %v10387_v1 }
0x51c2   :  { %10122 = vpow2.f32 %v8938_v12 }
0x51ca   :  { %v10121_v11 = vpop.eup %10120 }
0x51cb   :  { %7238 = vrot.lane.b32.xlu0 %v10121_v11, %s10390_s21 }
0x51cc   :  { %v10123_v15 = vpop.eup %10122 }
0x51cd   :  { %v7232_v16 = vadd.f32 1.0, %v10123_v15 }
0x51cf   :  { %10124 = vrcp.f32 %v7232_v16 }
0x51d9   :  { %v10125_v18 = vpop.eup %10124 }
0x51da   :  { %v7236_v9 = vmul.f32 %v10125_v18, %v7137_v39 }
0x523d   :  { %v7239_v42 = vpop.permute.xlu0 %7238 }
0x523e   :  { %v7241_v41 = vmul.f32 %v10125_v18, %v7239_v42 }
0x5240   :  { %7243 = vrot.lane.b32.xlu1 %v7241_v41, %s10391_s25 }
0x52b2   :  { %v7244_v24 = vpop.permute.xlu1 %7243 }
0x52b3   :  { %v11598_v51 = vadd.f32 %v7244_v24, %v7236_v9 }
0x52b5   :  { %10126 = vtanh.f32 %v11598_v51 }
0x52bf   :  { %v10127_v29 = vpop.eup %10126 }
0x52c0   :  { %7249 = vrot.lane.b32.xlu0 %v10127_v29, %s10392_s7  ;;  %v8588_v29 = vld [vmem:[%s11845_s15] sm:$0xff] }
0x5332   :  { %v7250_v28 = vpop.permute.xlu0 %7249 }
0x5333   :  { %v11602_v13 = vmul.f32 %v10125_v18, %v7250_v28  ;;  %v8589_v28 = vld [vmem:[%s11845_s15 + $0x8] sm:$0xff] }
0x5335   :  { %7254 = vrot.lane.b32.xlu1 %v11602_v13, %s10393_s19 }
0x53a7   :  { %v7255_v37 = vpop.permute.xlu1 %7254 }
0x53a8   :  { %7257 = vst.msk [vmem:[#allocation3 + $0xc] sm:$0x3] %vm931_vm5, %v7255_v37  ;;  %9662 = vmatmul.mubr.msk.f32.vlgmr.msra.gmra.mrb[78].mxu1 %vm828_vm6, %v7255_v37 }
0x53a9   :  { %9670 = vmatpush3.msra.mxu1 %v7371_v34  ;;  %9671 = vmatprep.mubr.msk.f32.mxu1 %vm10388_vm0, %v10387_v1 }
0x53aa   :  { %9679 = vmatprep.subr.mxu1 %v10387_v1 }
0x53ac   :  { %9672 = vmatmul.mubr.msk.f32.vlgmr.msra.gmra.mrb[80].mxu1 %vm1721_vm7, %v7374_v40  ;;  %v11748_v40 = vld [vmem:[%s11844_s14] ss:$0 sm:$0xff] }
0x53ad   :  { %9680 = vmatpush3.msra.mxu1 %v7371_v34  ;;  %9681 = vmatprep.mubr.msk.f32.mxu1 %vm10388_vm0, %v10387_v1 }
0x53ae   :  { %9689 = vmatprep.subr.mxu1 %v10387_v1 }
0x53af   :  { %v8287_v52 = vld [vmem:[#allocation3 + $0xc] sm:$0x3] }
0x53b0   :  { %9682 = vmatmul.mubr.msk.f32.vlgmr.msra.gmra.mrb[82].mxu1 %vm1721_vm7, %v7532_v3 }
0x53b1   :  { %9690 = vmatpush3.msra.mxu1 %v7371_v34  ;;  %9691 = vmatprep.mubr.msk.f32.mxu1 %vm10388_vm0, %v10387_v1 }
0x53b2   :  { %9699 = vmatprep.subr.mxu1 %v10387_v1 }
0x53b4   :  { %9692 = vmatmul.mubr.msk.f32.vlgmr.msra.gmra.mrb[84].mxu1 %vm1721_vm7, %v7683_v44 }
0x53b5   :  { %9700 = vmatpush3.msra.mxu1 %v7371_v34  ;;  %9701 = vmatprep.mubr.msk.f32.mxu1 %vm10388_vm0, %v10387_v1 }
0x53b6   :  { %9709 = vmatprep.subr.mxu1 %v10387_v1 }
0x53b8   :  { %9702 = vmatmul.mubr.msk.f32.vlgmr.msra.gmra.mrb[86].mxu1 %vm1721_vm7, %v7834_v46 }
0x53b9   :  { %9710 = vmatpush3.msra.mxu1 %v7371_v34  ;;  %9711 = vmatprep.mubr.msk.f32.mxu1 %vm10388_vm0, %v10387_v1 }
0x53ba   :  { %9719 = vmatprep.subr.mxu1 %v10387_v1 }
0x53bc   :  { %9712 = vmatmul.mubr.msk.f32.vlgmr.msra.gmra.mrb[88].mxu1 %vm1721_vm7, %v7985_v47 }
0x53bd   :  { %9720 = vmatpush3.msra.mxu1 %v7371_v34  ;;  %9721 = vmatprep.mubr.msk.f32.mxu1 %vm10388_vm0, %v10387_v1 }
0x53be   :  { %9729 = vmatprep.subr.mxu1 %v10387_v1 }
0x53c0   :  { %9722 = vmatmul.mubr.msk.f32.vlgmr.msra.gmra.mrb[90].mxu1 %vm1721_vm7, %v8136_v50 }
0x53c1   :  { %9730 = vmatpush3.msra.mxu1 %v7371_v34  ;;  %9731 = vmatprep.mubr.msk.f32.mxu1 %vm10388_vm0, %v10387_v1 }
0x53c2   :  { %9739 = vmatprep.subr.mxu1 %v10387_v1 }
0x53c4   :  { %9732 = vmatmul.mubr.msk.f32.vlgmr.msra.gmra.mrb[92].mxu1 %vm1721_vm7, %v8287_v52 }
0x53c5   :  { %9740 = vmatpush3.msra.mxu1 %v7371_v34  ;;  %9741 = vmatprep.mubr.msk.f32.mxu1 %vm10388_vm0, %v10387_v1  ;;  %v9855_v34 = vpack.c.bf16 %v8589_v28, %v8588_v29 }
0x53c6   :  { %9857 = vmatprep.subr.bf16.mxu1 %v10389_v14 }
0x547b   :  { %v7333_v23 = vpop.f32.mrb[78].mxu1 }
0x547c   :  { %v7337_v26 = vadd.f32 %v7333_v23, %v7264_v35  ;;  %v9663_v43 = vpop.f32.mrb[79].mxu1 }
0x547e   :  { %10128 = vtanh.f32 %v7337_v26  ;;  %v8940_v57 = vmul.f32 -1.442695, %v7337_v26 }
0x547f   :  { %v11644_v55 = vpop.f32.mrb[80].mxu1 }
0x5480   :  { %v9673_v31 = vpop.f32.mrb[81].mxu1  ;;  %10130 = vpow2.f32 %v8940_v57 }
0x5483   :  { %v11646_v56 = vpop.f32.mrb[82].mxu1 }
0x5484   :  { %v9683_v63 = vpop.f32.mrb[83].mxu1 }
0x5487   :  { %v11648_v8 = vpop.f32.mrb[84].mxu1 }
0x5488   :  { %v10129_v19 = vpop.eup %10128  ;;  %v9693_v32 = vpop.f32.mrb[85].mxu1 }
0x5489   :  { %7347 = vrot.lane.b32.xlu0 %v10129_v19, %s10390_s21 }
0x548a   :  { %v10131_v39 = vpop.eup %10130 }
0x548b   :  { %v11651_v58 = vpop.f32.mrb[86].mxu1  ;;  %v7341_v22 = vadd.f32 1.0, %v10131_v39 }
0x548c   :  { %v9703_v45 = vpop.f32.mrb[87].mxu1 }
0x548d   :  { %10132 = vrcp.f32 %v7341_v22 }
0x548f   :  { %v11653_v25 = vpop.f32.mrb[88].mxu1 }
0x5490   :  { %v9713_v61 = vpop.f32.mrb[89].mxu1 }
0x5493   :  { %v11655_v2 = vpop.f32.mrb[90].mxu1 }
0x5494   :  { %v9723_v36 = vpop.f32.mrb[91].mxu1 }
0x5497   :  { %v11657_v6 = vpop.f32.mrb[92].mxu1  ;;  %v10133_v59 = vpop.eup %10132 }
0x5498   :  { %v9733_v53 = vpop.f32.mrb[93].mxu1  ;;  %v7345_v49 = vmul.f32 %v10133_v59, %v11598_v51 }
0x54fb   :  { %v7348_v30 = vpop.permute.xlu0 %7347 }
0x54fc   :  { %v7350_v0 = vmul.f32 %v10133_v59, %v7348_v30 }
0x54fe   :  { %7352 = vrot.lane.b32.xlu1 %v7350_v0, %s10391_s25  ;;  %s10395_s25 = smov [#allocation21]  }
0x5570   :  { %v7353_v4 = vpop.permute.xlu1 %7352 }
0x5571   :  { %v7355_v38 = vadd.f32 %v7353_v4, %v7345_v49 }
0x5573   :  { %10134 = vtanh.f32 %v7355_v38 }
0x557d   :  { %v10135_v10 = vpop.eup %10134 }
0x557e   :  { %7358 = vrot.lane.b32.xlu0 %v10135_v10, %s10392_s7 }
0x5582   :  { %7258 = vrot.lane.b32.xlu0 %v11602_v13, %s10394_s9 }
0x5586   :  { %7040 = vrot.lane.b32.xlu0 %v11571_v54, %s10394_s9 }
0x558a   :  { %6822 = vrot.lane.b32.xlu0 %v11541_v60, %s10394_s9 }
0x558e   :  { %6604 = vrot.lane.b32.xlu0 %v11511_v20, %s10394_s9 }
0x55f0   :  { %v7359_v11 = vpop.permute.xlu0 %7358 }
0x55f1   :  { %v11677_v12 = vmul.f32 %v10133_v59, %v7359_v11  ;;  %v8965_v59 = vld [vmem:[%s11846_s16] ss:$0 sm:$0xff] }
0x55f3   :  { %7367 = vrot.lane.b32.xlu1 %v11677_v12, %s10394_s9 }
0x55f4   :  { %v7259_v54 = vpop.permute.xlu0 %7258 }
0x55f5   :  { %7261 = vst.msk [vmem:[#allocation4 + $0x2] sm:$0x3] %vm931_vm5, %v7259_v54 }
0x55f7   :  { %7149 = vrot.lane.b32.xlu1 %v11586_v7, %s10394_s9 }
0x55f8   :  { %v7041_v20 = vpop.permute.xlu0 %7040 }
0x55f9   :  { %7043 = vst.msk [vmem:[#allocation4 + $0x6] sm:$0x3] %vm931_vm5, %v7041_v20 }
0x55fb   :  { %6931 = vrot.lane.b32.xlu1 %v11556_v48, %s10394_s9 }
0x55fc   :  { %v6823_v60 = vpop.permute.xlu0 %6822 }
0x55fd   :  { %6825 = vst.msk [vmem:[#allocation4 + $0xa] sm:$0x3] %vm931_vm5, %v6823_v60  ;;  %v8682_v60 = vld [vmem:[%s11847_s17 + $0x8] sm:$0xff] }
0x55ff   :  { %6713 = vrot.lane.b32.xlu1 %v11526_v62, %s10394_s9  ;;  %v7533_v62 = vld [vmem:[#allocation4 + $0x2] sm:$0x3] }
0x5600   :  { %v6605_v15 = vpop.permute.xlu0 %6604  ;;  %v7835_v24 = vld [vmem:[#allocation4 + $0x6] sm:$0x3] }
0x5601   :  { %6607 = vst.msk [vmem:[#allocation4 + $0xe] sm:$0x3] %vm931_vm5, %v6605_v15 }
0x5603   :  { %3799 = vrot.lane.b32.xlu1 %v11441_v21, %s10378_s1 }
0x5604   :  { %v8137_v51 = vld [vmem:[#allocation4 + $0xa] sm:$0x3] }
0x5608   :  { %v8439_v37 = vld [vmem:[#allocation4 + $0xe] sm:$0x3] }
0x5665   :  { %v7368_v16 = vpop.permute.xlu1 %7367 }
0x5666   :  { %7370 = vst.msk [vmem:[#allocation4] sm:$0x3] %vm931_vm5, %v7368_v16 }
0x5669   :  { %v7150_v7 = vpop.permute.xlu1 %7149 }
0x566a   :  { %7152 = vst.msk [vmem:[#allocation4 + $0x4] sm:$0x3] %vm931_vm5, %v7150_v7 }
0x566d   :  { %v6932_v18 = vpop.permute.xlu1 %6931  ;;  %v7375_v48 = vld [vmem:[#allocation4] sm:$0x3] }
0x566e   :  { %6934 = vst.msk [vmem:[#allocation4 + $0x8] sm:$0x3] %vm931_vm5, %v6932_v18  ;;  %9667 = vmatmul.mubr.msk.f32.vlgmr.msra.gmra.mrb[80].mxu0 %vm1721_vm7, %v7375_v48 }
0x566f   :  { %9675 = vmatpush3.msra.mxu0 %v11673_v27  ;;  %9676 = vmatprep.mubr.msk.f32.mxu0 %vm10388_vm0, %v10387_v1 }
0x5670   :  { %9684 = vmatprep.subr.mxu0 %v10387_v1 }
0x5671   :  { %v6714_v21 = vpop.permute.xlu1 %6713  ;;  %v7684_v41 = vld [vmem:[#allocation4 + $0x4] sm:$0x3] }
0x5672   :  { %6716 = vst.msk [vmem:[#allocation4 + $0xc] sm:$0x3] %vm931_vm5, %v6714_v21  ;;  %9677 = vmatmul.mubr.msk.f32.vlgmr.msra.gmra.mrb[82].mxu0 %vm1721_vm7, %v7533_v62 }
0x5673   :  { %9685 = vmatpush3.msra.mxu0 %v11673_v27  ;;  %9686 = vmatprep.mubr.msk.f32.mxu0 %vm10388_vm0, %v10387_v1 }
0x5674   :  { %9694 = vmatprep.subr.mxu0 %v10387_v1 }
0x5675   :  { %v3800_v42 = vpop.permute.xlu1 %3799 }
0x5676   :  { %v3802_v9 = vsel %vm1721_vm7, %v11450_v17, %v3800_v42  ;;  %9687 = vmatmul.mubr.msk.f32.vlgmr.msra.gmra.mrb[84].mxu0 %vm1721_vm7, %v7684_v41  ;;  %v7986_v17 = vld [vmem:[#allocation4 + $0x8] sm:$0x3] }
0x5677   :  { %9695 = vmatpush3.msra.mxu0 %v11673_v27  ;;  %9696 = vmatprep.mubr.msk.f32.mxu0 %vm10388_vm0, %v10387_v1  ;;  %3804 = vst.msk [vmem:[#allocation21] sm:$0x3] %vm3803_vm8, %v3802_v9 }
0x5678   :  { %9704 = vmatprep.subr.mxu0 %v10387_v1 }
0x5679   :  { %v8288_v13 = vld [vmem:[#allocation4 + $0xc] sm:$0x3] }
0x567a   :  { %9697 = vmatmul.mubr.msk.f32.vlgmr.msra.gmra.mrb[86].mxu0 %vm1721_vm7, %v7835_v24 }
0x567b   :  { %9705 = vmatpush3.msra.mxu0 %v11673_v27  ;;  %9706 = vmatprep.mubr.msk.f32.mxu0 %vm10388_vm0, %v10387_v1 }
0x567c   :  { %9714 = vmatprep.subr.mxu0 %v10387_v1 }
0x567e   :  { %9707 = vmatmul.mubr.msk.f32.vlgmr.msra.gmra.mrb[88].mxu0 %vm1721_vm7, %v7986_v17 }
0x567f   :  { %9715 = vmatpush3.msra.mxu0 %v11673_v27  ;;  %9716 = vmatprep.mubr.msk.f32.mxu0 %vm10388_vm0, %v10387_v1 }
0x5680   :  { %9724 = vmatprep.subr.mxu0 %v10387_v1 }
0x5682   :  { %9717 = vmatmul.mubr.msk.f32.vlgmr.msra.gmra.mrb[90].mxu0 %vm1721_vm7, %v8137_v51 }
0x5683   :  { %9725 = vmatpush3.msra.mxu0 %v11673_v27  ;;  %9726 = vmatprep.mubr.msk.f32.mxu0 %vm10388_vm0, %v10387_v1 }
0x5684   :  { %9734 = vmatprep.subr.mxu0 %v10387_v1 }
0x5686   :  { %9727 = vmatmul.mubr.msk.f32.vlgmr.msra.gmra.mrb[92].mxu0 %vm1721_vm7, %v8288_v13 }
0x5687   :  { %9735 = vmatpush3.msra.mxu0 %v11673_v27  ;;  %9736 = vmatprep.mubr.msk.f32.mxu0 %vm10388_vm0, %v10387_v1 }
0x5688   :  { %9854 = vmatprep.subr.bf16.mxu0 %v10389_v14 }
0x568a   :  { %9737 = vmatmul.mubr.msk.f32.vlgmr.msra.gmra.mrb[94].mxu0 %vm1721_vm7, %v8439_v37 }
0x568b   :  { %9856 = vmatpush3.bf16.msra.mxu0 %v9855_v34  ;;  %9748 = vmatprep.mubr.msk.f32.mxu0 %vm10388_vm0, %v10387_v1 }
0x568e   :  { %9749 = vmatmul.mubr.msk.f32.vlgmr.msra.gmra.mrb[96].mxu0 %vm828_vm6, %v3802_v9 }
0x5741   :  { %v7445_v3 = vpop.f32.mrb[80].mxu0 }
0x5742   :  { %v7519_v44 = vadd.f32 %v11644_v55, %v7445_v3  ;;  %v9668_v46 = vpop.f32.mrb[81].mxu0 }
0x5744   :  { %v7528_v14 = vadd.f32 %v11748_v40, %v7519_v44 }
0x5745   :  { %v7603_v47 = vpop.f32.mrb[82].mxu0 }
0x5746   :  { %8944 = vst.msk [vmem:[%s11850_s20 + $0xe] sm:$0x3] %vm7530_vm9, %v7528_v14  ;;  %v7677_v50 = vadd.f32 %v11646_v56, %v7603_v47  ;;  %v9678_v52 = vpop.f32.mrb[83].mxu0 }
0x5748   :  { %v7680_v33 = vadd.f32 %v11748_v40, %v7677_v50 }
0x5749   :  { %v7754_v5 = vpop.f32.mrb[84].mxu0 }
0x574a   :  { %8947 = vst.msk [vmem:[%s11850_s20 + $0xc] sm:$0x3] %vm7530_vm9, %v7680_v33  ;;  %v7828_v35 = vadd.f32 %v11648_v8, %v7754_v5  ;;  %v9688_v23 = vpop.f32.mrb[85].mxu0 }
0x574c   :  { %v7831_v26 = vadd.f32 %v11748_v40, %v7828_v35 }
0x574d   :  { %v7905_v43 = vpop.f32.mrb[86].mxu0 }
0x574e   :  { %8950 = vst.msk [vmem:[%s11850_s20 + $0xa] sm:$0x3] %vm7530_vm9, %v7831_v26  ;;  %v7979_v55 = vadd.f32 %v11651_v58, %v7905_v43  ;;  %v9698_v31 = vpop.f32.mrb[87].mxu0 }
0x5750   :  { %v7982_v56 = vadd.f32 %v11748_v40, %v7979_v55 }
0x5751   :  { %v8056_v63 = vpop.f32.mrb[88].mxu0 }
0x5752   :  { %8953 = vst.msk [vmem:[%s11850_s20 + $0x8] sm:$0x3] %vm7530_vm9, %v7982_v56  ;;  %v8130_v8 = vadd.f32 %v11653_v25, %v8056_v63  ;;  %v9708_v19 = vpop.f32.mrb[89].mxu0 }
0x5754   :  { %v8133_v32 = vadd.f32 %v11748_v40, %v8130_v8 }
0x5755   :  { %v8207_v45 = vpop.f32.mrb[90].mxu0 }
0x5756   :  { %8956 = vst.msk [vmem:[%s11850_s20 + $0x6] sm:$0x3] %vm7530_vm9, %v8133_v32  ;;  %v8281_v58 = vadd.f32 %v11655_v2, %v8207_v45  ;;  %v9718_v61 = vpop.f32.mrb[91].mxu0 }
0x5758   :  { %v8284_v36 = vadd.f32 %v11748_v40, %v8281_v58 }
0x5759   :  { %v8358_v53 = vpop.f32.mrb[92].mxu0 }
0x575a   :  { %8959 = vst.msk [vmem:[%s11850_s20 + $0x4] sm:$0x3] %vm7530_vm9, %v8284_v36  ;;  %v8432_v25 = vadd.f32 %v11657_v6, %v8358_v53  ;;  %v9728_v57 = vpop.f32.mrb[93].mxu0 }
0x575c   :  { %v8435_v39 = vadd.f32 %v11748_v40, %v8432_v25 }
0x575d   :  { %v8509_v22 = vpop.f32.mrb[94].mxu0 }
0x575e   :  { %8962 = vst.msk [vmem:[%s11850_s20 + $0x2] sm:$0x3] %vm7530_vm9, %v8435_v39  ;;  %v9738_v2 = vpop.f32.mrb[95].mxu0 }
0x5761   :  { %v8666_v30 = vpop.f32.mrb[96].mxu0 }
0x5762   :  { %v8667_v0 = vadd.f32 %v8965_v59, %v8666_v30  ;;  %v9750_v49 = vpop.f32.mrb[97].mxu0 }
0x5764   :  { %v8670_v4 = vsel %vm3803_vm8, %v8667_v0, -inf }
0x5765   :  { %8671 = vmax.xlane.f32.xlu0 %v8670_v4 }
0x577b   :  { %7363 = vrot.lane.b32.xlu0 %v11677_v12, %s10393_s19  ;;  %v8681_v12 = vld [vmem:[%s11847_s17] sm:$0xff]  ;;  %s8777_s17 = sshll.u32 %s10395_s25, 4  ;;  %s8778_s17 = int_to_ptr.vmem [resolvable:$true] %s8777_s17 }
0x577c   :  { %v9858_v15 = vpack.c.bf16 %v8682_v60, %v8681_v12  ;;  %s10342_s13 = scalar_lea.vmem %s8778_s17, 32  ;;  %p10347_p3 = scmp.lt.s32.totalorder %s8778_s17, %s8778_s17 }
0x577d   :  { %p10343_p2 = scmp.ne.s32.totalorder %s8778_s17, %s10342_s13  ;;  %p10348_p4 = scmp.lt.s32.totalorder %s10342_s13, %s10342_s13 }
0x577f   :  { %p10349_p5 = por %p10348_p4, %p10347_p3 }
0x5781   :  { %p10350_p6 = pnand %p10349_p5, %p10343_p2 }
0x57f2   :  { %v8672_v6 = vpop.xlane.xlu0 %8671 }
0x57f3   :  { %v8673_v38 = vsub.f32 %v8667_v0, %v8672_v6 }
0x57f5   :  { %v8674_v10 = vmul.f32 1.442695, %v8673_v38 }
0x57f6   :  { %v7364_v27 = vpop.permute.xlu0 %7363 }
0x57f7   :  { %10136 = vpow2.f32 %v8674_v10  ;;  %7366 = vst.msk [vmem:[#allocation3 + $0xe] sm:$0x3] %vm931_vm5, %v7364_v27 }
0x57fe   :  { %v8438_v11 = vld [vmem:[#allocation3 + $0xe] sm:$0x3] }
0x57ff   :  { %9742 = vmatmul.mubr.msk.f32.vlgmr.msra.gmra.mrb[94].mxu1 %vm1721_vm7, %v8438_v11 }
0x5800   :  { %9755 = vmatprep.mubr.msk.f32.mxu1 %vm10388_vm0, %v10387_v1  ;;  %9859 = vmatpush3.bf16.msra.mxu1 %v9858_v15 }
0x5801   :  { %v10137_v54 = vpop.eup %10136 }
0x5802   :  { %v8676_v20 = vsel %vm3803_vm8, %v10137_v54, 0.0 }
0x5803   :  { %8677 = vadd.xlane.f32.xlu1 %v8676_v20 }
0x5890   :  { %v8678_v16 = vpop.xlane.xlu1 %8677 }
0x5891   :  { %10138 = vrcp.f32 %v8678_v16 }
0x589b   :  { %v10139_v7 = vpop.eup %10138 }
0x589c   :  { %v8680_v18 = vmul.f32 %v10139_v7, %v10137_v54 }
0x589e   :  { %9756 = vmatmul.mubr.msk.f32.vlgmr.msra.gmra.mrb[96].mxu1 %vm828_vm6, %v8680_v18 }
0x58d2   :  { %v8582_v1 = vpop.f32.mrb[94].mxu1 }
0x58d3   :  { %v8583_v48 = vadd.f32 %v8582_v1, %v8509_v22  ;;  %v9743_v21 = vpop.f32.mrb[95].mxu1 }
0x58d5   :  { %v8586_v62 = vadd.f32 %v11748_v40, %v8583_v48 }
0x58d7   :  { %8587 = vst.msk [vmem:[%s11850_s20] sm:$0x3] %vm7530_vm9, %v8586_v62 }
0x58d8   :  { %10353 = shalt.err (!%p10350_p6)
}
0x58d9   :  { %s11875_s9 = sld [smem:[#allocation34_spill]] }
0x58df   :  { %s10354_s15 = scalar_lea.hbm %s11875_s9, 32 }
0x58e0   :  { %p10355_p7 = scmp.ne.s32.totalorder %s11875_s9, %s10354_s15  ;;  %p10358_p8 = scmp.lt.u32.totalorder %s10354_s15, %s11875_s9 }
0x58e2   :  { %p10360_p9 = pnand %p10358_p8, %p10355_p7 }
0x58e4   :  { %10363 = shalt.err (!%p10360_p9)
}
0x58e5   :  { %8780 = dma.vmem_to_hbm [thread:$0]  %s8778_s17, 32, %s11875_s9, [#allocation8]   ;;  %v8967_v42 = vld [vmem:[#allocation5] ss:$0 sm:$0xff]  ;;  %vm8769_vm10 = vcmask 1024  }
0x58e6   :  { %s11876_s2 = sld [smem:[#allocation35_spill]] }
0x5971   :  { %v8759_v41 = vpop.f32.mrb[96].mxu1 }
0x5972   :  { %v8760_v9 = vadd.f32 %v8967_v42, %v8759_v41  ;;  %v9757_v24 = vpop.f32.mrb[97].mxu1 }
0x5974   :  { %v8969_v17 = vmul.f32 -1.442695, %v8760_v9 }
0x5976   :  { %10140 = vpow2.f32 %v8969_v17 }
0x5980   :  { %v10141_v51 = vpop.eup %10140 }
0x5981   :  { %v8766_v29 = vadd.f32 1.0, %v10141_v51 }
0x5983   :  { %10142 = vrcp.f32 %v8766_v29 }
0x598d   :  { %v10143_v28 = vpop.eup %10142 }
0x598e   :  { %8770 = vst.msk [vmem:[%s11876_s2] sm:$0x3] %vm8769_vm10, %v10143_v28 }
0x598f   :  { %10374 = dma.done.wait [#allocation8], 32  }
0x5990   :  { %10375 = vsyncadd [#allocation8], 4294967264 }
0x5991   :  { %8792 = vsyncpa [#allocation7], 1 }
0x5992   :  { %8793 = vsyncpa [#allocation10], 1 }
0x5993   :  { %8794 = vsyncpa [#allocation13], 1 }
0x5994   :  { %8795 = vsyncpa [#allocation16], 1 }
0x5995   :  { %8796 = vsyncpa [#allocation19], 1 }
0x5996   :  { %8797 = vsyncpa [#allocation8], 1 }

</bundles_post_ra>
